<compile_context>
chip_gen: v5e
topology: v5e:2x2
jax: 0.10.0
libtpu: 0.0.40
codegen_flags: <defaults>
</compile_context>

<pallas_src>
import functools

import jax
import jax.numpy as jnp
from jax.experimental import pallas as pl
from jax.experimental.pallas import tpu as pltpu

LEAKY_SLOPE = 0.2          # nn.LeakyReLU(0.2) and GATv2 negative_slope
EPS = 1e-5
NEG_INF = -1e30            # masked-softmax sentinel
NEG_MAX = -3.4e38          # segmented-max sentinel


def _leaky(x):
    return jnp.where(x > 0, x, LEAKY_SLOPE * x)


def _round_up(v, m):
    return ((v + m - 1) // m) * m


_VMEM_LIMIT_CACHE = None


def _vmem_limit_bytes():
    """Generation-aware scoped-VMEM limit (~3/4 of physical, capped at 112 MiB)."""
    global _VMEM_LIMIT_CACHE
    if _VMEM_LIMIT_CACHE is None:
        cap = 64 * 1024 * 1024
        try:
            cap = int(getattr(pltpu.get_tpu_info(), "vmem_capacity_bytes", cap))
        except Exception:
            pass
        _VMEM_LIMIT_CACHE = int(max(32 * 1024 * 1024,
                                    min(cap * 3 // 4, 112 * 1024 * 1024)))
    return _VMEM_LIMIT_CACHE


def _cparams(sem):
    return pltpu.CompilerParams(dimension_semantics=sem,
                                vmem_limit_bytes=_vmem_limit_bytes())


def _full(shape):
    n = len(shape)
    return pl.BlockSpec(shape, lambda i, n=n: (0,) * n)


# ----------------------------------------------------------------------------
# Kernel 1: fused block-diagonal input embedding + BatchNorm1d + LeakyReLU
# ----------------------------------------------------------------------------
def _input_embed_kernel(x_ref, w_ref, b_ref, g_ref, beta_ref, o_ref, *, eps):
    acc = jnp.dot(x_ref[...], w_ref[...],
                  preferred_element_type=jnp.float32) + b_ref[...]
    mean = jnp.mean(acc, axis=0, keepdims=True)
    var = jnp.mean(jnp.square(acc - mean), axis=0, keepdims=True)  # biased (train BN)
    y = (acc - mean) * jax.lax.rsqrt(var + eps) * g_ref[...] + beta_ref[...]
    o_ref[...] = _leaky(y).astype(o_ref.dtype)


def pallas_input_embed(x_bf16, w, b, gamma, beta):
    # TODO(synk): add a row grid + two-pass BatchNorm once N outgrows one VMEM block.
    M, K = x_bf16.shape
    P = w.shape[1]
    return pl.pallas_call(
        functools.partial(_input_embed_kernel, eps=EPS),
        grid=(1,),
        in_specs=[_full((M, K)), _full((K, P)), _full((1, P)),
                  _full((1, P)), _full((1, P))],
        out_specs=_full((M, P)),
        out_shape=jax.ShapeDtypeStruct((M, P), jnp.bfloat16),
        compiler_params=_cparams(("arbitrary",)),
    )(x_bf16, w, b, gamma, beta)


# ----------------------------------------------------------------------------
# Kernel 2: dual-branch fused GATv2 + InstanceNorm + LeakyReLU (object graph)
#   grid=(2,) "parallel" over the two independent branches, shared x block,
#   lane-dense fused-concat output (branch b -> column block b).
# ----------------------------------------------------------------------------
def _gat_dual_kernel(x_ref, adj_ref, e_ref, wlr_ref, blr_ref, att_ref, we_ref,
                     o_ref, *, C, C_pad, eps):
    b = pl.program_id(0)
    x = x_ref[...]                       # (N, K) bf16 (resident across both branches)
    adj = adj_ref[0]                     # (N, N) bf16 0/1 mask incl. self loops
    e = e_ref[0]                         # (N, N) f32 scalar edge attr
    wlr = wlr_ref[0]                     # (K, 2*C_pad) bf16  [lin_l | lin_r]
    blr = blr_ref[0]                     # (1, 2*C_pad) f32

    xlr = jnp.dot(x, wlr, preferred_element_type=jnp.float32) + blr   # (N, 2*C_pad)
    xl = xlr[:, :C_pad]                  # lin_l(x): source / message features
    xr = xlr[:, C_pad:]                  # lin_r(x): target features
    xl_t = xl.T                          # single in-kernel XLU transpose (C_pad, N)

    # attention logits accumulated channel-by-channel: only (N, N) in VMEM.
    # TODO(synk): chunk the channel loop for very large out_channels.
    logits = jnp.zeros_like(e)
    for c in range(C):
        a_c = att_ref[b, c]              # SMEM scalar
        w_c = we_ref[b, c]               # SMEM scalar (lin_edge weight, edge_dim == 1)
        logits = logits + a_c * _leaky(xr[:, c:c + 1] + xl_t[c:c + 1, :] + w_c * e)

    mask = adj > 0
    logits = jnp.where(mask, logits, NEG_INF)
    logits = logits - jnp.max(logits, axis=1, keepdims=True)
    p = jnp.where(mask, jnp.exp(logits), 0.0)
    alpha = p / jnp.sum(p, axis=1, keepdims=True)                     # exact softmax

    out = jnp.dot(alpha.astype(jnp.bfloat16), xl.astype(jnp.bfloat16),
                  preferred_element_type=jnp.float32)                 # (N, C_pad)
    # GATv2 output bias omitted: InstanceNorm(affine=False) right after cancels it.
    mean = jnp.mean(out, axis=0, keepdims=True)
    var = jnp.mean(jnp.square(out - mean), axis=0, keepdims=True)
    o_ref[...] = _leaky((out - mean) * jax.lax.rsqrt(var + eps))


def pallas_gat_dual(x_bf16, adj_stack, e_stack, wlr, blr, att, we, C, C_pad):
    N, K = x_bf16.shape
    # TODO(synk): switch to pltpu.CORE_PARALLEL if v7x profiling shows the two
    #             branches serialized on one TensorCore.
    return pl.pallas_call(
        functools.partial(_gat_dual_kernel, C=C, C_pad=C_pad, eps=EPS),
        grid=(2,),
        in_specs=[
            pl.BlockSpec((N, K), lambda b: (0, 0)),            # shared x, stays resident
            pl.BlockSpec((1, N, N), lambda b: (b, 0, 0)),      # adj (bf16)
            pl.BlockSpec((1, N, N), lambda b: (b, 0, 0)),      # edge attr (f32)
            pl.BlockSpec((1, K, 2 * C_pad), lambda b: (b, 0, 0)),
            pl.BlockSpec((1, 1, 2 * C_pad), lambda b: (b, 0, 0)),
            pl.BlockSpec(memory_space=pltpu.MemorySpace.SMEM),  # att (2, C)
            pl.BlockSpec(memory_space=pltpu.MemorySpace.SMEM),  # we  (2, C)
        ],
        out_specs=pl.BlockSpec((N, C_pad), lambda b: (0, b)),   # fused concat, lane-dense
        out_shape=jax.ShapeDtypeStruct((N, 2 * C_pad), jnp.float32),
        compiler_params=_cparams(("parallel",)),
    )(x_bf16, adj_stack, e_stack, wlr, blr, att, we)


# ----------------------------------------------------------------------------
# Kernel 3: img_fc + single-layer LSTM (batch_first, batch=1) fused
# ----------------------------------------------------------------------------
def _img_lstm_kernel(img_ref, wimg_ref, bimg_ref, wih_ref, b_ref, whh_ref,
                     o_ref, gx_sc, hs_sc, *, H):
    proj = jnp.dot(img_ref[...], wimg_ref[...],
                   preferred_element_type=jnp.float32) + bimg_ref[...]       # (G, H)
    gx_sc[...] = jnp.dot(proj.astype(jnp.bfloat16), wih_ref[...],
                         preferred_element_type=jnp.float32) + b_ref[...]    # (G, 4H)
    whh = whh_ref[...]                                                       # (H, 4H) bf16

    # TODO(synk): single fused bias; torch LSTM has b_ih + b_hh (fold both here).
    # TODO(synk): hold whh in MXU staging (pltpu.matmul_push_rhs) for long sequences.
    def step(t, carry):
        h, c = carry                                                         # (1, H) f32
        gates = gx_sc[pl.ds(t, 1), :] + jnp.dot(
            h.astype(jnp.bfloat16), whh, preferred_element_type=jnp.float32)
        i_g = jax.nn.sigmoid(gates[:, 0:H])
        f_g = jax.nn.sigmoid(gates[:, H:2 * H])
        g_g = jnp.tanh(gates[:, 2 * H:3 * H])
        o_g = jax.nn.sigmoid(gates[:, 3 * H:4 * H])
        c = f_g * c + i_g * g_g
        h = o_g * jnp.tanh(c)
        hs_sc[pl.ds(t, 1), :] = h
        return (h, c)

    z = jnp.zeros((1, H), jnp.float32)
    jax.lax.fori_loop(0, o_ref.shape[0], step, (z, z))
    o_ref[...] = hs_sc[...].astype(o_ref.dtype)                             # lane-dense store


def pallas_img_lstm(img_bf16, wimg, bimg, wih, b, whh):
    G, Ki = img_bf16.shape
    H = whh.shape[0]
    return pl.pallas_call(
        functools.partial(_img_lstm_kernel, H=H),
        grid=(1,),
        in_specs=[_full((G, Ki)), _full((Ki, H)), _full((1, H)),
                  _full((H, 4 * H)), _full((1, 4 * H)), _full((H, 4 * H))],
        out_specs=_full((G, H)),
        out_shape=jax.ShapeDtypeStruct((G, H), jnp.bfloat16),
        scratch_shapes=[pltpu.VMEM((G, 4 * H), jnp.float32),
                        pltpu.VMEM((G, H), jnp.float32)],
        compiler_params=_cparams(("arbitrary",)),
    )(img_bf16, wimg, bimg, wih, b, whh)


# ----------------------------------------------------------------------------
# Kernel 4: fused frame head
#   SAG scale-by-score + per-frame max-pool, gc2_sg / gc2_i3d GATv2 +
#   InstanceNorm + LeakyReLU, concat (implicit), classifier fc1/fc2 + softmax.
# ----------------------------------------------------------------------------
def _frame_head_kernel(n_ref, score_ref, keep_ref, h_ref, adj_ref,
                       wsg_ref, bsg_ref, wi_ref, bi_ref, att_ref,
                       w1_ref, b1_ref, w2_ref, b2_ref,
                       logit_ref, prob_ref, g_sc, *, G, C, C_pad, eps):
    # --- SAGPooling: scale by tanh(score) + global_max_pool over kept nodes ---
    scaled = n_ref[...] * score_ref[...]                               # (N, Dn)
    for g in range(G):
        m = keep_ref[:, g:g + 1]                                       # (N, 1)
        g_sc[pl.ds(g, 1), :] = jnp.max(jnp.where(m > 0, scaled, NEG_MAX),
                                       axis=0, keepdims=True)

    adj = adj_ref[...]                                                 # (G, G) bf16
    mask = adj > 0

    def gat_branch(x_bf, wlr, blr, row):
        xlr = jnp.dot(x_bf, wlr, preferred_element_type=jnp.float32) + blr
        xl = xlr[:, :C_pad]
        xr = xlr[:, C_pad:]
        xl_t = xl.T
        logits = jnp.zeros((G, G), jnp.float32)
        for c in range(C):                                             # no edge attr here
            logits = logits + att_ref[row, c] * _leaky(xr[:, c:c + 1] + xl_t[c:c + 1, :])
        lg = jnp.where(mask, logits, NEG_INF)
        lg = lg - jnp.max(lg, axis=1, keepdims=True)
        p = jnp.where(mask, jnp.exp(lg), 0.0)
        alpha = p / jnp.sum(p, axis=1, keepdims=True)
        out = jnp.dot(alpha.astype(jnp.bfloat16), xl.astype(jnp.bfloat16),
                      preferred_element_type=jnp.float32)              # (G, C_pad)
        mean = jnp.mean(out, axis=0, keepdims=True)
        var = jnp.mean(jnp.square(out - mean), axis=0, keepdims=True)
        return _leaky((out - mean) * jax.lax.rsqrt(var + eps))

    f_sg = gat_branch(g_sc[...].astype(jnp.bfloat16), wsg_ref[...], bsg_ref[...], 0)
    f_img = gat_branch(h_ref[...], wi_ref[...], bi_ref[...], 1)

    # classifier: split-weight matmul == cat([f_sg, f_img]) @ w1 (no in-kernel concat)
    w1 = w1_ref[...]
    h1 = _leaky(jnp.dot(f_sg.astype(jnp.bfloat16), w1[:C_pad],
                        preferred_element_type=jnp.float32)
                + jnp.dot(f_img.astype(jnp.bfloat16), w1[C_pad:],
                          preferred_element_type=jnp.float32)
                + b1_ref[...])
    logits = jnp.dot(h1.astype(jnp.bfloat16), w2_ref[...],
                     preferred_element_type=jnp.float32) + b2_ref[...]
    logit_ref[...] = logits
    z = logits - jnp.max(logits, axis=-1, keepdims=True)
    ez = jnp.exp(z)
    prob_ref[...] = ez / jnp.sum(ez, axis=-1, keepdims=True)


def pallas_frame_head(n_embed, score, keep_gn, hseq, adj_v,
                      wsg, bsg, wi, bi, att2, w1, b1, w2, b2, C, C_pad):
    N, Dn = n_embed.shape
    G, H = hseq.shape
    ncls = w2.shape[1]
    C1p = w1.shape[1]
    return pl.pallas_call(
        functools.partial(_frame_head_kernel, G=G, C=C, C_pad=C_pad, eps=EPS),
        grid=(1,),
        in_specs=[_full((N, Dn)), _full((N, 1)), _full((N, G)),
                  _full((G, H)), _full((G, G)),
                  _full((Dn, 2 * C_pad)), _full((1, 2 * C_pad)),
                  _full((H, 2 * C_pad)), _full((1, 2 * C_pad)),
                  pl.BlockSpec(memory_space=pltpu.MemorySpace.SMEM),   # att2 (2, C)
                  _full((Dn, C1p)), _full((1, C1p)),
                  _full((C1p, ncls)), _full((1, ncls))],
        out_specs=(_full((G, ncls)), _full((G, ncls))),
        out_shape=(jax.ShapeDtypeStruct((G, ncls), jnp.float32),
                   jax.ShapeDtypeStruct((G, ncls), jnp.float32)),
        scratch_shapes=[pltpu.VMEM((G, Dn), jnp.float32)],
        compiler_params=_cparams(("arbitrary",)),
    )(n_embed, score, keep_gn, hseq, adj_v, wsg, bsg, wi, bi, att2, w1, b1, w2, b2)


# ----------------------------------------------------------------------------
# Plain-JAX glue (no XLA scatter: one-hot matmuls)
# ----------------------------------------------------------------------------
def build_dense_graph(edge_index, edge_scalar, num_nodes):
    """Dense (target i, source j) adjacency + edge attr with GATv2-style self loops.

    Existing self loops are removed and re-added for all nodes; self-loop edge
    attr = per-target mean of incoming edge attrs (PyG fill_value='mean').
    TODO(synk): assumes no duplicate edges for the edge-attr map.
    """
    src, dst = edge_index[0], edge_index[1]
    oh_src = jax.nn.one_hot(src, num_nodes, dtype=jnp.float32)        # (E, N)
    oh_dst = jax.nn.one_hot(dst, num_nodes, dtype=jnp.float32)        # (E, N)
    not_self = (src != dst).astype(jnp.float32)
    cnt = oh_dst.T @ (oh_src * not_self[:, None])                     # (N, N) counts
    eye = jnp.eye(num_nodes, dtype=jnp.float32)
    adj = jnp.maximum((cnt > 0).astype(jnp.float32), eye)
    if edge_scalar is None:
        return adj.astype(jnp.bfloat16), jnp.zeros((num_nodes, num_nodes), jnp.float32)
    es = edge_scalar.astype(jnp.float32) * not_self
    e_sum = oh_dst.T @ (oh_src * es[:, None])                         # (N, N)
    mean_in = jnp.sum(e_sum, axis=1) / jnp.maximum(jnp.sum(cnt, axis=1), 1.0)
    e = e_sum * (1.0 - eye) + eye * mean_in[:, None]
    return adj.astype(jnp.bfloat16), e


def topk_keep_mask(score, batch_vec, ratio):
    """SAGPooling node selection: keep top ceil(ratio * n_g) per graph."""
    # TODO(synk): data-dependent ranking kept in plain JAX (O(N^2) comparisons).
    N = score.shape[0]
    idx = jnp.arange(N)
    same = batch_vec[:, None] == batch_vec[None, :]
    greater = (score[None, :] > score[:, None]) | (
        (score[None, :] == score[:, None]) & (idx[None, :] < idx[:, None]))
    rank = jnp.sum(same & greater, axis=1)
    count = jnp.sum(same, axis=1)
    k = jnp.ceil(ratio * count.astype(jnp.float32)).astype(jnp.int32)
    return rank < k


# ----------------------------------------------------------------------------
# Parameters (deterministic synthetic init; shapes follow the torch __init__)
# ----------------------------------------------------------------------------
def init_params(key, input_dim, embedding_dim, img_feat_dim, num_classes):
    E = embedding_dim
    C = E // 2
    C_pad = _round_up(C, 128)
    Dn = 2 * C_pad                         # fused [branch0 | branch1] layout width
    XXP = _round_up(2 * E + C, 128)        # input-embed output width
    Hp = _round_up(2 * E, 128)             # img_fc / LSTM hidden width (lane aligned)
    K_IN = input_dim + 300

    keys = iter(jax.random.split(key, 64))

    def w(shape, scale=0.05):
        return jax.random.normal(next(keys), shape, jnp.float32) * scale

    # fused block-diagonal input embedding [x_fc | obj_l_fc] + BN params
    in_w = jnp.zeros((K_IN, XXP), jnp.float32)
    in_w = in_w.at[:input_dim, :2 * E].set(w((input_dim, 2 * E)))
    in_w = in_w.at[input_dim:, 2 * E:2 * E + C].set(w((300, C)))
    in_b = jnp.zeros((1, XXP), jnp.float32).at[:, :2 * E + C].set(w((1, 2 * E + C)))
    in_gamma = jnp.ones((1, XXP), jnp.float32)
    in_beta = jnp.zeros((1, XXP), jnp.float32)

    def gat_branch(true_in, segs, k_pad, has_edge):
        # GATv2 output bias dropped: following InstanceNorm(affine=False) cancels it.
        wl = w((true_in, C))
        wr = w((true_in, C))
        bl = w((1, C))
        br = w((1, C))
        wlr = jnp.zeros((k_pad, 2 * C_pad), jnp.float32)
        r = 0
        for off, n in segs:
            wlr = wlr.at[off:off + n, :C].set(wl[r:r + n])
            wlr = wlr.at[off:off + n, C_pad:C_pad + C].set(wr[r:r + n])
            r += n
        blr = (jnp.zeros((1, 2 * C_pad), jnp.float32)
               .at[:, :C].set(bl).at[:, C_pad:C_pad + C].set(br))
        att = w((1, C))
        we = w((1, C)) if has_edge else jnp.zeros((1, C), jnp.float32)
        return wlr, blr, att, we

    # gc1 spatial / temporal: input = xx layout (contiguous 2E+C real rows of XXP)
    sp = gat_branch(2 * E + C, [(0, 2 * E + C)], XXP, True)
    tp = gat_branch(2 * E + C, [(0, 2 * E + C)], XXP, True)
    gc1_wlr = jnp.stack([sp[0], tp[0]]).astype(jnp.bfloat16)          # (2, XXP, 2*C_pad)
    gc1_blr = jnp.stack([sp[1], tp[1]])                               # (2, 1, 2*C_pad)
    gc1_att = jnp.concatenate([sp[2], tp[2]], axis=0)                 # (2, C) -> SMEM
    gc1_we = jnp.concatenate([sp[3], tp[3]], axis=0)                  # (2, C) -> SMEM

    # SAGPooling GraphConv score weights in the fused n_embed layout
    def seg_rows(vals):    # place (2C, k) true rows into (Dn, k)
        out = jnp.zeros((Dn, vals.shape[1]), jnp.float32)
        out = out.at[:C].set(vals[:C])
        out = out.at[C_pad:C_pad + C].set(vals[C:])
        return out

    sag_w_rel = seg_rows(w((2 * C, 1)))
    sag_w_root = seg_rows(w((2 * C, 1)))
    sag_b_rel = w((1, 1))

    # img_fc + LSTM (hidden padded to Hp; padded channels provably stay zero)
    img_w = jnp.zeros((img_feat_dim, Hp), jnp.float32).at[:, :2 * E].set(
        w((img_feat_dim, 2 * E)))
    img_b = jnp.zeros((1, Hp), jnp.float32).at[:, :2 * E].set(w((1, 2 * E)))

    def lstm_mat(true_rows):
        m = jnp.zeros((Hp, 4 * Hp), jnp.float32)
        for g4 in range(4):
            m = m.at[:true_rows, g4 * Hp:g4 * Hp + 2 * E].set(w((true_rows, 2 * E)))
        return m

    lstm_wih = lstm_mat(2 * E)
    lstm_whh = lstm_mat(2 * E)
    lstm_b = jnp.zeros((1, 4 * Hp), jnp.float32)
    for g4 in range(4):
        lstm_b = lstm_b.at[:, g4 * Hp:g4 * Hp + 2 * E].set(w((1, 2 * E)))

    # gc2_sg (input = g_embed fused layout) / gc2_i3d (input = LSTM hidden, Hp wide)
    sg = gat_branch(2 * C, [(0, C), (C_pad, C)], Dn, False)
    i3 = gat_branch(2 * E, [(0, 2 * E)], Hp, False)
    gc2_att = jnp.concatenate([sg[2], i3[2]], axis=0)                 # (2, C) -> SMEM

    # classifier (fc1 input = fused [sg | i3d] layout; fc1 output padded to C_pad lanes)
    cls1_core = seg_rows(w((2 * C, C)))                               # (Dn, C)
    cls1_w = jnp.zeros((Dn, C_pad), jnp.float32).at[:, :C].set(cls1_core)
    cls1_b = jnp.zeros((1, C_pad), jnp.float32).at[:, :C].set(w((1, C)))
    cls2_w = jnp.zeros((C_pad, num_classes), jnp.float32).at[:C, :].set(
        w((C, num_classes)))
    cls2_b = w((1, num_classes))

    return dict(
        in_w=in_w.astype(jnp.bfloat16), in_b=in_b, in_gamma=in_gamma, in_beta=in_beta,
        gc1_wlr=gc1_wlr, gc1_blr=gc1_blr, gc1_att=gc1_att, gc1_we=gc1_we,
        sag_w_rel=sag_w_rel, sag_b_rel=sag_b_rel, sag_w_root=sag_w_root,
        img_w=img_w.astype(jnp.bfloat16), img_b=img_b,
        lstm_wih=lstm_wih.astype(jnp.bfloat16), lstm_whh=lstm_whh.astype(jnp.bfloat16),
        lstm_b=lstm_b,
        gc2_sg_wlr=sg[0].astype(jnp.bfloat16), gc2_sg_blr=sg[1],
        gc2_i3d_wlr=i3[0].astype(jnp.bfloat16), gc2_i3d_blr=i3[1],
        gc2_att=gc2_att,
        cls1_w=cls1_w.astype(jnp.bfloat16), cls1_b=cls1_b,
        cls2_w=cls2_w.astype(jnp.bfloat16), cls2_b=cls2_b,
    )


# ----------------------------------------------------------------------------
# Forward pass (mirrors SpaceTempGoG_detr_dad.forward)
# ----------------------------------------------------------------------------
def forward(params, x, edge_index, img_feat, video_adj_list, edge_embeddings,
            temporal_adj_list, temporal_edge_w, batch_vec, ratio=0.8):
    C = params["gc1_att"].shape[1]
    C_pad = params["gc1_wlr"].shape[2] // 2
    N = x.shape[0]
    G = img_feat.shape[0]

    # ---- stage 1: fused [x_fc | obj_l_fc] + BatchNorm1d + LeakyReLU (bf16 out)
    xx = pallas_input_embed(x.astype(jnp.bfloat16), params["in_w"], params["in_b"],
                            params["in_gamma"], params["in_beta"])            # (N, XXP)

    # ---- stage 2: spatial + temporal GATv2 + InstanceNorm + LeakyReLU (fused concat)
    adj_s, e_s = build_dense_graph(edge_index, edge_embeddings[:, -1], N)
    adj_t, e_t = build_dense_graph(temporal_adj_list, temporal_edge_w, N)
    n_embed = pallas_gat_dual(
        xx, jnp.stack([adj_s, adj_t]), jnp.stack([e_s, e_t]),
        params["gc1_wlr"], params["gc1_blr"], params["gc1_att"], params["gc1_we"],
        C, C_pad)                                                             # (N, 2*C_pad)

    # ---- SAGPooling: GraphConv score + top-k keep mask (plain-JAX glue)
    oh_src = jax.nn.one_hot(edge_index[0], N, dtype=jnp.float32)
    oh_dst = jax.nn.one_hot(edge_index[1], N, dtype=jnp.float32)
    agg = oh_dst.T @ (oh_src @ n_embed)              # GraphConv 'add' aggregation
    score = jnp.tanh(agg @ params["sag_w_rel"] + params["sag_b_rel"]
                     + n_embed @ params["sag_w_root"])                        # (N, 1)
    keep = topk_keep_mask(score[:, 0], batch_vec, ratio)
    frame_ids = jnp.arange(G, dtype=batch_vec.dtype)
    keep_gn = ((batch_vec[:, None] == frame_ids[None, :])
               & keep[:, None]).astype(jnp.float32)                           # (N, G)

    # ---- frame branch: img_fc + LSTM (fused kernel, bf16 out)
    hseq = pallas_img_lstm(img_feat.astype(jnp.bfloat16), params["img_w"],
                           params["img_b"], params["lstm_wih"], params["lstm_b"],
                           params["lstm_whh"])                                # (G, Hp)

    # ---- fused frame head: SAG pool + gc2_sg/gc2_i3d + norms + classifier + softmax
    adj_v, _ = build_dense_graph(video_adj_list, None, G)
    logits_mc, probs_mc = pallas_frame_head(
        n_embed, score, keep_gn, hseq, adj_v,
        params["gc2_sg_wlr"], params["gc2_sg_blr"],
        params["gc2_i3d_wlr"], params["gc2_i3d_blr"], params["gc2_att"],
        params["cls1_w"], params["cls1_b"], params["cls2_w"], params["cls2_b"],
        C, C_pad)
    return logits_mc, probs_mc


# ----------------------------------------------------------------------------
if __name__ == "__main__":
    key = jax.random.PRNGKey(0)

    # Small shapes consistent with the module (constructor args shrunk).
    input_dim = 256
    embedding_dim = 32
    img_feat_dim = 256
    num_classes = 2
    num_frames = 4
    nodes_per_frame = 5
    N = num_frames * nodes_per_frame

    kp, kx, kimg, kee, ktw = jax.random.split(key, 5)
    params = init_params(kp, input_dim, embedding_dim, img_feat_dim, num_classes)

    x = jax.random.normal(kx, (N, input_dim + 300), jnp.float32)
    img_feat = jax.random.normal(kimg, (num_frames, img_feat_dim), jnp.float32)
    batch_vec = jnp.repeat(jnp.arange(num_frames, dtype=jnp.int32), nodes_per_frame)

    # spatial edges: fully connected within each frame (no self loops)
    src_l, dst_l = [], []
    for f in range(num_frames):
        base = f * nodes_per_frame
        for a in range(nodes_per_frame):
            for b in range(nodes_per_frame):
                if a != b:
                    src_l.append(base + a)
                    dst_l.append(base + b)
    edge_index = jnp.array([src_l, dst_l], dtype=jnp.int32)
    edge_embeddings = jax.random.normal(kee, (edge_index.shape[1], 4), jnp.float32)

    # temporal edges: node k in frame f -> node k in frame f+1
    tsrc, tdst = [], []
    for f in range(num_frames - 1):
        for a in range(nodes_per_frame):
            tsrc.append(f * nodes_per_frame + a)
            tdst.append((f + 1) * nodes_per_frame + a)
    temporal_adj_list = jnp.array([tsrc, tdst], dtype=jnp.int32)
    temporal_edge_w = jax.random.normal(ktw, (temporal_adj_list.shape[1],), jnp.float32)

    # frame-level adjacency: bidirectional chain over frames
    vsrc, vdst = [], []
    for f in range(num_frames - 1):
        vsrc += [f, f + 1]
        vdst += [f + 1, f]
    video_adj_list = jnp.array([vsrc, vdst], dtype=jnp.int32)

    fwd = jax.jit(forward)
    logits, probs = fwd(params, x, edge_index, img_feat, video_adj_list,
                        edge_embeddings, temporal_adj_list, temporal_edge_w,
                        batch_vec)
    jax.block_until_ready((logits, probs))

    assert logits.shape == (num_frames, num_classes)
    assert probs.shape == (num_frames, num_classes)
    assert bool(jnp.all(jnp.isfinite(logits))) and bool(jnp.all(jnp.isfinite(probs)))
    assert bool(jnp.allclose(jnp.sum(probs, axis=-1), 1.0, atol=1e-4))
    print("KERNEL_OK")
</pallas_src>

<mosaic_0001>
module attributes {stable_mosaic.version = 11 : i64} {
  func.func @_img_lstm_kernel(%arg0: i32, %arg1: memref<4x256xbf16, #tpu.memory_space<vmem>>, %arg2: memref<256x128xbf16, #tpu.memory_space<vmem>>, %arg3: memref<1x128xf32, #tpu.memory_space<vmem>>, %arg4: memref<128x512xbf16, #tpu.memory_space<vmem>>, %arg5: memref<1x512xf32, #tpu.memory_space<vmem>>, %arg6: memref<128x512xbf16, #tpu.memory_space<vmem>>, %arg7: memref<4x128xbf16, #tpu.memory_space<vmem>>, %arg8: memref<4x512xf32, #tpu.memory_space<vmem>>, %arg9: memref<4x128xf32, #tpu.memory_space<vmem>>) attributes {dimension_semantics = [#tpu.dimension_semantics<arbitrary>], iteration_bounds = array<i64: 1>, scalar_prefetch = 0 : i64, scratch_operands = 2 : i64, tpu.core_type = #tpu.core_type<tc>, window_params = [{pipeline_mode = #tpu.pipeline_mode<synchronous>, transform_indices = @transform_0, window_bounds = array<i64: 4, 256>}, {pipeline_mode = #tpu.pipeline_mode<synchronous>, transform_indices = @transform_1, window_bounds = array<i64: 256, 128>}, {pipeline_mode = #tpu.pipeline_mode<synchronous>, transform_indices = @transform_2, window_bounds = array<i64: 1, 128>}, {pipeline_mode = #tpu.pipeline_mode<synchronous>, transform_indices = @transform_3, window_bounds = array<i64: 128, 512>}, {pipeline_mode = #tpu.pipeline_mode<synchronous>, transform_indices = @transform_4, window_bounds = array<i64: 1, 512>}, {pipeline_mode = #tpu.pipeline_mode<synchronous>, transform_indices = @transform_5, window_bounds = array<i64: 128, 512>}, {pipeline_mode = #tpu.pipeline_mode<synchronous>, transform_indices = @transform_6, window_bounds = array<i64: 4, 128>}]} {
    %c0 = arith.constant 0 : index
    %c0_0 = arith.constant 0 : index
    %0 = vector.load %arg1[%c0, %c0_0] : memref<4x256xbf16, #tpu.memory_space<vmem>>, vector<4x256xbf16>
    %c0_1 = arith.constant 0 : index
    %c0_2 = arith.constant 0 : index
    %1 = vector.load %arg2[%c0_1, %c0_2] : memref<256x128xbf16, #tpu.memory_space<vmem>>, vector<256x128xbf16>
    %cst = arith.constant dense<0.000000e+00> : vector<4x128xf32>
    %2 = tpu.matmul %0, %1, %cst {dimension_numbers = #tpu.dot_dimension_numbers<[1], [0], [0], [1], [0, 0, 1, 1], [], []>} : vector<4x256xbf16>, vector<256x128xbf16>, vector<4x128xf32> -> vector<4x128xf32>
    %c0_3 = arith.constant 0 : index
    %c0_4 = arith.constant 0 : index
    %3 = vector.load %arg3[%c0_3, %c0_4] : memref<1x128xf32, #tpu.memory_space<vmem>>, vector<1x128xf32>
    %4 = vector.broadcast %3 : vector<1x128xf32> to vector<4x128xf32>
    %5 = arith.addf %2, %4 : vector<4x128xf32>
    %6 = arith.truncf %5 : vector<4x128xf32> to vector<4x128xbf16>
    %c0_5 = arith.constant 0 : index
    %c0_6 = arith.constant 0 : index
    %7 = vector.load %arg4[%c0_5, %c0_6] : memref<128x512xbf16, #tpu.memory_space<vmem>>, vector<128x512xbf16>
    %cst_7 = arith.constant dense<0.000000e+00> : vector<4x512xf32>
    %8 = tpu.matmul %6, %7, %cst_7 {dimension_numbers = #tpu.dot_dimension_numbers<[1], [0], [0], [1], [0, 0, 1, 1], [], []>} : vector<4x128xbf16>, vector<128x512xbf16>, vector<4x512xf32> -> vector<4x512xf32>
    %c0_8 = arith.constant 0 : index
    %c0_9 = arith.constant 0 : index
    %9 = vector.load %arg5[%c0_8, %c0_9] : memref<1x512xf32, #tpu.memory_space<vmem>>, vector<1x512xf32>
    %10 = vector.broadcast %9 : vector<1x512xf32> to vector<4x512xf32>
    %11 = arith.addf %8, %10 : vector<4x512xf32>
    %c0_10 = arith.constant 0 : index
    %c0_11 = arith.constant 0 : index
    %12 = vector.load %arg8[%c0_10, %c0_11] : memref<4x512xf32, #tpu.memory_space<vmem>>, vector<4x512xf32>
    tpu.vector_store %arg8[%c0_10, %c0_11], %11 {strides = array<i32>} : memref<4x512xf32, #tpu.memory_space<vmem>>, vector<4x512xf32>,
    %c0_12 = arith.constant 0 : index
    %c0_13 = arith.constant 0 : index
    %13 = vector.load %arg6[%c0_12, %c0_13] : memref<128x512xbf16, #tpu.memory_space<vmem>>, vector<128x512xbf16>
    %cst_14 = arith.constant 0.000000e+00 : f32
    %14 = vector.broadcast %cst_14 : f32 to vector<1x128xf32>
    %c0_i32 = arith.constant 0 : i32
    %c4_i32 = arith.constant 4 : i32
    %15 = arith.addi %c0_i32, %c4_i32 : i32
    %c1_i32 = arith.constant 1 : i32
    %16:2 = scf.for %arg10 = %c0_i32 to %15 step %c1_i32 iter_args(%arg11 = %14, %arg12 = %14) -> (vector<1x128xf32>, vector<1x128xf32>)  : i32 {
      %20 = arith.index_cast %arg10 : i32 to index
      %c0_20 = arith.constant 0 : index
      %21 = vector.load %arg8[%20, %c0_20] : memref<4x512xf32, #tpu.memory_space<vmem>>, vector<1x512xf32>
      %22 = arith.truncf %arg11 : vector<1x128xf32> to vector<1x128xbf16>
      %cst_21 = arith.constant dense<0.000000e+00> : vector<1x512xf32>
      %23 = tpu.matmul %22, %13, %cst_21 {dimension_numbers = #tpu.dot_dimension_numbers<[1], [0], [0], [1], [0, 0, 1, 1], [], []>} : vector<1x128xbf16>, vector<128x512xbf16>, vector<1x512xf32> -> vector<1x512xf32>
      %24 = arith.addf %21, %23 : vector<1x512xf32>
      %25 = vector.extract_strided_slice %24 {offsets = [0, 0], sizes = [1, 128], strides = [1, 1]} : vector<1x512xf32> to vector<1x128xf32>
      %26 = arith.negf %25 : vector<1x128xf32>
      %27 = math.exp %26 : vector<1x128xf32>
      %cst_22 = arith.constant 1.000000e+00 : f32
      %28 = vector.broadcast %cst_22 : f32 to vector<1x128xf32>
      %29 = arith.addf %28, %27 : vector<1x128xf32>
      %30 = arith.divf %28, %29 : vector<1x128xf32>
      %31 = vector.extract_strided_slice %24 {offsets = [0, 128], sizes = [1, 128], strides = [1, 1]} : vector<1x512xf32> to vector<1x128xf32>
      %32 = arith.negf %31 : vector<1x128xf32>
      %33 = math.exp %32 : vector<1x128xf32>
      %cst_23 = arith.constant 1.000000e+00 : f32
      %34 = vector.broadcast %cst_23 : f32 to vector<1x128xf32>
      %35 = arith.addf %34, %33 : vector<1x128xf32>
      %36 = arith.divf %34, %35 : vector<1x128xf32>
      %37 = vector.extract_strided_slice %24 {offsets = [0, 256], sizes = [1, 128], strides = [1, 1]} : vector<1x512xf32> to vector<1x128xf32>
      %38 = math.tanh %37 : vector<1x128xf32>
      %39 = vector.extract_strided_slice %24 {offsets = [0, 384], sizes = [1, 128], strides = [1, 1]} : vector<1x512xf32> to vector<1x128xf32>
      %40 = arith.negf %39 : vector<1x128xf32>
      %41 = math.exp %40 : vector<1x128xf32>
      %cst_24 = arith.constant 1.000000e+00 : f32
      %42 = vector.broadcast %cst_24 : f32 to vector<1x128xf32>
      %43 = arith.addf %42, %41 : vector<1x128xf32>
      %44 = arith.divf %42, %43 : vector<1x128xf32>
      %45 = arith.mulf %36, %arg12 : vector<1x128xf32>
      %46 = arith.mulf %30, %38 : vector<1x128xf32>
      %47 = arith.addf %45, %46 : vector<1x128xf32>
      %48 = math.tanh %47 : vector<1x128xf32>
      %49 = arith.mulf %44, %48 : vector<1x128xf32>
      %50 = arith.index_cast %arg10 : i32 to index
      %c0_25 = arith.constant 0 : index
      %51 = vector.load %arg9[%50, %c0_25] : memref<4x128xf32, #tpu.memory_space<vmem>>, vector<1x128xf32>
      tpu.vector_store %arg9[%50, %c0_25], %49 {strides = array<i32>} : memref<4x128xf32, #tpu.memory_space<vmem>>, vector<1x128xf32>,
      scf.yield %49, %47 : vector<1x128xf32>, vector<1x128xf32>
    }
    %c4_i32_15 = arith.constant 4 : i32
    %c0_16 = arith.constant 0 : index
    %c0_17 = arith.constant 0 : index
    %17 = vector.load %arg9[%c0_16, %c0_17] : memref<4x128xf32, #tpu.memory_space<vmem>>, vector<4x128xf32>
    %18 = arith.truncf %17 : vector<4x128xf32> to vector<4x128xbf16>
    %c0_18 = arith.constant 0 : index
    %c0_19 = arith.constant 0 : index
    %19 = vector.load %arg7[%c0_18, %c0_19] : memref<4x128xbf16, #tpu.memory_space<vmem>>, vector<4x128xbf16>
    tpu.vector_store %arg7[%c0_18, %c0_19], %18 {strides = array<i32>} : memref<4x128xbf16, #tpu.memory_space<vmem>>, vector<4x128xbf16>,
    return
  }
  func.func @transform_0(%arg0: i32) -> (i32, i32) {
    %c0_i32 = arith.constant 0 : i32
    %c0_i32_0 = arith.constant 0 : i32
    %c0_i32_1 = arith.constant 0 : i32
    return %c0_i32, %c0_i32_0 : i32, i32
  }
  func.func @transform_1(%arg0: i32) -> (i32, i32) {
    %c0_i32 = arith.constant 0 : i32
    %c0_i32_0 = arith.constant 0 : i32
    %c0_i32_1 = arith.constant 0 : i32
    return %c0_i32, %c0_i32_0 : i32, i32
  }
  func.func @transform_2(%arg0: i32) -> (i32, i32) {
    %c0_i32 = arith.constant 0 : i32
    %c0_i32_0 = arith.constant 0 : i32
    %c0_i32_1 = arith.constant 0 : i32
    return %c0_i32, %c0_i32_0 : i32, i32
  }
  func.func @transform_3(%arg0: i32) -> (i32, i32) {
    %c0_i32 = arith.constant 0 : i32
    %c0_i32_0 = arith.constant 0 : i32
    %c0_i32_1 = arith.constant 0 : i32
    return %c0_i32, %c0_i32_0 : i32, i32
  }
  func.func @transform_4(%arg0: i32) -> (i32, i32) {
    %c0_i32 = arith.constant 0 : i32
    %c0_i32_0 = arith.constant 0 : i32
    %c0_i32_1 = arith.constant 0 : i32
    return %c0_i32, %c0_i32_0 : i32, i32
  }
  func.func @transform_5(%arg0: i32) -> (i32, i32) {
    %c0_i32 = arith.constant 0 : i32
    %c0_i32_0 = arith.constant 0 : i32
    %c0_i32_1 = arith.constant 0 : i32
    return %c0_i32, %c0_i32_0 : i32, i32
  }
  func.func @transform_6(%arg0: i32) -> (i32, i32) {
    %c0_i32 = arith.constant 0 : i32
    %c0_i32_0 = arith.constant 0 : i32
    %c0_i32_1 = arith.constant 0 : i32
    return %c0_i32, %c0_i32_0 : i32, i32
  }
}

module attributes {stable_mosaic.version = 11 : i64} {
  func.func @_input_embed_kernel(%arg0: i32, %arg1: memref<20x556xbf16, #tpu.memory_space<vmem>>, %arg2: memref<556x128xbf16, #tpu.memory_space<vmem>>, %arg3: memref<1x128xf32, #tpu.memory_space<vmem>>, %arg4: memref<1x128xf32, #tpu.memory_space<vmem>>, %arg5: memref<1x128xf32, #tpu.memory_space<vmem>>, %arg6: memref<20x128xbf16, #tpu.memory_space<vmem>>) attributes {dimension_semantics = [#tpu.dimension_semantics<arbitrary>], iteration_bounds = array<i64: 1>, scalar_prefetch = 0 : i64, scratch_operands = 0 : i64, tpu.core_type = #tpu.core_type<tc>, window_params = [{pipeline_mode = #tpu.pipeline_mode<synchronous>, transform_indices = @transform_0, window_bounds = array<i64: 20, 556>}, {pipeline_mode = #tpu.pipeline_mode<synchronous>, transform_indices = @transform_1, window_bounds = array<i64: 556, 128>}, {pipeline_mode = #tpu.pipeline_mode<synchronous>, transform_indices = @transform_2, window_bounds = array<i64: 1, 128>}, {pipeline_mode = #tpu.pipeline_mode<synchronous>, transform_indices = @transform_3, window_bounds = array<i64: 1, 128>}, {pipeline_mode = #tpu.pipeline_mode<synchronous>, transform_indices = @transform_4, window_bounds = array<i64: 1, 128>}, {pipeline_mode = #tpu.pipeline_mode<synchronous>, transform_indices = @transform_5, window_bounds = array<i64: 20, 128>}]} {
    %c0 = arith.constant 0 : index
    %c0_0 = arith.constant 0 : index
    %0 = vector.load %arg1[%c0, %c0_0] : memref<20x556xbf16, #tpu.memory_space<vmem>>, vector<20x556xbf16>
    %c0_1 = arith.constant 0 : index
    %c0_2 = arith.constant 0 : index
    %1 = vector.load %arg2[%c0_1, %c0_2] : memref<556x128xbf16, #tpu.memory_space<vmem>>, vector<556x128xbf16>
    %cst = arith.constant dense<0.000000e+00> : vector<20x128xf32>
    %2 = tpu.matmul %0, %1, %cst {dimension_numbers = #tpu.dot_dimension_numbers<[1], [0], [0], [1], [0, 0, 1, 1], [], []>} : vector<20x556xbf16>, vector<556x128xbf16>, vector<20x128xf32> -> vector<20x128xf32>
    %c0_3 = arith.constant 0 : index
    %c0_4 = arith.constant 0 : index
    %3 = vector.load %arg3[%c0_3, %c0_4] : memref<1x128xf32, #tpu.memory_space<vmem>>, vector<1x128xf32>
    %4 = vector.broadcast %3 : vector<1x128xf32> to vector<20x128xf32>
    %5 = arith.addf %2, %4 : vector<20x128xf32>
    %cst_5 = arith.constant dense<0.000000e+00> : vector<128xf32>
    %6 = vector.multi_reduction <add>, %5, %cst_5 [0] : vector<20x128xf32> to vector<128xf32>
    %7 = vector.shape_cast %6 : vector<128xf32> to vector<1x128xf32>
    %cst_6 = arith.constant 2.000000e+01 : f32
    %8 = vector.broadcast %cst_6 : f32 to vector<1x128xf32>
    %9 = arith.divf %7, %8 : vector<1x128xf32>
    %10 = vector.broadcast %9 : vector<1x128xf32> to vector<20x128xf32>
    %11 = arith.subf %5, %10 : vector<20x128xf32>
    %12 = arith.mulf %11, %11 : vector<20x128xf32>
    %cst_7 = arith.constant dense<0.000000e+00> : vector<128xf32>
    %13 = vector.multi_reduction <add>, %12, %cst_7 [0] : vector<20x128xf32> to vector<128xf32>
    %14 = vector.shape_cast %13 : vector<128xf32> to vector<1x128xf32>
    %cst_8 = arith.constant 2.000000e+01 : f32
    %15 = vector.broadcast %cst_8 : f32 to vector<1x128xf32>
    %16 = arith.divf %14, %15 : vector<1x128xf32>
    %17 = vector.broadcast %9 : vector<1x128xf32> to vector<20x128xf32>
    %18 = arith.subf %5, %17 : vector<20x128xf32>
    %cst_9 = arith.constant 9.99999974E-6 : f32
    %19 = vector.broadcast %cst_9 : f32 to vector<1x128xf32>
    %20 = arith.addf %16, %19 : vector<1x128xf32>
    %21 = math.rsqrt %20 : vector<1x128xf32>
    %22 = vector.broadcast %21 : vector<1x128xf32> to vector<20x128xf32>
    %23 = arith.mulf %18, %22 : vector<20x128xf32>
    %c0_10 = arith.constant 0 : index
    %c0_11 = arith.constant 0 : index
    %24 = vector.load %arg4[%c0_10, %c0_11] : memref<1x128xf32, #tpu.memory_space<vmem>>, vector<1x128xf32>
    %25 = vector.broadcast %24 : vector<1x128xf32> to vector<20x128xf32>
    %26 = arith.mulf %23, %25 : vector<20x128xf32>
    %c0_12 = arith.constant 0 : index
    %c0_13 = arith.constant 0 : index
    %27 = vector.load %arg5[%c0_12, %c0_13] : memref<1x128xf32, #tpu.memory_space<vmem>>, vector<1x128xf32>
    %28 = vector.broadcast %27 : vector<1x128xf32> to vector<20x128xf32>
    %29 = arith.addf %26, %28 : vector<20x128xf32>
    %cst_14 = arith.constant 0.000000e+00 : f32
    %30 = vector.broadcast %cst_14 : f32 to vector<20x128xf32>
    %31 = arith.cmpf ogt, %29, %30 : vector<20x128xf32>
    %cst_15 = arith.constant 2.000000e-01 : f32
    %32 = vector.broadcast %cst_15 : f32 to vector<20x128xf32>
    %33 = arith.mulf %32, %29 : vector<20x128xf32>
    %34 = arith.select %31, %29, %33 : vector<20x128xi1>, vector<20x128xf32>
    %35 = arith.truncf %34 : vector<20x128xf32> to vector<20x128xbf16>
    %c0_16 = arith.constant 0 : index
    %c0_17 = arith.constant 0 : index
    %36 = vector.load %arg6[%c0_16, %c0_17] : memref<20x128xbf16, #tpu.memory_space<vmem>>, vector<20x128xbf16>
    tpu.vector_store %arg6[%c0_16, %c0_17], %35 {strides = array<i32>} : memref<20x128xbf16, #tpu.memory_space<vmem>>, vector<20x128xbf16>,
    return
  }
  func.func @transform_0(%arg0: i32) -> (i32, i32) {
    %c0_i32 = arith.constant 0 : i32
    %c0_i32_0 = arith.constant 0 : i32
    %c0_i32_1 = arith.constant 0 : i32
    return %c0_i32, %c0_i32_0 : i32, i32
  }
  func.func @transform_1(%arg0: i32) -> (i32, i32) {
    %c0_i32 = arith.constant 0 : i32
    %c0_i32_0 = arith.constant 0 : i32
    %c0_i32_1 = arith.constant 0 : i32
    return %c0_i32, %c0_i32_0 : i32, i32
  }
  func.func @transform_2(%arg0: i32) -> (i32, i32) {
    %c0_i32 = arith.constant 0 : i32
    %c0_i32_0 = arith.constant 0 : i32
    %c0_i32_1 = arith.constant 0 : i32
    return %c0_i32, %c0_i32_0 : i32, i32
  }
  func.func @transform_3(%arg0: i32) -> (i32, i32) {
    %c0_i32 = arith.constant 0 : i32
    %c0_i32_0 = arith.constant 0 : i32
    %c0_i32_1 = arith.constant 0 : i32
    return %c0_i32, %c0_i32_0 : i32, i32
  }
  func.func @transform_4(%arg0: i32) -> (i32, i32) {
    %c0_i32 = arith.constant 0 : i32
    %c0_i32_0 = arith.constant 0 : i32
    %c0_i32_1 = arith.constant 0 : i32
    return %c0_i32, %c0_i32_0 : i32, i32
  }
  func.func @transform_5(%arg0: i32) -> (i32, i32) {
    %c0_i32 = arith.constant 0 : i32
    %c0_i32_0 = arith.constant 0 : i32
    %c0_i32_1 = arith.constant 0 : i32
    return %c0_i32, %c0_i32_0 : i32, i32
  }
}

module attributes {stable_mosaic.version = 11 : i64} {
  func.func @_gat_dual_kernel(%arg0: i32, %arg1: memref<20x128xbf16, #tpu.memory_space<vmem>>, %arg2: memref<1x20x20xbf16, #tpu.memory_space<vmem>>, %arg3: memref<1x20x20xf32, #tpu.memory_space<vmem>>, %arg4: memref<1x128x256xbf16, #tpu.memory_space<vmem>>, %arg5: memref<1x1x256xf32, #tpu.memory_space<vmem>>, %arg6: memref<2x16xf32, #tpu.memory_space<smem>>, %arg7: memref<2x16xf32, #tpu.memory_space<smem>>, %arg8: memref<20x128xf32, #tpu.memory_space<vmem>>) attributes {dimension_semantics = [#tpu.dimension_semantics<parallel>], iteration_bounds = array<i64: 2>, scalar_prefetch = 0 : i64, scratch_operands = 0 : i64, tpu.core_type = #tpu.core_type<tc>, window_params = [{pipeline_mode = #tpu.pipeline_mode<synchronous>, transform_indices = @transform_0, window_bounds = array<i64: 20, 128>}, {transform_indices = @transform_1, window_bounds = array<i64: 1, 20, 20>}, {transform_indices = @transform_2, window_bounds = array<i64: 1, 20, 20>}, {transform_indices = @transform_3, window_bounds = array<i64: 1, 128, 256>}, {transform_indices = @transform_4, window_bounds = array<i64: 1, 1, 256>}, {transform_indices = @transform_5, window_bounds = array<i64: 2, 16>}, {transform_indices = @transform_6, window_bounds = array<i64: 2, 16>}, {transform_indices = @transform_7, window_bounds = array<i64: 20, 128>}]} {
    %c0 = arith.constant 0 : index
    %c0_0 = arith.constant 0 : index
    %0 = vector.load %arg1[%c0, %c0_0] : memref<20x128xbf16, #tpu.memory_space<vmem>>, vector<20x128xbf16>
    %c0_1 = arith.constant 0 : index
    %c0_2 = arith.constant 0 : index
    %c0_3 = arith.constant 0 : index
    %1 = vector.load %arg2[%c0_1, %c0_2, %c0_3] : memref<1x20x20xbf16, #tpu.memory_space<vmem>>, vector<1x20x20xbf16>
    %2 = vector.shape_cast %1 : vector<1x20x20xbf16> to vector<20x20xbf16>
    %c0_4 = arith.constant 0 : index
    %c0_5 = arith.constant 0 : index
    %c0_6 = arith.constant 0 : index
    %3 = vector.load %arg3[%c0_4, %c0_5, %c0_6] : memref<1x20x20xf32, #tpu.memory_space<vmem>>, vector<1x20x20xf32>
    %4 = vector.shape_cast %3 : vector<1x20x20xf32> to vector<20x20xf32>
    %c0_7 = arith.constant 0 : index
    %c0_8 = arith.constant 0 : index
    %c0_9 = arith.constant 0 : index
    %5 = vector.load %arg4[%c0_7, %c0_8, %c0_9] : memref<1x128x256xbf16, #tpu.memory_space<vmem>>, vector<1x128x256xbf16>
    %6 = vector.shape_cast %5 : vector<1x128x256xbf16> to vector<128x256xbf16>
    %c0_10 = arith.constant 0 : index
    %c0_11 = arith.constant 0 : index
    %c0_12 = arith.constant 0 : index
    %7 = vector.load %arg5[%c0_10, %c0_11, %c0_12] : memref<1x1x256xf32, #tpu.memory_space<vmem>>, vector<1x1x256xf32>
    %8 = vector.shape_cast %7 : vector<1x1x256xf32> to vector<1x256xf32>
    %cst = arith.constant dense<0.000000e+00> : vector<20x256xf32>
    %9 = tpu.matmul %0, %6, %cst {dimension_numbers = #tpu.dot_dimension_numbers<[1], [0], [0], [1], [0, 0, 1, 1], [], []>} : vector<20x128xbf16>, vector<128x256xbf16>, vector<20x256xf32> -> vector<20x256xf32>
    %10 = vector.broadcast %8 : vector<1x256xf32> to vector<20x256xf32>
    %11 = arith.addf %9, %10 : vector<20x256xf32>
    %12 = vector.extract_strided_slice %11 {offsets = [0, 0], sizes = [20, 128], strides = [1, 1]} : vector<20x256xf32> to vector<20x128xf32>
    %13 = vector.extract_strided_slice %11 {offsets = [0, 128], sizes = [20, 128], strides = [1, 1]} : vector<20x256xf32> to vector<20x128xf32>
    %14 = tpu.transpose %12, [1, 0] : vector<20x128xf32> -> vector<128x20xf32>
    %cst_13 = arith.constant 0.000000e+00 : f32
    %15 = vector.broadcast %cst_13 : f32 to vector<20x20xf32>
    %16 = arith.index_cast %arg0 : i32 to index
    %c0_14 = arith.constant 0 : index
    %17 = memref.load %arg6[%16, %c0_14] : memref<2x16xf32, #tpu.memory_space<smem>>
    %18 = arith.index_cast %arg0 : i32 to index
    %c0_15 = arith.constant 0 : index
    %19 = memref.load %arg7[%18, %c0_15] : memref<2x16xf32, #tpu.memory_space<smem>>
    %20 = vector.extract_strided_slice %13 {offsets = [0, 0], sizes = [20, 1], strides = [1, 1]} : vector<20x128xf32> to vector<20x1xf32>
    %21 = vector.extract_strided_slice %14 {offsets = [0, 0], sizes = [1, 20], strides = [1, 1]} : vector<128x20xf32> to vector<1x20xf32>
    %22 = vector.broadcast %20 : vector<20x1xf32> to vector<20x20xf32>
    %23 = vector.broadcast %21 : vector<1x20xf32> to vector<20x20xf32>
    %24 = arith.addf %22, %23 : vector<20x20xf32>
    %25 = vector.broadcast %19 : f32 to vector<20x20xf32>
    %26 = arith.mulf %25, %4 : vector<20x20xf32>
    %27 = arith.addf %24, %26 : vector<20x20xf32>
    %cst_16 = arith.constant 0.000000e+00 : f32
    %28 = vector.broadcast %cst_16 : f32 to vector<20x20xf32>
    %29 = arith.cmpf ogt, %27, %28 : vector<20x20xf32>
    %cst_17 = arith.constant 2.000000e-01 : f32
    %30 = vector.broadcast %cst_17 : f32 to vector<20x20xf32>
    %31 = arith.mulf %30, %27 : vector<20x20xf32>
    %32 = arith.select %29, %27, %31 : vector<20x20xi1>, vector<20x20xf32>
    %33 = vector.broadcast %17 : f32 to vector<20x20xf32>
    %34 = arith.mulf %33, %32 : vector<20x20xf32>
    %35 = arith.addf %15, %34 : vector<20x20xf32>
    %36 = arith.index_cast %arg0 : i32 to index
    %c1 = arith.constant 1 : index
    %37 = memref.load %arg6[%36, %c1] : memref<2x16xf32, #tpu.memory_space<smem>>
    %38 = arith.index_cast %arg0 : i32 to index
    %c1_18 = arith.constant 1 : index
    %39 = memref.load %arg7[%38, %c1_18] : memref<2x16xf32, #tpu.memory_space<smem>>
    %40 = vector.extract_strided_slice %13 {offsets = [0, 1], sizes = [20, 1], strides = [1, 1]} : vector<20x128xf32> to vector<20x1xf32>
    %41 = vector.extract_strided_slice %14 {offsets = [1, 0], sizes = [1, 20], strides = [1, 1]} : vector<128x20xf32> to vector<1x20xf32>
    %42 = vector.broadcast %40 : vector<20x1xf32> to vector<20x20xf32>
    %43 = vector.broadcast %41 : vector<1x20xf32> to vector<20x20xf32>
    %44 = arith.addf %42, %43 : vector<20x20xf32>
    %45 = vector.broadcast %39 : f32 to vector<20x20xf32>
    %46 = arith.mulf %45, %4 : vector<20x20xf32>
    %47 = arith.addf %44, %46 : vector<20x20xf32>
    %cst_19 = arith.constant 0.000000e+00 : f32
    %48 = vector.broadcast %cst_19 : f32 to vector<20x20xf32>
    %49 = arith.cmpf ogt, %47, %48 : vector<20x20xf32>
    %cst_20 = arith.constant 2.000000e-01 : f32
    %50 = vector.broadcast %cst_20 : f32 to vector<20x20xf32>
    %51 = arith.mulf %50, %47 : vector<20x20xf32>
    %52 = arith.select %49, %47, %51 : vector<20x20xi1>, vector<20x20xf32>
    %53 = vector.broadcast %37 : f32 to vector<20x20xf32>
    %54 = arith.mulf %53, %52 : vector<20x20xf32>
    %55 = arith.addf %35, %54 : vector<20x20xf32>
    %56 = arith.index_cast %arg0 : i32 to index
    %c2 = arith.constant 2 : index
    %57 = memref.load %arg6[%56, %c2] : memref<2x16xf32, #tpu.memory_space<smem>>
    %58 = arith.index_cast %arg0 : i32 to index
    %c2_21 = arith.constant 2 : index
    %59 = memref.load %arg7[%58, %c2_21] : memref<2x16xf32, #tpu.memory_space<smem>>
    %60 = vector.extract_strided_slice %13 {offsets = [0, 2], sizes = [20, 1], strides = [1, 1]} : vector<20x128xf32> to vector<20x1xf32>
    %61 = vector.extract_strided_slice %14 {offsets = [2, 0], sizes = [1, 20], strides = [1, 1]} : vector<128x20xf32> to vector<1x20xf32>
    %62 = vector.broadcast %60 : vector<20x1xf32> to vector<20x20xf32>
    %63 = vector.broadcast %61 : vector<1x20xf32> to vector<20x20xf32>
    %64 = arith.addf %62, %63 : vector<20x20xf32>
    %65 = vector.broadcast %59 : f32 to vector<20x20xf32>
    %66 = arith.mulf %65, %4 : vector<20x20xf32>
    %67 = arith.addf %64, %66 : vector<20x20xf32>
    %cst_22 = arith.constant 0.000000e+00 : f32
    %68 = vector.broadcast %cst_22 : f32 to vector<20x20xf32>
    %69 = arith.cmpf ogt, %67, %68 : vector<20x20xf32>
    %cst_23 = arith.constant 2.000000e-01 : f32
    %70 = vector.broadcast %cst_23 : f32 to vector<20x20xf32>
    %71 = arith.mulf %70, %67 : vector<20x20xf32>
    %72 = arith.select %69, %67, %71 : vector<20x20xi1>, vector<20x20xf32>
    %73 = vector.broadcast %57 : f32 to vector<20x20xf32>
    %74 = arith.mulf %73, %72 : vector<20x20xf32>
    %75 = arith.addf %55, %74 : vector<20x20xf32>
    %76 = arith.index_cast %arg0 : i32 to index
    %c3 = arith.constant 3 : index
    %77 = memref.load %arg6[%76, %c3] : memref<2x16xf32, #tpu.memory_space<smem>>
    %78 = arith.index_cast %arg0 : i32 to index
    %c3_24 = arith.constant 3 : index
    %79 = memref.load %arg7[%78, %c3_24] : memref<2x16xf32, #tpu.memory_space<smem>>
    %80 = vector.extract_strided_slice %13 {offsets = [0, 3], sizes = [20, 1], strides = [1, 1]} : vector<20x128xf32> to vector<20x1xf32>
    %81 = vector.extract_strided_slice %14 {offsets = [3, 0], sizes = [1, 20], strides = [1, 1]} : vector<128x20xf32> to vector<1x20xf32>
    %82 = vector.broadcast %80 : vector<20x1xf32> to vector<20x20xf32>
    %83 = vector.broadcast %81 : vector<1x20xf32> to vector<20x20xf32>
    %84 = arith.addf %82, %83 : vector<20x20xf32>
    %85 = vector.broadcast %79 : f32 to vector<20x20xf32>
    %86 = arith.mulf %85, %4 : vector<20x20xf32>
    %87 = arith.addf %84, %86 : vector<20x20xf32>
    %cst_25 = arith.constant 0.000000e+00 : f32
    %88 = vector.broadcast %cst_25 : f32 to vector<20x20xf32>
    %89 = arith.cmpf ogt, %87, %88 : vector<20x20xf32>
    %cst_26 = arith.constant 2.000000e-01 : f32
    %90 = vector.broadcast %cst_26 : f32 to vector<20x20xf32>
    %91 = arith.mulf %90, %87 : vector<20x20xf32>
    %92 = arith.select %89, %87, %91 : vector<20x20xi1>, vector<20x20xf32>
    %93 = vector.broadcast %77 : f32 to vector<20x20xf32>
    %94 = arith.mulf %93, %92 : vector<20x20xf32>
    %95 = arith.addf %75, %94 : vector<20x20xf32>
    %96 = arith.index_cast %arg0 : i32 to index
    %c4 = arith.constant 4 : index
    %97 = memref.load %arg6[%96, %c4] : memref<2x16xf32, #tpu.memory_space<smem>>
    %98 = arith.index_cast %arg0 : i32 to index
    %c4_27 = arith.constant 4 : index
    %99 = memref.load %arg7[%98, %c4_27] : memref<2x16xf32, #tpu.memory_space<smem>>
    %100 = vector.extract_strided_slice %13 {offsets = [0, 4], sizes = [20, 1], strides = [1, 1]} : vector<20x128xf32> to vector<20x1xf32>
    %101 = vector.extract_strided_slice %14 {offsets = [4, 0], sizes = [1, 20], strides = [1, 1]} : vector<128x20xf32> to vector<1x20xf32>
    %102 = vector.broadcast %100 : vector<20x1xf32> to vector<20x20xf32>
    %103 = vector.broadcast %101 : vector<1x20xf32> to vector<20x20xf32>
    %104 = arith.addf %102, %103 : vector<20x20xf32>
    %105 = vector.broadcast %99 : f32 to vector<20x20xf32>
    %106 = arith.mulf %105, %4 : vector<20x20xf32>
    %107 = arith.addf %104, %106 : vector<20x20xf32>
    %cst_28 = arith.constant 0.000000e+00 : f32
    %108 = vector.broadcast %cst_28 : f32 to vector<20x20xf32>
    %109 = arith.cmpf ogt, %107, %108 : vector<20x20xf32>
    %cst_29 = arith.constant 2.000000e-01 : f32
    %110 = vector.broadcast %cst_29 : f32 to vector<20x20xf32>
    %111 = arith.mulf %110, %107 : vector<20x20xf32>
    %112 = arith.select %109, %107, %111 : vector<20x20xi1>, vector<20x20xf32>
    %113 = vector.broadcast %97 : f32 to vector<20x20xf32>
    %114 = arith.mulf %113, %112 : vector<20x20xf32>
    %115 = arith.addf %95, %114 : vector<20x20xf32>
    %116 = arith.index_cast %arg0 : i32 to index
    %c5 = arith.constant 5 : index
    %117 = memref.load %arg6[%116, %c5] : memref<2x16xf32, #tpu.memory_space<smem>>
    %118 = arith.index_cast %arg0 : i32 to index
    %c5_30 = arith.constant 5 : index
    %119 = memref.load %arg7[%118, %c5_30] : memref<2x16xf32, #tpu.memory_space<smem>>
    %120 = vector.extract_strided_slice %13 {offsets = [0, 5], sizes = [20, 1], strides = [1, 1]} : vector<20x128xf32> to vector<20x1xf32>
    %121 = vector.extract_strided_slice %14 {offsets = [5, 0], sizes = [1, 20], strides = [1, 1]} : vector<128x20xf32> to vector<1x20xf32>
    %122 = vector.broadcast %120 : vector<20x1xf32> to vector<20x20xf32>
    %123 = vector.broadcast %121 : vector<1x20xf32> to vector<20x20xf32>
    %124 = arith.addf %122, %123 : vector<20x20xf32>
    %125 = vector.broadcast %119 : f32 to vector<20x20xf32>
    %126 = arith.mulf %125, %4 : vector<20x20xf32>
    %127 = arith.addf %124, %126 : vector<20x20xf32>
    %cst_31 = arith.constant 0.000000e+00 : f32
    %128 = vector.broadcast %cst_31 : f32 to vector<20x20xf32>
    %129 = arith.cmpf ogt, %127, %128 : vector<20x20xf32>
    %cst_32 = arith.constant 2.000000e-01 : f32
    %130 = vector.broadcast %cst_32 : f32 to vector<20x20xf32>
    %131 = arith.mulf %130, %127 : vector<20x20xf32>
    %132 = arith.select %129, %127, %131 : vector<20x20xi1>, vector<20x20xf32>
    %133 = vector.broadcast %117 : f32 to vector<20x20xf32>
    %134 = arith.mulf %133, %132 : vector<20x20xf32>
    %135 = arith.addf %115, %134 : vector<20x20xf32>
    %136 = arith.index_cast %arg0 : i32 to index
    %c6 = arith.constant 6 : index
    %137 = memref.load %arg6[%136, %c6] : memref<2x16xf32, #tpu.memory_space<smem>>
    %138 = arith.index_cast %arg0 : i32 to index
    %c6_33 = arith.constant 6 : index
    %139 = memref.load %arg7[%138, %c6_33] : memref<2x16xf32, #tpu.memory_space<smem>>
    %140 = vector.extract_strided_slice %13 {offsets = [0, 6], sizes = [20, 1], strides = [1, 1]} : vector<20x128xf32> to vector<20x1xf32>
    %141 = vector.extract_strided_slice %14 {offsets = [6, 0], sizes = [1, 20], strides = [1, 1]} : vector<128x20xf32> to vector<1x20xf32>
    %142 = vector.broadcast %140 : vector<20x1xf32> to vector<20x20xf32>
    %143 = vector.broadcast %141 : vector<1x20xf32> to vector<20x20xf32>
    %144 = arith.addf %142, %143 : vector<20x20xf32>
    %145 = vector.broadcast %139 : f32 to vector<20x20xf32>
    %146 = arith.mulf %145, %4 : vector<20x20xf32>
    %147 = arith.addf %144, %146 : vector<20x20xf32>
    %cst_34 = arith.constant 0.000000e+00 : f32
    %148 = vector.broadcast %cst_34 : f32 to vector<20x20xf32>
    %149 = arith.cmpf ogt, %147, %148 : vector<20x20xf32>
    %cst_35 = arith.constant 2.000000e-01 : f32
    %150 = vector.broadcast %cst_35 : f32 to vector<20x20xf32>
    %151 = arith.mulf %150, %147 : vector<20x20xf32>
    %152 = arith.select %149, %147, %151 : vector<20x20xi1>, vector<20x20xf32>
    %153 = vector.broadcast %137 : f32 to vector<20x20xf32>
    %154 = arith.mulf %153, %152 : vector<20x20xf32>
    %155 = arith.addf %135, %154 : vector<20x20xf32>
    %156 = arith.index_cast %arg0 : i32 to index
    %c7 = arith.constant 7 : index
    %157 = memref.load %arg6[%156, %c7] : memref<2x16xf32, #tpu.memory_space<smem>>
    %158 = arith.index_cast %arg0 : i32 to index
    %c7_36 = arith.constant 7 : index
    %159 = memref.load %arg7[%158, %c7_36] : memref<2x16xf32, #tpu.memory_space<smem>>
    %160 = vector.extract_strided_slice %13 {offsets = [0, 7], sizes = [20, 1], strides = [1, 1]} : vector<20x128xf32> to vector<20x1xf32>
    %161 = vector.extract_strided_slice %14 {offsets = [7, 0], sizes = [1, 20], strides = [1, 1]} : vector<128x20xf32> to vector<1x20xf32>
    %162 = vector.broadcast %160 : vector<20x1xf32> to vector<20x20xf32>
    %163 = vector.broadcast %161 : vector<1x20xf32> to vector<20x20xf32>
    %164 = arith.addf %162, %163 : vector<20x20xf32>
    %165 = vector.broadcast %159 : f32 to vector<20x20xf32>
    %166 = arith.mulf %165, %4 : vector<20x20xf32>
    %167 = arith.addf %164, %166 : vector<20x20xf32>
    %cst_37 = arith.constant 0.000000e+00 : f32
    %168 = vector.broadcast %cst_37 : f32 to vector<20x20xf32>
    %169 = arith.cmpf ogt, %167, %168 : vector<20x20xf32>
    %cst_38 = arith.constant 2.000000e-01 : f32
    %170 = vector.broadcast %cst_38 : f32 to vector<20x20xf32>
    %171 = arith.mulf %170, %167 : vector<20x20xf32>
    %172 = arith.select %169, %167, %171 : vector<20x20xi1>, vector<20x20xf32>
    %173 = vector.broadcast %157 : f32 to vector<20x20xf32>
    %174 = arith.mulf %173, %172 : vector<20x20xf32>
    %175 = arith.addf %155, %174 : vector<20x20xf32>
    %176 = arith.index_cast %arg0 : i32 to index
    %c8 = arith.constant 8 : index
    %177 = memref.load %arg6[%176, %c8] : memref<2x16xf32, #tpu.memory_space<smem>>
    %178 = arith.index_cast %arg0 : i32 to index
    %c8_39 = arith.constant 8 : index
    %179 = memref.load %arg7[%178, %c8_39] : memref<2x16xf32, #tpu.memory_space<smem>>
    %180 = vector.extract_strided_slice %13 {offsets = [0, 8], sizes = [20, 1], strides = [1, 1]} : vector<20x128xf32> to vector<20x1xf32>
    %181 = vector.extract_strided_slice %14 {offsets = [8, 0], sizes = [1, 20], strides = [1, 1]} : vector<128x20xf32> to vector<1x20xf32>
    %182 = vector.broadcast %180 : vector<20x1xf32> to vector<20x20xf32>
    %183 = vector.broadcast %181 : vector<1x20xf32> to vector<20x20xf32>
    %184 = arith.addf %182, %183 : vector<20x20xf32>
    %185 = vector.broadcast %179 : f32 to vector<20x20xf32>
    %186 = arith.mulf %185, %4 : vector<20x20xf32>
    %187 = arith.addf %184, %186 : vector<20x20xf32>
    %cst_40 = arith.constant 0.000000e+00 : f32
    %188 = vector.broadcast %cst_40 : f32 to vector<20x20xf32>
    %189 = arith.cmpf ogt, %187, %188 : vector<20x20xf32>
    %cst_41 = arith.constant 2.000000e-01 : f32
    %190 = vector.broadcast %cst_41 : f32 to vector<20x20xf32>
    %191 = arith.mulf %190, %187 : vector<20x20xf32>
    %192 = arith.select %189, %187, %191 : vector<20x20xi1>, vector<20x20xf32>
    %193 = vector.broadcast %177 : f32 to vector<20x20xf32>
    %194 = arith.mulf %193, %192 : vector<20x20xf32>
    %195 = arith.addf %175, %194 : vector<20x20xf32>
    %196 = arith.index_cast %arg0 : i32 to index
    %c9 = arith.constant 9 : index
    %197 = memref.load %arg6[%196, %c9] : memref<2x16xf32, #tpu.memory_space<smem>>
    %198 = arith.index_cast %arg0 : i32 to index
    %c9_42 = arith.constant 9 : index
    %199 = memref.load %arg7[%198, %c9_42] : memref<2x16xf32, #tpu.memory_space<smem>>
    %200 = vector.extract_strided_slice %13 {offsets = [0, 9], sizes = [20, 1], strides = [1, 1]} : vector<20x128xf32> to vector<20x1xf32>
    %201 = vector.extract_strided_slice %14 {offsets = [9, 0], sizes = [1, 20], strides = [1, 1]} : vector<128x20xf32> to vector<1x20xf32>
    %202 = vector.broadcast %200 : vector<20x1xf32> to vector<20x20xf32>
    %203 = vector.broadcast %201 : vector<1x20xf32> to vector<20x20xf32>
    %204 = arith.addf %202, %203 : vector<20x20xf32>
    %205 = vector.broadcast %199 : f32 to vector<20x20xf32>
    %206 = arith.mulf %205, %4 : vector<20x20xf32>
    %207 = arith.addf %204, %206 : vector<20x20xf32>
    %cst_43 = arith.constant 0.000000e+00 : f32
    %208 = vector.broadcast %cst_43 : f32 to vector<20x20xf32>
    %209 = arith.cmpf ogt, %207, %208 : vector<20x20xf32>
    %cst_44 = arith.constant 2.000000e-01 : f32
    %210 = vector.broadcast %cst_44 : f32 to vector<20x20xf32>
    %211 = arith.mulf %210, %207 : vector<20x20xf32>
    %212 = arith.select %209, %207, %211 : vector<20x20xi1>, vector<20x20xf32>
    %213 = vector.broadcast %197 : f32 to vector<20x20xf32>
    %214 = arith.mulf %213, %212 : vector<20x20xf32>
    %215 = arith.addf %195, %214 : vector<20x20xf32>
    %216 = arith.index_cast %arg0 : i32 to index
    %c10 = arith.constant 10 : index
    %217 = memref.load %arg6[%216, %c10] : memref<2x16xf32, #tpu.memory_space<smem>>
    %218 = arith.index_cast %arg0 : i32 to index
    %c10_45 = arith.constant 10 : index
    %219 = memref.load %arg7[%218, %c10_45] : memref<2x16xf32, #tpu.memory_space<smem>>
    %220 = vector.extract_strided_slice %13 {offsets = [0, 10], sizes = [20, 1], strides = [1, 1]} : vector<20x128xf32> to vector<20x1xf32>
    %221 = vector.extract_strided_slice %14 {offsets = [10, 0], sizes = [1, 20], strides = [1, 1]} : vector<128x20xf32> to vector<1x20xf32>
    %222 = vector.broadcast %220 : vector<20x1xf32> to vector<20x20xf32>
    %223 = vector.broadcast %221 : vector<1x20xf32> to vector<20x20xf32>
    %224 = arith.addf %222, %223 : vector<20x20xf32>
    %225 = vector.broadcast %219 : f32 to vector<20x20xf32>
    %226 = arith.mulf %225, %4 : vector<20x20xf32>
    %227 = arith.addf %224, %226 : vector<20x20xf32>
    %cst_46 = arith.constant 0.000000e+00 : f32
    %228 = vector.broadcast %cst_46 : f32 to vector<20x20xf32>
    %229 = arith.cmpf ogt, %227, %228 : vector<20x20xf32>
    %cst_47 = arith.constant 2.000000e-01 : f32
    %230 = vector.broadcast %cst_47 : f32 to vector<20x20xf32>
    %231 = arith.mulf %230, %227 : vector<20x20xf32>
    %232 = arith.select %229, %227, %231 : vector<20x20xi1>, vector<20x20xf32>
    %233 = vector.broadcast %217 : f32 to vector<20x20xf32>
    %234 = arith.mulf %233, %232 : vector<20x20xf32>
    %235 = arith.addf %215, %234 : vector<20x20xf32>
    %236 = arith.index_cast %arg0 : i32 to index
    %c11 = arith.constant 11 : index
    %237 = memref.load %arg6[%236, %c11] : memref<2x16xf32, #tpu.memory_space<smem>>
    %238 = arith.index_cast %arg0 : i32 to index
    %c11_48 = arith.constant 11 : index
    %239 = memref.load %arg7[%238, %c11_48] : memref<2x16xf32, #tpu.memory_space<smem>>
    %240 = vector.extract_strided_slice %13 {offsets = [0, 11], sizes = [20, 1], strides = [1, 1]} : vector<20x128xf32> to vector<20x1xf32>
    %241 = vector.extract_strided_slice %14 {offsets = [11, 0], sizes = [1, 20], strides = [1, 1]} : vector<128x20xf32> to vector<1x20xf32>
    %242 = vector.broadcast %240 : vector<20x1xf32> to vector<20x20xf32>
    %243 = vector.broadcast %241 : vector<1x20xf32> to vector<20x20xf32>
    %244 = arith.addf %242, %243 : vector<20x20xf32>
    %245 = vector.broadcast %239 : f32 to vector<20x20xf32>
    %246 = arith.mulf %245, %4 : vector<20x20xf32>
    %247 = arith.addf %244, %246 : vector<20x20xf32>
    %cst_49 = arith.constant 0.000000e+00 : f32
    %248 = vector.broadcast %cst_49 : f32 to vector<20x20xf32>
    %249 = arith.cmpf ogt, %247, %248 : vector<20x20xf32>
    %cst_50 = arith.constant 2.000000e-01 : f32
    %250 = vector.broadcast %cst_50 : f32 to vector<20x20xf32>
    %251 = arith.mulf %250, %247 : vector<20x20xf32>
    %252 = arith.select %249, %247, %251 : vector<20x20xi1>, vector<20x20xf32>
    %253 = vector.broadcast %237 : f32 to vector<20x20xf32>
    %254 = arith.mulf %253, %252 : vector<20x20xf32>
    %255 = arith.addf %235, %254 : vector<20x20xf32>
    %256 = arith.index_cast %arg0 : i32 to index
    %c12 = arith.constant 12 : index
    %257 = memref.load %arg6[%256, %c12] : memref<2x16xf32, #tpu.memory_space<smem>>
    %258 = arith.index_cast %arg0 : i32 to index
    %c12_51 = arith.constant 12 : index
    %259 = memref.load %arg7[%258, %c12_51] : memref<2x16xf32, #tpu.memory_space<smem>>
    %260 = vector.extract_strided_slice %13 {offsets = [0, 12], sizes = [20, 1], strides = [1, 1]} : vector<20x128xf32> to vector<20x1xf32>
    %261 = vector.extract_strided_slice %14 {offsets = [12, 0], sizes = [1, 20], strides = [1, 1]} : vector<128x20xf32> to vector<1x20xf32>
    %262 = vector.broadcast %260 : vector<20x1xf32> to vector<20x20xf32>
    %263 = vector.broadcast %261 : vector<1x20xf32> to vector<20x20xf32>
    %264 = arith.addf %262, %263 : vector<20x20xf32>
    %265 = vector.broadcast %259 : f32 to vector<20x20xf32>
    %266 = arith.mulf %265, %4 : vector<20x20xf32>
    %267 = arith.addf %264, %266 : vector<20x20xf32>
    %cst_52 = arith.constant 0.000000e+00 : f32
    %268 = vector.broadcast %cst_52 : f32 to vector<20x20xf32>
    %269 = arith.cmpf ogt, %267, %268 : vector<20x20xf32>
    %cst_53 = arith.constant 2.000000e-01 : f32
    %270 = vector.broadcast %cst_53 : f32 to vector<20x20xf32>
    %271 = arith.mulf %270, %267 : vector<20x20xf32>
    %272 = arith.select %269, %267, %271 : vector<20x20xi1>, vector<20x20xf32>
    %273 = vector.broadcast %257 : f32 to vector<20x20xf32>
    %274 = arith.mulf %273, %272 : vector<20x20xf32>
    %275 = arith.addf %255, %274 : vector<20x20xf32>
    %276 = arith.index_cast %arg0 : i32 to index
    %c13 = arith.constant 13 : index
    %277 = memref.load %arg6[%276, %c13] : memref<2x16xf32, #tpu.memory_space<smem>>
    %278 = arith.index_cast %arg0 : i32 to index
    %c13_54 = arith.constant 13 : index
    %279 = memref.load %arg7[%278, %c13_54] : memref<2x16xf32, #tpu.memory_space<smem>>
    %280 = vector.extract_strided_slice %13 {offsets = [0, 13], sizes = [20, 1], strides = [1, 1]} : vector<20x128xf32> to vector<20x1xf32>
    %281 = vector.extract_strided_slice %14 {offsets = [13, 0], sizes = [1, 20], strides = [1, 1]} : vector<128x20xf32> to vector<1x20xf32>
    %282 = vector.broadcast %280 : vector<20x1xf32> to vector<20x20xf32>
    %283 = vector.broadcast %281 : vector<1x20xf32> to vector<20x20xf32>
    %284 = arith.addf %282, %283 : vector<20x20xf32>
    %285 = vector.broadcast %279 : f32 to vector<20x20xf32>
    %286 = arith.mulf %285, %4 : vector<20x20xf32>
    %287 = arith.addf %284, %286 : vector<20x20xf32>
    %cst_55 = arith.constant 0.000000e+00 : f32
    %288 = vector.broadcast %cst_55 : f32 to vector<20x20xf32>
    %289 = arith.cmpf ogt, %287, %288 : vector<20x20xf32>
    %cst_56 = arith.constant 2.000000e-01 : f32
    %290 = vector.broadcast %cst_56 : f32 to vector<20x20xf32>
    %291 = arith.mulf %290, %287 : vector<20x20xf32>
    %292 = arith.select %289, %287, %291 : vector<20x20xi1>, vector<20x20xf32>
    %293 = vector.broadcast %277 : f32 to vector<20x20xf32>
    %294 = arith.mulf %293, %292 : vector<20x20xf32>
    %295 = arith.addf %275, %294 : vector<20x20xf32>
    %296 = arith.index_cast %arg0 : i32 to index
    %c14 = arith.constant 14 : index
    %297 = memref.load %arg6[%296, %c14] : memref<2x16xf32, #tpu.memory_space<smem>>
    %298 = arith.index_cast %arg0 : i32 to index
    %c14_57 = arith.constant 14 : index
    %299 = memref.load %arg7[%298, %c14_57] : memref<2x16xf32, #tpu.memory_space<smem>>
    %300 = vector.extract_strided_slice %13 {offsets = [0, 14], sizes = [20, 1], strides = [1, 1]} : vector<20x128xf32> to vector<20x1xf32>
    %301 = vector.extract_strided_slice %14 {offsets = [14, 0], sizes = [1, 20], strides = [1, 1]} : vector<128x20xf32> to vector<1x20xf32>
    %302 = vector.broadcast %300 : vector<20x1xf32> to vector<20x20xf32>
    %303 = vector.broadcast %301 : vector<1x20xf32> to vector<20x20xf32>
    %304 = arith.addf %302, %303 : vector<20x20xf32>
    %305 = vector.broadcast %299 : f32 to vector<20x20xf32>
    %306 = arith.mulf %305, %4 : vector<20x20xf32>
    %307 = arith.addf %304, %306 : vector<20x20xf32>
    %cst_58 = arith.constant 0.000000e+00 : f32
    %308 = vector.broadcast %cst_58 : f32 to vector<20x20xf32>
    %309 = arith.cmpf ogt, %307, %308 : vector<20x20xf32>
    %cst_59 = arith.constant 2.000000e-01 : f32
    %310 = vector.broadcast %cst_59 : f32 to vector<20x20xf32>
    %311 = arith.mulf %310, %307 : vector<20x20xf32>
    %312 = arith.select %309, %307, %311 : vector<20x20xi1>, vector<20x20xf32>
    %313 = vector.broadcast %297 : f32 to vector<20x20xf32>
    %314 = arith.mulf %313, %312 : vector<20x20xf32>
    %315 = arith.addf %295, %314 : vector<20x20xf32>
    %316 = arith.index_cast %arg0 : i32 to index
    %c15 = arith.constant 15 : index
    %317 = memref.load %arg6[%316, %c15] : memref<2x16xf32, #tpu.memory_space<smem>>
    %318 = arith.index_cast %arg0 : i32 to index
    %c15_60 = arith.constant 15 : index
    %319 = memref.load %arg7[%318, %c15_60] : memref<2x16xf32, #tpu.memory_space<smem>>
    %320 = vector.extract_strided_slice %13 {offsets = [0, 15], sizes = [20, 1], strides = [1, 1]} : vector<20x128xf32> to vector<20x1xf32>
    %321 = vector.extract_strided_slice %14 {offsets = [15, 0], sizes = [1, 20], strides = [1, 1]} : vector<128x20xf32> to vector<1x20xf32>
    %322 = vector.broadcast %320 : vector<20x1xf32> to vector<20x20xf32>
    %323 = vector.broadcast %321 : vector<1x20xf32> to vector<20x20xf32>
    %324 = arith.addf %322, %323 : vector<20x20xf32>
    %325 = vector.broadcast %319 : f32 to vector<20x20xf32>
    %326 = arith.mulf %325, %4 : vector<20x20xf32>
    %327 = arith.addf %324, %326 : vector<20x20xf32>
    %cst_61 = arith.constant 0.000000e+00 : f32
    %328 = vector.broadcast %cst_61 : f32 to vector<20x20xf32>
    %329 = arith.cmpf ogt, %327, %328 : vector<20x20xf32>
    %cst_62 = arith.constant 2.000000e-01 : f32
    %330 = vector.broadcast %cst_62 : f32 to vector<20x20xf32>
    %331 = arith.mulf %330, %327 : vector<20x20xf32>
    %332 = arith.select %329, %327, %331 : vector<20x20xi1>, vector<20x20xf32>
    %333 = vector.broadcast %317 : f32 to vector<20x20xf32>
    %334 = arith.mulf %333, %332 : vector<20x20xf32>
    %335 = arith.addf %315, %334 : vector<20x20xf32>
    %cst_63 = arith.constant 0.000000e+00 : bf16
    %336 = vector.broadcast %cst_63 : bf16 to vector<20x20xbf16>
    %337 = arith.cmpf ogt, %2, %336 : vector<20x20xbf16>
    %cst_64 = arith.constant -1.000000e+30 : f32
    %338 = vector.broadcast %cst_64 : f32 to vector<20x20xf32>
    %339 = arith.select %337, %335, %338 : vector<20x20xi1>, vector<20x20xf32>
    %cst_65 = arith.constant dense<0xFF800000> : vector<20xf32>
    %340 = vector.multi_reduction <maximumf>, %339, %cst_65 [1] : vector<20x20xf32> to vector<20xf32>
    %341 = vector.shape_cast %340 : vector<20xf32> to vector<20x1xf32>
    %342 = vector.broadcast %341 : vector<20x1xf32> to vector<20x20xf32>
    %343 = arith.subf %339, %342 : vector<20x20xf32>
    %344 = math.exp %343 : vector<20x20xf32>
    %cst_66 = arith.constant 0.000000e+00 : f32
    %345 = vector.broadcast %cst_66 : f32 to vector<20x20xf32>
    %346 = arith.select %337, %344, %345 : vector<20x20xi1>, vector<20x20xf32>
    %cst_67 = arith.constant dense<0.000000e+00> : vector<20xf32>
    %347 = vector.multi_reduction <add>, %346, %cst_67 [1] : vector<20x20xf32> to vector<20xf32>
    %348 = vector.shape_cast %347 : vector<20xf32> to vector<20x1xf32>
    %349 = vector.broadcast %348 : vector<20x1xf32> to vector<20x20xf32>
    %350 = arith.divf %346, %349 : vector<20x20xf32>
    %351 = arith.truncf %350 : vector<20x20xf32> to vector<20x20xbf16>
    %352 = arith.truncf %12 : vector<20x128xf32> to vector<20x128xbf16>
    %cst_68 = arith.constant dense<0.000000e+00> : vector<20x128xf32>
    %353 = tpu.matmul %351, %352, %cst_68 {dimension_numbers = #tpu.dot_dimension_numbers<[1], [0], [0], [1], [0, 0, 1, 1], [], []>} : vector<20x20xbf16>, vector<20x128xbf16>, vector<20x128xf32> -> vector<20x128xf32>
    %cst_69 = arith.constant dense<0.000000e+00> : vector<128xf32>
    %354 = vector.multi_reduction <add>, %353, %cst_69 [0] : vector<20x128xf32> to vector<128xf32>
    %355 = vector.shape_cast %354 : vector<128xf32> to vector<1x128xf32>
    %cst_70 = arith.constant 2.000000e+01 : f32
    %356 = vector.broadcast %cst_70 : f32 to vector<1x128xf32>
    %357 = arith.divf %355, %356 : vector<1x128xf32>
    %358 = vector.broadcast %357 : vector<1x128xf32> to vector<20x128xf32>
    %359 = arith.subf %353, %358 : vector<20x128xf32>
    %360 = arith.mulf %359, %359 : vector<20x128xf32>
    %cst_71 = arith.constant dense<0.000000e+00> : vector<128xf32>
    %361 = vector.multi_reduction <add>, %360, %cst_71 [0] : vector<20x128xf32> to vector<128xf32>
    %362 = vector.shape_cast %361 : vector<128xf32> to vector<1x128xf32>
    %cst_72 = arith.constant 2.000000e+01 : f32
    %363 = vector.broadcast %cst_72 : f32 to vector<1x128xf32>
    %364 = arith.divf %362, %363 : vector<1x128xf32>
    %365 = vector.broadcast %357 : vector<1x128xf32> to vector<20x128xf32>
    %366 = arith.subf %353, %365 : vector<20x128xf32>
    %cst_73 = arith.constant 9.99999974E-6 : f32
    %367 = vector.broadcast %cst_73 : f32 to vector<1x128xf32>
    %368 = arith.addf %364, %367 : vector<1x128xf32>
    %369 = math.rsqrt %368 : vector<1x128xf32>
    %370 = vector.broadcast %369 : vector<1x128xf32> to vector<20x128xf32>
    %371 = arith.mulf %366, %370 : vector<20x128xf32>
    %cst_74 = arith.constant 0.000000e+00 : f32
    %372 = vector.broadcast %cst_74 : f32 to vector<20x128xf32>
    %373 = arith.cmpf ogt, %371, %372 : vector<20x128xf32>
    %cst_75 = arith.constant 2.000000e-01 : f32
    %374 = vector.broadcast %cst_75 : f32 to vector<20x128xf32>
    %375 = arith.mulf %374, %371 : vector<20x128xf32>
    %376 = arith.select %373, %371, %375 : vector<20x128xi1>, vector<20x128xf32>
    %c0_76 = arith.constant 0 : index
    %c0_77 = arith.constant 0 : index
    %377 = vector.load %arg8[%c0_76, %c0_77] : memref<20x128xf32, #tpu.memory_space<vmem>>, vector<20x128xf32>
    tpu.vector_store %arg8[%c0_76, %c0_77], %376 {strides = array<i32>} : memref<20x128xf32, #tpu.memory_space<vmem>>, vector<20x128xf32>,
    return
  }
  func.func @transform_0(%arg0: i32) -> (i32, i32) {
    %c0_i32 = arith.constant 0 : i32
    %c0_i32_0 = arith.constant 0 : i32
    %c0_i32_1 = arith.constant 0 : i32
    return %c0_i32, %c0_i32_0 : i32, i32
  }
  func.func @transform_1(%arg0: i32) -> (i32, i32, i32) {
    %c0_i32 = arith.constant 0 : i32
    %c0_i32_0 = arith.constant 0 : i32
    %c0_i32_1 = arith.constant 0 : i32
    return %arg0, %c0_i32, %c0_i32_0 : i32, i32, i32
  }
  func.func @transform_2(%arg0: i32) -> (i32, i32, i32) {
    %c0_i32 = arith.constant 0 : i32
    %c0_i32_0 = arith.constant 0 : i32
    %c0_i32_1 = arith.constant 0 : i32
    return %arg0, %c0_i32, %c0_i32_0 : i32, i32, i32
  }
  func.func @transform_3(%arg0: i32) -> (i32, i32, i32) {
    %c0_i32 = arith.constant 0 : i32
    %c0_i32_0 = arith.constant 0 : i32
    %c0_i32_1 = arith.constant 0 : i32
    return %arg0, %c0_i32, %c0_i32_0 : i32, i32, i32
  }
  func.func @transform_4(%arg0: i32) -> (i32, i32, i32) {
    %c0_i32 = arith.constant 0 : i32
    %c0_i32_0 = arith.constant 0 : i32
    %c0_i32_1 = arith.constant 0 : i32
    return %arg0, %c0_i32, %c0_i32_0 : i32, i32, i32
  }
  func.func @transform_5(%arg0: i32) -> (i32, i32) {
    %c0_i32 = arith.constant 0 : i32
    %c0_i32_0 = arith.constant 0 : i32
    %c0_i32_1 = arith.constant 0 : i32
    return %c0_i32, %c0_i32_0 : i32, i32
  }
  func.func @transform_6(%arg0: i32) -> (i32, i32) {
    %c0_i32 = arith.constant 0 : i32
    %c0_i32_0 = arith.constant 0 : i32
    %c0_i32_1 = arith.constant 0 : i32
    return %c0_i32, %c0_i32_0 : i32, i32
  }
  func.func @transform_7(%arg0: i32) -> (i32, i32) {
    %c0_i32 = arith.constant 0 : i32
    %c0_i32_0 = arith.constant 0 : i32
    return %c0_i32, %arg0 : i32, i32
  }
}

module attributes {stable_mosaic.version = 11 : i64} {
  func.func @_frame_head_kernel(%arg0: i32, %arg1: memref<20x256xf32, #tpu.memory_space<vmem>>, %arg2: memref<20x1xf32, #tpu.memory_space<vmem>>, %arg3: memref<20x4xf32, #tpu.memory_space<vmem>>, %arg4: memref<4x128xbf16, #tpu.memory_space<vmem>>, %arg5: memref<4x4xbf16, #tpu.memory_space<vmem>>, %arg6: memref<256x256xbf16, #tpu.memory_space<vmem>>, %arg7: memref<1x256xf32, #tpu.memory_space<vmem>>, %arg8: memref<128x256xbf16, #tpu.memory_space<vmem>>, %arg9: memref<1x256xf32, #tpu.memory_space<vmem>>, %arg10: memref<2x16xf32, #tpu.memory_space<smem>>, %arg11: memref<256x128xbf16, #tpu.memory_space<vmem>>, %arg12: memref<1x128xf32, #tpu.memory_space<vmem>>, %arg13: memref<128x2xbf16, #tpu.memory_space<vmem>>, %arg14: memref<1x2xf32, #tpu.memory_space<vmem>>, %arg15: memref<4x2xf32, #tpu.memory_space<vmem>>, %arg16: memref<4x2xf32, #tpu.memory_space<vmem>>, %arg17: memref<4x256xf32, #tpu.memory_space<vmem>>) attributes {dimension_semantics = [#tpu.dimension_semantics<arbitrary>], iteration_bounds = array<i64: 1>, scalar_prefetch = 0 : i64, scratch_operands = 1 : i64, tpu.core_type = #tpu.core_type<tc>, window_params = [{pipeline_mode = #tpu.pipeline_mode<synchronous>, transform_indices = @transform_0, window_bounds = array<i64: 20, 256>}, {pipeline_mode = #tpu.pipeline_mode<synchronous>, transform_indices = @transform_1, window_bounds = array<i64: 20, 1>}, {pipeline_mode = #tpu.pipeline_mode<synchronous>, transform_indices = @transform_2, window_bounds = array<i64: 20, 4>}, {pipeline_mode = #tpu.pipeline_mode<synchronous>, transform_indices = @transform_3, window_bounds = array<i64: 4, 128>}, {pipeline_mode = #tpu.pipeline_mode<synchronous>, transform_indices = @transform_4, window_bounds = array<i64: 4, 4>}, {pipeline_mode = #tpu.pipeline_mode<synchronous>, transform_indices = @transform_5, window_bounds = array<i64: 256, 256>}, {pipeline_mode = #tpu.pipeline_mode<synchronous>, transform_indices = @transform_6, window_bounds = array<i64: 1, 256>}, {pipeline_mode = #tpu.pipeline_mode<synchronous>, transform_indices = @transform_7, window_bounds = array<i64: 128, 256>}, {pipeline_mode = #tpu.pipeline_mode<synchronous>, transform_indices = @transform_8, window_bounds = array<i64: 1, 256>}, {transform_indices = @transform_9, window_bounds = array<i64: 2, 16>}, {pipeline_mode = #tpu.pipeline_mode<synchronous>, transform_indices = @transform_10, window_bounds = array<i64: 256, 128>}, {pipeline_mode = #tpu.pipeline_mode<synchronous>, transform_indices = @transform_11, window_bounds = array<i64: 1, 128>}, {pipeline_mode = #tpu.pipeline_mode<synchronous>, transform_indices = @transform_12, window_bounds = array<i64: 128, 2>}, {pipeline_mode = #tpu.pipeline_mode<synchronous>, transform_indices = @transform_13, window_bounds = array<i64: 1, 2>}, {pipeline_mode = #tpu.pipeline_mode<synchronous>, transform_indices = @transform_14, window_bounds = array<i64: 4, 2>}, {pipeline_mode = #tpu.pipeline_mode<synchronous>, transform_indices = @transform_15, window_bounds = array<i64: 4, 2>}]} {
    %c0 = arith.constant 0 : index
    %c0_0 = arith.constant 0 : index
    %0 = vector.load %arg1[%c0, %c0_0] : memref<20x256xf32, #tpu.memory_space<vmem>>, vector<20x256xf32>
    %c0_1 = arith.constant 0 : index
    %c0_2 = arith.constant 0 : index
    %1 = vector.load %arg2[%c0_1, %c0_2] : memref<20x1xf32, #tpu.memory_space<vmem>>, vector<20x1xf32>
    %2 = vector.broadcast %1 : vector<20x1xf32> to vector<20x256xf32>
    %3 = arith.mulf %0, %2 : vector<20x256xf32>
    %c0_3 = arith.constant 0 : index
    %c0_4 = arith.constant 0 : index
    %4 = vector.load %arg3[%c0_3, %c0_4] : memref<20x4xf32, #tpu.memory_space<vmem>>, vector<20x1xf32>
    %cst = arith.constant 0.000000e+00 : f32
    %5 = vector.broadcast %cst : f32 to vector<20x1xf32>
    %6 = arith.cmpf ogt, %4, %5 : vector<20x1xf32>
    %cst_5 = arith.constant -3.400000e+38 : f32
    %7 = vector.shape_cast %6 : vector<20x1xi1> to vector<20x1xi1>
    %8 = vector.broadcast %7 : vector<20x1xi1> to vector<20x256xi1>
    %9 = vector.broadcast %cst_5 : f32 to vector<20x256xf32>
    %10 = arith.select %8, %3, %9 : vector<20x256xi1>, vector<20x256xf32>
    %cst_6 = arith.constant dense<0xFF800000> : vector<256xf32>
    %11 = vector.multi_reduction <maximumf>, %10, %cst_6 [0] : vector<20x256xf32> to vector<256xf32>
    %12 = vector.shape_cast %11 : vector<256xf32> to vector<1x256xf32>
    %c0_7 = arith.constant 0 : index
    %c0_8 = arith.constant 0 : index
    %13 = vector.load %arg17[%c0_7, %c0_8] : memref<4x256xf32, #tpu.memory_space<vmem>>, vector<1x256xf32>
    tpu.vector_store %arg17[%c0_7, %c0_8], %12 {strides = array<i32>} : memref<4x256xf32, #tpu.memory_space<vmem>>, vector<1x256xf32>,
    %c0_9 = arith.constant 0 : index
    %c1 = arith.constant 1 : index
    %14 = vector.load %arg3[%c0_9, %c1] : memref<20x4xf32, #tpu.memory_space<vmem>>, vector<20x1xf32>
    %cst_10 = arith.constant 0.000000e+00 : f32
    %15 = vector.broadcast %cst_10 : f32 to vector<20x1xf32>
    %16 = arith.cmpf ogt, %14, %15 : vector<20x1xf32>
    %cst_11 = arith.constant -3.400000e+38 : f32
    %17 = vector.shape_cast %16 : vector<20x1xi1> to vector<20x1xi1>
    %18 = vector.broadcast %17 : vector<20x1xi1> to vector<20x256xi1>
    %19 = vector.broadcast %cst_11 : f32 to vector<20x256xf32>
    %20 = arith.select %18, %3, %19 : vector<20x256xi1>, vector<20x256xf32>
    %cst_12 = arith.constant dense<0xFF800000> : vector<256xf32>
    %21 = vector.multi_reduction <maximumf>, %20, %cst_12 [0] : vector<20x256xf32> to vector<256xf32>
    %22 = vector.shape_cast %21 : vector<256xf32> to vector<1x256xf32>
    %c1_13 = arith.constant 1 : index
    %c0_14 = arith.constant 0 : index
    %23 = vector.load %arg17[%c1_13, %c0_14] : memref<4x256xf32, #tpu.memory_space<vmem>>, vector<1x256xf32>
    tpu.vector_store %arg17[%c1_13, %c0_14], %22 {strides = array<i32>} : memref<4x256xf32, #tpu.memory_space<vmem>>, vector<1x256xf32>,
    %c0_15 = arith.constant 0 : index
    %c2 = arith.constant 2 : index
    %24 = vector.load %arg3[%c0_15, %c2] : memref<20x4xf32, #tpu.memory_space<vmem>>, vector<20x1xf32>
    %cst_16 = arith.constant 0.000000e+00 : f32
    %25 = vector.broadcast %cst_16 : f32 to vector<20x1xf32>
    %26 = arith.cmpf ogt, %24, %25 : vector<20x1xf32>
    %cst_17 = arith.constant -3.400000e+38 : f32
    %27 = vector.shape_cast %26 : vector<20x1xi1> to vector<20x1xi1>
    %28 = vector.broadcast %27 : vector<20x1xi1> to vector<20x256xi1>
    %29 = vector.broadcast %cst_17 : f32 to vector<20x256xf32>
    %30 = arith.select %28, %3, %29 : vector<20x256xi1>, vector<20x256xf32>
    %cst_18 = arith.constant dense<0xFF800000> : vector<256xf32>
    %31 = vector.multi_reduction <maximumf>, %30, %cst_18 [0] : vector<20x256xf32> to vector<256xf32>
    %32 = vector.shape_cast %31 : vector<256xf32> to vector<1x256xf32>
    %c2_19 = arith.constant 2 : index
    %c0_20 = arith.constant 0 : index
    %33 = vector.load %arg17[%c2_19, %c0_20] : memref<4x256xf32, #tpu.memory_space<vmem>>, vector<1x256xf32>
    tpu.vector_store %arg17[%c2_19, %c0_20], %32 {strides = array<i32>} : memref<4x256xf32, #tpu.memory_space<vmem>>, vector<1x256xf32>,
    %c0_21 = arith.constant 0 : index
    %c3 = arith.constant 3 : index
    %34 = vector.load %arg3[%c0_21, %c3] : memref<20x4xf32, #tpu.memory_space<vmem>>, vector<20x1xf32>
    %cst_22 = arith.constant 0.000000e+00 : f32
    %35 = vector.broadcast %cst_22 : f32 to vector<20x1xf32>
    %36 = arith.cmpf ogt, %34, %35 : vector<20x1xf32>
    %cst_23 = arith.constant -3.400000e+38 : f32
    %37 = vector.shape_cast %36 : vector<20x1xi1> to vector<20x1xi1>
    %38 = vector.broadcast %37 : vector<20x1xi1> to vector<20x256xi1>
    %39 = vector.broadcast %cst_23 : f32 to vector<20x256xf32>
    %40 = arith.select %38, %3, %39 : vector<20x256xi1>, vector<20x256xf32>
    %cst_24 = arith.constant dense<0xFF800000> : vector<256xf32>
    %41 = vector.multi_reduction <maximumf>, %40, %cst_24 [0] : vector<20x256xf32> to vector<256xf32>
    %42 = vector.shape_cast %41 : vector<256xf32> to vector<1x256xf32>
    %c3_25 = arith.constant 3 : index
    %c0_26 = arith.constant 0 : index
    %43 = vector.load %arg17[%c3_25, %c0_26] : memref<4x256xf32, #tpu.memory_space<vmem>>, vector<1x256xf32>
    tpu.vector_store %arg17[%c3_25, %c0_26], %42 {strides = array<i32>} : memref<4x256xf32, #tpu.memory_space<vmem>>, vector<1x256xf32>,
    %c0_27 = arith.constant 0 : index
    %c0_28 = arith.constant 0 : index
    %44 = vector.load %arg5[%c0_27, %c0_28] : memref<4x4xbf16, #tpu.memory_space<vmem>>, vector<4x4xbf16>
    %cst_29 = arith.constant 0.000000e+00 : bf16
    %45 = vector.broadcast %cst_29 : bf16 to vector<4x4xbf16>
    %46 = arith.cmpf ogt, %44, %45 : vector<4x4xbf16>
    %c0_30 = arith.constant 0 : index
    %c0_31 = arith.constant 0 : index
    %47 = vector.load %arg17[%c0_30, %c0_31] : memref<4x256xf32, #tpu.memory_space<vmem>>, vector<4x256xf32>
    %48 = arith.truncf %47 : vector<4x256xf32> to vector<4x256xbf16>
    %c0_32 = arith.constant 0 : index
    %c0_33 = arith.constant 0 : index
    %49 = vector.load %arg6[%c0_32, %c0_33] : memref<256x256xbf16, #tpu.memory_space<vmem>>, vector<256x256xbf16>
    %c0_34 = arith.constant 0 : index
    %c0_35 = arith.constant 0 : index
    %50 = vector.load %arg7[%c0_34, %c0_35] : memref<1x256xf32, #tpu.memory_space<vmem>>, vector<1x256xf32>
    %cst_36 = arith.constant dense<0.000000e+00> : vector<4x256xf32>
    %51 = tpu.matmul %48, %49, %cst_36 {dimension_numbers = #tpu.dot_dimension_numbers<[1], [0], [0], [1], [0, 0, 1, 1], [], []>} : vector<4x256xbf16>, vector<256x256xbf16>, vector<4x256xf32> -> vector<4x256xf32>
    %52 = vector.broadcast %50 : vector<1x256xf32> to vector<4x256xf32>
    %53 = arith.addf %51, %52 : vector<4x256xf32>
    %54 = vector.extract_strided_slice %53 {offsets = [0, 0], sizes = [4, 128], strides = [1, 1]} : vector<4x256xf32> to vector<4x128xf32>
    %55 = vector.extract_strided_slice %53 {offsets = [0, 128], sizes = [4, 128], strides = [1, 1]} : vector<4x256xf32> to vector<4x128xf32>
    %56 = tpu.transpose %54, [1, 0] : vector<4x128xf32> -> vector<128x4xf32>
    %cst_37 = arith.constant 0.000000e+00 : f32
    %57 = vector.broadcast %cst_37 : f32 to vector<4x4xf32>
    %c0_38 = arith.constant 0 : index
    %c0_39 = arith.constant 0 : index
    %58 = memref.load %arg10[%c0_38, %c0_39] : memref<2x16xf32, #tpu.memory_space<smem>>
    %59 = vector.extract_strided_slice %55 {offsets = [0, 0], sizes = [4, 1], strides = [1, 1]} : vector<4x128xf32> to vector<4x1xf32>
    %60 = vector.extract_strided_slice %56 {offsets = [0, 0], sizes = [1, 4], strides = [1, 1]} : vector<128x4xf32> to vector<1x4xf32>
    %61 = vector.broadcast %59 : vector<4x1xf32> to vector<4x4xf32>
    %62 = vector.broadcast %60 : vector<1x4xf32> to vector<4x4xf32>
    %63 = arith.addf %61, %62 : vector<4x4xf32>
    %cst_40 = arith.constant 0.000000e+00 : f32
    %64 = vector.broadcast %cst_40 : f32 to vector<4x4xf32>
    %65 = arith.cmpf ogt, %63, %64 : vector<4x4xf32>
    %cst_41 = arith.constant 2.000000e-01 : f32
    %66 = vector.broadcast %cst_41 : f32 to vector<4x4xf32>
    %67 = arith.mulf %66, %63 : vector<4x4xf32>
    %68 = arith.select %65, %63, %67 : vector<4x4xi1>, vector<4x4xf32>
    %69 = vector.broadcast %58 : f32 to vector<4x4xf32>
    %70 = arith.mulf %69, %68 : vector<4x4xf32>
    %71 = arith.addf %57, %70 : vector<4x4xf32>
    %c0_42 = arith.constant 0 : index
    %c1_43 = arith.constant 1 : index
    %72 = memref.load %arg10[%c0_42, %c1_43] : memref<2x16xf32, #tpu.memory_space<smem>>
    %73 = vector.extract_strided_slice %55 {offsets = [0, 1], sizes = [4, 1], strides = [1, 1]} : vector<4x128xf32> to vector<4x1xf32>
    %74 = vector.extract_strided_slice %56 {offsets = [1, 0], sizes = [1, 4], strides = [1, 1]} : vector<128x4xf32> to vector<1x4xf32>
    %75 = vector.broadcast %73 : vector<4x1xf32> to vector<4x4xf32>
    %76 = vector.broadcast %74 : vector<1x4xf32> to vector<4x4xf32>
    %77 = arith.addf %75, %76 : vector<4x4xf32>
    %cst_44 = arith.constant 0.000000e+00 : f32
    %78 = vector.broadcast %cst_44 : f32 to vector<4x4xf32>
    %79 = arith.cmpf ogt, %77, %78 : vector<4x4xf32>
    %cst_45 = arith.constant 2.000000e-01 : f32
    %80 = vector.broadcast %cst_45 : f32 to vector<4x4xf32>
    %81 = arith.mulf %80, %77 : vector<4x4xf32>
    %82 = arith.select %79, %77, %81 : vector<4x4xi1>, vector<4x4xf32>
    %83 = vector.broadcast %72 : f32 to vector<4x4xf32>
    %84 = arith.mulf %83, %82 : vector<4x4xf32>
    %85 = arith.addf %71, %84 : vector<4x4xf32>
    %c0_46 = arith.constant 0 : index
    %c2_47 = arith.constant 2 : index
    %86 = memref.load %arg10[%c0_46, %c2_47] : memref<2x16xf32, #tpu.memory_space<smem>>
    %87 = vector.extract_strided_slice %55 {offsets = [0, 2], sizes = [4, 1], strides = [1, 1]} : vector<4x128xf32> to vector<4x1xf32>
    %88 = vector.extract_strided_slice %56 {offsets = [2, 0], sizes = [1, 4], strides = [1, 1]} : vector<128x4xf32> to vector<1x4xf32>
    %89 = vector.broadcast %87 : vector<4x1xf32> to vector<4x4xf32>
    %90 = vector.broadcast %88 : vector<1x4xf32> to vector<4x4xf32>
    %91 = arith.addf %89, %90 : vector<4x4xf32>
    %cst_48 = arith.constant 0.000000e+00 : f32
    %92 = vector.broadcast %cst_48 : f32 to vector<4x4xf32>
    %93 = arith.cmpf ogt, %91, %92 : vector<4x4xf32>
    %cst_49 = arith.constant 2.000000e-01 : f32
    %94 = vector.broadcast %cst_49 : f32 to vector<4x4xf32>
    %95 = arith.mulf %94, %91 : vector<4x4xf32>
    %96 = arith.select %93, %91, %95 : vector<4x4xi1>, vector<4x4xf32>
    %97 = vector.broadcast %86 : f32 to vector<4x4xf32>
    %98 = arith.mulf %97, %96 : vector<4x4xf32>
    %99 = arith.addf %85, %98 : vector<4x4xf32>
    %c0_50 = arith.constant 0 : index
    %c3_51 = arith.constant 3 : index
    %100 = memref.load %arg10[%c0_50, %c3_51] : memref<2x16xf32, #tpu.memory_space<smem>>
    %101 = vector.extract_strided_slice %55 {offsets = [0, 3], sizes = [4, 1], strides = [1, 1]} : vector<4x128xf32> to vector<4x1xf32>
    %102 = vector.extract_strided_slice %56 {offsets = [3, 0], sizes = [1, 4], strides = [1, 1]} : vector<128x4xf32> to vector<1x4xf32>
    %103 = vector.broadcast %101 : vector<4x1xf32> to vector<4x4xf32>
    %104 = vector.broadcast %102 : vector<1x4xf32> to vector<4x4xf32>
    %105 = arith.addf %103, %104 : vector<4x4xf32>
    %cst_52 = arith.constant 0.000000e+00 : f32
    %106 = vector.broadcast %cst_52 : f32 to vector<4x4xf32>
    %107 = arith.cmpf ogt, %105, %106 : vector<4x4xf32>
    %cst_53 = arith.constant 2.000000e-01 : f32
    %108 = vector.broadcast %cst_53 : f32 to vector<4x4xf32>
    %109 = arith.mulf %108, %105 : vector<4x4xf32>
    %110 = arith.select %107, %105, %109 : vector<4x4xi1>, vector<4x4xf32>
    %111 = vector.broadcast %100 : f32 to vector<4x4xf32>
    %112 = arith.mulf %111, %110 : vector<4x4xf32>
    %113 = arith.addf %99, %112 : vector<4x4xf32>
    %c0_54 = arith.constant 0 : index
    %c4 = arith.constant 4 : index
    %114 = memref.load %arg10[%c0_54, %c4] : memref<2x16xf32, #tpu.memory_space<smem>>
    %115 = vector.extract_strided_slice %55 {offsets = [0, 4], sizes = [4, 1], strides = [1, 1]} : vector<4x128xf32> to vector<4x1xf32>
    %116 = vector.extract_strided_slice %56 {offsets = [4, 0], sizes = [1, 4], strides = [1, 1]} : vector<128x4xf32> to vector<1x4xf32>
    %117 = vector.broadcast %115 : vector<4x1xf32> to vector<4x4xf32>
    %118 = vector.broadcast %116 : vector<1x4xf32> to vector<4x4xf32>
    %119 = arith.addf %117, %118 : vector<4x4xf32>
    %cst_55 = arith.constant 0.000000e+00 : f32
    %120 = vector.broadcast %cst_55 : f32 to vector<4x4xf32>
    %121 = arith.cmpf ogt, %119, %120 : vector<4x4xf32>
    %cst_56 = arith.constant 2.000000e-01 : f32
    %122 = vector.broadcast %cst_56 : f32 to vector<4x4xf32>
    %123 = arith.mulf %122, %119 : vector<4x4xf32>
    %124 = arith.select %121, %119, %123 : vector<4x4xi1>, vector<4x4xf32>
    %125 = vector.broadcast %114 : f32 to vector<4x4xf32>
    %126 = arith.mulf %125, %124 : vector<4x4xf32>
    %127 = arith.addf %113, %126 : vector<4x4xf32>
    %c0_57 = arith.constant 0 : index
    %c5 = arith.constant 5 : index
    %128 = memref.load %arg10[%c0_57, %c5] : memref<2x16xf32, #tpu.memory_space<smem>>
    %129 = vector.extract_strided_slice %55 {offsets = [0, 5], sizes = [4, 1], strides = [1, 1]} : vector<4x128xf32> to vector<4x1xf32>
    %130 = vector.extract_strided_slice %56 {offsets = [5, 0], sizes = [1, 4], strides = [1, 1]} : vector<128x4xf32> to vector<1x4xf32>
    %131 = vector.broadcast %129 : vector<4x1xf32> to vector<4x4xf32>
    %132 = vector.broadcast %130 : vector<1x4xf32> to vector<4x4xf32>
    %133 = arith.addf %131, %132 : vector<4x4xf32>
    %cst_58 = arith.constant 0.000000e+00 : f32
    %134 = vector.broadcast %cst_58 : f32 to vector<4x4xf32>
    %135 = arith.cmpf ogt, %133, %134 : vector<4x4xf32>
    %cst_59 = arith.constant 2.000000e-01 : f32
    %136 = vector.broadcast %cst_59 : f32 to vector<4x4xf32>
    %137 = arith.mulf %136, %133 : vector<4x4xf32>
    %138 = arith.select %135, %133, %137 : vector<4x4xi1>, vector<4x4xf32>
    %139 = vector.broadcast %128 : f32 to vector<4x4xf32>
    %140 = arith.mulf %139, %138 : vector<4x4xf32>
    %141 = arith.addf %127, %140 : vector<4x4xf32>
    %c0_60 = arith.constant 0 : index
    %c6 = arith.constant 6 : index
    %142 = memref.load %arg10[%c0_60, %c6] : memref<2x16xf32, #tpu.memory_space<smem>>
    %143 = vector.extract_strided_slice %55 {offsets = [0, 6], sizes = [4, 1], strides = [1, 1]} : vector<4x128xf32> to vector<4x1xf32>
    %144 = vector.extract_strided_slice %56 {offsets = [6, 0], sizes = [1, 4], strides = [1, 1]} : vector<128x4xf32> to vector<1x4xf32>
    %145 = vector.broadcast %143 : vector<4x1xf32> to vector<4x4xf32>
    %146 = vector.broadcast %144 : vector<1x4xf32> to vector<4x4xf32>
    %147 = arith.addf %145, %146 : vector<4x4xf32>
    %cst_61 = arith.constant 0.000000e+00 : f32
    %148 = vector.broadcast %cst_61 : f32 to vector<4x4xf32>
    %149 = arith.cmpf ogt, %147, %148 : vector<4x4xf32>
    %cst_62 = arith.constant 2.000000e-01 : f32
    %150 = vector.broadcast %cst_62 : f32 to vector<4x4xf32>
    %151 = arith.mulf %150, %147 : vector<4x4xf32>
    %152 = arith.select %149, %147, %151 : vector<4x4xi1>, vector<4x4xf32>
    %153 = vector.broadcast %142 : f32 to vector<4x4xf32>
    %154 = arith.mulf %153, %152 : vector<4x4xf32>
    %155 = arith.addf %141, %154 : vector<4x4xf32>
    %c0_63 = arith.constant 0 : index
    %c7 = arith.constant 7 : index
    %156 = memref.load %arg10[%c0_63, %c7] : memref<2x16xf32, #tpu.memory_space<smem>>
    %157 = vector.extract_strided_slice %55 {offsets = [0, 7], sizes = [4, 1], strides = [1, 1]} : vector<4x128xf32> to vector<4x1xf32>
    %158 = vector.extract_strided_slice %56 {offsets = [7, 0], sizes = [1, 4], strides = [1, 1]} : vector<128x4xf32> to vector<1x4xf32>
    %159 = vector.broadcast %157 : vector<4x1xf32> to vector<4x4xf32>
    %160 = vector.broadcast %158 : vector<1x4xf32> to vector<4x4xf32>
    %161 = arith.addf %159, %160 : vector<4x4xf32>
    %cst_64 = arith.constant 0.000000e+00 : f32
    %162 = vector.broadcast %cst_64 : f32 to vector<4x4xf32>
    %163 = arith.cmpf ogt, %161, %162 : vector<4x4xf32>
    %cst_65 = arith.constant 2.000000e-01 : f32
    %164 = vector.broadcast %cst_65 : f32 to vector<4x4xf32>
    %165 = arith.mulf %164, %161 : vector<4x4xf32>
    %166 = arith.select %163, %161, %165 : vector<4x4xi1>, vector<4x4xf32>
    %167 = vector.broadcast %156 : f32 to vector<4x4xf32>
    %168 = arith.mulf %167, %166 : vector<4x4xf32>
    %169 = arith.addf %155, %168 : vector<4x4xf32>
    %c0_66 = arith.constant 0 : index
    %c8 = arith.constant 8 : index
    %170 = memref.load %arg10[%c0_66, %c8] : memref<2x16xf32, #tpu.memory_space<smem>>
    %171 = vector.extract_strided_slice %55 {offsets = [0, 8], sizes = [4, 1], strides = [1, 1]} : vector<4x128xf32> to vector<4x1xf32>
    %172 = vector.extract_strided_slice %56 {offsets = [8, 0], sizes = [1, 4], strides = [1, 1]} : vector<128x4xf32> to vector<1x4xf32>
    %173 = vector.broadcast %171 : vector<4x1xf32> to vector<4x4xf32>
    %174 = vector.broadcast %172 : vector<1x4xf32> to vector<4x4xf32>
    %175 = arith.addf %173, %174 : vector<4x4xf32>
    %cst_67 = arith.constant 0.000000e+00 : f32
    %176 = vector.broadcast %cst_67 : f32 to vector<4x4xf32>
    %177 = arith.cmpf ogt, %175, %176 : vector<4x4xf32>
    %cst_68 = arith.constant 2.000000e-01 : f32
    %178 = vector.broadcast %cst_68 : f32 to vector<4x4xf32>
    %179 = arith.mulf %178, %175 : vector<4x4xf32>
    %180 = arith.select %177, %175, %179 : vector<4x4xi1>, vector<4x4xf32>
    %181 = vector.broadcast %170 : f32 to vector<4x4xf32>
    %182 = arith.mulf %181, %180 : vector<4x4xf32>
    %183 = arith.addf %169, %182 : vector<4x4xf32>
    %c0_69 = arith.constant 0 : index
    %c9 = arith.constant 9 : index
    %184 = memref.load %arg10[%c0_69, %c9] : memref<2x16xf32, #tpu.memory_space<smem>>
    %185 = vector.extract_strided_slice %55 {offsets = [0, 9], sizes = [4, 1], strides = [1, 1]} : vector<4x128xf32> to vector<4x1xf32>
    %186 = vector.extract_strided_slice %56 {offsets = [9, 0], sizes = [1, 4], strides = [1, 1]} : vector<128x4xf32> to vector<1x4xf32>
    %187 = vector.broadcast %185 : vector<4x1xf32> to vector<4x4xf32>
    %188 = vector.broadcast %186 : vector<1x4xf32> to vector<4x4xf32>
    %189 = arith.addf %187, %188 : vector<4x4xf32>
    %cst_70 = arith.constant 0.000000e+00 : f32
    %190 = vector.broadcast %cst_70 : f32 to vector<4x4xf32>
    %191 = arith.cmpf ogt, %189, %190 : vector<4x4xf32>
    %cst_71 = arith.constant 2.000000e-01 : f32
    %192 = vector.broadcast %cst_71 : f32 to vector<4x4xf32>
    %193 = arith.mulf %192, %189 : vector<4x4xf32>
    %194 = arith.select %191, %189, %193 : vector<4x4xi1>, vector<4x4xf32>
    %195 = vector.broadcast %184 : f32 to vector<4x4xf32>
    %196 = arith.mulf %195, %194 : vector<4x4xf32>
    %197 = arith.addf %183, %196 : vector<4x4xf32>
    %c0_72 = arith.constant 0 : index
    %c10 = arith.constant 10 : index
    %198 = memref.load %arg10[%c0_72, %c10] : memref<2x16xf32, #tpu.memory_space<smem>>
    %199 = vector.extract_strided_slice %55 {offsets = [0, 10], sizes = [4, 1], strides = [1, 1]} : vector<4x128xf32> to vector<4x1xf32>
    %200 = vector.extract_strided_slice %56 {offsets = [10, 0], sizes = [1, 4], strides = [1, 1]} : vector<128x4xf32> to vector<1x4xf32>
    %201 = vector.broadcast %199 : vector<4x1xf32> to vector<4x4xf32>
    %202 = vector.broadcast %200 : vector<1x4xf32> to vector<4x4xf32>
    %203 = arith.addf %201, %202 : vector<4x4xf32>
    %cst_73 = arith.constant 0.000000e+00 : f32
    %204 = vector.broadcast %cst_73 : f32 to vector<4x4xf32>
    %205 = arith.cmpf ogt, %203, %204 : vector<4x4xf32>
    %cst_74 = arith.constant 2.000000e-01 : f32
    %206 = vector.broadcast %cst_74 : f32 to vector<4x4xf32>
    %207 = arith.mulf %206, %203 : vector<4x4xf32>
    %208 = arith.select %205, %203, %207 : vector<4x4xi1>, vector<4x4xf32>
    %209 = vector.broadcast %198 : f32 to vector<4x4xf32>
    %210 = arith.mulf %209, %208 : vector<4x4xf32>
    %211 = arith.addf %197, %210 : vector<4x4xf32>
    %c0_75 = arith.constant 0 : index
    %c11 = arith.constant 11 : index
    %212 = memref.load %arg10[%c0_75, %c11] : memref<2x16xf32, #tpu.memory_space<smem>>
    %213 = vector.extract_strided_slice %55 {offsets = [0, 11], sizes = [4, 1], strides = [1, 1]} : vector<4x128xf32> to vector<4x1xf32>
    %214 = vector.extract_strided_slice %56 {offsets = [11, 0], sizes = [1, 4], strides = [1, 1]} : vector<128x4xf32> to vector<1x4xf32>
    %215 = vector.broadcast %213 : vector<4x1xf32> to vector<4x4xf32>
    %216 = vector.broadcast %214 : vector<1x4xf32> to vector<4x4xf32>
    %217 = arith.addf %215, %216 : vector<4x4xf32>
    %cst_76 = arith.constant 0.000000e+00 : f32
    %218 = vector.broadcast %cst_76 : f32 to vector<4x4xf32>
    %219 = arith.cmpf ogt, %217, %218 : vector<4x4xf32>
    %cst_77 = arith.constant 2.000000e-01 : f32
    %220 = vector.broadcast %cst_77 : f32 to vector<4x4xf32>
    %221 = arith.mulf %220, %217 : vector<4x4xf32>
    %222 = arith.select %219, %217, %221 : vector<4x4xi1>, vector<4x4xf32>
    %223 = vector.broadcast %212 : f32 to vector<4x4xf32>
    %224 = arith.mulf %223, %222 : vector<4x4xf32>
    %225 = arith.addf %211, %224 : vector<4x4xf32>
    %c0_78 = arith.constant 0 : index
    %c12 = arith.constant 12 : index
    %226 = memref.load %arg10[%c0_78, %c12] : memref<2x16xf32, #tpu.memory_space<smem>>
    %227 = vector.extract_strided_slice %55 {offsets = [0, 12], sizes = [4, 1], strides = [1, 1]} : vector<4x128xf32> to vector<4x1xf32>
    %228 = vector.extract_strided_slice %56 {offsets = [12, 0], sizes = [1, 4], strides = [1, 1]} : vector<128x4xf32> to vector<1x4xf32>
    %229 = vector.broadcast %227 : vector<4x1xf32> to vector<4x4xf32>
    %230 = vector.broadcast %228 : vector<1x4xf32> to vector<4x4xf32>
    %231 = arith.addf %229, %230 : vector<4x4xf32>
    %cst_79 = arith.constant 0.000000e+00 : f32
    %232 = vector.broadcast %cst_79 : f32 to vector<4x4xf32>
    %233 = arith.cmpf ogt, %231, %232 : vector<4x4xf32>
    %cst_80 = arith.constant 2.000000e-01 : f32
    %234 = vector.broadcast %cst_80 : f32 to vector<4x4xf32>
    %235 = arith.mulf %234, %231 : vector<4x4xf32>
    %236 = arith.select %233, %231, %235 : vector<4x4xi1>, vector<4x4xf32>
    %237 = vector.broadcast %226 : f32 to vector<4x4xf32>
    %238 = arith.mulf %237, %236 : vector<4x4xf32>
    %239 = arith.addf %225, %238 : vector<4x4xf32>
    %c0_81 = arith.constant 0 : index
    %c13 = arith.constant 13 : index
    %240 = memref.load %arg10[%c0_81, %c13] : memref<2x16xf32, #tpu.memory_space<smem>>
    %241 = vector.extract_strided_slice %55 {offsets = [0, 13], sizes = [4, 1], strides = [1, 1]} : vector<4x128xf32> to vector<4x1xf32>
    %242 = vector.extract_strided_slice %56 {offsets = [13, 0], sizes = [1, 4], strides = [1, 1]} : vector<128x4xf32> to vector<1x4xf32>
    %243 = vector.broadcast %241 : vector<4x1xf32> to vector<4x4xf32>
    %244 = vector.broadcast %242 : vector<1x4xf32> to vector<4x4xf32>
    %245 = arith.addf %243, %244 : vector<4x4xf32>
    %cst_82 = arith.constant 0.000000e+00 : f32
    %246 = vector.broadcast %cst_82 : f32 to vector<4x4xf32>
    %247 = arith.cmpf ogt, %245, %246 : vector<4x4xf32>
    %cst_83 = arith.constant 2.000000e-01 : f32
    %248 = vector.broadcast %cst_83 : f32 to vector<4x4xf32>
    %249 = arith.mulf %248, %245 : vector<4x4xf32>
    %250 = arith.select %247, %245, %249 : vector<4x4xi1>, vector<4x4xf32>
    %251 = vector.broadcast %240 : f32 to vector<4x4xf32>
    %252 = arith.mulf %251, %250 : vector<4x4xf32>
    %253 = arith.addf %239, %252 : vector<4x4xf32>
    %c0_84 = arith.constant 0 : index
    %c14 = arith.constant 14 : index
    %254 = memref.load %arg10[%c0_84, %c14] : memref<2x16xf32, #tpu.memory_space<smem>>
    %255 = vector.extract_strided_slice %55 {offsets = [0, 14], sizes = [4, 1], strides = [1, 1]} : vector<4x128xf32> to vector<4x1xf32>
    %256 = vector.extract_strided_slice %56 {offsets = [14, 0], sizes = [1, 4], strides = [1, 1]} : vector<128x4xf32> to vector<1x4xf32>
    %257 = vector.broadcast %255 : vector<4x1xf32> to vector<4x4xf32>
    %258 = vector.broadcast %256 : vector<1x4xf32> to vector<4x4xf32>
    %259 = arith.addf %257, %258 : vector<4x4xf32>
    %cst_85 = arith.constant 0.000000e+00 : f32
    %260 = vector.broadcast %cst_85 : f32 to vector<4x4xf32>
    %261 = arith.cmpf ogt, %259, %260 : vector<4x4xf32>
    %cst_86 = arith.constant 2.000000e-01 : f32
    %262 = vector.broadcast %cst_86 : f32 to vector<4x4xf32>
    %263 = arith.mulf %262, %259 : vector<4x4xf32>
    %264 = arith.select %261, %259, %263 : vector<4x4xi1>, vector<4x4xf32>
    %265 = vector.broadcast %254 : f32 to vector<4x4xf32>
    %266 = arith.mulf %265, %264 : vector<4x4xf32>
    %267 = arith.addf %253, %266 : vector<4x4xf32>
    %c0_87 = arith.constant 0 : index
    %c15 = arith.constant 15 : index
    %268 = memref.load %arg10[%c0_87, %c15] : memref<2x16xf32, #tpu.memory_space<smem>>
    %269 = vector.extract_strided_slice %55 {offsets = [0, 15], sizes = [4, 1], strides = [1, 1]} : vector<4x128xf32> to vector<4x1xf32>
    %270 = vector.extract_strided_slice %56 {offsets = [15, 0], sizes = [1, 4], strides = [1, 1]} : vector<128x4xf32> to vector<1x4xf32>
    %271 = vector.broadcast %269 : vector<4x1xf32> to vector<4x4xf32>
    %272 = vector.broadcast %270 : vector<1x4xf32> to vector<4x4xf32>
    %273 = arith.addf %271, %272 : vector<4x4xf32>
    %cst_88 = arith.constant 0.000000e+00 : f32
    %274 = vector.broadcast %cst_88 : f32 to vector<4x4xf32>
    %275 = arith.cmpf ogt, %273, %274 : vector<4x4xf32>
    %cst_89 = arith.constant 2.000000e-01 : f32
    %276 = vector.broadcast %cst_89 : f32 to vector<4x4xf32>
    %277 = arith.mulf %276, %273 : vector<4x4xf32>
    %278 = arith.select %275, %273, %277 : vector<4x4xi1>, vector<4x4xf32>
    %279 = vector.broadcast %268 : f32 to vector<4x4xf32>
    %280 = arith.mulf %279, %278 : vector<4x4xf32>
    %281 = arith.addf %267, %280 : vector<4x4xf32>
    %cst_90 = arith.constant -1.000000e+30 : f32
    %282 = vector.broadcast %cst_90 : f32 to vector<4x4xf32>
    %283 = arith.select %46, %281, %282 : vector<4x4xi1>, vector<4x4xf32>
    %cst_91 = arith.constant dense<0xFF800000> : vector<4xf32>
    %284 = vector.multi_reduction <maximumf>, %283, %cst_91 [1] : vector<4x4xf32> to vector<4xf32>
    %285 = vector.shape_cast %284 : vector<4xf32> to vector<4x1xf32>
    %286 = vector.broadcast %285 : vector<4x1xf32> to vector<4x4xf32>
    %287 = arith.subf %283, %286 : vector<4x4xf32>
    %288 = math.exp %287 : vector<4x4xf32>
    %cst_92 = arith.constant 0.000000e+00 : f32
    %289 = vector.broadcast %cst_92 : f32 to vector<4x4xf32>
    %290 = arith.select %46, %288, %289 : vector<4x4xi1>, vector<4x4xf32>
    %cst_93 = arith.constant dense<0.000000e+00> : vector<4xf32>
    %291 = vector.multi_reduction <add>, %290, %cst_93 [1] : vector<4x4xf32> to vector<4xf32>
    %292 = vector.shape_cast %291 : vector<4xf32> to vector<4x1xf32>
    %293 = vector.broadcast %292 : vector<4x1xf32> to vector<4x4xf32>
    %294 = arith.divf %290, %293 : vector<4x4xf32>
    %295 = arith.truncf %294 : vector<4x4xf32> to vector<4x4xbf16>
    %296 = arith.truncf %54 : vector<4x128xf32> to vector<4x128xbf16>
    %cst_94 = arith.constant dense<0.000000e+00> : vector<4x128xf32>
    %297 = tpu.matmul %295, %296, %cst_94 {dimension_numbers = #tpu.dot_dimension_numbers<[1], [0], [0], [1], [0, 0, 1, 1], [], []>} : vector<4x4xbf16>, vector<4x128xbf16>, vector<4x128xf32> -> vector<4x128xf32>
    %cst_95 = arith.constant dense<0.000000e+00> : vector<128xf32>
    %298 = vector.multi_reduction <add>, %297, %cst_95 [0] : vector<4x128xf32> to vector<128xf32>
    %299 = vector.shape_cast %298 : vector<128xf32> to vector<1x128xf32>
    %cst_96 = arith.constant 4.000000e+00 : f32
    %300 = vector.broadcast %cst_96 : f32 to vector<1x128xf32>
    %301 = arith.divf %299, %300 : vector<1x128xf32>
    %302 = vector.broadcast %301 : vector<1x128xf32> to vector<4x128xf32>
    %303 = arith.subf %297, %302 : vector<4x128xf32>
    %304 = arith.mulf %303, %303 : vector<4x128xf32>
    %cst_97 = arith.constant dense<0.000000e+00> : vector<128xf32>
    %305 = vector.multi_reduction <add>, %304, %cst_97 [0] : vector<4x128xf32> to vector<128xf32>
    %306 = vector.shape_cast %305 : vector<128xf32> to vector<1x128xf32>
    %cst_98 = arith.constant 4.000000e+00 : f32
    %307 = vector.broadcast %cst_98 : f32 to vector<1x128xf32>
    %308 = arith.divf %306, %307 : vector<1x128xf32>
    %309 = vector.broadcast %301 : vector<1x128xf32> to vector<4x128xf32>
    %310 = arith.subf %297, %309 : vector<4x128xf32>
    %cst_99 = arith.constant 9.99999974E-6 : f32
    %311 = vector.broadcast %cst_99 : f32 to vector<1x128xf32>
    %312 = arith.addf %308, %311 : vector<1x128xf32>
    %313 = math.rsqrt %312 : vector<1x128xf32>
    %314 = vector.broadcast %313 : vector<1x128xf32> to vector<4x128xf32>
    %315 = arith.mulf %310, %314 : vector<4x128xf32>
    %cst_100 = arith.constant 0.000000e+00 : f32
    %316 = vector.broadcast %cst_100 : f32 to vector<4x128xf32>
    %317 = arith.cmpf ogt, %315, %316 : vector<4x128xf32>
    %cst_101 = arith.constant 2.000000e-01 : f32
    %318 = vector.broadcast %cst_101 : f32 to vector<4x128xf32>
    %319 = arith.mulf %318, %315 : vector<4x128xf32>
    %320 = arith.select %317, %315, %319 : vector<4x128xi1>, vector<4x128xf32>
    %c0_102 = arith.constant 0 : index
    %c0_103 = arith.constant 0 : index
    %321 = vector.load %arg4[%c0_102, %c0_103] : memref<4x128xbf16, #tpu.memory_space<vmem>>, vector<4x128xbf16>
    %c0_104 = arith.constant 0 : index
    %c0_105 = arith.constant 0 : index
    %322 = vector.load %arg8[%c0_104, %c0_105] : memref<128x256xbf16, #tpu.memory_space<vmem>>, vector<128x256xbf16>
    %c0_106 = arith.constant 0 : index
    %c0_107 = arith.constant 0 : index
    %323 = vector.load %arg9[%c0_106, %c0_107] : memref<1x256xf32, #tpu.memory_space<vmem>>, vector<1x256xf32>
    %cst_108 = arith.constant dense<0.000000e+00> : vector<4x256xf32>
    %324 = tpu.matmul %321, %322, %cst_108 {dimension_numbers = #tpu.dot_dimension_numbers<[1], [0], [0], [1], [0, 0, 1, 1], [], []>} : vector<4x128xbf16>, vector<128x256xbf16>, vector<4x256xf32> -> vector<4x256xf32>
    %325 = vector.broadcast %323 : vector<1x256xf32> to vector<4x256xf32>
    %326 = arith.addf %324, %325 : vector<4x256xf32>
    %327 = vector.extract_strided_slice %326 {offsets = [0, 0], sizes = [4, 128], strides = [1, 1]} : vector<4x256xf32> to vector<4x128xf32>
    %328 = vector.extract_strided_slice %326 {offsets = [0, 128], sizes = [4, 128], strides = [1, 1]} : vector<4x256xf32> to vector<4x128xf32>
    %329 = tpu.transpose %327, [1, 0] : vector<4x128xf32> -> vector<128x4xf32>
    %cst_109 = arith.constant 0.000000e+00 : f32
    %330 = vector.broadcast %cst_109 : f32 to vector<4x4xf32>
    %c1_110 = arith.constant 1 : index
    %c0_111 = arith.constant 0 : index
    %331 = memref.load %arg10[%c1_110, %c0_111] : memref<2x16xf32, #tpu.memory_space<smem>>
    %332 = vector.extract_strided_slice %328 {offsets = [0, 0], sizes = [4, 1], strides = [1, 1]} : vector<4x128xf32> to vector<4x1xf32>
    %333 = vector.extract_strided_slice %329 {offsets = [0, 0], sizes = [1, 4], strides = [1, 1]} : vector<128x4xf32> to vector<1x4xf32>
    %334 = vector.broadcast %332 : vector<4x1xf32> to vector<4x4xf32>
    %335 = vector.broadcast %333 : vector<1x4xf32> to vector<4x4xf32>
    %336 = arith.addf %334, %335 : vector<4x4xf32>
    %cst_112 = arith.constant 0.000000e+00 : f32
    %337 = vector.broadcast %cst_112 : f32 to vector<4x4xf32>
    %338 = arith.cmpf ogt, %336, %337 : vector<4x4xf32>
    %cst_113 = arith.constant 2.000000e-01 : f32
    %339 = vector.broadcast %cst_113 : f32 to vector<4x4xf32>
    %340 = arith.mulf %339, %336 : vector<4x4xf32>
    %341 = arith.select %338, %336, %340 : vector<4x4xi1>, vector<4x4xf32>
    %342 = vector.broadcast %331 : f32 to vector<4x4xf32>
    %343 = arith.mulf %342, %341 : vector<4x4xf32>
    %344 = arith.addf %330, %343 : vector<4x4xf32>
    %c1_114 = arith.constant 1 : index
    %c1_115 = arith.constant 1 : index
    %345 = memref.load %arg10[%c1_114, %c1_115] : memref<2x16xf32, #tpu.memory_space<smem>>
    %346 = vector.extract_strided_slice %328 {offsets = [0, 1], sizes = [4, 1], strides = [1, 1]} : vector<4x128xf32> to vector<4x1xf32>
    %347 = vector.extract_strided_slice %329 {offsets = [1, 0], sizes = [1, 4], strides = [1, 1]} : vector<128x4xf32> to vector<1x4xf32>
    %348 = vector.broadcast %346 : vector<4x1xf32> to vector<4x4xf32>
    %349 = vector.broadcast %347 : vector<1x4xf32> to vector<4x4xf32>
    %350 = arith.addf %348, %349 : vector<4x4xf32>
    %cst_116 = arith.constant 0.000000e+00 : f32
    %351 = vector.broadcast %cst_116 : f32 to vector<4x4xf32>
    %352 = arith.cmpf ogt, %350, %351 : vector<4x4xf32>
    %cst_117 = arith.constant 2.000000e-01 : f32
    %353 = vector.broadcast %cst_117 : f32 to vector<4x4xf32>
    %354 = arith.mulf %353, %350 : vector<4x4xf32>
    %355 = arith.select %352, %350, %354 : vector<4x4xi1>, vector<4x4xf32>
    %356 = vector.broadcast %345 : f32 to vector<4x4xf32>
    %357 = arith.mulf %356, %355 : vector<4x4xf32>
    %358 = arith.addf %344, %357 : vector<4x4xf32>
    %c1_118 = arith.constant 1 : index
    %c2_119 = arith.constant 2 : index
    %359 = memref.load %arg10[%c1_118, %c2_119] : memref<2x16xf32, #tpu.memory_space<smem>>
    %360 = vector.extract_strided_slice %328 {offsets = [0, 2], sizes = [4, 1], strides = [1, 1]} : vector<4x128xf32> to vector<4x1xf32>
    %361 = vector.extract_strided_slice %329 {offsets = [2, 0], sizes = [1, 4], strides = [1, 1]} : vector<128x4xf32> to vector<1x4xf32>
    %362 = vector.broadcast %360 : vector<4x1xf32> to vector<4x4xf32>
    %363 = vector.broadcast %361 : vector<1x4xf32> to vector<4x4xf32>
    %364 = arith.addf %362, %363 : vector<4x4xf32>
    %cst_120 = arith.constant 0.000000e+00 : f32
    %365 = vector.broadcast %cst_120 : f32 to vector<4x4xf32>
    %366 = arith.cmpf ogt, %364, %365 : vector<4x4xf32>
    %cst_121 = arith.constant 2.000000e-01 : f32
    %367 = vector.broadcast %cst_121 : f32 to vector<4x4xf32>
    %368 = arith.mulf %367, %364 : vector<4x4xf32>
    %369 = arith.select %366, %364, %368 : vector<4x4xi1>, vector<4x4xf32>
    %370 = vector.broadcast %359 : f32 to vector<4x4xf32>
    %371 = arith.mulf %370, %369 : vector<4x4xf32>
    %372 = arith.addf %358, %371 : vector<4x4xf32>
    %c1_122 = arith.constant 1 : index
    %c3_123 = arith.constant 3 : index
    %373 = memref.load %arg10[%c1_122, %c3_123] : memref<2x16xf32, #tpu.memory_space<smem>>
    %374 = vector.extract_strided_slice %328 {offsets = [0, 3], sizes = [4, 1], strides = [1, 1]} : vector<4x128xf32> to vector<4x1xf32>
    %375 = vector.extract_strided_slice %329 {offsets = [3, 0], sizes = [1, 4], strides = [1, 1]} : vector<128x4xf32> to vector<1x4xf32>
    %376 = vector.broadcast %374 : vector<4x1xf32> to vector<4x4xf32>
    %377 = vector.broadcast %375 : vector<1x4xf32> to vector<4x4xf32>
    %378 = arith.addf %376, %377 : vector<4x4xf32>
    %cst_124 = arith.constant 0.000000e+00 : f32
    %379 = vector.broadcast %cst_124 : f32 to vector<4x4xf32>
    %380 = arith.cmpf ogt, %378, %379 : vector<4x4xf32>
    %cst_125 = arith.constant 2.000000e-01 : f32
    %381 = vector.broadcast %cst_125 : f32 to vector<4x4xf32>
    %382 = arith.mulf %381, %378 : vector<4x4xf32>
    %383 = arith.select %380, %378, %382 : vector<4x4xi1>, vector<4x4xf32>
    %384 = vector.broadcast %373 : f32 to vector<4x4xf32>
    %385 = arith.mulf %384, %383 : vector<4x4xf32>
    %386 = arith.addf %372, %385 : vector<4x4xf32>
    %c1_126 = arith.constant 1 : index
    %c4_127 = arith.constant 4 : index
    %387 = memref.load %arg10[%c1_126, %c4_127] : memref<2x16xf32, #tpu.memory_space<smem>>
    %388 = vector.extract_strided_slice %328 {offsets = [0, 4], sizes = [4, 1], strides = [1, 1]} : vector<4x128xf32> to vector<4x1xf32>
    %389 = vector.extract_strided_slice %329 {offsets = [4, 0], sizes = [1, 4], strides = [1, 1]} : vector<128x4xf32> to vector<1x4xf32>
    %390 = vector.broadcast %388 : vector<4x1xf32> to vector<4x4xf32>
    %391 = vector.broadcast %389 : vector<1x4xf32> to vector<4x4xf32>
    %392 = arith.addf %390, %391 : vector<4x4xf32>
    %cst_128 = arith.constant 0.000000e+00 : f32
    %393 = vector.broadcast %cst_128 : f32 to vector<4x4xf32>
    %394 = arith.cmpf ogt, %392, %393 : vector<4x4xf32>
    %cst_129 = arith.constant 2.000000e-01 : f32
    %395 = vector.broadcast %cst_129 : f32 to vector<4x4xf32>
    %396 = arith.mulf %395, %392 : vector<4x4xf32>
    %397 = arith.select %394, %392, %396 : vector<4x4xi1>, vector<4x4xf32>
    %398 = vector.broadcast %387 : f32 to vector<4x4xf32>
    %399 = arith.mulf %398, %397 : vector<4x4xf32>
    %400 = arith.addf %386, %399 : vector<4x4xf32>
    %c1_130 = arith.constant 1 : index
    %c5_131 = arith.constant 5 : index
    %401 = memref.load %arg10[%c1_130, %c5_131] : memref<2x16xf32, #tpu.memory_space<smem>>
    %402 = vector.extract_strided_slice %328 {offsets = [0, 5], sizes = [4, 1], strides = [1, 1]} : vector<4x128xf32> to vector<4x1xf32>
    %403 = vector.extract_strided_slice %329 {offsets = [5, 0], sizes = [1, 4], strides = [1, 1]} : vector<128x4xf32> to vector<1x4xf32>
    %404 = vector.broadcast %402 : vector<4x1xf32> to vector<4x4xf32>
    %405 = vector.broadcast %403 : vector<1x4xf32> to vector<4x4xf32>
    %406 = arith.addf %404, %405 : vector<4x4xf32>
    %cst_132 = arith.constant 0.000000e+00 : f32
    %407 = vector.broadcast %cst_132 : f32 to vector<4x4xf32>
    %408 = arith.cmpf ogt, %406, %407 : vector<4x4xf32>
    %cst_133 = arith.constant 2.000000e-01 : f32
    %409 = vector.broadcast %cst_133 : f32 to vector<4x4xf32>
    %410 = arith.mulf %409, %406 : vector<4x4xf32>
    %411 = arith.select %408, %406, %410 : vector<4x4xi1>, vector<4x4xf32>
    %412 = vector.broadcast %401 : f32 to vector<4x4xf32>
    %413 = arith.mulf %412, %411 : vector<4x4xf32>
    %414 = arith.addf %400, %413 : vector<4x4xf32>
    %c1_134 = arith.constant 1 : index
    %c6_135 = arith.constant 6 : index
    %415 = memref.load %arg10[%c1_134, %c6_135] : memref<2x16xf32, #tpu.memory_space<smem>>
    %416 = vector.extract_strided_slice %328 {offsets = [0, 6], sizes = [4, 1], strides = [1, 1]} : vector<4x128xf32> to vector<4x1xf32>
    %417 = vector.extract_strided_slice %329 {offsets = [6, 0], sizes = [1, 4], strides = [1, 1]} : vector<128x4xf32> to vector<1x4xf32>
    %418 = vector.broadcast %416 : vector<4x1xf32> to vector<4x4xf32>
    %419 = vector.broadcast %417 : vector<1x4xf32> to vector<4x4xf32>
    %420 = arith.addf %418, %419 : vector<4x4xf32>
    %cst_136 = arith.constant 0.000000e+00 : f32
    %421 = vector.broadcast %cst_136 : f32 to vector<4x4xf32>
    %422 = arith.cmpf ogt, %420, %421 : vector<4x4xf32>
    %cst_137 = arith.constant 2.000000e-01 : f32
    %423 = vector.broadcast %cst_137 : f32 to vector<4x4xf32>
    %424 = arith.mulf %423, %420 : vector<4x4xf32>
    %425 = arith.select %422, %420, %424 : vector<4x4xi1>, vector<4x4xf32>
    %426 = vector.broadcast %415 : f32 to vector<4x4xf32>
    %427 = arith.mulf %426, %425 : vector<4x4xf32>
    %428 = arith.addf %414, %427 : vector<4x4xf32>
    %c1_138 = arith.constant 1 : index
    %c7_139 = arith.constant 7 : index
    %429 = memref.load %arg10[%c1_138, %c7_139] : memref<2x16xf32, #tpu.memory_space<smem>>
    %430 = vector.extract_strided_slice %328 {offsets = [0, 7], sizes = [4, 1], strides = [1, 1]} : vector<4x128xf32> to vector<4x1xf32>
    %431 = vector.extract_strided_slice %329 {offsets = [7, 0], sizes = [1, 4], strides = [1, 1]} : vector<128x4xf32> to vector<1x4xf32>
    %432 = vector.broadcast %430 : vector<4x1xf32> to vector<4x4xf32>
    %433 = vector.broadcast %431 : vector<1x4xf32> to vector<4x4xf32>
    %434 = arith.addf %432, %433 : vector<4x4xf32>
    %cst_140 = arith.constant 0.000000e+00 : f32
    %435 = vector.broadcast %cst_140 : f32 to vector<4x4xf32>
    %436 = arith.cmpf ogt, %434, %435 : vector<4x4xf32>
    %cst_141 = arith.constant 2.000000e-01 : f32
    %437 = vector.broadcast %cst_141 : f32 to vector<4x4xf32>
    %438 = arith.mulf %437, %434 : vector<4x4xf32>
    %439 = arith.select %436, %434, %438 : vector<4x4xi1>, vector<4x4xf32>
    %440 = vector.broadcast %429 : f32 to vector<4x4xf32>
    %441 = arith.mulf %440, %439 : vector<4x4xf32>
    %442 = arith.addf %428, %441 : vector<4x4xf32>
    %c1_142 = arith.constant 1 : index
    %c8_143 = arith.constant 8 : index
    %443 = memref.load %arg10[%c1_142, %c8_143] : memref<2x16xf32, #tpu.memory_space<smem>>
    %444 = vector.extract_strided_slice %328 {offsets = [0, 8], sizes = [4, 1], strides = [1, 1]} : vector<4x128xf32> to vector<4x1xf32>
    %445 = vector.extract_strided_slice %329 {offsets = [8, 0], sizes = [1, 4], strides = [1, 1]} : vector<128x4xf32> to vector<1x4xf32>
    %446 = vector.broadcast %444 : vector<4x1xf32> to vector<4x4xf32>
    %447 = vector.broadcast %445 : vector<1x4xf32> to vector<4x4xf32>
    %448 = arith.addf %446, %447 : vector<4x4xf32>
    %cst_144 = arith.constant 0.000000e+00 : f32
    %449 = vector.broadcast %cst_144 : f32 to vector<4x4xf32>
    %450 = arith.cmpf ogt, %448, %449 : vector<4x4xf32>
    %cst_145 = arith.constant 2.000000e-01 : f32
    %451 = vector.broadcast %cst_145 : f32 to vector<4x4xf32>
    %452 = arith.mulf %451, %448 : vector<4x4xf32>
    %453 = arith.select %450, %448, %452 : vector<4x4xi1>, vector<4x4xf32>
    %454 = vector.broadcast %443 : f32 to vector<4x4xf32>
    %455 = arith.mulf %454, %453 : vector<4x4xf32>
    %456 = arith.addf %442, %455 : vector<4x4xf32>
    %c1_146 = arith.constant 1 : index
    %c9_147 = arith.constant 9 : index
    %457 = memref.load %arg10[%c1_146, %c9_147] : memref<2x16xf32, #tpu.memory_space<smem>>
    %458 = vector.extract_strided_slice %328 {offsets = [0, 9], sizes = [4, 1], strides = [1, 1]} : vector<4x128xf32> to vector<4x1xf32>
    %459 = vector.extract_strided_slice %329 {offsets = [9, 0], sizes = [1, 4], strides = [1, 1]} : vector<128x4xf32> to vector<1x4xf32>
    %460 = vector.broadcast %458 : vector<4x1xf32> to vector<4x4xf32>
    %461 = vector.broadcast %459 : vector<1x4xf32> to vector<4x4xf32>
    %462 = arith.addf %460, %461 : vector<4x4xf32>
    %cst_148 = arith.constant 0.000000e+00 : f32
    %463 = vector.broadcast %cst_148 : f32 to vector<4x4xf32>
    %464 = arith.cmpf ogt, %462, %463 : vector<4x4xf32>
    %cst_149 = arith.constant 2.000000e-01 : f32
    %465 = vector.broadcast %cst_149 : f32 to vector<4x4xf32>
    %466 = arith.mulf %465, %462 : vector<4x4xf32>
    %467 = arith.select %464, %462, %466 : vector<4x4xi1>, vector<4x4xf32>
    %468 = vector.broadcast %457 : f32 to vector<4x4xf32>
    %469 = arith.mulf %468, %467 : vector<4x4xf32>
    %470 = arith.addf %456, %469 : vector<4x4xf32>
    %c1_150 = arith.constant 1 : index
    %c10_151 = arith.constant 10 : index
    %471 = memref.load %arg10[%c1_150, %c10_151] : memref<2x16xf32, #tpu.memory_space<smem>>
    %472 = vector.extract_strided_slice %328 {offsets = [0, 10], sizes = [4, 1], strides = [1, 1]} : vector<4x128xf32> to vector<4x1xf32>
    %473 = vector.extract_strided_slice %329 {offsets = [10, 0], sizes = [1, 4], strides = [1, 1]} : vector<128x4xf32> to vector<1x4xf32>
    %474 = vector.broadcast %472 : vector<4x1xf32> to vector<4x4xf32>
    %475 = vector.broadcast %473 : vector<1x4xf32> to vector<4x4xf32>
    %476 = arith.addf %474, %475 : vector<4x4xf32>
    %cst_152 = arith.constant 0.000000e+00 : f32
    %477 = vector.broadcast %cst_152 : f32 to vector<4x4xf32>
    %478 = arith.cmpf ogt, %476, %477 : vector<4x4xf32>
    %cst_153 = arith.constant 2.000000e-01 : f32
    %479 = vector.broadcast %cst_153 : f32 to vector<4x4xf32>
    %480 = arith.mulf %479, %476 : vector<4x4xf32>
    %481 = arith.select %478, %476, %480 : vector<4x4xi1>, vector<4x4xf32>
    %482 = vector.broadcast %471 : f32 to vector<4x4xf32>
    %483 = arith.mulf %482, %481 : vector<4x4xf32>
    %484 = arith.addf %470, %483 : vector<4x4xf32>
    %c1_154 = arith.constant 1 : index
    %c11_155 = arith.constant 11 : index
    %485 = memref.load %arg10[%c1_154, %c11_155] : memref<2x16xf32, #tpu.memory_space<smem>>
    %486 = vector.extract_strided_slice %328 {offsets = [0, 11], sizes = [4, 1], strides = [1, 1]} : vector<4x128xf32> to vector<4x1xf32>
    %487 = vector.extract_strided_slice %329 {offsets = [11, 0], sizes = [1, 4], strides = [1, 1]} : vector<128x4xf32> to vector<1x4xf32>
    %488 = vector.broadcast %486 : vector<4x1xf32> to vector<4x4xf32>
    %489 = vector.broadcast %487 : vector<1x4xf32> to vector<4x4xf32>
    %490 = arith.addf %488, %489 : vector<4x4xf32>
    %cst_156 = arith.constant 0.000000e+00 : f32
    %491 = vector.broadcast %cst_156 : f32 to vector<4x4xf32>
    %492 = arith.cmpf ogt, %490, %491 : vector<4x4xf32>
    %cst_157 = arith.constant 2.000000e-01 : f32
    %493 = vector.broadcast %cst_157 : f32 to vector<4x4xf32>
    %494 = arith.mulf %493, %490 : vector<4x4xf32>
    %495 = arith.select %492, %490, %494 : vector<4x4xi1>, vector<4x4xf32>
    %496 = vector.broadcast %485 : f32 to vector<4x4xf32>
    %497 = arith.mulf %496, %495 : vector<4x4xf32>
    %498 = arith.addf %484, %497 : vector<4x4xf32>
    %c1_158 = arith.constant 1 : index
    %c12_159 = arith.constant 12 : index
    %499 = memref.load %arg10[%c1_158, %c12_159] : memref<2x16xf32, #tpu.memory_space<smem>>
    %500 = vector.extract_strided_slice %328 {offsets = [0, 12], sizes = [4, 1], strides = [1, 1]} : vector<4x128xf32> to vector<4x1xf32>
    %501 = vector.extract_strided_slice %329 {offsets = [12, 0], sizes = [1, 4], strides = [1, 1]} : vector<128x4xf32> to vector<1x4xf32>
    %502 = vector.broadcast %500 : vector<4x1xf32> to vector<4x4xf32>
    %503 = vector.broadcast %501 : vector<1x4xf32> to vector<4x4xf32>
    %504 = arith.addf %502, %503 : vector<4x4xf32>
    %cst_160 = arith.constant 0.000000e+00 : f32
    %505 = vector.broadcast %cst_160 : f32 to vector<4x4xf32>
    %506 = arith.cmpf ogt, %504, %505 : vector<4x4xf32>
    %cst_161 = arith.constant 2.000000e-01 : f32
    %507 = vector.broadcast %cst_161 : f32 to vector<4x4xf32>
    %508 = arith.mulf %507, %504 : vector<4x4xf32>
    %509 = arith.select %506, %504, %508 : vector<4x4xi1>, vector<4x4xf32>
    %510 = vector.broadcast %499 : f32 to vector<4x4xf32>
    %511 = arith.mulf %510, %509 : vector<4x4xf32>
    %512 = arith.addf %498, %511 : vector<4x4xf32>
    %c1_162 = arith.constant 1 : index
    %c13_163 = arith.constant 13 : index
    %513 = memref.load %arg10[%c1_162, %c13_163] : memref<2x16xf32, #tpu.memory_space<smem>>
    %514 = vector.extract_strided_slice %328 {offsets = [0, 13], sizes = [4, 1], strides = [1, 1]} : vector<4x128xf32> to vector<4x1xf32>
    %515 = vector.extract_strided_slice %329 {offsets = [13, 0], sizes = [1, 4], strides = [1, 1]} : vector<128x4xf32> to vector<1x4xf32>
    %516 = vector.broadcast %514 : vector<4x1xf32> to vector<4x4xf32>
    %517 = vector.broadcast %515 : vector<1x4xf32> to vector<4x4xf32>
    %518 = arith.addf %516, %517 : vector<4x4xf32>
    %cst_164 = arith.constant 0.000000e+00 : f32
    %519 = vector.broadcast %cst_164 : f32 to vector<4x4xf32>
    %520 = arith.cmpf ogt, %518, %519 : vector<4x4xf32>
    %cst_165 = arith.constant 2.000000e-01 : f32
    %521 = vector.broadcast %cst_165 : f32 to vector<4x4xf32>
    %522 = arith.mulf %521, %518 : vector<4x4xf32>
    %523 = arith.select %520, %518, %522 : vector<4x4xi1>, vector<4x4xf32>
    %524 = vector.broadcast %513 : f32 to vector<4x4xf32>
    %525 = arith.mulf %524, %523 : vector<4x4xf32>
    %526 = arith.addf %512, %525 : vector<4x4xf32>
    %c1_166 = arith.constant 1 : index
    %c14_167 = arith.constant 14 : index
    %527 = memref.load %arg10[%c1_166, %c14_167] : memref<2x16xf32, #tpu.memory_space<smem>>
    %528 = vector.extract_strided_slice %328 {offsets = [0, 14], sizes = [4, 1], strides = [1, 1]} : vector<4x128xf32> to vector<4x1xf32>
    %529 = vector.extract_strided_slice %329 {offsets = [14, 0], sizes = [1, 4], strides = [1, 1]} : vector<128x4xf32> to vector<1x4xf32>
    %530 = vector.broadcast %528 : vector<4x1xf32> to vector<4x4xf32>
    %531 = vector.broadcast %529 : vector<1x4xf32> to vector<4x4xf32>
    %532 = arith.addf %530, %531 : vector<4x4xf32>
    %cst_168 = arith.constant 0.000000e+00 : f32
    %533 = vector.broadcast %cst_168 : f32 to vector<4x4xf32>
    %534 = arith.cmpf ogt, %532, %533 : vector<4x4xf32>
    %cst_169 = arith.constant 2.000000e-01 : f32
    %535 = vector.broadcast %cst_169 : f32 to vector<4x4xf32>
    %536 = arith.mulf %535, %532 : vector<4x4xf32>
    %537 = arith.select %534, %532, %536 : vector<4x4xi1>, vector<4x4xf32>
    %538 = vector.broadcast %527 : f32 to vector<4x4xf32>
    %539 = arith.mulf %538, %537 : vector<4x4xf32>
    %540 = arith.addf %526, %539 : vector<4x4xf32>
    %c1_170 = arith.constant 1 : index
    %c15_171 = arith.constant 15 : index
    %541 = memref.load %arg10[%c1_170, %c15_171] : memref<2x16xf32, #tpu.memory_space<smem>>
    %542 = vector.extract_strided_slice %328 {offsets = [0, 15], sizes = [4, 1], strides = [1, 1]} : vector<4x128xf32> to vector<4x1xf32>
    %543 = vector.extract_strided_slice %329 {offsets = [15, 0], sizes = [1, 4], strides = [1, 1]} : vector<128x4xf32> to vector<1x4xf32>
    %544 = vector.broadcast %542 : vector<4x1xf32> to vector<4x4xf32>
    %545 = vector.broadcast %543 : vector<1x4xf32> to vector<4x4xf32>
    %546 = arith.addf %544, %545 : vector<4x4xf32>
    %cst_172 = arith.constant 0.000000e+00 : f32
    %547 = vector.broadcast %cst_172 : f32 to vector<4x4xf32>
    %548 = arith.cmpf ogt, %546, %547 : vector<4x4xf32>
    %cst_173 = arith.constant 2.000000e-01 : f32
    %549 = vector.broadcast %cst_173 : f32 to vector<4x4xf32>
    %550 = arith.mulf %549, %546 : vector<4x4xf32>
    %551 = arith.select %548, %546, %550 : vector<4x4xi1>, vector<4x4xf32>
    %552 = vector.broadcast %541 : f32 to vector<4x4xf32>
    %553 = arith.mulf %552, %551 : vector<4x4xf32>
    %554 = arith.addf %540, %553 : vector<4x4xf32>
    %cst_174 = arith.constant -1.000000e+30 : f32
    %555 = vector.broadcast %cst_174 : f32 to vector<4x4xf32>
    %556 = arith.select %46, %554, %555 : vector<4x4xi1>, vector<4x4xf32>
    %cst_175 = arith.constant dense<0xFF800000> : vector<4xf32>
    %557 = vector.multi_reduction <maximumf>, %556, %cst_175 [1] : vector<4x4xf32> to vector<4xf32>
    %558 = vector.shape_cast %557 : vector<4xf32> to vector<4x1xf32>
    %559 = vector.broadcast %558 : vector<4x1xf32> to vector<4x4xf32>
    %560 = arith.subf %556, %559 : vector<4x4xf32>
    %561 = math.exp %560 : vector<4x4xf32>
    %cst_176 = arith.constant 0.000000e+00 : f32
    %562 = vector.broadcast %cst_176 : f32 to vector<4x4xf32>
    %563 = arith.select %46, %561, %562 : vector<4x4xi1>, vector<4x4xf32>
    %cst_177 = arith.constant dense<0.000000e+00> : vector<4xf32>
    %564 = vector.multi_reduction <add>, %563, %cst_177 [1] : vector<4x4xf32> to vector<4xf32>
    %565 = vector.shape_cast %564 : vector<4xf32> to vector<4x1xf32>
    %566 = vector.broadcast %565 : vector<4x1xf32> to vector<4x4xf32>
    %567 = arith.divf %563, %566 : vector<4x4xf32>
    %568 = arith.truncf %567 : vector<4x4xf32> to vector<4x4xbf16>
    %569 = arith.truncf %327 : vector<4x128xf32> to vector<4x128xbf16>
    %cst_178 = arith.constant dense<0.000000e+00> : vector<4x128xf32>
    %570 = tpu.matmul %568, %569, %cst_178 {dimension_numbers = #tpu.dot_dimension_numbers<[1], [0], [0], [1], [0, 0, 1, 1], [], []>} : vector<4x4xbf16>, vector<4x128xbf16>, vector<4x128xf32> -> vector<4x128xf32>
    %cst_179 = arith.constant dense<0.000000e+00> : vector<128xf32>
    %571 = vector.multi_reduction <add>, %570, %cst_179 [0] : vector<4x128xf32> to vector<128xf32>
    %572 = vector.shape_cast %571 : vector<128xf32> to vector<1x128xf32>
    %cst_180 = arith.constant 4.000000e+00 : f32
    %573 = vector.broadcast %cst_180 : f32 to vector<1x128xf32>
    %574 = arith.divf %572, %573 : vector<1x128xf32>
    %575 = vector.broadcast %574 : vector<1x128xf32> to vector<4x128xf32>
    %576 = arith.subf %570, %575 : vector<4x128xf32>
    %577 = arith.mulf %576, %576 : vector<4x128xf32>
    %cst_181 = arith.constant dense<0.000000e+00> : vector<128xf32>
    %578 = vector.multi_reduction <add>, %577, %cst_181 [0] : vector<4x128xf32> to vector<128xf32>
    %579 = vector.shape_cast %578 : vector<128xf32> to vector<1x128xf32>
    %cst_182 = arith.constant 4.000000e+00 : f32
    %580 = vector.broadcast %cst_182 : f32 to vector<1x128xf32>
    %581 = arith.divf %579, %580 : vector<1x128xf32>
    %582 = vector.broadcast %574 : vector<1x128xf32> to vector<4x128xf32>
    %583 = arith.subf %570, %582 : vector<4x128xf32>
    %cst_183 = arith.constant 9.99999974E-6 : f32
    %584 = vector.broadcast %cst_183 : f32 to vector<1x128xf32>
    %585 = arith.addf %581, %584 : vector<1x128xf32>
    %586 = math.rsqrt %585 : vector<1x128xf32>
    %587 = vector.broadcast %586 : vector<1x128xf32> to vector<4x128xf32>
    %588 = arith.mulf %583, %587 : vector<4x128xf32>
    %cst_184 = arith.constant 0.000000e+00 : f32
    %589 = vector.broadcast %cst_184 : f32 to vector<4x128xf32>
    %590 = arith.cmpf ogt, %588, %589 : vector<4x128xf32>
    %cst_185 = arith.constant 2.000000e-01 : f32
    %591 = vector.broadcast %cst_185 : f32 to vector<4x128xf32>
    %592 = arith.mulf %591, %588 : vector<4x128xf32>
    %593 = arith.select %590, %588, %592 : vector<4x128xi1>, vector<4x128xf32>
    %c0_186 = arith.constant 0 : index
    %c0_187 = arith.constant 0 : index
    %594 = vector.load %arg11[%c0_186, %c0_187] : memref<256x128xbf16, #tpu.memory_space<vmem>>, vector<256x128xbf16>
    %595 = arith.truncf %320 : vector<4x128xf32> to vector<4x128xbf16>
    %596 = vector.extract_strided_slice %594 {offsets = [0, 0], sizes = [128, 128], strides = [1, 1]} : vector<256x128xbf16> to vector<128x128xbf16>
    %cst_188 = arith.constant dense<0.000000e+00> : vector<4x128xf32>
    %597 = tpu.matmul %595, %596, %cst_188 {dimension_numbers = #tpu.dot_dimension_numbers<[1], [0], [0], [1], [0, 0, 1, 1], [], []>} : vector<4x128xbf16>, vector<128x128xbf16>, vector<4x128xf32> -> vector<4x128xf32>
    %598 = arith.truncf %593 : vector<4x128xf32> to vector<4x128xbf16>
    %599 = vector.extract_strided_slice %594 {offsets = [128, 0], sizes = [128, 128], strides = [1, 1]} : vector<256x128xbf16> to vector<128x128xbf16>
    %cst_189 = arith.constant dense<0.000000e+00> : vector<4x128xf32>
    %600 = tpu.matmul %598, %599, %cst_189 {dimension_numbers = #tpu.dot_dimension_numbers<[1], [0], [0], [1], [0, 0, 1, 1], [], []>} : vector<4x128xbf16>, vector<128x128xbf16>, vector<4x128xf32> -> vector<4x128xf32>
    %601 = arith.addf %597, %600 : vector<4x128xf32>
    %c0_190 = arith.constant 0 : index
    %c0_191 = arith.constant 0 : index
    %602 = vector.load %arg12[%c0_190, %c0_191] : memref<1x128xf32, #tpu.memory_space<vmem>>, vector<1x128xf32>
    %603 = vector.broadcast %602 : vector<1x128xf32> to vector<4x128xf32>
    %604 = arith.addf %601, %603 : vector<4x128xf32>
    %cst_192 = arith.constant 0.000000e+00 : f32
    %605 = vector.broadcast %cst_192 : f32 to vector<4x128xf32>
    %606 = arith.cmpf ogt, %604, %605 : vector<4x128xf32>
    %cst_193 = arith.constant 2.000000e-01 : f32
    %607 = vector.broadcast %cst_193 : f32 to vector<4x128xf32>
    %608 = arith.mulf %607, %604 : vector<4x128xf32>
    %609 = arith.select %606, %604, %608 : vector<4x128xi1>, vector<4x128xf32>
    %610 = arith.truncf %609 : vector<4x128xf32> to vector<4x128xbf16>
    %c0_194 = arith.constant 0 : index
    %c0_195 = arith.constant 0 : index
    %611 = vector.load %arg13[%c0_194, %c0_195] : memref<128x2xbf16, #tpu.memory_space<vmem>>, vector<128x2xbf16>
    %cst_196 = arith.constant dense<0.000000e+00> : vector<4x2xf32>
    %612 = tpu.matmul %610, %611, %cst_196 {dimension_numbers = #tpu.dot_dimension_numbers<[1], [0], [0], [1], [0, 0, 1, 1], [], []>} : vector<4x128xbf16>, vector<128x2xbf16>, vector<4x2xf32> -> vector<4x2xf32>
    %c0_197 = arith.constant 0 : index
    %c0_198 = arith.constant 0 : index
    %613 = vector.load %arg14[%c0_197, %c0_198] : memref<1x2xf32, #tpu.memory_space<vmem>>, vector<1x2xf32>
    %614 = vector.broadcast %613 : vector<1x2xf32> to vector<4x2xf32>
    %615 = arith.addf %612, %614 : vector<4x2xf32>
    %c0_199 = arith.constant 0 : index
    %c0_200 = arith.constant 0 : index
    %616 = vector.load %arg15[%c0_199, %c0_200] : memref<4x2xf32, #tpu.memory_space<vmem>>, vector<4x2xf32>
    tpu.vector_store %arg15[%c0_199, %c0_200], %615 {strides = array<i32>} : memref<4x2xf32, #tpu.memory_space<vmem>>, vector<4x2xf32>,
    %cst_201 = arith.constant dense<0xFF800000> : vector<4xf32>
    %617 = vector.multi_reduction <maximumf>, %615, %cst_201 [1] : vector<4x2xf32> to vector<4xf32>
    %618 = vector.shape_cast %617 : vector<4xf32> to vector<4x1xf32>
    %619 = vector.broadcast %618 : vector<4x1xf32> to vector<4x2xf32>
    %620 = arith.subf %615, %619 : vector<4x2xf32>
    %621 = math.exp %620 : vector<4x2xf32>
    %cst_202 = arith.constant dense<0.000000e+00> : vector<4xf32>
    %622 = vector.multi_reduction <add>, %621, %cst_202 [1] : vector<4x2xf32> to vector<4xf32>
    %623 = vector.shape_cast %622 : vector<4xf32> to vector<4x1xf32>
    %624 = vector.broadcast %623 : vector<4x1xf32> to vector<4x2xf32>
    %625 = arith.divf %621, %624 : vector<4x2xf32>
    %c0_203 = arith.constant 0 : index
    %c0_204 = arith.constant 0 : index
    %626 = vector.load %arg16[%c0_203, %c0_204] : memref<4x2xf32, #tpu.memory_space<vmem>>, vector<4x2xf32>
    tpu.vector_store %arg16[%c0_203, %c0_204], %625 {strides = array<i32>} : memref<4x2xf32, #tpu.memory_space<vmem>>, vector<4x2xf32>,
    return
  }
  func.func @transform_0(%arg0: i32) -> (i32, i32) {
    %c0_i32 = arith.constant 0 : i32
    %c0_i32_0 = arith.constant 0 : i32
    %c0_i32_1 = arith.constant 0 : i32
    return %c0_i32, %c0_i32_0 : i32, i32
  }
  func.func @transform_1(%arg0: i32) -> (i32, i32) {
    %c0_i32 = arith.constant 0 : i32
    %c0_i32_0 = arith.constant 0 : i32
    %c0_i32_1 = arith.constant 0 : i32
    return %c0_i32, %c0_i32_0 : i32, i32
  }
  func.func @transform_2(%arg0: i32) -> (i32, i32) {
    %c0_i32 = arith.constant 0 : i32
    %c0_i32_0 = arith.constant 0 : i32
    %c0_i32_1 = arith.constant 0 : i32
    return %c0_i32, %c0_i32_0 : i32, i32
  }
  func.func @transform_3(%arg0: i32) -> (i32, i32) {
    %c0_i32 = arith.constant 0 : i32
    %c0_i32_0 = arith.constant 0 : i32
    %c0_i32_1 = arith.constant 0 : i32
    return %c0_i32, %c0_i32_0 : i32, i32
  }
  func.func @transform_4(%arg0: i32) -> (i32, i32) {
    %c0_i32 = arith.constant 0 : i32
    %c0_i32_0 = arith.constant 0 : i32
    %c0_i32_1 = arith.constant 0 : i32
    return %c0_i32, %c0_i32_0 : i32, i32
  }
  func.func @transform_5(%arg0: i32) -> (i32, i32) {
    %c0_i32 = arith.constant 0 : i32
    %c0_i32_0 = arith.constant 0 : i32
    %c0_i32_1 = arith.constant 0 : i32
    return %c0_i32, %c0_i32_0 : i32, i32
  }
  func.func @transform_6(%arg0: i32) -> (i32, i32) {
    %c0_i32 = arith.constant 0 : i32
    %c0_i32_0 = arith.constant 0 : i32
    %c0_i32_1 = arith.constant 0 : i32
    return %c0_i32, %c0_i32_0 : i32, i32
  }
  func.func @transform_7(%arg0: i32) -> (i32, i32) {
    %c0_i32 = arith.constant 0 : i32
    %c0_i32_0 = arith.constant 0 : i32
    %c0_i32_1 = arith.constant 0 : i32
    return %c0_i32, %c0_i32_0 : i32, i32
  }
  func.func @transform_8(%arg0: i32) -> (i32, i32) {
    %c0_i32 = arith.constant 0 : i32
    %c0_i32_0 = arith.constant 0 : i32
    %c0_i32_1 = arith.constant 0 : i32
    return %c0_i32, %c0_i32_0 : i32, i32
  }
  func.func @transform_9(%arg0: i32) -> (i32, i32) {
    %c0_i32 = arith.constant 0 : i32
    %c0_i32_0 = arith.constant 0 : i32
    %c0_i32_1 = arith.constant 0 : i32
    return %c0_i32, %c0_i32_0 : i32, i32
  }
  func.func @transform_10(%arg0: i32) -> (i32, i32) {
    %c0_i32 = arith.constant 0 : i32
    %c0_i32_0 = arith.constant 0 : i32
    %c0_i32_1 = arith.constant 0 : i32
    return %c0_i32, %c0_i32_0 : i32, i32
  }
  func.func @transform_11(%arg0: i32) -> (i32, i32) {
    %c0_i32 = arith.constant 0 : i32
    %c0_i32_0 = arith.constant 0 : i32
    %c0_i32_1 = arith.constant 0 : i32
    return %c0_i32, %c0_i32_0 : i32, i32
  }
  func.func @transform_12(%arg0: i32) -> (i32, i32) {
    %c0_i32 = arith.constant 0 : i32
    %c0_i32_0 = arith.constant 0 : i32
    %c0_i32_1 = arith.constant 0 : i32
    return %c0_i32, %c0_i32_0 : i32, i32
  }
  func.func @transform_13(%arg0: i32) -> (i32, i32) {
    %c0_i32 = arith.constant 0 : i32
    %c0_i32_0 = arith.constant 0 : i32
    %c0_i32_1 = arith.constant 0 : i32
    return %c0_i32, %c0_i32_0 : i32, i32
  }
  func.func @transform_14(%arg0: i32) -> (i32, i32) {
    %c0_i32 = arith.constant 0 : i32
    %c0_i32_0 = arith.constant 0 : i32
    %c0_i32_1 = arith.constant 0 : i32
    return %c0_i32, %c0_i32_0 : i32, i32
  }
  func.func @transform_15(%arg0: i32) -> (i32, i32) {
    %c0_i32 = arith.constant 0 : i32
    %c0_i32_0 = arith.constant 0 : i32
    %c0_i32_1 = arith.constant 0 : i32
    return %c0_i32, %c0_i32_0 : i32, i32
  }
}

</mosaic_0001>

<bundles_post_ra>
// kernel: forward.6
= control target key start
LH: loop header
LB: loop body
LE: loop exit
PB: predicated region body
PF: predicated region fallthrough
CT: control target
= control target key end

     0   :  { %11 = vsyncpa [#allocation5], 0  ;;  %s1709_s0 = inlined_call_operand.vmem [shape: bf16[4,256], index: 0, kind: input, shape index: {}]   ;;  %s1710_s1 = inlined_call_operand.hbm [shape: bf16[256,128], index: 1, kind: input, shape index: {}]   ;;  %s1711_s2 = inlined_call_operand.vmem [shape: f32[1,128], index: 2, kind: input, shape index: {}]   ;;  %s1712_s3 = inlined_call_operand.hbm [shape: bf16[128,512], index: 3, kind: input, shape index: {}]   ;;  %s1713_s4 = inlined_call_operand.vmem [shape: f32[1,512], index: 4, kind: input, shape index: {}]   ;;  %s1714_s5 = inlined_call_operand.hbm [shape: bf16[128,512], index: 5, kind: input, shape index: {}]   ;;  %s1715_s6 = inlined_call_operand.vmem [shape: bf16[4,128], index: 6, kind: output, shape index: {}]  }
   0x1   :  { %12 = vsyncpa [#allocation7], 0  ;;  %s34_s23 = sshll.u32 %s1712_s3, 4  ;;  %s1430_s24 = smov [#allocation6]   ;;  %s35_s23 = int_to_ptr.hbm [resolvable:$true] %s34_s23 }
   0x2   :  { %s36_s25 = sshll.u32 %s1430_s24, 4  ;;  %s19_s28 = sshll.u32 %s1710_s1, 4  ;;  %s37_s25 = int_to_ptr.vmem [resolvable:$true] %s36_s25  ;;  %s20_s28 = int_to_ptr.hbm [resolvable:$true] %s19_s28 }
   0x3   :  { %s1431_s29 = smov 256   ;;  %s1432_s30 = smov 16  }
   0x4   :  { %42 = dma.hbm_to_vmem [thread:$0]  %s35_s23, 4096, %s37_s25, [#allocation7], %s1431_s29, %s1431_s29, %s1432_s30  }
   0x5   :  { %s1433_s7 = smov [#allocation4]   ;;  %s1434_s9 = smov 64  }
   0x6   :  { %s21_s8 = sshll.u32 %s1433_s7, 4  ;;  %s1435_s10 = smov 4   ;;  %s22_s8 = int_to_ptr.vmem [resolvable:$true] %s21_s8 }
   0x7   :  { %27 = dma.hbm_to_vmem [thread:$0]  %s20_s28, 2048, %s22_s8, [#allocation5], %s1434_s9, %s1434_s9, %s1435_s10  }
   0x8   :  { %s49_s12 = sshll.u32 %s1714_s5, 4  ;;  %s1436_s13 = smov [#allocation8]   ;;  %s50_s12 = int_to_ptr.hbm [resolvable:$true] %s49_s12 }
   0x9   :  { %s51_s14 = sshll.u32 %s1436_s13, 4  ;;  %s52_s14 = int_to_ptr.vmem [resolvable:$true] %s51_s14 }
   0xa   :  { %57 = dma.hbm_to_vmem [thread:$0]  %s50_s12, 4096, %s52_s14, [#allocation7], %s1431_s29, %s1431_s29, %s1432_s30  }
   0xb   :  { %1414 = dma.done.wait [#allocation5], 2048  }
   0xc   :  { %1415 = vsyncadd [#allocation5], 4294965248 }
   0xd   :  { %1416 = dma.done.wait [#allocation7], 8192  }
   0xe   :  { %1417 = vsyncadd [#allocation7], 4294959104  ;;  %v1481_v0 = vld [vmem:[#allocation8 + $0x4] sm:$0xf]  ;;  %v1483_v1 = vld [vmem:[#allocation8] sm:$0xf] }
   0xf   :  { %1716 = vst [vmem:[#allocation11_spill] sm:$0xff] %v1481_v0  ;;  %v1485_v2 = vld [vmem:[#allocation8 + $0xc] sm:$0xf]  ;;  %v1487_v3 = vld [vmem:[#allocation8 + $0x8] sm:$0xf]  ;;  %vm496_vm0 = vcmask 1043456  }
  0x10   :  { %1717 = vst [vmem:[#allocation12_spill] sm:$0xff] %v1483_v1  ;;  %v1489_v4 = vld [vmem:[#allocation8 + $0x10] sm:$0xf0]  ;;  %v1491_v5 = vld [vmem:[#allocation8 + $0xc] sm:$0xf0]  ;;  %v1206_v0 = vld [vmem:[#allocation4 + $0x28] sm:$0xff] }
  0x11   :  { %1718 = vst [vmem:[#allocation13_spill] sm:$0xff] %v1485_v2  ;;  %v1493_v6 = vld [vmem:[#allocation8 + $0x18] sm:$0xf0]  ;;  %v1495_v7 = vld [vmem:[#allocation8 + $0x14] sm:$0xf0] }
  0x12   :  { %1719 = vst [vmem:[#allocation14_spill] sm:$0xff] %v1487_v3  ;;  %v1497_v8 = vld [vmem:[#allocation8 + $0x24] sm:$0xf]  ;;  %v1499_v9 = vld [vmem:[#allocation8 + $0x20] sm:$0xf]  ;;  %v1208_v2 = vld [vmem:[#allocation4 + $0x38] sm:$0xff] }
  0x13   :  { %1720 = vst [vmem:[#allocation15_spill] sm:$0xff] %v1489_v4  ;;  %v1501_v10 = vld [vmem:[#allocation8 + $0x2c] sm:$0xf]  ;;  %v1503_v11 = vld [vmem:[#allocation8 + $0x28] sm:$0xf]  ;;  %209 = vmatpush.bf16.msra.mxu0 %v1208_v2  ;;  %v1215_v3 = vld [vmem:[#allocation4 + $0x70] sm:$0xff] }
  0x14   :  { %1721 = vst [vmem:[#allocation16_spill] sm:$0xff] %v1491_v5  ;;  %v1505_v12 = vld [vmem:[#allocation8 + $0x30] sm:$0xf0]  ;;  %v1507_v13 = vld [vmem:[#allocation8 + $0x2c] sm:$0xf0]  ;;  %v1214_v4 = vld [vmem:[#allocation4 + $0x68] sm:$0xff] }
  0x15   :  { %1722 = vst [vmem:[#allocation17_spill] sm:$0xff] %v1493_v6  ;;  %v1509_v14 = vld [vmem:[#allocation8 + $0x38] sm:$0xf0]  ;;  %v1511_v15 = vld [vmem:[#allocation8 + $0x34] sm:$0xf0] }
  0x16   :  { %1723 = vst [vmem:[#allocation18_spill] sm:$0xff] %v1495_v7  ;;  %v1513_v16 = vld [vmem:[#allocation8 + $0x44] sm:$0xf]  ;;  %v1515_v17 = vld [vmem:[#allocation8 + $0x40] sm:$0xf]  ;;  %v1216_v6 = vld [vmem:[#allocation4 + $0x78] sm:$0xff] }
  0x17   :  { %1724 = vst [vmem:[#allocation19_spill] sm:$0xff] %v1497_v8  ;;  %v1517_v18 = vld [vmem:[#allocation8 + $0x4c] sm:$0xf]  ;;  %v1519_v19 = vld [vmem:[#allocation8 + $0x48] sm:$0xf]  ;;  %222 = vmatpush.bf16.msra.mxu1 %v1216_v6  ;;  %v1207_v7 = vld [vmem:[#allocation4 + $0x30] sm:$0xff] }
  0x18   :  { %1725 = vst [vmem:[#allocation20_spill] sm:$0xff] %v1499_v9  ;;  %v1521_v20 = vld [vmem:[#allocation8 + $0x50] sm:$0xf0]  ;;  %v1523_v21 = vld [vmem:[#allocation8 + $0x4c] sm:$0xf0]  ;;  %210 = vmatpush.bf16.msra.mxu0 %v1207_v7  ;;  %v1213_v9 = vld [vmem:[#allocation4 + $0x60] sm:$0xff] }
  0x19   :  { %1726 = vst [vmem:[#allocation21_spill] sm:$0xff] %v1501_v10  ;;  %v1525_v22 = vld [vmem:[#allocation8 + $0x58] sm:$0xf0]  ;;  %v1527_v23 = vld [vmem:[#allocation8 + $0x54] sm:$0xf0] }
  0x1a   :  { %1727 = vst [vmem:[#allocation22_spill] sm:$0xff] %v1503_v11  ;;  %v1529_v24 = vld [vmem:[#allocation8 + $0x64] sm:$0xf]  ;;  %v1531_v25 = vld [vmem:[#allocation8 + $0x60] sm:$0xf] }
  0x1b   :  { %1728 = vst [vmem:[#allocation23_spill] sm:$0xff] %v1505_v12  ;;  %v1533_v26 = vld [vmem:[#allocation8 + $0x6c] sm:$0xf]  ;;  %v1535_v27 = vld [vmem:[#allocation8 + $0x68] sm:$0xf]  ;;  %223 = vmatpush.bf16.msra.mxu1 %v1215_v3 }
  0x1c   :  { %1729 = vst [vmem:[#allocation24_spill] sm:$0xff] %v1507_v13  ;;  %v1537_v28 = vld [vmem:[#allocation8 + $0x70] sm:$0xf0]  ;;  %v1539_v29 = vld [vmem:[#allocation8 + $0x6c] sm:$0xf0]  ;;  %211 = vmatpush.bf16.msra.mxu0 %v1206_v0  ;;  %v1205_v13 = vld [vmem:[#allocation4 + $0x20] sm:$0xff] }
  0x1d   :  { %1730 = vst [vmem:[#allocation25_spill] sm:$0xff] %v1509_v14  ;;  %v1541_v30 = vld [vmem:[#allocation8 + $0x78] sm:$0xf0]  ;;  %v1543_v31 = vld [vmem:[#allocation8 + $0x74] sm:$0xf0] }
  0x1e   :  { %1731 = vst [vmem:[#allocation26_spill] sm:$0xff] %v1511_v15  ;;  %v1545_v32 = vld [vmem:[#allocation8 + $0x84] sm:$0xf]  ;;  %v1547_v33 = vld [vmem:[#allocation8 + $0x80] sm:$0xf] }
  0x1f   :  { %1732 = vst [vmem:[#allocation27_spill] sm:$0xff] %v1513_v16  ;;  %v1549_v34 = vld [vmem:[#allocation8 + $0x8c] sm:$0xf]  ;;  %v1551_v35 = vld [vmem:[#allocation8 + $0x88] sm:$0xf]  ;;  %224 = vmatpush.bf16.msra.mxu1 %v1214_v4 }
  0x20   :  { %1733 = vst [vmem:[#allocation28_spill] sm:$0xff] %v1515_v17  ;;  %v1553_v36 = vld [vmem:[#allocation8 + $0x90] sm:$0xf0]  ;;  %v1555_v37 = vld [vmem:[#allocation8 + $0x8c] sm:$0xf0]  ;;  %212 = vmatpush.bf16.msra.mxu0 %v1205_v13 }
  0x21   :  { %1734 = vst [vmem:[#allocation29_spill] sm:$0xff] %v1517_v18  ;;  %v1557_v38 = vld [vmem:[#allocation8 + $0x98] sm:$0xf0]  ;;  %v1559_v39 = vld [vmem:[#allocation8 + $0x94] sm:$0xf0] }
  0x22   :  { %1735 = vst [vmem:[#allocation30_spill] sm:$0xff] %v1519_v19  ;;  %v1561_v40 = vld [vmem:[#allocation8 + $0xa4] sm:$0xf]  ;;  %v1563_v41 = vld [vmem:[#allocation8 + $0xa0] sm:$0xf] }
  0x23   :  { %1736 = vst [vmem:[#allocation31_spill] sm:$0xff] %v1521_v20  ;;  %v1565_v42 = vld [vmem:[#allocation8 + $0xac] sm:$0xf]  ;;  %v1567_v43 = vld [vmem:[#allocation8 + $0xa8] sm:$0xf]  ;;  %225 = vmatpush.bf16.msra.mxu1 %v1213_v9 }
  0x24   :  { %1737 = vst [vmem:[#allocation32_spill] sm:$0xff] %v1523_v21  ;;  %v1569_v44 = vld [vmem:[#allocation8 + $0xb0] sm:$0xf0]  ;;  %v1571_v45 = vld [vmem:[#allocation8 + $0xac] sm:$0xf0] }
  0x25   :  { %1738 = vst [vmem:[#allocation33_spill] sm:$0xff] %v1525_v22  ;;  %v1573_v46 = vld [vmem:[#allocation8 + $0xb8] sm:$0xf0]  ;;  %v1575_v47 = vld [vmem:[#allocation8 + $0xb4] sm:$0xf0] }
  0x26   :  { %1739 = vst [vmem:[#allocation34_spill] sm:$0xff] %v1527_v23  ;;  %v1577_v48 = vld [vmem:[#allocation8 + $0xc4] sm:$0xf]  ;;  %v1579_v49 = vld [vmem:[#allocation8 + $0xc0] sm:$0xf] }
  0x27   :  { %1740 = vst [vmem:[#allocation35_spill] sm:$0xff] %v1529_v24  ;;  %v1581_v50 = vld [vmem:[#allocation8 + $0xcc] sm:$0xf]  ;;  %v1583_v51 = vld [vmem:[#allocation8 + $0xc8] sm:$0xf] }
  0x28   :  { %1741 = vst [vmem:[#allocation36_spill] sm:$0xff] %v1531_v25  ;;  %v1585_v52 = vld [vmem:[#allocation8 + $0xd0] sm:$0xf0]  ;;  %v1587_v53 = vld [vmem:[#allocation8 + $0xcc] sm:$0xf0] }
  0x29   :  { %v1589_v54 = vld [vmem:[#allocation8 + $0xd8] sm:$0xf0]  ;;  %v1591_v55 = vld [vmem:[#allocation8 + $0xd4] sm:$0xf0]  ;;  %v1593_v56 = vld [vmem:[#allocation8 + $0xe4] sm:$0xf] }
  0x2a   :  { %v1595_v57 = vld [vmem:[#allocation8 + $0xe0] sm:$0xf]  ;;  %v1597_v58 = vld [vmem:[#allocation8 + $0xec] sm:$0xf]  ;;  %v1599_v59 = vld [vmem:[#allocation8 + $0xe8] sm:$0xf] }
  0x2b   :  { %v1601_v60 = vld [vmem:[#allocation8 + $0xf0] sm:$0xf0]  ;;  %v1603_v61 = vld [vmem:[#allocation8 + $0xec] sm:$0xf0]  ;;  %v1605_v62 = vld [vmem:[#allocation8 + $0xf8] sm:$0xf0] }
  0x2c   :  { %v1607_v63 = vld [vmem:[#allocation8 + $0xf4] sm:$0xf0]  ;;  %v70_v5 = vld [vmem:[%s1709_s0] sm:$0xf]  ;;  %v1054_v1 = vld [vmem:[#allocation6 + $0xe0] sm:$0xf] }
  0x2d   :  { %108 = vst [vmem:[#allocation1] ss:$4 sm:$0xff] %v70_v5  ;;  %v1247_v10 = vld [vmem:[#allocation6 + $0xec] sm:$0xf0]  ;;  %v1245_v15 = vld [vmem:[#allocation6 + $0xe4] sm:$0xf] }
  0x2e   :  { %v1055_v14 = vor.u32 %v1247_v10, %v1054_v1  ;;  %v1056_v11 = vld [vmem:[#allocation6 + $0xf0] sm:$0xf0]  ;;  %v1038_v2 = vld [vmem:[#allocation6 + $0xc0] sm:$0xf]  ;;  %v1243_v6 = vld [vmem:[#allocation6 + $0xcc] sm:$0xf0] }
  0x2f   :  { %v1059_v8 = vor.u32 %v1245_v15, %v1056_v11  ;;  %v1241_v12 = vld [vmem:[#allocation6 + $0xc4] sm:$0xf]  ;;  %v1039_v18 = vor.u32 %v1243_v6, %v1038_v2  ;;  %v1040_v22 = vld [vmem:[#allocation6 + $0xd0] sm:$0xf0]  ;;  %v1022_v3 = vld [vmem:[#allocation6 + $0xa0] sm:$0xf] }
  0x30   :  { %438 = vmatpush.bf16.msra.mxu2 %v1055_v14  ;;  %v1043_v7 = vor.u32 %v1241_v12, %v1040_v22  ;;  %v1239_v5 = vld [vmem:[#allocation6 + $0xac] sm:$0xf0]  ;;  %v1237_v23 = vld [vmem:[#allocation6 + $0xa4] sm:$0xf]  ;;  %v1024_v19 = vld [vmem:[#allocation6 + $0xb0] sm:$0xf0] }
  0x31   :  { %451 = vmatpush.bf16.msra.mxu3 %v1059_v8  ;;  %v1023_v1 = vor.u32 %v1239_v5, %v1022_v3  ;;  %v1204_v10 = vld [vmem:[#allocation4 + $0x18] sm:$0xff]  ;;  %v1027_v14 = vor.u32 %v1237_v23, %v1024_v19  ;;  %v1006_v0 = vld [vmem:[#allocation6 + $0x80] sm:$0xf]  ;;  %v1235_v4 = vld [vmem:[#allocation6 + $0x8c] sm:$0xf0] }
  0x32   :  { %v1212_v11 = vld [vmem:[#allocation4 + $0x58] sm:$0xff]  ;;  %v1233_v15 = vld [vmem:[#allocation6 + $0x84] sm:$0xf]  ;;  %v1008_v16 = vld [vmem:[#allocation6 + $0x90] sm:$0xf0]  ;;  %v1007_v8 = vor.u32 %v1235_v4, %v1006_v0  ;;  %213 = vmatpush.bf16.msra.mxu0 %v1204_v10 }
  0x33   :  { %v1203_v2 = vld [vmem:[#allocation4 + $0x10] sm:$0xff]  ;;  %226 = vmatpush.bf16.msra.mxu1 %v1212_v11  ;;  %v990_v22 = vld [vmem:[#allocation6 + $0x60] sm:$0xf]  ;;  %v1229_v13 = vld [vmem:[#allocation6 + $0x64] sm:$0xf] }
  0x34   :  { %439 = vmatpush.bf16.msra.mxu2 %v1039_v18  ;;  %v1211_v12 = vld [vmem:[#allocation4 + $0x50] sm:$0xff]  ;;  %v1011_v18 = vor.u32 %v1233_v15, %v1008_v16  ;;  %v1202_v3 = vld [vmem:[#allocation4 + $0x8] sm:$0xff]  ;;  %v974_v23 = vld [vmem:[#allocation6 + $0x40] sm:$0xf] }
  0x35   :  { %452 = vmatpush.bf16.msra.mxu3 %v1043_v7  ;;  %v1231_v6 = vld [vmem:[#allocation6 + $0x6c] sm:$0xf0]  ;;  %v992_v9 = vld [vmem:[#allocation6 + $0x70] sm:$0xf0]  ;;  %v1210_v19 = vld [vmem:[#allocation4 + $0x48] sm:$0xff] }
  0x36   :  { %v991_v7 = vor.u32 %v1231_v6, %v990_v22  ;;  %214 = vmatpush.bf16.msra.mxu0 %v1203_v2  ;;  %v1227_v5 = vld [vmem:[#allocation6 + $0x4c] sm:$0xf0]  ;;  %v1062_v20 = vld [vmem:[#allocation6 + $0xe8] sm:$0xf]  ;;  %v1248_v10 = vld [vmem:[#allocation6 + $0xf4] sm:$0xf0] }
  0x37   :  { %227 = vmatpush.bf16.msra.mxu1 %v1211_v12  ;;  %v1246_v11 = vld [vmem:[#allocation6 + $0xec] sm:$0xf]  ;;  %v1064_v0 = vld [vmem:[#allocation6 + $0xf8] sm:$0xf0]  ;;  %v975_v4 = vor.u32 %v1227_v5, %v974_v23  ;;  %v976_v16 = vld [vmem:[#allocation6 + $0x50] sm:$0xf0]  ;;  %v1063_v22 = vor.u32 %v1248_v10, %v1062_v20 }
  0x38   :  { %440 = vmatpush.bf16.msra.mxu2 %v1023_v1  ;;  %v995_v1 = vor.u32 %v1229_v13, %v992_v9  ;;  %v1201_v15 = vld [vmem:[#allocation4] sm:$0xff]  ;;  %v1067_v2 = vor.u32 %v1246_v11, %v1064_v0  ;;  %v1046_v12 = vld [vmem:[#allocation6 + $0xc8] sm:$0xf]  ;;  %v1244_v6 = vld [vmem:[#allocation6 + $0xd4] sm:$0xf0] }
  0x39   :  { %453 = vmatpush.bf16.msra.mxu3 %v1027_v14  ;;  %v1225_v14 = vld [vmem:[#allocation6 + $0x44] sm:$0xf]  ;;  %v1242_v21 = vld [vmem:[#allocation6 + $0xcc] sm:$0xf]  ;;  %v1048_v17 = vld [vmem:[#allocation6 + $0xd8] sm:$0xf0] }
  0x3a   :  { %215 = vmatpush.bf16.msra.mxu0 %v1202_v3  ;;  %v109_v13 = vld.sshfl [vmem:[#allocation1] sm:$0xff pattern:$0x73625140]  ;;  %v110_v9 = vld.sshfl [vmem:[#allocation1 + $0x8] sm:$0xff pattern:$0x73625140]  ;;  %v1051_v3 = vor.u32 %v1242_v21, %v1048_v17 }
  0x3b   :  { %228 = vmatpush.bf16.msra.mxu1 %v1210_v19  ;;  %v1030_v19 = vld [vmem:[#allocation6 + $0xa8] sm:$0xf]  ;;  %v1240_v23 = vld [vmem:[#allocation6 + $0xb4] sm:$0xf0]  ;;  %v1238_v5 = vld [vmem:[#allocation6 + $0xac] sm:$0xf] }
  0x3c   :  { %441 = vmatpush.bf16.msra.mxu2 %v1007_v8  ;;  %v1209_v8 = vld [vmem:[#allocation4 + $0x40] sm:$0xff]  ;;  %v1032_v20 = vld [vmem:[#allocation6 + $0xb8] sm:$0xf0]  ;;  %v1014_v11 = vld [vmem:[#allocation6 + $0x88] sm:$0xf] }
  0x3d   :  { %454 = vmatpush.bf16.msra.mxu3 %v1011_v18  ;;  %v979_v18 = vor.u32 %v1225_v14, %v976_v16  ;;  %v1035_v10 = vor.u32 %v1238_v5, %v1032_v20  ;;  %v1236_v0 = vld [vmem:[#allocation6 + $0x94] sm:$0xf0]  ;;  %v1016_v14 = vld [vmem:[#allocation6 + $0x98] sm:$0xf0]  ;;  %v998_v17 = vld [vmem:[#allocation6 + $0x68] sm:$0xf] }
  0x3e   :  { %216 = vmatpush.bf16.msra.mxu0 %v1201_v15  ;;  %v1015_v16 = vor.u32 %v1236_v0, %v1014_v11  ;;  %v1232_v21 = vld [vmem:[#allocation6 + $0x74] sm:$0xf0]  ;;  %v1221_v5 = vld [vmem:[#allocation6 + $0x24] sm:$0xf] }
  0x3f   :  { %229 = vmatpush.bf16.msra.mxu1 %v1209_v8  ;;  %v1230_v8 = vld [vmem:[#allocation6 + $0x6c] sm:$0xf]  ;;  %v1224_v11 = vld [vmem:[#allocation6 + $0x34] sm:$0xf0] }
  0x40   :  { %442 = vmatpush.bf16.msra.mxu2 %v991_v7  ;;  %v1047_v7 = vor.u32 %v1244_v6, %v1046_v12  ;;  %v982_v6 = vld [vmem:[#allocation6 + $0x48] sm:$0xf] }
  0x41   :  { %455 = vmatpush.bf16.msra.mxu3 %v995_v1  ;;  %217 = vmatmul.bf16.vlgmr.msra.gmra.mxu0 %v109_v13  ;;  %v1031_v1 = vor.u32 %v1240_v23, %v1030_v19  ;;  %v1226_v13 = vld [vmem:[#allocation6 + $0x4c] sm:$0xf]  ;;  %v958_v19 = vld [vmem:[#allocation6 + $0x20] sm:$0xf]  ;;  %v1223_v23 = vld [vmem:[#allocation6 + $0x2c] sm:$0xf0] }
  0x42   :  { %464 = vmatpush.bf16.msrb.mxu0 %v1063_v22  ;;  %230 = vmatmul.bf16.vlgmr.msra.gmra.mxu1 %v110_v9  ;;  %v1000_v22 = vld [vmem:[#allocation6 + $0x78] sm:$0xf0]  ;;  %v959_v20 = vor.u32 %v1223_v23, %v958_v19  ;;  %v1313_v19 = vld [vmem:[%s1711_s2] ss:$0 sm:$0xff]  ;;  %s1622_s2 = smov 0  }
  0x43   :  { %477 = vmatpush.bf16.msrb.mxu1 %v1067_v2  ;;  %v999_v2 = vor.u32 %v1232_v21, %v998_v17  ;;  %v1003_v12 = vor.u32 %v1230_v8, %v1000_v22  ;;  %v984_v9 = vld [vmem:[#allocation6 + $0x58] sm:$0xf0]  ;;  %v942_v17 = vld [vmem:[#allocation6] sm:$0xf]  ;;  %v1219_v21 = vld [vmem:[#allocation6 + $0xc] sm:$0xf0] }
  0x44   :  { %443 = vmatpush.bf16.msra.mxu2 %v975_v4  ;;  %v1234_v4 = vld [vmem:[#allocation6 + $0x8c] sm:$0xf]  ;;  %v1217_v8 = vld [vmem:[#allocation6 + $0x4] sm:$0xf]  ;;  %v943_v22 = vor.u32 %v1219_v21, %v942_v17 }
  0x45   :  { %456 = vmatpush.bf16.msra.mxu3 %v979_v18  ;;  %v1019_v15 = vor.u32 %v1234_v4, %v1016_v14  ;;  %v1228_v18 = vld [vmem:[#allocation6 + $0x54] sm:$0xf0]  ;;  %v1222_v14 = vld [vmem:[#allocation6 + $0x2c] sm:$0xf] }
  0x46   :  { %465 = vmatpush.bf16.msrb.mxu0 %v1047_v7  ;;  %v983_v7 = vor.u32 %v1228_v18, %v982_v6  ;;  %v1220_v6 = vld [vmem:[#allocation6 + $0x14] sm:$0xf0] }
  0x47   :  { %478 = vmatpush.bf16.msrb.mxu1 %v1051_v3  ;;  %v987_v3 = vor.u32 %v1226_v13, %v984_v9  ;;  %v1218_v9 = vld [vmem:[#allocation6 + $0xc] sm:$0xf] }
  0x48   :  { %444 = vmatpush.bf16.msra.mxu2 %v959_v20 }
  0x4a   :  { %466 = vmatpush.bf16.msrb.mxu0 %v1031_v1  ;;  %v960_v1 = vld [vmem:[#allocation6 + $0x30] sm:$0xf0] }
  0x4b   :  { %479 = vmatpush.bf16.msrb.mxu1 %v1035_v10  ;;  %v966_v10 = vld [vmem:[#allocation6 + $0x28] sm:$0xf]  ;;  %v963_v0 = vor.u32 %v1221_v5, %v960_v1 }
  0x4c   :  { %v967_v4 = vor.u32 %v1224_v11, %v966_v10  ;;  %445 = vmatpush.bf16.msra.mxu2 %v943_v22 }
  0x4d   :  { %457 = vmatpush.bf16.msra.mxu3 %v963_v0 }
  0x4e   :  { %467 = vmatpush.bf16.msrb.mxu0 %v1015_v16  ;;  %v968_v16 = vld [vmem:[#allocation6 + $0x38] sm:$0xf0] }
  0x4f   :  { %480 = vmatpush.bf16.msrb.mxu1 %v1019_v15  ;;  %v971_v15 = vor.u32 %v1222_v14, %v968_v16 }
  0x52   :  { %468 = vmatpush.bf16.msrb.mxu0 %v999_v2  ;;  %v944_v2 = vld [vmem:[#allocation6 + $0x10] sm:$0xf0] }
  0x53   :  { %481 = vmatpush.bf16.msrb.mxu1 %v1003_v12  ;;  %v950_v12 = vld [vmem:[#allocation6 + $0x8] sm:$0xf]  ;;  %v947_v18 = vor.u32 %v1217_v8, %v944_v2 }
  0x54   :  { %v951_v13 = vor.u32 %v1220_v6, %v950_v12 }
  0x55   :  { %458 = vmatpush.bf16.msra.mxu3 %v947_v18 }
  0x56   :  { %469 = vmatpush.bf16.msrb.mxu0 %v983_v7  ;;  %v952_v7 = vld [vmem:[#allocation6 + $0x18] sm:$0xf0] }
  0x57   :  { %482 = vmatpush.bf16.msrb.mxu1 %v987_v3  ;;  %v955_v3 = vor.u32 %v1218_v9, %v952_v7 }
  0x5a   :  { %470 = vmatpush.bf16.msrb.mxu0 %v967_v4  ;;  %v268_v4 = vld [vmem:[%s1713_s4] sm:$0xf] }
  0x5b   :  { %483 = vmatpush.bf16.msrb.mxu1 %v971_v15  ;;  %v273_v14 = vperm.slane %v268_v4, 3  ;;  %v272_v16 = vperm.slane %v268_v4, 2  ;;  %v271_v8 = vperm.slane %v268_v4, 1  ;;  %v270_v12 = vperm.slane %v268_v4, 0 }
  0x5e   :  { %471 = vmatpush.bf16.msrb.mxu0 %v951_v13 }
  0x5f   :  { %484 = vmatpush.bf16.msrb.mxu1 %v955_v3 }
  0xbe   :  { %v218_v23 = vpop.f32.mrf.mxu0 }
  0xbf   :  { %v231_v5 = vpop.f32.mrf.mxu1  ;;  %v219_v20 = vadd.f32 %v1313_v19, %v218_v23 }
  0xc1   :  { %v232_v1 = vadd.f32 %v231_v5, %v219_v20 }
  0xc3   :  { %v235_v10 = vpack.c.bf16 %v232_v1, %v232_v1 }
  0xc5   :  { %446 = vmatmul.bf16.vlgmr.msra.gmra.mxu2 %v235_v10  ;;  %459 = vmatmul.bf16.vlgmr.msra.gmra.mxu3 %v235_v10 }
  0xc6   :  { %472 = vmatmul.bf16.vlgmr.msrb.gmra.mxu0 %v235_v10  ;;  %485 = vmatmul.bf16.vlgmr.msrb.gmra.mxu1 %v235_v10  ;;  %v220_v11 = vpop.f32.mrf.mxu0  ;;  %v1618_v10 = vmov 0.0  }
  0xc7   :  { %v233_v0 = vpop.f32.mrf.mxu1  ;;  %v1620_v11 = vmov 0.0  }
 0x143   :  { %v473_v15 = vpop.f32.mrf.mxu0  ;;  %v486_v17 = vpop.f32.mrf.mxu1 }
 0x144   :  { %v487_v21 = vadd.f32 %v486_v17, %v273_v14  ;;  %v474_v22 = vadd.f32 %v473_v15, %v272_v16 }
 0x146   :  { %v495_v2 = vrot.slane %v487_v21, 4 }
 0x148   :  { %v498_v6 = vsel %vm496_vm0, %v474_v22, %v495_v2  ;;  %v447_v18 = vpop.f32.mrf.mxu2  ;;  %v460_v13 = vpop.f32.mrf.mxu3 }
 0x149   :  { %502 = vst [vmem:[#allocation2 + $0x8] sm:$0xff] %v498_v6  ;;  %v461_v9 = vadd.f32 %v460_v13, %v271_v8  ;;  %v448_v7 = vadd.f32 %v447_v18, %v270_v12 }
 0x14b   :  { %v494_v3 = vrot.slane %v461_v9, 4  ;;  %v475_v19 = vpop.f32.mrf.mxu0  ;;  %v488_v23 = vpop.f32.mrf.mxu1 }
 0x14d   :  { %v497_v5 = vsel %vm496_vm0, %v448_v7, %v494_v3 }
 0x14e   :  { %501 = vst [vmem:[#allocation2] sm:$0xff] %v497_v5 }
 0x150   :  { %v449_v20 = vpop.f32.mrf.mxu2  ;;  %v462_v1 = vpop.f32.mrf.mxu3 }
 0x151 LB: > { %v1185_v0 = vor.u32 %v1603_v61, %v1595_v57  ;;  %v1189_v4 = vor.u32 %v1593_v56, %v1601_v60  ;;  %v1193_v14 = vor.u32 %v1607_v63, %v1599_v59  ;;  %v1197_v16 = vor.u32 %v1597_v58, %v1605_v62  ;;  %v1742_v25 = vld [vmem:[#allocation36_spill] sm:$0xff]  ;;  %v1743_v24 = vld [vmem:[#allocation35_spill] sm:$0xff]  ;;  %s543_s4 = sshra.s32 %s1428_s2, 2  ;;  %s546_s18 = sand.u32 3, %s1428_s2  ;;  %s1428_s2 = sphi %s1622_s2, %s540_s2   ;;  %v1424_v11 = vphi %v1620_v11, %v849_v11   ;;  %v1420_v10 = vphi %v1618_v10, %v847_v10  }
 0x152   : > { %v1169_v15 = vor.u32 %v1587_v53, %v1579_v49  ;;  %v1173_v17 = vor.u32 %v1577_v48, %v1585_v52  ;;  %v1177_v21 = vor.u32 %v1591_v55, %v1583_v51  ;;  %v1181_v8 = vor.u32 %v1581_v50, %v1589_v54  ;;  %v1744_v20 = vld [vmem:[#allocation28_spill] sm:$0xff]  ;;  %s1281_s19 = sshll.u32 %s543_s4, 4  ;;  %s850_s22 = scalar_lea.vmem [#allocation3], %s1428_s2 }
 0x153   : > { %713 = vmatpush.bf16.msra.mxu0 %v1185_v0  ;;  %726 = vmatpush.bf16.msra.mxu1 %v1189_v4  ;;  %v1153_v22 = vor.u32 %v1571_v45, %v1563_v41  ;;  %v1157_v2 = vor.u32 %v1561_v40, %v1569_v44  ;;  %v1161_v12 = vor.u32 %v1575_v47, %v1567_v43  ;;  %v1745_v1 = vld [vmem:[#allocation32_spill] sm:$0xff]  ;;  %v1746_v4 = vld [vmem:[#allocation31_spill] sm:$0xff]  ;;  %s549_s20 = sadd.s32 %s1281_s19, %s546_s18  ;;  %vm772_vm1 = vcmask 1040384   ;;  %s540_s2 = sadd.s32 1, %s1428_s2  }
 0x154   : > { %739 = vmatpush.bf16.msra.mxu2 %v1193_v14  ;;  %752 = vmatpush.bf16.msra.mxu3 %v1197_v16  ;;  %v1165_v6 = vor.u32 %v1565_v42, %v1573_v46  ;;  %v1137_v18 = vor.u32 %v1555_v37, %v1547_v33  ;;  %v1141_v13 = vor.u32 %v1545_v32, %v1553_v36  ;;  %v1747_v14 = vld [vmem:[#allocation27_spill] sm:$0xff]  ;;  %vm774_vm2 = vcmask 1042434   ;;  %s550_s21 = scalar_lea.vmem [#allocation2], %s549_s20  ;;  %p537_p0 = scmp.ge.s32.totalorder %s540_s2, 4  }
 0x155   : > { %v1145_v9 = vor.u32 %v1559_v39, %v1551_v35  ;;  %v1149_v7 = vor.u32 %v1549_v34, %v1557_v38  ;;  %v1121_v3 = vor.u32 %v1539_v29, %v1742_v25  ;;  %v1125_v19 = vor.u32 %v1743_v24, %v1537_v28 }
 0x156   : > { %v1129_v23 = vor.u32 %v1543_v31, %v1535_v27  ;;  %v1133_v5 = vor.u32 %v1533_v26, %v1541_v30  ;;  %v1105_v0 = vor.u32 %v1745_v1, %v1744_v20  ;;  %v1109_v16 = vor.u32 %v1747_v14, %v1746_v4  ;;  %v1759_v20 = vld [vmem:[#allocation21_spill] sm:$0xff]  ;;  %v1760_v4 = vld [vmem:[#allocation12_spill] sm:$0xff] }
 0x157   : > { %714 = vmatpush.bf16.msra.mxu0 %v1169_v15  ;;  %727 = vmatpush.bf16.msra.mxu1 %v1173_v17  ;;  %v1748_v15 = vld [vmem:[#allocation30_spill] sm:$0xff]  ;;  %v1761_v14 = vld [vmem:[#allocation16_spill] sm:$0xff]  ;;  %vm776_vm3 = vcmask 1041408  }
 0x158   : > { %740 = vmatpush.bf16.msra.mxu2 %v1177_v21  ;;  %753 = vmatpush.bf16.msra.mxu3 %v1181_v8  ;;  %v1749_v17 = vld [vmem:[#allocation34_spill] sm:$0xff]  ;;  %v1750_v8 = vld [vmem:[#allocation33_spill] sm:$0xff] }
 0x159   : > { %v1113_v21 = vor.u32 %v1749_v17, %v1748_v15  ;;  %v1763_v15 = vld [vmem:[#allocation11_spill] sm:$0xff] }
 0x15b   : > { %715 = vmatpush.bf16.msra.mxu0 %v1153_v22  ;;  %728 = vmatpush.bf16.msra.mxu1 %v1157_v2  ;;  %v1751_v22 = vld [vmem:[#allocation29_spill] sm:$0xff] }
 0x15c   : > { %741 = vmatpush.bf16.msra.mxu2 %v1161_v12  ;;  %754 = vmatpush.bf16.msra.mxu3 %v1165_v6  ;;  %v1117_v2 = vor.u32 %v1751_v22, %v1750_v8  ;;  %v1752_v12 = vld [vmem:[#allocation20_spill] sm:$0xff]  ;;  %v1765_v8 = vld [vmem:[#allocation18_spill] sm:$0xff] }
 0x15d   : > { %v1753_v6 = vld [vmem:[#allocation24_spill] sm:$0xff] }
 0x15f   : > { %716 = vmatpush.bf16.msra.mxu0 %v1137_v18  ;;  %729 = vmatpush.bf16.msra.mxu1 %v1141_v13  ;;  %v1089_v18 = vor.u32 %v1753_v6, %v1752_v12  ;;  %v1754_v13 = vld [vmem:[#allocation23_spill] sm:$0xff]  ;;  %v1767_v12 = vld [vmem:[#allocation13_spill] sm:$0xff] }
 0x160   : > { %742 = vmatpush.bf16.msra.mxu2 %v1145_v9  ;;  %755 = vmatpush.bf16.msra.mxu3 %v1149_v7  ;;  %v1755_v9 = vld [vmem:[#allocation19_spill] sm:$0xff] }
 0x161   : > { %v1093_v7 = vor.u32 %v1755_v9, %v1754_v13  ;;  %v552_v13 = vpack.c.bf16 %v1424_v11, %v1424_v11 }
 0x163   : > { %717 = vmatpush.bf16.msra.mxu0 %v1121_v3  ;;  %730 = vmatpush.bf16.msra.mxu1 %v1125_v19  ;;  %v1756_v3 = vld [vmem:[#allocation22_spill] sm:$0xff] }
 0x164   : > { %743 = vmatpush.bf16.msra.mxu2 %v1129_v23  ;;  %756 = vmatpush.bf16.msra.mxu3 %v1133_v5  ;;  %v1757_v19 = vld [vmem:[#allocation26_spill] sm:$0xff]  ;;  %v1758_v5 = vld [vmem:[#allocation25_spill] sm:$0xff] }
 0x165   : > { %v1097_v23 = vor.u32 %v1757_v19, %v1756_v3  ;;  %v1101_v1 = vor.u32 %v1759_v20, %v1758_v5 }
 0x167   : > { %718 = vmatpush.bf16.msra.mxu0 %v1105_v0  ;;  %731 = vmatpush.bf16.msra.mxu1 %v1109_v16  ;;  %v1073_v0 = vor.u32 %v1761_v14, %v1760_v4  ;;  %v1762_v16 = vld [vmem:[#allocation15_spill] sm:$0xff] }
 0x168   : > { %744 = vmatpush.bf16.msra.mxu2 %v1113_v21  ;;  %757 = vmatpush.bf16.msra.mxu3 %v1117_v2  ;;  %v1077_v17 = vor.u32 %v1763_v15, %v1762_v16  ;;  %v1764_v21 = vld [vmem:[#allocation14_spill] sm:$0xff]  ;;  %v1766_v2 = vld [vmem:[#allocation17_spill] sm:$0xff] }
 0x169   : > { %v1081_v22 = vor.u32 %v1765_v8, %v1764_v21  ;;  %v1085_v6 = vor.u32 %v1767_v12, %v1766_v2  ;;  %v551_v4 = vld [vmem:[%s550_s21] ss:$4 sm:$0xf] }
 0x16b   : > { %719 = vmatpush.bf16.msra.mxu0 %v1089_v18  ;;  %732 = vmatpush.bf16.msra.mxu1 %v1093_v7 }
 0x16c   : > { %745 = vmatpush.bf16.msra.mxu2 %v1097_v23  ;;  %758 = vmatpush.bf16.msra.mxu3 %v1101_v1 }
 0x16f   : > { %720 = vmatpush.bf16.msra.mxu0 %v1073_v0  ;;  %733 = vmatpush.bf16.msra.mxu1 %v1077_v17 }
 0x170   : > { %746 = vmatpush.bf16.msra.mxu2 %v1081_v22  ;;  %759 = vmatpush.bf16.msra.mxu3 %v1085_v6 }
 0x172   : > { %721 = vmatmul.bf16.vlgmr.msra.gmra.mxu0 %v552_v13  ;;  %734 = vmatmul.bf16.vlgmr.msra.gmra.mxu1 %v552_v13 }
 0x173   : > { %747 = vmatmul.bf16.vlgmr.msra.gmra.mxu2 %v552_v13  ;;  %760 = vmatmul.bf16.vlgmr.msra.gmra.mxu3 %v552_v13 }
 0x1ef   : > { %v722_v18 = vpop.f32.mrf.mxu0  ;;  %v735_v9 = vpop.f32.mrf.mxu1 }
 0x1f0   : > { %v769_v7 = vrot.slane %v735_v9, 7 }
 0x1f2   : > { %v773_v11 = vsel %vm772_vm1, %v722_v18, %v769_v7 }
 0x1f6   : > { %v748_v3 = vpop.f32.mrf.mxu2  ;;  %v761_v19 = vpop.f32.mrf.mxu3 }
 0x1f7   : > { %v770_v23 = vrot.slane %v748_v3, 6  ;;  %v771_v5 = vrot.slane %v761_v19, 5  ;;  %v724_v20 = vpop.f32.mrf.mxu0  ;;  %v737_v1 = vpop.f32.mrf.mxu1 }
 0x1f9   : > { %v775_v14 = vsel %vm774_vm2, %v770_v23, %v771_v5 }
 0x1fa   : > { %v777_v0 = vsel %vm776_vm3, %v773_v11, %v775_v14 }
 0x1fb   : > { %v779_v16 = vadd.f32 %v777_v0, %v551_v4 }
 0x1fd   : > { %v1198_v15 = vmul.f32 -1.442695, %v779_v16  ;;  %v800_v17 = vrot.slane %v779_v16, 1  ;;  %v824_v21 = vrot.slane %v779_v16, 3  ;;  %v821_v20 = vrot.slane %v779_v16, 2 }
 0x1fe   : > { %v750_v8 = vpop.f32.mrf.mxu2  ;;  %v763_v22 = vpop.f32.mrf.mxu3 }
 0x1ff   : > { %1314 = vpow2.f32 %v1198_v15  ;;  %v1199_v2 = vmul.f32 -1.442695, %v800_v17  ;;  %v1200_v12 = vmul.f32 -1.442695, %v824_v21 }
 0x201   : > { %1316 = vpow2.f32 %v1199_v2 }
 0x202   : > { %1318 = vpow2.f32 %v1200_v12 }
 0x205   : > { %v1315_v6 = vpop.eup %1314 }
 0x206   : > { %v783_v13 = vadd.f32 1.0, %v1315_v6 }
 0x207   : > { %v1317_v18 = vpop.eup %1316 }
 0x208   : > { %v1319_v9 = vpop.eup %1318  ;;  %1320 = vrcp.f32 %v783_v13  ;;  %v805_v7 = vadd.f32 1.0, %v1317_v18  ;;  %v795_v0 = vand.u32 2147483648, %v783_v13  ;;  %v793_v17 = vand.u32 2147483647, %v783_v13 }
 0x209   : > { %v829_v3 = vadd.f32 1.0, %v1319_v9  ;;  %vm789_vm5 = vweird.f32 %v783_v13 }
 0x20a   : > { %1322 = vrcp.f32 %v805_v7  ;;  %v817_v22 = vand.u32 2147483648, %v805_v7  ;;  %v815_v12 = vand.u32 2147483647, %v805_v7  ;;  %v796_v18 = vor.u32 1.1754944e-38, %v795_v0 }
 0x20b   : > { %1324 = vrcp.f32 %v829_v3  ;;  %vm794_vm8 = vcmp.eq.f32.partialorder %v793_v17, 8.507059e+37  ;;  %vm811_vm9 = vweird.f32 %v805_v7  ;;  %vm835_vm13 = vweird.f32 %v829_v3 }
 0x20c   : > { %1326 = vtanh.f32 %v821_v20  ;;  %vm816_vm11 = vcmp.eq.f32.partialorder %v815_v12, 8.507059e+37  ;;  %v839_v0 = vand.u32 2147483647, %v829_v3 }
 0x20e   : > { %v1321_v19 = vpop.eup %1320  ;;  %vm840_vm15 = vcmp.eq.f32.partialorder %v839_v0, 8.507059e+37 }
 0x20f   : > { %v785_v11 = vmul.f32 %v1321_v19, %v783_v13  ;;  %vm790_vm4 = vweird.f32 %v1321_v19 }
 0x210   : > { %v1323_v23 = vpop.eup %1322  ;;  %vm791_vm6 = vmor %vm789_vm5, %vm790_vm4 }
 0x211   : > { %v786_v5 = vsub.f32 1.0, %v785_v11  ;;  %v1325_v1 = vpop.eup %1324  ;;  %v807_v4 = vmul.f32 %v1323_v23, %v805_v7  ;;  %vm812_vm7 = vweird.f32 %v1323_v23 }
 0x212   : > { %v831_v15 = vmul.f32 %v1325_v1, %v829_v3  ;;  %vm813_vm10 = vmor %vm811_vm9, %vm812_vm7  ;;  %vm836_vm12 = vweird.f32 %v1325_v1 }
 0x213   : > { %v787_v14 = vmul.f32 %v1321_v19, %v786_v5  ;;  %v808_v21 = vsub.f32 1.0, %v807_v4  ;;  %v818_v5 = vor.u32 1.1754944e-38, %v817_v22  ;;  %v1327_v4 = vpop.eup %1326  ;;  %vm837_vm14 = vmor %vm835_vm13, %vm836_vm12 }
 0x214   : > { %v832_v9 = vsub.f32 1.0, %v831_v15 }
 0x215   : > { %v788_v8 = vadd.f32 %v1321_v19, %v787_v14  ;;  %v809_v2 = vmul.f32 %v1323_v23, %v808_v21 }
 0x216   : > { %v833_v13 = vmul.f32 %v1325_v1, %v832_v9 }
 0x217   : > { %v792_v6 = vsel %vm791_vm6, %v1321_v19, %v788_v8  ;;  %v810_v16 = vadd.f32 %v1323_v23, %v809_v2  ;;  %v841_v19 = vand.u32 2147483648, %v829_v3 }
 0x218   : > { %v797_v11 = vsel %vm794_vm8, %v796_v18, %v792_v6  ;;  %v834_v25 = vadd.f32 %v1325_v1, %v833_v13 }
 0x219   : > { %v814_v24 = vsel %vm813_vm10, %v1323_v23, %v810_v16  ;;  %v846_v21 = vmul.f32 %v1327_v4, %v797_v11  ;;  %v842_v15 = vor.u32 1.1754944e-38, %v841_v19 }
 0x21a   : > { %v819_v14 = vsel %vm816_vm11, %v818_v5, %v814_v24  ;;  %v838_v7 = vsel %vm837_vm14, %v1325_v1, %v834_v25 }
 0x21b   : > { %v845_v20 = vmul.f32 %v1420_v10, %v819_v14  ;;  %v843_v17 = vsel %vm840_vm15, %v842_v15, %v838_v7 }
 0x21d   : > { %v847_v10 = vadd.f32 %v846_v21, %v845_v20  }
 0x21f   : > { %1328 = vtanh.f32 %v847_v10 }
 0x224   :  { %539 = sbr.rel (!%p537_p0) target bundleno = 337 (0x151), region = 65 }
 0x225   : > { %v1329_v23 = vpop.eup %1328 }
 0x226   : > { %v849_v11 = vmul.f32 %v1329_v23, %v843_v17  }
 0x228   : > { %851 = vst [vmem:[%s850_s22] sm:$0x1] %v849_v11 }
 0x22f   :  { %v852_v24 = vld [vmem:[#allocation3] sm:$0xf] }
 0x230   :  { %v853_v3 = vpack.c.bf16 %v852_v24, %v852_v24 }
 0x232   :  { %854 = vst [vmem:[%s1715_s6] sm:$0x3] %v853_v3 }
 0x233   :  { %859 = vsyncpa [#allocation5], 1 }
 0x234   :  { %860 = vsyncpa [#allocation7], 1 }

// kernel: forward.4
= control target key start
LH: loop header
LB: loop body
LE: loop exit
PB: predicated region body
PF: predicated region fallthrough
CT: control target
= control target key end

     0   :  { %vm362_vm0 = vcmask 1045504   ;;  %vm355_vm1 = vcmask 359424   ;;  %vm457_vm2 = vcmask 1043456   ;;  %s950_s1 = inlined_call_operand.vmem [shape: bf16[556,128], index: 1, kind: input, shape index: {}]   ;;  %s951_s2 = inlined_call_operand.vmem [shape: f32[1,128], index: 2, kind: input, shape index: {}]   ;;  %s952_s0 = inlined_call_operand.vmem [shape: bf16[20,556], index: 0, kind: input, shape index: {}]   ;;  %s953_s3 = inlined_call_operand.vmem [shape: f32[1,128], index: 3, kind: input, shape index: {}]   ;;  %s954_s4 = inlined_call_operand.vmem [shape: f32[1,128], index: 4, kind: input, shape index: {}]   ;;  %s955_s5 = inlined_call_operand.vmem [shape: bf16[20,128], index: 5, kind: output, shape index: {}]  }
   0x1   :  { %v711_v0 = vld [vmem:[%s950_s1 + $0x38] sm:$0xff]  ;;  %v710_v4 = vld [vmem:[%s950_s1 + $0x30] sm:$0xff]  ;;  %v709_v8 = vld [vmem:[%s950_s1 + $0x28] sm:$0xff] }
   0x2   :  { %v719_v1 = vld [vmem:[%s950_s1 + $0x78] sm:$0xff]  ;;  %366 = vmatpush.bf16.msra.mxu0 %v711_v0  ;;  %v718_v5 = vld [vmem:[%s950_s1 + $0x70] sm:$0xff]  ;;  %v717_v9 = vld [vmem:[%s950_s1 + $0x68] sm:$0xff] }
   0x3   :  { %v727_v2 = vld [vmem:[%s950_s1 + $0xb8] sm:$0xff]  ;;  %384 = vmatpush.bf16.msra.mxu1 %v719_v1  ;;  %v726_v6 = vld [vmem:[%s950_s1 + $0xb0] sm:$0xff]  ;;  %v725_v10 = vld [vmem:[%s950_s1 + $0xa8] sm:$0xff] }
   0x4   :  { %v735_v3 = vld [vmem:[%s950_s1 + $0xf8] sm:$0xff]  ;;  %402 = vmatpush.bf16.msra.mxu2 %v727_v2  ;;  %v734_v7 = vld [vmem:[%s950_s1 + $0xf0] sm:$0xff]  ;;  %v733_v11 = vld [vmem:[%s950_s1 + $0xe8] sm:$0xff] }
   0x5   :  { %420 = vmatpush.bf16.msra.mxu3 %v735_v3  ;;  %v708_v12 = vld [vmem:[%s950_s1 + $0x20] sm:$0xff]  ;;  %v707_v16 = vld [vmem:[%s950_s1 + $0x18] sm:$0xff]  ;;  %v706_v20 = vld [vmem:[%s950_s1 + $0x10] sm:$0xff] }
   0x6   :  { %367 = vmatpush.bf16.msra.mxu0 %v710_v4  ;;  %v716_v13 = vld [vmem:[%s950_s1 + $0x60] sm:$0xff]  ;;  %v715_v17 = vld [vmem:[%s950_s1 + $0x58] sm:$0xff]  ;;  %v714_v21 = vld [vmem:[%s950_s1 + $0x50] sm:$0xff] }
   0x7   :  { %385 = vmatpush.bf16.msra.mxu1 %v718_v5  ;;  %v724_v14 = vld [vmem:[%s950_s1 + $0xa0] sm:$0xff]  ;;  %v723_v18 = vld [vmem:[%s950_s1 + $0x98] sm:$0xff]  ;;  %v722_v22 = vld [vmem:[%s950_s1 + $0x90] sm:$0xff] }
   0x8   :  { %403 = vmatpush.bf16.msra.mxu2 %v726_v6  ;;  %v732_v15 = vld [vmem:[%s950_s1 + $0xe0] sm:$0xff]  ;;  %v731_v19 = vld [vmem:[%s950_s1 + $0xd8] sm:$0xff]  ;;  %v730_v23 = vld [vmem:[%s950_s1 + $0xd0] sm:$0xff] }
   0x9   :  { %421 = vmatpush.bf16.msra.mxu3 %v734_v7  ;;  %v705_v24 = vld [vmem:[%s950_s1 + $0x8] sm:$0xff]  ;;  %v695_v26 = vld [vmem:[%s950_s1 + $0x110] sm:$0xf]  ;;  %v738_v27 = vld [vmem:[%s950_s1 + $0x110] sm:$0x30] }
   0xa   :  { %368 = vmatpush.bf16.msra.mxu0 %v709_v8  ;;  %v713_v25 = vld [vmem:[%s950_s1 + $0x48] sm:$0xff]  ;;  %v704_v30 = vld [vmem:[%s950_s1] sm:$0xff]  ;;  %v701_v35 = vld [vmem:[%s952_s0 + $0x10] sm:$0xf0]  ;;  %v696_v36 = vor.u32 %v738_v27, %v695_v26 }
   0xb   :  { %386 = vmatpush.bf16.msra.mxu1 %v717_v9  ;;  %v721_v28 = vld [vmem:[%s950_s1 + $0x88] sm:$0xff]  ;;  %v712_v31 = vld [vmem:[%s950_s1 + $0x40] sm:$0xff]  ;;  %v541_v38 = vld [vmem:[%s952_s0 + $0x14] sm:$0xf0] }
   0xc   :  { %404 = vmatpush.bf16.msra.mxu2 %v725_v10  ;;  %v729_v29 = vld [vmem:[%s950_s1 + $0xc8] sm:$0xff]  ;;  %v720_v32 = vld [vmem:[%s950_s1 + $0x80] sm:$0xff]  ;;  %v702_v40 = vld [vmem:[%s952_s0 + $0x18] sm:$0xf0]  ;;  %v364_v45 = vsel %vm362_vm0, %v696_v36, 0 }
   0xd   :  { %422 = vmatpush.bf16.msra.mxu3 %v733_v11  ;;  %v728_v33 = vld [vmem:[%s950_s1 + $0xc0] sm:$0xff]  ;;  %v547_v39 = vld [vmem:[%s952_s0 + $0x8] sm:$0xf]  ;;  %v700_v41 = vld [vmem:[%s952_s0 + $0xc] sm:$0xf] }
   0xe   :  { %369 = vmatpush.bf16.msra.mxu0 %v708_v12  ;;  %v539_v34 = vld [vmem:[%s952_s0] sm:$0xf]  ;;  %v699_v37 = vld [vmem:[%s952_s0 + $0x4] sm:$0xf]  ;;  %v548_v46 = vor.u32 %v702_v40, %v547_v39  ;;  %v737_v48 = vld [vmem:[%s950_s1 + $0x108] sm:$0xff] }
   0xf   :  { %387 = vmatpush.bf16.msra.mxu1 %v716_v13  ;;  %v549_v42 = vld [vmem:[%s952_s0 + $0x1c] sm:$0xf0]  ;;  %v540_v43 = vor.u32 %v701_v35, %v539_v34  ;;  %v544_v44 = vor.u32 %v699_v37, %v541_v38  ;;  %v27_v50 = vld [vmem:[%s952_s0 + $0x28] sm:$0x33]  ;;  %v28_v51 = vld [vmem:[%s952_s0 + $0x30] sm:$0x33] }
  0x10   :  { %405 = vmatpush.bf16.msra.mxu2 %v724_v14  ;;  %v552_v47 = vor.u32 %v700_v41, %v549_v42  ;;  %v736_v49 = vld [vmem:[%s950_s1 + $0x100] sm:$0xff]  ;;  %v123_v52 = vunpack.c.l.b16 %v27_v50  ;;  %v124_v53 = vunpack.c.h.b16 %v27_v50  ;;  %v125_v54 = vunpack.c.l.b16 %v28_v51  ;;  %v29_v60 = vld [vmem:[%s952_s0 + $0x38] sm:$0x3]  ;;  %v555_v62 = vld [vmem:[%s952_s0 + $0x10] sm:$0xf] }
  0x11   :  { %423 = vmatpush.bf16.msra.mxu3 %v732_v15  ;;  %v126_v55 = vunpack.c.h.b16 %v28_v51  ;;  %v127_v61 = vunpack.c.l.b16 %v29_v60  ;;  %v703_v63 = vld [vmem:[%s952_s0 + $0x20] sm:$0xf0] }
  0x12   :  { %370 = vmatpush.bf16.msra.mxu0 %v707_v16  ;;  %v133_v56 = vpack.c.b16 %v123_v52, %v123_v52  ;;  %v134_v57 = vpack.c.b16 %v124_v53, %v124_v53  ;;  %v135_v58 = vpack.c.b16 %v125_v54, %v125_v54  ;;  %v556_v0 = vor.u32 %v703_v63, %v555_v62  ;;  %v748_v16 = vld [vmem:[%s951_s2] ss:$0 sm:$0xff] }
  0x13   :  { %388 = vmatpush.bf16.msra.mxu1 %v715_v17  ;;  %v136_v59 = vpack.c.b16 %v126_v55, %v126_v55  ;;  %v137_v1 = vpack.c.b16 %v127_v61, %v127_v61 }
  0x14   :  { %406 = vmatpush.bf16.msra.mxu2 %v723_v18 }
  0x15   :  { %424 = vmatpush.bf16.msra.mxu3 %v731_v19 }
  0x16   :  { %371 = vmatpush.bf16.msra.mxu0 %v706_v20 }
  0x17   :  { %389 = vmatpush.bf16.msra.mxu1 %v714_v21 }
  0x18   :  { %407 = vmatpush.bf16.msra.mxu2 %v722_v22  ;;  %v755_v22 = vmov 20.0  }
  0x19   :  { %425 = vmatpush.bf16.msra.mxu3 %v730_v23  ;;  %751 = vrcp.f32 %v755_v22 }
  0x1a   :  { %372 = vmatpush.bf16.msra.mxu0 %v705_v24 }
  0x1b   :  { %390 = vmatpush.bf16.msra.mxu1 %v713_v25 }
  0x1c   :  { %408 = vmatpush.bf16.msra.mxu2 %v721_v28 }
  0x1d   :  { %426 = vmatpush.bf16.msra.mxu3 %v729_v29 }
  0x1e   :  { %373 = vmatpush.bf16.msra.mxu0 %v704_v30 }
  0x1f   :  { %391 = vmatpush.bf16.msra.mxu1 %v712_v31  ;;  %v752_v31 = vpop.eup %751 }
  0x20   :  { %409 = vmatpush.bf16.msra.mxu2 %v720_v32  ;;  %v467_v37 = vmul.f32 20.0, %v752_v31  ;;  %vm471_vm3 = vweird.f32 %v752_v31 }
  0x21   :  { %427 = vmatpush.bf16.msra.mxu3 %v728_v33  ;;  %374 = vmatmul.bf16.vlgmr.msra.gmra.mxu0 %v540_v43 }
  0x22   :  { %443 = vmatpush.bf16.msrb.mxu0 %v364_v45  ;;  %392 = vmatmul.bf16.vlgmr.msra.gmra.mxu1 %v544_v44  ;;  %v468_v43 = vsub.f32 1.0, %v467_v37 }
  0x23   :  { %744 = vmatpush.bf16.msrb.mxu1 %v364_v45  ;;  %410 = vmatmul.bf16.vlgmr.msra.gmra.mxu2 %v548_v46 }
  0x24   :  { %428 = vmatmul.bf16.vlgmr.msra.gmra.mxu3 %v552_v47  ;;  %v469_v46 = vmul.f32 %v752_v31, %v468_v43 }
  0x26   :  { %444 = vmatpush.bf16.msrb.mxu0 %v737_v48 }
  0x27   :  { %745 = vmatpush.bf16.msrb.mxu1 %v737_v48 }
  0x2a   :  { %445 = vmatpush.bf16.msrb.mxu0 %v736_v49 }
  0x2b   :  { %746 = vmatpush.bf16.msrb.mxu1 %v736_v49  ;;  %v470_v49 = vadd.f32 %v752_v31, %v469_v46 }
  0x2d   :  { %v472_v52 = vsel %vm471_vm3, %v752_v31, %v470_v49 }
  0x31   :  { %379 = vmatmul.bf16.gmra.mxu0 %v133_v56 }
  0x32   :  { %397 = vmatmul.bf16.gmra.mxu1 %v134_v57 }
  0x33   :  { %415 = vmatmul.bf16.gmra.mxu2 %v135_v58 }
  0x34   :  { %433 = vmatmul.bf16.gmra.mxu3 %v136_v59 }
  0x41   :  { %697 = vmatmul.msk.bf16.vlgmr.msrb.gmra.mxu0 %vm355_vm1, %v556_v0 }
  0x42   :  { %698 = vmatmul.msk.bf16.vlgmr.msrb.gmra.mxu1 %vm355_vm1, %v137_v1 }
  0x9e   :  { %v375_v2 = vpop.f32.mrf.mxu0 }
  0x9f   :  { %v393_v3 = vpop.f32.mrf.mxu1  ;;  %v376_v18 = vadd.f32 %v748_v16, %v375_v2 }
  0xa1   :  { %v394_v26 = vadd.f32 %v393_v3, %v376_v18 }
  0xa6   :  { %v411_v4 = vpop.f32.mrf.mxu2  ;;  %v377_v6 = vpop.f32.mrf.mxu0 }
  0xa7   :  { %v429_v5 = vpop.f32.mrf.mxu3  ;;  %v395_v7 = vpop.f32.mrf.mxu1  ;;  %v378_v19 = vadd.f32 %v748_v16, %v377_v6  ;;  %v412_v29 = vadd.f32 %v411_v4, %v394_v26 }
  0xa9   :  { %v396_v27 = vadd.f32 %v395_v7, %v378_v19  ;;  %v430_v33 = vadd.f32 %v429_v5, %v412_v29  ;;  %v750_v19 = vld [vmem:[%s954_s4] ss:$0 sm:$0xff] }
  0xae   :  { %v413_v8 = vpop.f32.mrf.mxu2  ;;  %v380_v10 = vpop.f32.mrf.mxu0 }
  0xaf   :  { %v431_v9 = vpop.f32.mrf.mxu3  ;;  %v398_v11 = vpop.f32.mrf.mxu1  ;;  %v381_v17 = vadd.f32 %v748_v16, %v380_v10  ;;  %v414_v30 = vadd.f32 %v413_v8, %v396_v27 }
  0xb1   :  { %v399_v23 = vadd.f32 %v398_v11, %v381_v17  ;;  %v432_v34 = vadd.f32 %v431_v9, %v414_v30 }
  0xb6   :  { %v416_v12 = vpop.f32.mrf.mxu2  ;;  %v382_v14 = vpop.f32.mrf.mxu0 }
  0xb7   :  { %v434_v13 = vpop.f32.mrf.mxu3  ;;  %v400_v15 = vpop.f32.mrf.mxu1  ;;  %v417_v28 = vadd.f32 %v416_v12, %v399_v23  ;;  %v749_v14 = vld [vmem:[%s953_s3] ss:$0 sm:$0xff] }
  0xb9   :  { %v435_v32 = vadd.f32 %v434_v13, %v417_v28 }
  0xbe   :  { %v418_v20 = vpop.f32.mrf.mxu2  ;;  %v447_v24 = vpop.f32.mrf.mxu0 }
  0xbf   :  { %v436_v21 = vpop.f32.mrf.mxu3  ;;  %v452_v25 = vpop.f32.mrf.mxu1  ;;  %v448_v39 = vadd.f32 %v447_v24, %v430_v33 }
  0xc0   :  { %v453_v35 = vadd.f32 %v452_v25, %v435_v32 }
  0xc2   :  { %v458_v42 = vsel %vm457_vm2, %v453_v35, 0.0 }
  0xc6   :  { %v449_v36 = vpop.f32.mrf.mxu0 }
  0xc7   :  { %v454_v38 = vpop.f32.mrf.mxu1  ;;  %v450_v40 = vadd.f32 %v449_v36, %v432_v34 }
  0xc9   :  { %v456_v41 = vadd.f32 %v450_v40, %v448_v39 }
  0xcb   :  { %v459_v44 = vadd.f32 %v458_v42, %v456_v41 }
  0xcd   :  { %v460_v45 = vrot.slane %v459_v44, 4 }
  0xcf   :  { %v461_v47 = vadd.f32 %v460_v45, %v459_v44 }
  0xd1   :  { %v462_v48 = vrot.slane %v461_v47, 2 }
  0xd3   :  { %v463_v50 = vadd.f32 %v462_v48, %v461_v47 }
  0xd5   :  { %v464_v51 = vrot.slane %v463_v50, 1 }
  0xd7   :  { %v465_v53 = vadd.f32 %v464_v51, %v463_v50 }
  0xd9   :  { %v473_v54 = vmul.f32 %v472_v52, %v465_v53 }
  0xdb   :  { %v474_v55 = vsub.f32 %v448_v39, %v473_v54  ;;  %v475_v56 = vsub.f32 %v450_v40, %v473_v54  ;;  %v476_v57 = vsub.f32 %v453_v35, %v473_v54 }
  0xdd   :  { %v477_v58 = vmul.f32 %v474_v55, %v474_v55  ;;  %v478_v59 = vmul.f32 %v475_v56, %v475_v56  ;;  %v479_v60 = vmul.f32 %v476_v57, %v476_v57 }
  0xdf   :  { %v480_v61 = vadd.f32 %v478_v59, %v477_v58  ;;  %v481_v62 = vsel %vm457_vm2, %v479_v60, 0.0 }
  0xe1   :  { %v482_v63 = vadd.f32 %v481_v62, %v480_v61 }
  0xe3   :  { %v483_v0 = vrot.slane %v482_v63, 4 }
  0xe5   :  { %v484_v1 = vadd.f32 %v483_v0, %v482_v63 }
  0xe7   :  { %v485_v2 = vrot.slane %v484_v1, 2 }
  0xe9   :  { %v486_v3 = vadd.f32 %v485_v2, %v484_v1 }
  0xeb   :  { %v487_v4 = vrot.slane %v486_v3, 1 }
  0xed   :  { %v488_v5 = vadd.f32 %v487_v4, %v486_v3 }
  0xef   :  { %v489_v6 = vmul.f32 %v488_v5, %v472_v52 }
  0xf1   :  { %v490_v7 = vadd.f32 1e-05, %v489_v6 }
  0xf3   :  { %753 = vrsqrt.f32 %v490_v7  ;;  %vm497_vm5 = vweird.f32 %v490_v7 }
  0xf9   :  { %v754_v8 = vpop.eup %753 }
  0xfa   :  { %v492_v9 = vmul.f32 %v754_v8, %v490_v7  ;;  %vm498_vm4 = vweird.f32 %v754_v8 }
  0xfb   :  { %vm499_vm6 = vmor %vm497_vm5, %vm498_vm4 }
  0xfc   :  { %v493_v10 = vmul.f32 %v754_v8, %v492_v9 }
  0xfe   :  { %v494_v11 = vmul.f32 0.5, %v493_v10 }
 0x100   :  { %v495_v12 = vsub.f32 1.5, %v494_v11 }
 0x102   :  { %v496_v13 = vmul.f32 %v754_v8, %v495_v12 }
 0x104   :  { %v500_v15 = vsel %vm499_vm6, %v754_v8, %v496_v13 }
 0x105   :  { %v501_v16 = vmul.f32 %v500_v15, %v474_v55  ;;  %v502_v17 = vmul.f32 %v500_v15, %v475_v56  ;;  %v503_v18 = vmul.f32 %v500_v15, %v476_v57 }
 0x107   :  { %v508_v20 = vmul.f32 %v749_v14, %v501_v16  ;;  %v509_v21 = vmul.f32 %v749_v14, %v502_v17  ;;  %v510_v22 = vmul.f32 %v749_v14, %v503_v18 }
 0x109   :  { %v515_v23 = vadd.f32 %v750_v19, %v508_v20  ;;  %v516_v24 = vadd.f32 %v750_v19, %v509_v21  ;;  %v517_v25 = vadd.f32 %v750_v19, %v510_v22 }
 0x10b   :  { %vm518_vm7 = vcmp.gt.f32.partialorder %v515_v23, 0.0  ;;  %vm519_vm8 = vcmp.gt.f32.partialorder %v516_v24, 0.0  ;;  %vm520_vm9 = vcmp.gt.f32.partialorder %v517_v25, 0.0  ;;  %v521_v26 = vmul.f32 0.2, %v515_v23 }
 0x10c   :  { %v522_v27 = vmul.f32 0.2, %v516_v24  ;;  %v523_v28 = vmul.f32 0.2, %v517_v25 }
 0x10d   :  { %v524_v29 = vsel %vm518_vm7, %v515_v23, %v521_v26 }
 0x10e   :  { %v525_v30 = vsel %vm519_vm8, %v516_v24, %v522_v27  ;;  %v526_v31 = vsel %vm520_vm9, %v517_v25, %v523_v28 }
 0x10f   :  { %v529_v32 = vpack.c.bf16 %v526_v31, %v526_v31  ;;  %v742_v33 = vpack.c.bf16 %v525_v30, %v524_v29 }
 0x111   :  { %743 = vst [vmem:[%s955_s5] sm:$0xff] %v742_v33  }
 0x112   :  { %532 = vst [vmem:[%s955_s5 + $0x8] sm:$0x3] %v529_v32 }

// kernel: forward.5
= control target key start
LH: loop header
LB: loop body
LE: loop exit
PB: predicated region body
PF: predicated region fallthrough
CT: control target
= control target key end

     0   :  { %s2973_s0 = inlined_call_operand.vmem [shape: bf16[20,128], index: 0, kind: input, shape index: {}]   ;;  %s2974_s1 = inlined_call_operand.vmem [shape: bf16[2,20,20], index: 1, kind: input, shape index: {}]   ;;  %s2975_s2 = inlined_call_operand.vmem [shape: f32[2,20,20], index: 2, kind: input, shape index: {}]   ;;  %s2976_s3 = inlined_call_operand.hbm [shape: bf16[2,128,256], index: 3, kind: input, shape index: {}]   ;;  %s2977_s4 = inlined_call_operand.vmem [shape: f32[2,1,256], index: 4, kind: input, shape index: {}]   ;;  %s2978_s5 = inlined_call_operand.vmem [shape: f32[2,16], index: 5, kind: input, shape index: {}]   ;;  %s2979_s6 = inlined_call_operand.vmem [shape: f32[2,16], index: 6, kind: input, shape index: {}]   ;;  %s2980_s7 = inlined_call_operand.vmem [shape: f32[20,256], index: 7, kind: output, shape index: {}]  }
   0x1   :  { %2996 = sst [smem:[#allocation38_spill]] %s2973_s0 }
   0x2   :  { %2997 = sst [smem:[#allocation39_spill]] %s2976_s3 }
   0x3   :  { %2998 = sst [smem:[#allocation40_spill]] %s2977_s4 }
   0x4   :  { %2999 = sst [smem:[#allocation41_spill]] %s2978_s5 }
   0x5   :  { %3000 = sst [smem:[#allocation42_spill]] %s2979_s6 }
   0x6   :  { %12 = vsyncpa [#allocation3], 0 }
   0x7   :  { %14 = vsyncpa [#allocation3 + $0x1], 0 }
   0x8   :  { %15 = vsyncpa [#allocation4], 0 }
   0x9   :  { %16 = vsyncpa [#allocation7], 0  ;;  %s2024_s24 = smov 0   ;;  %s2026_s25 = smov 0  }
   0xa   :  { %s2028_s26 = smov 0   ;;  %s2030_s27 = smov 0  }
   0xb LB: > { %s2043_s28 = sadd.s32 4294967295, %s1961_s27   ;;  %s2046_s29 = sadd.s32 1, %s1961_s27   ;;  %s1961_s27 = sphi %s2030_s27, %s3086_s27   ;;  %s1957_s26 = sphi %s2028_s26, %s3085_s26   ;;  %s1953_s25 = sphi %s2026_s25, %s3084_s25   ;;  %s1949_s24 = sphi %s2024_s24, %s3083_s24  }
   0xc   : > { %s99_s30 = ssub.s32 %s1961_s27, %s2046_s29  ;;  %s102_s8 = sadd.s32 1, %s1957_s26 }
   0xd   : > { %p100_p0 = scmp.eq.s32.totalorder %s99_s30, 0  ;;  %p109_p1 = scmp.ne.s32.totalorder %s1957_s26, %s1953_s25 }
   0xe   : > { %p110_p2 = scmp.eq.s32.totalorder %s1961_s27, 0  ;;  %p115_p3 = scmp.ne.s32.totalorder %s1953_s25, %s1949_s24 }
   0xf   : > { %s2056_s9 = scalar_select %p100_p0, %s1957_s26, %s102_s8  }
  0x10   : > { %p2058_p4 = por %p110_p2, %p109_p1  ;;  %p116_p5 = scmp.eq.s32.totalorder %s2043_s28, 0 }
  0x11   : > { %3001 = sst [smem:[#allocation12_spill]] %s2056_s9  ;;  %p207_p6 = scmp.eq.s32.totalorder %s2043_s28, 1 }
  0x12   : > { %p1593_p7 = scmp.ge.s32.totalorder %s1961_s27, 1  ;;  %p2067_p8 = por %p116_p5, %p115_p3 }
  0x13   : > { %p220_p9 = scmp.lt.s32.totalorder %s1961_s27, 3  ;;  %p2072_p10 = por %p207_p6, %p109_p1 }
  0x14   : > { %s3006_s5 = sld [smem:[#allocation41_spill]]  ;;  %p1737_p13 = scmp.lt.s32.totalorder %s1961_s27, 2 }
  0x15   : > { %p2076_p11 = pnand %p1593_p7, %p220_p9  ;;  %s3007_s6 = sld [smem:[#allocation42_spill]] }
  0x16   : > { %p2093_p1 = pnand %p1737_p13, %p2058_p4  ;;  %s272_s21 = sand.u32 1, %s1957_s26  }
  0x17   : > { %p1724_p12 = pneg %p2076_p11  ;;  %s1963_s22 = smov [#allocation5]  }
  0x18   : > { %s1964_s23 = smov [#allocation6]   ;;  %s1597_s24 = sshll.u32 %s272_s21, 7 }
  0x19   : > { %p1725_p0 = pnand %p1724_p12, %p116_p5  ;;  %s1681_s30 = sshll.u32 %s1961_s27, 7 }
  0x1a   : > { %s235_s16 = sshll.u32 %s3006_s5, 4  ;;  %s3009_s3 = sld [smem:[#allocation39_spill]]  ;;  %s236_s16 = int_to_ptr.vmem [resolvable:$true] %s235_s16 }
  0x1b   : > { %s245_s19 = sshll.u32 %s3007_s6, 4  ;;  %s276_s18 = scalar_lea.vmem [#allocation2], %s1597_s24  ;;  %s246_s19 = int_to_ptr.vmem [resolvable:$true] %s245_s19 }
  0x1c   : > { %1727 = dma.vmem_to_smem (!%p1725_p0), %s236_s16, 32, %s1963_s22, [#allocation4]  }
  0x1d   : > { %1730 = dma.vmem_to_smem (!%p1725_p0), %s246_s19, 32, %s1964_s23, [#allocation7]  }
  0x1e   : > { %s284_s5 = sshll.u32 %s276_s18, 4  ;;  %s273_s10 = scalar_lea.sflag [#allocation3], %s272_s21  ;;  %s285_s5 = int_to_ptr.vmem [resolvable:$true] %s284_s5 }
  0x1f   : > { %p1893_p3 = pneg %p2093_p1 }
  0x20   : > { %s281_s15 = scalar_lea.hbm %s3009_s3, %s1681_s30  ;;  %s1896_s19 = scalar_lea.hbm %s3009_s3, 256 }
  0x21   : > { %s282_s17 = sshll.u32 %s281_s15, 4  ;;  %s283_s17 = int_to_ptr.hbm [resolvable:$true] %s282_s17 }
  0x22   : > { %s1889_s6 = sshra.s32 %s283_s17, 4  ;;  %s1890_s6 = int_to_ptr.hbm [resolvable:$true] %s1889_s6 }
  0x23   : > { %s1891_s9 = scalar_lea.hbm %s1890_s6, 128  ;;  %p1897_p7 = scmp.lt.s32.totalorder %s1890_s6, %s3009_s3 }
  0x24   : > { %p1892_p2 = scmp.ne.s32.totalorder %s1890_s6, %s1891_s9  ;;  %p1898_p9 = scmp.lt.s32.totalorder %s1896_s19, %s1891_s9 }
  0x26   : > { %p1894_p4 = pnand %p1893_p3, %p1892_p2  ;;  %p1899_p12 = por %p1898_p9, %p1897_p7 }
  0x28   : > { %p1895_p6 = pneg %p1894_p4 }
  0x2a   : > { %p1900_p13 = pnand %p1899_p12, %p1895_p6 }
  0x2c   : > { %1903 = shalt.err (!%p1900_p13)
}
  0x2d   : > { %s1965_s21 = smov 128   ;;  %s1966_s24 = smov 8  }
  0x2e   : > { %1734 = dma.hbm_to_vmem [thread:$0]  (!%p2093_p1), %s283_s17, 2048, %s285_s5, %s273_s10, %s1965_s21, %s1965_s21, %s1966_s24  }
  0x2f   : > { %303 = sbr.rel (%p2076_p11) target bundleno = 1090 (0x442), region = 48 }
  0x34   : > { %s2115_s30 = sand.u32 1, %s1953_s25  }
  0x35   : > { %s1601_s8 = sshll.u32 %s2115_s30, 7  ;;  %s306_s6 = scalar_lea.sflag [#allocation3], %s2115_s30 }
  0x36   : > { %s2119_s9 = scalar_lea.vmem [#allocation2], %s1601_s8 }
  0x37   : > { %1936 = dma.done.wait (%p2067_p8), %s306_s6, 2048  }
  0x38   : > { %1938 = vsyncadd (%p2067_p8), %s306_s6, 4294965248 }
  0x39   : > { %1940 = dma.done.wait (%p116_p5), [#allocation4], 32  }
  0x3a   : > { %1942 = vsyncadd (%p116_p5), [#allocation4], 4294967264 }
  0x3b   : > { %1944 = dma.done.wait (%p116_p5), [#allocation7], 32  }
  0x3c   : > { %1946 = vsyncadd (%p116_p5), [#allocation7], 4294967264 }
  0x3d   : > { %325 = sfence }
  0x3e   : > { %v1697_v0 = vld [vmem:[%s2119_s9 + $0x74] sm:$0xf]  ;;  %v1671_v1 = vld [vmem:[%s2119_s9 + $0x78] sm:$0xf0]  ;;  %v1695_v2 = vld [vmem:[%s2119_s9 + $0x64] sm:$0xf] }
  0x3f   : > { %v1674_v3 = vor.u32 %v1697_v0, %v1671_v1  ;;  %v1663_v4 = vld [vmem:[%s2119_s9 + $0x68] sm:$0xf0]  ;;  %v1693_v6 = vld [vmem:[%s2119_s9 + $0x54] sm:$0xf]  ;;  %v1655_v7 = vld [vmem:[%s2119_s9 + $0x58] sm:$0xf0] }
  0x40   : > { %v1666_v5 = vor.u32 %v1695_v2, %v1663_v4  ;;  %v1658_v8 = vor.u32 %v1693_v6, %v1655_v7  ;;  %v1691_v9 = vld [vmem:[%s2119_s9 + $0x44] sm:$0xf]  ;;  %v1647_v10 = vld [vmem:[%s2119_s9 + $0x48] sm:$0xf0]  ;;  %v1689_v12 = vld [vmem:[%s2119_s9 + $0x34] sm:$0xf] }
  0x41   : > { %519 = vmatpush.bf16.msra.mxu1 %v1674_v3  ;;  %v1650_v11 = vor.u32 %v1691_v9, %v1647_v10  ;;  %v1639_v13 = vld [vmem:[%s2119_s9 + $0x38] sm:$0xf0]  ;;  %v1687_v15 = vld [vmem:[%s2119_s9 + $0x24] sm:$0xf]  ;;  %v1631_v16 = vld [vmem:[%s2119_s9 + $0x28] sm:$0xf0] }
  0x42   : > { %v1642_v14 = vor.u32 %v1689_v12, %v1639_v13  ;;  %v1669_v17 = vld [vmem:[%s2119_s9 + $0x70] sm:$0xf]  ;;  %v1698_v18 = vld [vmem:[%s2119_s9 + $0x74] sm:$0xf0]  ;;  %v1661_v19 = vld [vmem:[%s2119_s9 + $0x60] sm:$0xf]  ;;  %v1634_v20 = vor.u32 %v1687_v15, %v1631_v16 }
  0x43   : > { %v1670_v21 = vor.u32 %v1698_v18, %v1669_v17  ;;  %v1696_v22 = vld [vmem:[%s2119_s9 + $0x64] sm:$0xf0]  ;;  %v1685_v23 = vld [vmem:[%s2119_s9 + $0x14] sm:$0xf]  ;;  %v1623_v24 = vld [vmem:[%s2119_s9 + $0x18] sm:$0xf0] }
  0x44   : > { %v1662_v25 = vor.u32 %v1696_v22, %v1661_v19  ;;  %v1653_v26 = vld [vmem:[%s2119_s9 + $0x50] sm:$0xf]  ;;  %v1694_v27 = vld [vmem:[%s2119_s9 + $0x54] sm:$0xf0]  ;;  %v1626_v28 = vor.u32 %v1685_v23, %v1623_v24  ;;  %v1683_v29 = vld [vmem:[%s2119_s9 + $0x4] sm:$0xf] }
  0x45   : > { %520 = vmatpush.bf16.msra.mxu1 %v1666_v5  ;;  %1703 = vmatpush.bf16.msra.mxu3 %v1670_v21  ;;  %v1615_v30 = vld [vmem:[%s2119_s9 + $0x8] sm:$0xf0]  ;;  %v1654_v31 = vor.u32 %v1694_v27, %v1653_v26  ;;  %v1645_v32 = vld [vmem:[%s2119_s9 + $0x40] sm:$0xf]  ;;  %v1692_v33 = vld [vmem:[%s2119_s9 + $0x44] sm:$0xf0] }
  0x46   : > { %501 = vmatpush.bf16.msra.mxu0 %v1670_v21  ;;  %v1618_v34 = vor.u32 %v1683_v29, %v1615_v30  ;;  %v1646_v35 = vor.u32 %v1692_v33, %v1645_v32  ;;  %s3010_s0 = sld [smem:[#allocation38_spill]]  ;;  %v1637_v37 = vld [vmem:[%s2119_s9 + $0x30] sm:$0xf]  ;;  %v1690_v38 = vld [vmem:[%s2119_s9 + $0x34] sm:$0xf0]  ;;  %v1967_v52 = vmov 2  }
  0x47   : > { %v1638_v39 = vor.u32 %v1690_v38, %v1637_v37  ;;  %v1629_v40 = vld [vmem:[%s2119_s9 + $0x20] sm:$0xf]  ;;  %v1688_v41 = vld [vmem:[%s2119_s9 + $0x24] sm:$0xf0]  ;;  %v1621_v43 = vld [vmem:[%s2119_s9 + $0x10] sm:$0xf]  ;;  %1796 = vset.pattern.permute.xlu2 %v1967_v52 }
  0x48   : > { %v1630_v42 = vor.u32 %v1688_v41, %v1629_v40  ;;  %v1686_v44 = vld [vmem:[%s2119_s9 + $0x14] sm:$0xf0]  ;;  %v1613_v48 = vld [vmem:[%s2119_s9] sm:$0xf]  ;;  %v1684_v49 = vld [vmem:[%s2119_s9 + $0x4] sm:$0xf0] }
  0x49   : > { %521 = vmatpush.bf16.msra.mxu1 %v1658_v8  ;;  %1704 = vmatpush.bf16.msra.mxu3 %v1662_v25  ;;  %v1622_v46 = vor.u32 %v1686_v44, %v1621_v43  ;;  %v1614_v50 = vor.u32 %v1684_v49, %v1613_v48  ;;  %v1968_v53 = vmov 1   ;;  %v1969_v54 = vmov 0   ;;  %p365_p5 = scmp.lt.s32.totalorder %s2043_s28, 1  ;;  %s3011_s4 = sld [smem:[#allocation40_spill]] }
  0x4a   : > { %502 = vmatpush.bf16.msra.mxu0 %v1662_v25  ;;  %1795 = vset.pattern.permute.xlu1 %v1968_v53  ;;  %v1970_v59 = vmov 4   ;;  %v1971_v60 = vmov 6   ;;  %v1972_v61 = vmov 3   ;;  %v1973_v62 = vmov 5   ;;  %s2336_s16 = sshll.u32 %s2043_s28, 7 }
  0x4b   : > { %1794 = vset.pattern.permute.xlu0 %v1969_v54  ;;  %s2176_s14 = scalar_select %p365_p5, %s2043_s28, 1  ;;  %v1974_v0 = vmov 7   ;;  %v1975_v1 = vmov 8   ;;  %v1976_v4 = vmov 9   ;;  %v1977_v5 = vmov 11  }
  0x4c   : > { %v1682_v36 = vld [vmem:[%s3010_s0] sm:$0xff]  ;;  %v382_v45 = vld [vmem:[%s3010_s0 + $0x8] sm:$0x3]  ;;  %v1978_v7 = vmov 10   ;;  %v1979_v8 = vmov 12   ;;  %v1980_v9 = vmov 13  }
  0x4d   : > { %522 = vmatpush.bf16.msra.mxu1 %v1650_v11  ;;  %1705 = vmatpush.bf16.msra.mxu3 %v1654_v31  ;;  %v416_v47 = vunpack.c.l.b16 %v382_v45  ;;  %s1606_s15 = sshll.u32 %s2176_s14, 1  ;;  %v1981_v10 = vmov 14   ;;  %vm1340_vm0 = vcmask 1041408   ;;  %v1982_v23 = vmov 15   ;;  %s570_s27 = sld [smem:[#allocation5 + %s2336_s16]] }
  0x4e   : > { %503 = vmatpush.bf16.msra.mxu0 %v1654_v31  ;;  %s614_s19 = sadd.s32 1, %s2336_s16  ;;  %s571_s22 = sld [smem:[#allocation6 + %s2336_s16]] }
  0x4f   : > { %v418_v51 = vpack.c.b16 %v416_v47, %v416_v47  ;;  %s378_s10 = scalar_lea.vmem %s3011_s4, %s1606_s15  ;;  %s656_s23 = sadd.s32 2, %s2336_s16 }
  0x50   : > { %v2182_v55 = vld [vmem:[%s378_s10] sm:$0x3]  ;;  %s615_s21 = sld [smem:[#allocation5 + %s614_s19]]  ;;  %s698_s24 = sadd.s32 3, %s2336_s16 }
  0x51   : > { %523 = vmatpush.bf16.msra.mxu1 %v1642_v14  ;;  %1706 = vmatpush.bf16.msra.mxu3 %v1646_v35  ;;  %v2185_v56 = vperm.slane %v2182_v55, 1  ;;  %v407_v12 = vperm.slane %v2182_v55, 0  ;;  %s616_s8 = sld [smem:[#allocation6 + %s614_s19]]  ;;  %s740_s6 = sadd.s32 4, %s2336_s16 }
  0x52   : > { %504 = vmatpush.bf16.msra.mxu0 %v1646_v35  ;;  %s658_s9 = sld [smem:[#allocation6 + %s656_s23]]  ;;  %s782_s5 = sadd.s32 5, %s2336_s16 }
  0x53   : > { %s700_s11 = sld [smem:[#allocation6 + %s698_s24]]  ;;  %s2981_s13 = sadd.s32 6, %s2336_s16 }
  0x54   : > { %s1713_s20 = smul.u32 24, %s2176_s14  ;;  %s742_s15 = sld [smem:[#allocation6 + %s740_s6]] }
  0x55   : > { %524 = vmatpush.bf16.msra.mxu1 %v1634_v20  ;;  %1707 = vmatpush.bf16.msra.mxu3 %v1638_v39  ;;  %s784_s17 = sld [smem:[#allocation6 + %s782_s5]]  ;;  %s866_s3 = sadd.s32 7, %s2336_s16 }
  0x56   : > { %505 = vmatpush.bf16.msra.mxu0 %v1638_v39  ;;  %s826_s18 = sld [smem:[#allocation6 + %s2981_s13]]  ;;  %s374_s0 = scalar_lea.vmem %s2975_s2, %s1713_s20 }
  0x57   : > { %s2365_s4 = sld [smem:[#allocation5 + %s656_s23]]  ;;  %s1076_s20 = sadd.s32 12, %s2336_s16 }
  0x58   : > { %s2375_s13 = sld [smem:[#allocation6 + %s866_s3]]  ;;  %s992_s19 = sadd.s32 10, %s2336_s16 }
  0x59   : > { %525 = vmatpush.bf16.msra.mxu1 %v1626_v28  ;;  %1708 = vmatpush.bf16.msra.mxu3 %v1630_v42  ;;  %s2383_s23 = sld [smem:[#allocation5 + %s698_s24]] }
  0x5a   : > { %506 = vmatpush.bf16.msra.mxu0 %v1630_v42 }
  0x5d   : > { %526 = vmatpush.bf16.msra.mxu1 %v1618_v34  ;;  %1709 = vmatpush.bf16.msra.mxu3 %v1622_v46 }
  0x5e   : > { %507 = vmatpush.bf16.msra.mxu0 %v1622_v46 }
  0x60   : > { %527 = vmatmul.bf16.vlgmr.msra.gmra.mxu1 %v1682_v36 }
  0x61   : > { %1710 = vmatpush.bf16.msra.mxu3 %v1614_v50 }
  0x62   : > { %508 = vmatpush.bf16.msra.mxu0 %v1614_v50 }
  0x64   : > { %514 = vmatmul.bf16.vlgmr.msra.gmra.mxu3 %v418_v51 }
  0x65   : > { %509 = vmatmul.bf16.vlgmr.msra.gmra.mxu0 %v1682_v36 }
  0x70   : > { %532 = vmatmul.bf16.gmra.mxu1 %v418_v51 }
  0xdd   : > { %v528_v57 = vpop.f32.mrf.mxu1 }
  0xde   : > { %v2188_v58 = vadd.f32 %v528_v57, %v2185_v56  ;;  %v2369_v57 = vld [vmem:[%s374_s0 + $0x8] sm:$0xff] }
  0xe0   : > { %660 = vperm.xlu2 %1796, %v2188_v58   ;;  %618 = vperm.xlu1 %1795, %v2188_v58  }
  0xe1   : > { %574 = vperm.xlu0 %1794, %v2188_v58  }
  0xe2   : > { %v510_v13 = vpop.f32.mrf.mxu0 }
  0xe3   : > { %v511_v17 = vadd.f32 %v510_v13, %v407_v12 }
  0xe5   : > { %v530_v63 = vpop.f32.mrf.mxu1 }
  0xe6   : > { %v2206_v3 = vadd.f32 %v530_v63, %v2185_v56  ;;  %v2381_v63 = vstv %s658_s9 }
  0xe7   : > { %v515_v14 = vpop.f32.mrf.mxu3 }
  0xe8   : > { %1798 = vset.pattern.permute.xlu2 %v1970_v59  ;;  %1800 = vset.pattern.permute.xlu1 %v1971_v60  ;;  %v516_v15 = vadd.f32 %v515_v14, %v407_v12 }
  0xe9   : > { %1797 = vset.pattern.permute.xlu0 %v1972_v61  ;;  %744 = vperm.xlu2 %1798, %v2188_v58  }
  0xea   : > { %828 = vperm.xlu1 %1800, %v2188_v58   ;;  %702 = vperm.xlu0 %1797, %v2188_v58   ;;  %v1333_v16 = vpack.c.bf16 %v516_v15, %v516_v15  ;;  %v512_v18 = vpop.f32.mrf.mxu0 }
  0xeb   : > { %v513_v19 = vadd.f32 %v512_v18, %v407_v12 }
  0xec   : > { %v1342_v20 = vsel %vm1340_vm0, %v1333_v16, 0  ;;  %v677_v16 = vmul.f32 %v2381_v63, %v2369_v57 }
  0xed   : > { %v533_v2 = vpop.f32.mrf.mxu1  ;;  %1350 = vmatpush.bf16.msra.mxu2 %v1342_v20  ;;  %v1332_v22 = vpack.c.bf16 %v513_v19, %v511_v17 }
  0xee   : > { %v2236_v11 = vadd.f32 %v533_v2, %v2185_v56  ;;  %v2367_v56 = vld [vmem:[%s374_s0] sm:$0xff]  ;;  %v2389_v2 = vstv %s742_s15  ;;  %s2623_s15 = sld [smem:[#allocation6 + %s1076_s20]] }
  0xef   : > { %v517_v21 = vpop.f32.mrf.mxu3  ;;  %3026 = vst [vmem:[#allocation27_spill] sm:$0xff] %v2389_v2  ;;  %v676_v12 = vmul.f32 %v2381_v63, %v2367_v56  ;;  %v760_v20 = vmul.f32 %v2389_v2, %v2367_v56 }
  0xf0   : > { %v761_v21 = vmul.f32 %v2389_v2, %v2369_v57 }
  0xf1   : > { %1799 = vset.pattern.permute.xlu2 %v1973_v62  ;;  %1351 = vmatpush.bf16.msra.mxu2 %v1332_v22 }
  0xf2   : > { %1801 = vset.pattern.permute.xlu1 %v1974_v0  ;;  %1802 = vset.pattern.permute.xlu0 %v1975_v1 }
  0xf3   : > { %786 = vperm.xlu2 %1799, %v2188_v58   ;;  %870 = vperm.xlu1 %1801, %v2188_v58  }
  0xf4   : > { %912 = vperm.xlu0 %1802, %v2188_v58  }
  0xf5   : > { %v535_v6 = vpop.f32.mrf.mxu1 }
  0xfb   : > { %1803 = vset.pattern.permute.xlu2 %v1976_v4  ;;  %1810 = vset.pattern.permute.xlu1 %v1968_v53 }
  0xfc   : > { %1805 = vset.pattern.permute.xlu0 %v1977_v5  ;;  %954 = vperm.xlu2 %1803, %v2188_v58  }
  0xfd   : > { %622 = vperm.xlu1 %1810, %v2206_v3   ;;  %1038 = vperm.xlu0 %1805, %v2188_v58  }
 0x104   : > { %1804 = vset.pattern.permute.xlu2 %v1978_v7 }
 0x105   : > { %1812 = vset.pattern.permute.xlu1 %v1972_v61  ;;  %1806 = vset.pattern.permute.xlu0 %v1979_v8 }
 0x106   : > { %996 = vperm.xlu2 %1804, %v2188_v58   ;;  %706 = vperm.xlu1 %1812, %v2206_v3  }
 0x107   : > { %1080 = vperm.xlu0 %1806, %v2188_v58  }
 0x10e   : > { %1811 = vset.pattern.permute.xlu2 %v1967_v52  ;;  %1813 = vset.pattern.permute.xlu1 %v1970_v59 }
 0x10f   : > { %1807 = vset.pattern.permute.xlu0 %v1980_v9  ;;  %664 = vperm.xlu2 %1811, %v2206_v3  }
 0x110   : > { %748 = vperm.xlu1 %1813, %v2206_v3   ;;  %1122 = vperm.xlu0 %1807, %v2188_v58  }
 0x117   : > { %1815 = vset.pattern.permute.xlu2 %v1971_v60 }
 0x118   : > { %1817 = vset.pattern.permute.xlu1 %v1975_v1  ;;  %1808 = vset.pattern.permute.xlu0 %v1981_v10 }
 0x119   : > { %832 = vperm.xlu2 %1815, %v2206_v3   ;;  %916 = vperm.xlu1 %1817, %v2206_v3  }
 0x11a   : > { %1164 = vperm.xlu0 %1808, %v2188_v58  }
 0x121   : > { %1816 = vset.pattern.permute.xlu2 %v1974_v0  ;;  %1819 = vset.pattern.permute.xlu1 %v1978_v7 }
 0x122   : > { %1809 = vset.pattern.permute.xlu0 %v1969_v54  ;;  %874 = vperm.xlu2 %1816, %v2206_v3  }
 0x123   : > { %1000 = vperm.xlu1 %1819, %v2206_v3   ;;  %579 = vperm.xlu0 %1809, %v2206_v3  }
 0x12a   : > { %1824 = vset.pattern.permute.xlu2 %v1969_v54 }
 0x12b   : > { %1820 = vset.pattern.permute.xlu1 %v1977_v5  ;;  %1814 = vset.pattern.permute.xlu0 %v1973_v62 }
 0x12c   : > { %584 = vperm.xlu2 %1824, %v2236_v11   ;;  %1042 = vperm.xlu1 %1820, %v2206_v3  }
 0x12d   : > { %790 = vperm.xlu0 %1814, %v2206_v3  }
 0x134   : > { %1827 = vset.pattern.permute.xlu2 %v1972_v61  ;;  %1821 = vset.pattern.permute.xlu1 %v1979_v8  ;;  %v2379_v61 = vstv %s570_s27  ;;  %s2404_s27 = sld [smem:[#allocation5 + %s782_s5]]  ;;  %s1034_s5 = sadd.s32 11, %s2336_s16 }
 0x135   : > { %1818 = vset.pattern.permute.xlu0 %v1976_v4  ;;  %710 = vperm.xlu2 %1827, %v2236_v11   ;;  %s2661_s10 = sld [smem:[#allocation5 + %s1034_s5]] }
 0x136   : > { %1084 = vperm.xlu1 %1821, %v2206_v3   ;;  %958 = vperm.xlu0 %1818, %v2206_v3  }
 0x13a   : > { %v2284_v30 = vpop.permute.xlu2 %660 }
 0x13e   : > { %1822 = vset.pattern.permute.xlu1 %v1980_v9  ;;  %1833 = vset.pattern.permute.xlu0 %v1982_v23 }
 0x13f   : > { %1126 = vperm.xlu1 %1822, %v2206_v3   ;;  %1210 = vperm.xlu0 %1833, %v2206_v3  }
 0x143   : > { %v2290_v32 = vpop.permute.xlu2 %744 }
 0x147   : > { %1823 = vset.pattern.permute.xlu1 %v1981_v10  ;;  %1836 = vset.pattern.permute.xlu0 %v1978_v7 }
 0x148   : > { %1168 = vperm.xlu1 %1823, %v2206_v3   ;;  %1004 = vperm.xlu0 %1836, %v2236_v11   ;;  %v2391_v3 = vstv %s784_s17  ;;  %s1160_s17 = sadd.s32 14, %s2336_s16 }
 0x149   : > { %3027 = vst [vmem:[#allocation28_spill] sm:$0xff] %v2391_v3 }
 0x14d   : > { %v2296_v34 = vpop.permute.xlu2 %786 }
 0x150   : > { %1825 = vset.pattern.permute.xlu1 %v1968_v53  ;;  %1839 = vset.pattern.permute.xlu0 %v1980_v9 }
 0x151   : > { %626 = vperm.xlu1 %1825, %v2236_v11   ;;  %1130 = vperm.xlu0 %1839, %v2236_v11  }
 0x152   : > { %v2261_v24 = vpop.permute.xlu1 %618 }
 0x153   : > { %v2302_v36 = vpop.permute.xlu0 %574 }
 0x156   : > { %v2304_v37 = vpop.permute.xlu2 %954 }
 0x159   : > { %1826 = vset.pattern.permute.xlu1 %v1967_v52  ;;  %1842 = vset.pattern.permute.xlu0 %v1982_v23 }
 0x15a   : > { %668 = vperm.xlu1 %1826, %v2236_v11  }
 0x15b   : > { %537 = vxpose.xlu2.b32.start [1/3] (short) (narrow) %v511_v17, 16 }
 0x15c   : > { %v2265_v25 = vpop.permute.xlu1 %828  ;;  %v2309_v39 = vpop.permute.xlu0 %702 }
 0x160   : > { %v2311_v40 = vpop.permute.xlu2 %996 }
 0x161   : > { %3015 = vst [vmem:[#allocation16_spill] sm:$0xff] %v2311_v40 }
 0x162   : > { %1828 = vset.pattern.permute.xlu1 %v1970_v59  ;;  %v591_v59 = vstv %s571_s22  ;;  %s908_s22 = sadd.s32 8, %s2336_s16 }
 0x163   : > { %752 = vperm.xlu1 %1828, %v2236_v11   ;;  %538 = vxpose.xlu2.b32.cont [2/3] (short) (narrow) %v513_v19, 16  ;;  %v593_v6 = vmul.f32 %v591_v59, %v2369_v57  ;;  %s2569_s9 = sld [smem:[#allocation5 + %s908_s22]] }
 0x165   : > { %v2269_v26 = vpop.permute.xlu1 %870 }
 0x166   : > { %v2315_v42 = vpop.permute.xlu0 %912 }
 0x169   : > { %v2317_v43 = vpop.permute.xlu2 %664 }
 0x16b   : > { %1829 = vset.pattern.permute.xlu1 %v1973_v62  ;;  %539 = vxpose.xlu2.b32.end [3/3] (short) (narrow) %v516_v15, 16  ;;  %v633_v62 = vstv %s616_s8  ;;  %s2433_s8 = sld [smem:[#allocation5 + %s866_s3]]  ;;  %s950_s3 = sadd.s32 9, %s2336_s16 }
 0x16c   : > { %794 = vperm.xlu1 %1829, %v2236_v11   ;;  %v634_v9 = vmul.f32 %v633_v62, %v2367_v56 }
 0x16f   : > { %v2273_v27 = vpop.permute.xlu1 %622  ;;  %v2322_v45 = vpop.permute.xlu0 %1038 }
 0x170   : > { %3018 = vst [vmem:[#allocation19_spill] sm:$0xff] %v2322_v45 }
 0x173   : > { %v2324_v46 = vpop.permute.xlu2 %832 }
 0x174   : > { %1830 = vset.pattern.permute.xlu1 %v1971_v60 }
 0x175   : > { %836 = vperm.xlu1 %1830, %v2236_v11  }
 0x178   : > { %v2276_v28 = vpop.permute.xlu1 %706 }
 0x179   : > { %v2329_v48 = vpop.permute.xlu0 %1080 }
 0x17a   : > { %3019 = vst [vmem:[#allocation20_spill] sm:$0xff] %v2329_v48 }
 0x17c   : > { %v2331_v49 = vpop.permute.xlu2 %874 }
 0x17d   : > { %1832 = vset.pattern.permute.xlu1 %v1982_v23 }
 0x17e   : > { %1206 = vperm.xlu1 %1832, %v2188_v58   ;;  %v2371_v58 = vld [vmem:[%s374_s0 + $0x10] sm:$0xf]  ;;  %s2393_s0 = sld [smem:[#allocation5 + %s740_s6]] }
 0x17f   : > { %v2400_v7 = vmul.f32 %v591_v59, %v2371_v58  ;;  %s2445_s6 = sld [smem:[#allocation6 + %s908_s22]]  ;;  %s1712_s22 = smul.u32 12, %s2176_s14 }
 0x181   : > { %3029 = vst [vmem:[#allocation30_spill] sm:$0xff] %v2400_v7 }
 0x182   : > { %v2280_v29 = vpop.permute.xlu1 %748  ;;  %v2338_v51 = vpop.permute.xlu0 %1122 }
 0x183   : > { %3020 = vst [vmem:[#allocation21_spill] sm:$0xff] %v2338_v51 }
 0x186   : > { %1834 = vset.pattern.permute.xlu1 %v1975_v1  ;;  %v2340_v52 = vpop.permute.xlu2 %584  ;;  %v2387_v1 = vstv %s700_s11  ;;  %s2586_s11 = sld [smem:[#allocation6 + %s1034_s5]] }
 0x187   : > { %920 = vperm.xlu1 %1834, %v2236_v11   ;;  %3025 = vst [vmem:[#allocation26_spill] sm:$0xff] %v2387_v1  ;;  %v718_v18 = vmul.f32 %v2387_v1, %v2367_v56  ;;  %v719_v19 = vmul.f32 %v2387_v1, %v2369_v57  ;;  %v2460_v1 = vmul.f32 %v2391_v3, %v2369_v57 }
 0x18b   : > { %v2286_v31 = vpop.permute.xlu1 %916 }
 0x18c   : > { %v2357_v54 = vpop.permute.xlu0 %1164 }
 0x18d   : > { %3022 = vst [vmem:[#allocation23_spill] sm:$0xff] %v2357_v54  ;;  %v2482_v54 = vstv %s2393_s0  ;;  %s1118_s0 = sadd.s32 13, %s2336_s16 }
 0x18e   : > { %s2706_s14 = sld [smem:[#allocation6 + %s1118_s0]] }
 0x18f   : > { %1835 = vset.pattern.permute.xlu1 %v1976_v4  ;;  %v2359_v55 = vpop.permute.xlu2 %710  ;;  %v2395_v4 = vstv %s826_s18  ;;  %s2651_s18 = sld [smem:[#allocation6 + %s1160_s17]] }
 0x190   : > { %962 = vperm.xlu1 %1835, %v2236_v11   ;;  %3023 = vst [vmem:[#allocation24_spill] sm:$0xff] %v2359_v55  ;;  %s2757_s5 = sld [smem:[#allocation5 + %s1118_s0]] }
 0x191   : > { %3028 = vst [vmem:[#allocation29_spill] sm:$0xff] %v2395_v4 }
 0x195   : > { %v2292_v33 = vpop.permute.xlu1 %1000  ;;  %v580_v17 = vpop.permute.xlu0 %579 }
 0x196   : > { %3012 = vst [vmem:[#allocation13_spill] sm:$0xff] %v2292_v33 }
 0x198   : > { %1837 = vset.pattern.permute.xlu1 %v1977_v5  ;;  %v592_v5 = vmul.f32 %v591_v59, %v2367_v56 }
 0x199   : > { %1046 = vperm.xlu1 %1837, %v2236_v11  }
 0x19e   : > { %v2299_v35 = vpop.permute.xlu1 %1042 }
 0x19f   : > { %3013 = vst [vmem:[#allocation14_spill] sm:$0xff] %v2299_v35 }
 0x1a1   : > { %1838 = vset.pattern.permute.xlu1 %v1979_v8 }
 0x1a2   : > { %1088 = vperm.xlu1 %1838, %v2236_v11  }
 0x1a8   : > { %v2307_v38 = vpop.permute.xlu1 %1084 }
 0x1a9   : > { %3014 = vst [vmem:[#allocation15_spill] sm:$0xff] %v2307_v38 }
 0x1aa   : > { %1840 = vset.pattern.permute.xlu1 %v1981_v10  ;;  %v635_v10 = vmul.f32 %v633_v62, %v2369_v57 }
 0x1ab   : > { %1172 = vperm.xlu1 %1840, %v2236_v11  }
 0x1b1   : > { %v2313_v41 = vpop.permute.xlu1 %1126 }
 0x1b2   : > { %3016 = vst [vmem:[#allocation17_spill] sm:$0xff] %v2313_v41  ;;  %v2479_v41 = vstv %s2383_s23  ;;  %s2681_s23 = sld [smem:[#allocation6 + %s992_s19]] }
 0x1b3   : > { %1841 = vset.pattern.permute.xlu1 %v1982_v23 }
 0x1b4   : > { %1214 = vperm.xlu1 %1841, %v2236_v11  }
 0x1ba   : > { %v2319_v44 = vpop.permute.xlu1 %1168 }
 0x1bb   : > { %3017 = vst [vmem:[#allocation18_spill] sm:$0xff] %v2319_v44 }
 0x1c3   : > { %v2326_v47 = vpop.permute.xlu1 %626 }
 0x1cc   : > { %v2333_v50 = vpop.permute.xlu1 %668 }
 0x1cd   : > { %1831 = vset.pattern.permute.xlu2 %v1974_v0  ;;  %v2385_v0 = vstv %s615_s21  ;;  %s3031_s21 = sadd.s32 6, %s2336_s16 }
 0x1ce   : > { %s2418_s24 = sld [smem:[#allocation5 + %s3031_s21]]  ;;  %s1202_s21 = sadd.s32 15, %s2336_s16 }
 0x1cf   : > { %s1711_s16 = smul.u32 24, %s2115_s30  ;;  %s1678_s30 = sshll.u32 (%p2072_p10), %s2043_s28, 3 }
 0x1d4   : > { %878 = vperm.xlu2 %1831, %v2236_v11   ;;  %v2412_v11 = vmul.f32 %v633_v62, %v2371_v58  ;;  %v2454_v62 = vmul.f32 %v2391_v3, %v2367_v56  ;;  %v2476_v3 = vstv %s2365_s4  ;;  %s2564_s4 = sld [smem:[#allocation6 + %s950_s3]] }
 0x1d5   : > { %v2348_v53 = vpop.permute.xlu1 %752 }
 0x1d6   : > { %3021 = vst [vmem:[#allocation22_spill] sm:$0xff] %v2348_v53 }
 0x1d7   : > { %3030 = vst [vmem:[#allocation31_spill] sm:$0xff] %v2412_v11 }
 0x1de   : > { %v2377_v60 = vpop.permute.xlu1 %794 }
 0x1df   : > { %3024 = vst [vmem:[#allocation25_spill] sm:$0xff] %v2377_v60 }
 0x1e7   : > { %v2484_v33 = vpop.permute.xlu1 %836 }
 0x1e8   : > { %3033 = vst [vmem:[#allocation33_spill] sm:$0xff] %v2484_v33  ;;  %v2501_v33 = vstv %s2433_s8  ;;  %s2730_s8 = sld [smem:[#allocation5 + %s1160_s17]]  ;;  %s1430_s17 = scalar_lea.vmem (%p2072_p10), %s2980_s7, %s1678_s30 }
 0x1e9   : > { %3036 = vst [vmem:[#allocation36_spill] sm:$0xff] %v2501_v33 }
 0x1f4   : > { %v2407_v8 = vpop.trf.xlu2 }
 0x1f5   : > { %v2421_v13 = vperm.slane %v2407_v8, 0  ;;  %v2424_v14 = vperm.slane %v2407_v8, 1  ;;  %v2427_v15 = vperm.slane %v2407_v8, 2  ;;  %v2498_v44 = vperm.slane %v2407_v8, 4 }
 0x1f7   : > { %3032 = vst [vmem:[#allocation32_spill] sm:$0xff] %v2427_v15  ;;  %v588_v22 = vadd.f32 %v2421_v13, %v2302_v36  ;;  %v589_v23 = vadd.f32 %v2421_v13, %v580_v17  ;;  %v630_v59 = vadd.f32 %v2424_v14, %v2261_v24  ;;  %v631_v2 = vadd.f32 %v2424_v14, %v2273_v27 }
 0x1f8   : > { %v2464_v36 = vmul.f32 %v2395_v4, %v2367_v56  ;;  %v2467_v17 = vstv %s2375_s13  ;;  %v672_v51 = vadd.f32 %v2427_v15, %v2284_v30  ;;  %v2473_v27 = vmul.f32 %v2395_v4, %v2369_v57  ;;  %3035 = vst [vmem:[#allocation35_spill] sm:$0xff] %v2498_v44  ;;  %s2602_s13 = sld [smem:[#allocation5 + %s950_s3]] }
 0x1f9   : > { %v595_v60 = vadd.f32 %v592_v5, %v588_v22  ;;  %v637_v24 = vadd.f32 %v634_v9, %v630_v59  ;;  %v596_v40 = vadd.f32 %v593_v6, %v589_v23  ;;  %v638_v9 = vadd.f32 %v635_v10, %v631_v2 }
 0x1fa   : > { %v673_v30 = vadd.f32 %v2427_v15, %v2317_v43  ;;  %v2489_v22 = vstv %s2404_s27  ;;  %v2492_v6 = vperm.slane %v2407_v8, 3  ;;  %v2495_v23 = vstv %s2418_s24  ;;  %s2690_s27 = sld [smem:[#allocation5 + %s1076_s20]] }
 0x1fb   : > { %v601_v5 = vmul.f32 0.2, %v595_v60  ;;  %vm598_vm1 = vcmp.gt.f32.partialorder %v595_v60, 0.0  ;;  %v643_v59 = vmul.f32 0.2, %v637_v24  ;;  %3034 = vst [vmem:[#allocation34_spill] sm:$0xff] %v2495_v23  ;;  %v679_v4 = vadd.f32 %v676_v12, %v672_v51 }
 0x1fc   : > { %vm640_vm2 = vcmp.gt.f32.partialorder %v637_v24, 0.0  ;;  %v602_v2 = vmul.f32 0.2, %v596_v40  ;;  %v2504_v10 = vperm.slane %v2407_v8, 5  ;;  %v2507_v43 = vstv %s2445_s6  ;;  %s2719_s24 = sld [smem:[#allocation5 + %s992_s19]] }
 0x1fd   : > { %v2511_v48 = vmul.f32 %v2467_v17, %v2367_v56  ;;  %vm599_vm3 = vcmp.gt.f32.partialorder %v596_v40, 0.0  ;;  %v604_v38 = vsel %vm598_vm1, %v595_v60, %v601_v5  ;;  %v644_v53 = vmul.f32 0.2, %v638_v9 }
 0x1fe   : > { %v680_v55 = vadd.f32 %v677_v16, %v673_v30  ;;  %vm641_vm4 = vcmp.gt.f32.partialorder %v638_v9, 0.0  ;;  %v646_v51 = vsel %vm640_vm2, %v637_v24, %v643_v59  ;;  %v714_v12 = vadd.f32 %v2492_v6, %v2309_v39 }
 0x1ff   : > { %v715_v11 = vadd.f32 %v2492_v6, %v2276_v28  ;;  %v685_v7 = vmul.f32 0.2, %v679_v4  ;;  %v756_v35 = vadd.f32 %v2498_v44, %v2290_v32  ;;  %v757_v45 = vadd.f32 %v2498_v44, %v2280_v29  ;;  %v2532_v44 = vpop.permute.xlu1 %1206 }
 0x200   : > { %v2522_v15 = vperm.slane %v2407_v8, 6  ;;  %v605_v60 = vsel %vm599_vm3, %v596_v40, %v602_v2  ;;  %v608_v16 = vmul.f32 %v2379_v61, %v604_v38  ;;  %vm682_vm5 = vcmp.gt.f32.partialorder %v679_v4, 0.0 }
 0x201   : > { %v721_v24 = vadd.f32 %v718_v18, %v714_v12  ;;  %v647_v5 = vsel %vm641_vm4, %v638_v9, %v644_v53  ;;  %v650_v39 = vmul.f32 %v2385_v0, %v646_v51  ;;  %v686_v30 = vmul.f32 0.2, %v680_v55  ;;  %v791_v18 = vpop.permute.xlu0 %790 }
 0x202   : > { %v763_v28 = vadd.f32 %v760_v20, %v756_v35  ;;  %vm683_vm6 = vcmp.gt.f32.partialorder %v680_v55, 0.0  ;;  %v722_v59 = vadd.f32 %v719_v19, %v715_v11  ;;  %v798_v32 = vadd.f32 %v2504_v10, %v2296_v34 }
 0x203   : > { %v2530_v29 = vmul.f32 %v2467_v17, %v2369_v57  ;;  %v688_v40 = vsel %vm682_vm5, %v679_v4, %v685_v7  ;;  %v727_v38 = vmul.f32 0.2, %v721_v24  ;;  %v764_v2 = vadd.f32 %v761_v21, %v757_v45 }
 0x204   : > { %v2535_v53 = vperm.slane %v2407_v8, 7  ;;  %v609_v35 = vmul.f32 %v2379_v61, %v605_v60  ;;  %v651_v11 = vmul.f32 %v2385_v0, %v647_v5  ;;  %vm724_vm7 = vcmp.gt.f32.partialorder %v721_v24, 0.0  ;;  %v2543_v8 = vpop.trf.xlu2 }
 0x205   : > { %v840_v34 = vadd.f32 %v2522_v15, %v2265_v25  ;;  %v689_v19 = vsel %vm683_vm6, %v680_v55, %v686_v30  ;;  %v769_v20 = vmul.f32 0.2, %v763_v28  ;;  %v799_v9 = vadd.f32 %v2504_v10, %v791_v18 }
 0x206   : > { %v653_v4 = vadd.f32 %v650_v39, %v608_v16  ;;  %vm725_vm8 = vcmp.gt.f32.partialorder %v722_v59, 0.0  ;;  %v728_v45 = vmul.f32 0.2, %v722_v59  ;;  %v805_v7 = vadd.f32 %v2454_v62, %v798_v32 }
 0x207   : > { %v692_v21 = vmul.f32 %v2476_v3, %v688_v40  ;;  %v770_v51 = vmul.f32 0.2, %v764_v2  ;;  %v841_v12 = vadd.f32 %v2522_v15, %v2324_v46  ;;  %v847_v60 = vadd.f32 %v2464_v36, %v840_v34 }
 0x208   : > { %v730_v25 = vsel %vm724_vm7, %v721_v24, %v727_v38  ;;  %v654_v55 = vadd.f32 %v651_v11, %v609_v35  ;;  %vm766_vm9 = vcmp.gt.f32.partialorder %v763_v28, 0.0  ;;  %v806_v62 = vadd.f32 %v2460_v1, %v799_v9  ;;  %v2571_v35 = vpop.permute.xlu1 %920 }
 0x209   : > { %v695_v5 = vadd.f32 %v692_v21, %v653_v4  ;;  %v734_v16 = vmul.f32 %v2479_v41, %v730_v25  ;;  %v882_v39 = vadd.f32 %v2535_v53, %v2269_v26  ;;  %v2555_v30 = vperm.slane %v2543_v8, 0 }
 0x20a   : > { %v772_v46 = vsel %vm766_vm9, %v763_v28, %v769_v20  ;;  %v693_v36 = vmul.f32 %v2476_v3, %v689_v19  ;;  %vm808_vm10 = vcmp.gt.f32.partialorder %v805_v7, 0.0  ;;  %v848_v40 = vadd.f32 %v2473_v27, %v841_v12 }
 0x20b   : > { %v737_v24 = vadd.f32 %v734_v16, %v695_v5  ;;  %v776_v32 = vmul.f32 %v2482_v54, %v772_v46  ;;  %v883_v38 = vadd.f32 %v2535_v53, %v2331_v49  ;;  %v731_v26 = vsel %vm725_vm8, %v722_v59, %v728_v45 }
 0x20c   : > { %v811_v1 = vmul.f32 0.2, %v805_v7  ;;  %v696_v28 = vadd.f32 %v693_v36, %v654_v55  ;;  %vm767_vm11 = vcmp.gt.f32.partialorder %v764_v2, 0.0  ;;  %vm850_vm12 = vcmp.gt.f32.partialorder %v847_v60, 0.0 }
 0x20d   : > { %v779_v18 = vadd.f32 %v776_v32, %v737_v24  ;;  %v924_v27 = vadd.f32 %v2555_v30, %v2315_v42  ;;  %v812_v49 = vmul.f32 0.2, %v806_v62  ;;  %v853_v34 = vmul.f32 0.2, %v847_v60 }
 0x20e   : > { %v814_v11 = vsel %vm808_vm10, %v805_v7, %v811_v1  ;;  %v735_v19 = vmul.f32 %v2479_v41, %v731_v26  ;;  %vm809_vm13 = vcmp.gt.f32.partialorder %v806_v62, 0.0  ;;  %v889_v20 = vadd.f32 %v2511_v48, %v882_v39  ;;  %v959_v1 = vpop.permute.xlu0 %958 }
 0x20f   : > { %v818_v59 = vmul.f32 %v2489_v22, %v814_v11  ;;  %v925_v9 = vadd.f32 %v2555_v30, %v2286_v31  ;;  %v773_v4 = vsel %vm767_vm11, %v764_v2, %v770_v51  ;;  %v856_v45 = vsel %vm850_vm12, %v847_v60, %v853_v34 }
 0x210   : > { %v928_v42 = vmul.f32 %v2507_v43, %v2367_v56  ;;  %v738_v7 = vadd.f32 %v735_v19, %v696_v28  ;;  %v860_v12 = vmul.f32 %v2495_v23, %v856_v45  ;;  %vm892_vm14 = vcmp.gt.f32.partialorder %v889_v20, 0.0 }
 0x211   : > { %v821_v21 = vadd.f32 %v818_v59, %v779_v18  ;;  %v815_v25 = vsel %vm809_vm13, %v806_v62, %v812_v49  ;;  %vm851_vm15 = vcmp.gt.f32.partialorder %v848_v40, 0.0  ;;  %v854_v48 = vmul.f32 0.2, %v848_v40  ;;  %v963_v49 = vpop.permute.xlu1 %962 }
 0x212   : > { %v895_v55 = vmul.f32 0.2, %v889_v20  ;;  %v890_v2 = vadd.f32 %v2530_v29, %v883_v38  ;;  %v929_v51 = vmul.f32 %v2507_v43, %v2369_v57  ;;  %v931_v60 = vadd.f32 %v928_v42, %v924_v27 }
 0x213   : > { %v863_v31 = vadd.f32 %v860_v12, %v821_v21  ;;  %v969_v5 = vstv %s2564_s4  ;;  %v777_v16 = vmul.f32 %v2482_v54, %v773_v4  ;;  %v965_v62 = vperm.slane %v2543_v8, 1  ;;  %v3038_v4 = vld [vmem:[#allocation32_spill] sm:$0xff]  ;;  %s2735_s4 = scalar_lea.vmem %s2974_s1, %s1712_s22 }
 0x214   : > { %v898_v39 = vsel %vm892_vm14, %v889_v20, %v895_v55  ;;  %v678_v46 = vmul.f32 %v2381_v63, %v2371_v58  ;;  %v2597_v36 = vstv %s2569_s9  ;;  %vm934_vm0 = vcmp.gt.f32.partialorder %v931_v60, 0.0  ;;  %s2742_s9 = sld [smem:[#allocation6 + %s1202_s21]] }
 0x215   : > { %3037 = vst [vmem:[#allocation37_spill] sm:$0xff] %v2597_v36  ;;  %v902_v24 = vmul.f32 %v2501_v33, %v898_v39  ;;  %v780_v29 = vadd.f32 %v777_v16, %v738_v7  ;;  %v819_v32 = vmul.f32 %v2489_v22, %v815_v25  ;;  %v857_v38 = vsel %vm851_vm15, %v848_v40, %v854_v48  ;;  %v3039_v48 = vld [vmem:[#allocation19_spill] sm:$0xff] }
 0x216   : > { %v937_v26 = vmul.f32 0.2, %v931_v60  ;;  %v896_v28 = vmul.f32 0.2, %v890_v2  ;;  %v932_v27 = vadd.f32 %v929_v51, %v925_v9  ;;  %v970_v63 = vmul.f32 %v969_v5, %v2367_v56  ;;  %v3042_v39 = vld [vmem:[#allocation31_spill] sm:$0xff] }
 0x217   : > { %v905_v18 = vadd.f32 %v902_v24, %v863_v31  ;;  %v966_v34 = vadd.f32 %v965_v62, %v2304_v37  ;;  %v967_v19 = vadd.f32 %v965_v62, %v959_v1  ;;  %v971_v59 = vmul.f32 %v969_v5, %v2369_v57  ;;  %v3040_v31 = vld [vmem:[#allocation14_spill] sm:$0xff] }
 0x218   : > { %v940_v11 = vsel %vm934_vm0, %v931_v60, %v937_v26  ;;  %v590_v40 = vadd.f32 %v2421_v13, %v2340_v52  ;;  %v632_v20 = vadd.f32 %v2424_v14, %v2326_v47  ;;  %vm893_vm1 = vcmp.gt.f32.partialorder %v890_v2, 0.0 }
 0x219   : > { %v944_v9 = vmul.f32 %v2597_v36, %v940_v11  ;;  %v674_v45 = vadd.f32 %v3038_v4, %v2333_v50  ;;  %v822_v42 = vadd.f32 %v819_v32, %v780_v29  ;;  %v861_v7 = vmul.f32 %v2495_v23, %v857_v38  ;;  %v3044_v32 = vld [vmem:[#allocation24_spill] sm:$0xff]  ;;  %v3045_v11 = vld [vmem:[#allocation22_spill] sm:$0xff] }
 0x21a   : > { %v2619_v37 = vstv %s2586_s11  ;;  %v968_v52 = vadd.f32 %v965_v62, %v963_v49  ;;  %v972_v47 = vmul.f32 %v969_v5, %v2371_v58  ;;  %v2629_v13 = vperm.slane %v2543_v8, 3  ;;  %v3041_v5 = vld [vmem:[#allocation30_spill] sm:$0xff]  ;;  %s2767_s11 = sld [smem:[#allocation5 + %s1202_s21]] }
 0x21b   : > { %v2625_v21 = vadd.f32 %v944_v9, %v905_v18  ;;  %v899_v50 = vsel %vm893_vm1, %v890_v2, %v896_v28  ;;  %v938_v14 = vmul.f32 0.2, %v932_v27  ;;  %v973_v12 = vadd.f32 %v970_v63, %v966_v34  ;;  %v3046_v34 = vld [vmem:[#allocation35_spill] sm:$0xff] }
 0x21c   : > { %v974_v25 = vadd.f32 %v971_v59, %v967_v19  ;;  %vm935_vm2 = vcmp.gt.f32.partialorder %v932_v27, 0.0  ;;  %v1050_v55 = vadd.f32 %v2629_v13, %v3039_v48  ;;  %v1051_v51 = vadd.f32 %v2629_v13, %v3040_v31 }
 0x21d   : > { %v1054_v60 = vmul.f32 %v2619_v37, %v2367_v56  ;;  %v2639_v16 = vadd.f32 %v3041_v5, %v590_v40  ;;  %v2642_v2 = vadd.f32 %v3042_v39, %v632_v20  ;;  %v2645_v62 = vstv %s2602_s13  ;;  %s364_s13 = scalar_lea.vmem [#allocation8], %s1711_s16 }
 0x21e   : > { %3043 = vst [vmem:[#allocation32_spill] sm:$0xff] %v2645_v62  ;;  %v1055_v24 = vmul.f32 %v2619_v37, %v2369_v57  ;;  %v2653_v29 = vadd.f32 %v678_v46, %v674_v45  ;;  %v2657_v38 = vadd.f32 %v2492_v6, %v3044_v32  ;;  %v864_v26 = vadd.f32 %v861_v7, %v822_v42 }
 0x21f   : > { %v975_v1 = vadd.f32 %v972_v47, %v968_v52  ;;  %v903_v28 = vmul.f32 %v2501_v33, %v899_v50  ;;  %v941_v18 = vsel %vm935_vm2, %v932_v27, %v938_v14  ;;  %v979_v63 = vmul.f32 0.2, %v973_v12  ;;  %v3047_v52 = vld [vmem:[#allocation15_spill] sm:$0xff]  ;;  %v1047_v50 = vpop.permute.xlu1 %1046 }
 0x220   : > { %v980_v46 = vmul.f32 0.2, %v974_v25  ;;  %vm976_vm3 = vcmp.gt.f32.partialorder %v973_v12, 0.0  ;;  %vm977_vm4 = vcmp.gt.f32.partialorder %v974_v25, 0.0  ;;  %v1057_v49 = vadd.f32 %v1054_v60, %v1050_v55 }
 0x221   : > { %v1058_v6 = vadd.f32 %v1055_v24, %v1051_v51  ;;  %v2668_v19 = vadd.f32 %v3046_v34, %v3045_v11  ;;  %v2671_v59 = vperm.slane %v2543_v8, 2  ;;  %v2674_v40 = vstv %s2623_s15  ;;  %v3053_v11 = vld [vmem:[#allocation18_spill] sm:$0xff] }
 0x222   : > { %v2677_v27 = vperm.slane %v2543_v8, 4  ;;  %v2684_v20 = vperm.slane %v2543_v8, 5  ;;  %v906_v9 = vadd.f32 %v903_v28, %v864_v26  ;;  %v945_v4 = vmul.f32 %v2597_v36, %v941_v18 }
 0x223   : > { %vm978_vm5 = vcmp.gt.f32.partialorder %v975_v1, 0.0  ;;  %v981_v45 = vmul.f32 0.2, %v975_v1  ;;  %v982_v42 = vsel %vm976_vm3, %v973_v12, %v979_v63  ;;  %v983_v7 = vsel %vm977_vm4, %v974_v25, %v980_v46  ;;  %v3048_v12 = vld [vmem:[#allocation20_spill] sm:$0xff] }
 0x224   : > { %v1093_v47 = vadd.f32 %v2677_v27, %v3047_v52  ;;  %vm1060_vm6 = vcmp.gt.f32.partialorder %v1057_v49, 0.0  ;;  %v1063_v14 = vmul.f32 0.2, %v1057_v49  ;;  %v1064_v48 = vmul.f32 0.2, %v1058_v6  ;;  %v2763_v52 = vld [vmem:[%s2735_s4] sm:$0xff]  }
 0x225   : > { %v1097_v55 = vmul.f32 %v2674_v40, %v2369_v57  ;;  %vm1061_vm7 = vcmp.gt.f32.partialorder %v1058_v6, 0.0  ;;  %v1092_v25 = vadd.f32 %v2677_v27, %v3048_v12  ;;  %v1096_v31 = vmul.f32 %v2674_v40, %v2367_v56 }
 0x226   : > { %v2702_v51 = vstv %s2651_s18  ;;  %v948_v60 = vadd.f32 %v945_v4, %v906_v9  ;;  %v2710_v5 = vstv %s2661_s10  ;;  %v2713_v39 = vperm.slane %v2543_v8, 6  ;;  %v3054_v4 = vld [vmem:[#allocation13_spill] sm:$0xff] }
 0x227   : > { %3049 = vst [vmem:[#allocation19_spill] sm:$0xff] %v2702_v51  ;;  %v1181_v24 = vmul.f32 %v2702_v51, %v2369_v57  ;;  %v2722_v32 = vsel %vm978_vm5, %v975_v1, %v981_v45  ;;  %v986_v26 = vmul.f32 %v2645_v62, %v982_v42  ;;  %v2726_v28 = vadd.f32 %v2629_v13, %v1047_v50 }
 0x228   : > { %3050 = vst [vmem:[#allocation14_spill] sm:$0xff] %v2710_v5  ;;  %v1100_v18 = vadd.f32 %v1097_v55, %v1093_v47  ;;  %v987_v63 = vmul.f32 %v2645_v62, %v983_v7  ;;  %v1066_v1 = vsel %vm1060_vm6, %v1057_v49, %v1063_v14  ;;  %v1067_v46 = vsel %vm1061_vm7, %v1058_v6, %v1064_v48  ;;  %v3055_v48 = vld [vmem:[#allocation23_spill] sm:$0xff] }
 0x229   : > { %3051 = vst [vmem:[#allocation30_spill] sm:$0xff] %v2713_v39  ;;  %v1177_v13 = vadd.f32 %v2713_v39, %v3053_v11  ;;  %v2746_v34 = vmul.f32 %v2619_v37, %v2371_v58  ;;  %v2748_v9 = vadd.f32 %v1096_v31, %v1092_v25  ;;  %v1009_v45 = vadd.f32 %v2671_v59, %v3054_v4 }
 0x22a   : > { %3052 = vst [vmem:[#allocation31_spill] sm:$0xff] %v2722_v32  ;;  %v2753_v42 = vstv %s2681_s23  ;;  %v2760_v49 = vadd.f32 %v986_v26, %v2625_v21  ;;  %v990_v6 = vadd.f32 %v987_v63, %v948_v60  ;;  %v2770_v47 = vmul.f32 %v2710_v5, %v1066_v1 }
 0x22b   : > { %v1184_v7 = vadd.f32 %v1181_v24, %v1177_v13  ;;  %v1013_v37 = vmul.f32 %v2753_v42, %v2369_v57  ;;  %v1071_v50 = vmul.f32 %v2710_v5, %v1067_v46  ;;  %v2774_v14 = vstv %s2690_s27  ;;  %v3056_v24 = vld [vmem:[#allocation17_spill] sm:$0xff] }
 0x22c   : > { %v1106_v21 = vmul.f32 0.2, %v1100_v18  ;;  %v1176_v55 = vadd.f32 %v2713_v39, %v3055_v48  ;;  %v1180_v12 = vmul.f32 %v2702_v51, %v2367_v56  ;;  %vm1103_vm8 = vcmp.gt.f32.partialorder %v1100_v18, 0.0 }
 0x22d   : > { %v1016_v25 = vadd.f32 %v1013_v37, %v1009_v45  ;;  %v1105_v31 = vmul.f32 0.2, %v2748_v9  ;;  %v1135_v26 = vadd.f32 %v2684_v20, %v3056_v24  ;;  %v2785_v63 = vstv %s2706_s14  ;;  %v1211_v37 = vpop.permute.xlu0 %1210 }
 0x22e   : > { %3057 = vst [vmem:[#allocation24_spill] sm:$0xff] %v2785_v63  ;;  %v2788_v46 = vstv %s2719_s24  ;;  %vm1187_vm10 = vcmp.gt.f32.partialorder %v1184_v7, 0.0  ;;  %v1109_v11 = vsel %vm1103_vm8, %v1100_v18, %v1106_v21  ;;  %v1139_v13 = vmul.f32 %v2785_v63, %v2369_v57 }
 0x22f   : > { %vm1019_vm9 = vcmp.gt.f32.partialorder %v1016_v25, 0.0  ;;  %v1022_v1 = vmul.f32 0.2, %v1016_v25  ;;  %v1190_v4 = vmul.f32 0.2, %v1184_v7  ;;  %v2793_v45 = vperm.slane %v2543_v8, 7 }
 0x230   : > { %v1183_v48 = vadd.f32 %v1180_v12, %v1176_v55  ;;  %v2796_v60 = vstv %s2730_s8  ;;  %v2799_v5 = vstv %s2742_s9  ;;  %v1142_v32 = vadd.f32 %v1139_v13, %v1135_v26 }
 0x231   : > { %v1025_v24 = vsel %vm1019_vm9, %v1016_v25, %v1022_v1  ;;  %v1193_v36 = vsel %vm1187_vm10, %v1184_v7, %v1190_v4  ;;  %v1219_v18 = vadd.f32 %v2793_v45, %v1211_v37  ;;  %v1113_v21 = vmul.f32 %v2774_v14, %v1109_v11  ;;  %v3058_v25 = vld [vmem:[#allocation16_spill] sm:$0xff]  ;;  %v3059_v11 = vld [vmem:[#allocation21_spill] sm:$0xff] }
 0x232   : > { %v1029_v62 = vmul.f32 %v2788_v46, %v1025_v24  ;;  %v2805_v33 = vstv %s2757_s5  ;;  %v1223_v8 = vmul.f32 %v2799_v5, %v2369_v57  ;;  %v2810_v51 = vstv %s2767_s11 }
 0x233   : > { %vm1145_vm11 = vcmp.gt.f32.partialorder %v1142_v32, 0.0  ;;  %v1148_v12 = vmul.f32 0.2, %v1142_v32  ;;  %v1008_v1 = vadd.f32 %v2671_v59, %v3058_v25  ;;  %v1197_v26 = vmul.f32 %v2796_v60, %v1193_v36 }
 0x234   : > { %v1032_v55 = vadd.f32 %v1029_v62, %v990_v6  ;;  %v1226_v7 = vadd.f32 %v1223_v8, %v1219_v18  ;;  %v1012_v13 = vmul.f32 %v2753_v42, %v2367_v56  ;;  %v1134_v4 = vadd.f32 %v2684_v20, %v3059_v11 }
 0x235   : > { %v1151_v24 = vsel %vm1145_vm11, %v1142_v32, %v1148_v12  ;;  %v1701_v57 = vunpack.c.l.bf16 %v2763_v52  ;;  %v1138_v62 = vmul.f32 %v2785_v63, %v2367_v56  ;;  %vm1102_vm13 = vcmp.gt.f32.partialorder %v2748_v9, 0.0  ;;  %v1089_v32 = vpop.permute.xlu1 %1088 }
 0x236   : > { %v1074_v37 = vadd.f32 %v1071_v50, %v1032_v55  ;;  %vm1229_vm12 = vcmp.gt.f32.partialorder %v1226_v7, 0.0  ;;  %v1232_v6 = vmul.f32 0.2, %v1226_v7  ;;  %v1015_v39 = vadd.f32 %v1012_v13, %v1008_v1 }
 0x237   : > { %v1155_v18 = vmul.f32 %v2805_v33, %v1151_v24  ;;  %v1141_v8 = vadd.f32 %v1138_v62, %v1134_v4  ;;  %vm1186_vm14 = vcmp.gt.f32.partialorder %v1183_v48, 0.0  ;;  %v1189_v50 = vmul.f32 0.2, %v1183_v48 }
 0x238   : > { %v1116_v36 = vadd.f32 %v1113_v21, %v1074_v37  ;;  %v1235_v25 = vsel %vm1229_vm12, %v1226_v7, %v1232_v6  ;;  %vm1018_vm15 = vcmp.gt.f32.partialorder %v1015_v39, 0.0  ;;  %v1021_v11 = vmul.f32 0.2, %v1015_v39 }
 0x239   : > { %v1108_v12 = vsel %vm1102_vm13, %v2748_v9, %v1105_v31  ;;  %vm1144_vm0 = vcmp.gt.f32.partialorder %v1141_v8, 0.0  ;;  %v1147_v23 = vmul.f32 0.2, %v1141_v8  ;;  %v1239_v63 = vmul.f32 %v2810_v51, %v1235_v25 }
 0x23a   : > { %v1158_v55 = vadd.f32 %v1155_v18, %v1116_v36  ;;  %v1024_v1 = vsel %vm1018_vm15, %v1015_v39, %v1021_v11  ;;  %v1218_v21 = vadd.f32 %v2793_v45, %v2532_v44  ;;  %v1222_v13 = vmul.f32 %v2799_v5, %v2367_v56 }
 0x23b   : > { %v1028_v7 = vmul.f32 %v2788_v46, %v1024_v1  ;;  %v1150_v37 = vsel %vm1144_vm0, %v1141_v8, %v1147_v23  ;;  %v1192_v24 = vsel %vm1186_vm14, %v1183_v48, %v1189_v50  ;;  %v2833_v62 = vadd.f32 %v2677_v27, %v1089_v32  ;;  %v3066_v8 = vld [vmem:[#allocation33_spill] sm:$0xff]  ;;  %v3067_v1 = vld [vmem:[#allocation26_spill] sm:$0xff] }
 0x23c   : > { %v1200_v4 = vadd.f32 %v1197_v26, %v1158_v55  ;;  %v2837_v9 = vmul.f32 %v2674_v40, %v2371_v58  ;;  %v3060_v39 = vunpack.c.h.bf16 %v2763_v52  ;;  %v1225_v56 = vadd.f32 %v1222_v13, %v1218_v21  ;;  %v3068_v13 = vld [vmem:[#allocation27_spill] sm:$0xff] }
 0x23d   : > { %vm1253_vm2 = vcmask 162816   ;;  %v1031_v23 = vadd.f32 %v1028_v7, %v2760_v49  ;;  %v1112_v48 = vmul.f32 %v2774_v14, %v1108_v12  ;;  %v1154_v27 = vmul.f32 %v2805_v33, %v1150_v37  ;;  %v3069_v7 = vld [vmem:[#allocation28_spill] sm:$0xff] }
 0x23e   : > { %vm2841_vm1 = vcmp.gt.f32.partialorder %v3060_v39, 0.0  ;;  %v1242_v31 = vadd.f32 %v1239_v63, %v1200_v4  ;;  %v1196_v26 = vmul.f32 %v2796_v60, %v1192_v24  ;;  %vm1228_vm3 = vcmp.gt.f32.partialorder %v1225_v56, 0.0  ;;  %v3065_v63 = vld [vmem:[#allocation25_spill] sm:$0xff] }
 0x23f   : > { %v1231_v40 = vmul.f32 0.2, %v1225_v56  ;;  %v1073_v6 = vadd.f32 %v2770_v47, %v1031_v23  ;;  %vm2854_vm4 = vcmp.gt.f32.partialorder %v1701_v57, 0.0  ;;  %vm600_vm5 = vcmp.gt.f32.partialorder %v2639_v16, 0.0  ;;  %v3070_v24 = vld [vmem:[#allocation29_spill] sm:$0xff] }
 0x240   : > { %v2851_v52 = vsel %vm2841_vm1, %v1242_v31, -1e+30  ;;  %v800_v18 = vadd.f32 %v2504_v10, %v3065_v63  ;;  %v842_v25 = vadd.f32 %v2522_v15, %v3066_v8  ;;  %v603_v11 = vmul.f32 0.2, %v2639_v16 }
 0x241   : > { %v1257_v49 = vsel %vm1253_vm2, %v2851_v52, -inf  ;;  %v1115_v50 = vadd.f32 %v1112_v48, %v1073_v6  ;;  %v1234_v47 = vsel %vm1228_vm3, %v1225_v56, %v1231_v40  ;;  %v926_v57 = vadd.f32 %v2555_v30, %v2571_v35  ;;  %v1005_v30 = vpop.permute.xlu0 %1004  ;;  %v1173_v48 = vpop.permute.xlu1 %1172 }
 0x242   : > { %1258 = vmax.xlane.f32.xlu1 %v1257_v49  ;;  %vm642_vm6 = vcmp.gt.f32.partialorder %v2642_v2, 0.0  ;;  %v606_v32 = vsel %vm600_vm5, %v2639_v16, %v603_v11  ;;  %v645_v55 = vmul.f32 0.2, %v2642_v2  ;;  %vm684_vm7 = vcmp.gt.f32.partialorder %v2653_v29, 0.0 }
 0x243   : > { %v687_v10 = vmul.f32 0.2, %v2653_v29  ;;  %v1157_v12 = vadd.f32 %v1154_v27, %v1115_v50  ;;  %v610_v15 = vmul.f32 %v2379_v61, %v606_v32  ;;  %v720_v21 = vmul.f32 %v3067_v1, %v2371_v58  ;;  %v879_v27 = vpop.permute.xlu2 %878 }
 0x244   : > { %v762_v4 = vmul.f32 %v3068_v13, %v2371_v58  ;;  %v648_v35 = vsel %vm642_vm6, %v2642_v2, %v645_v55  ;;  %v804_v37 = vmul.f32 %v3069_v7, %v2371_v58  ;;  %v846_v39 = vmul.f32 %v3070_v24, %v2371_v58 }
 0x245   : > { %v690_v16 = vsel %vm684_vm7, %v2653_v29, %v687_v10  ;;  %v1199_v56 = vadd.f32 %v1196_v26, %v1157_v12  ;;  %v1238_v61 = vmul.f32 %v2810_v51, %v1234_v47  ;;  %v652_v31 = vmul.f32 %v2385_v0, %v648_v35 }
 0x246   : > { %v723_v23 = vadd.f32 %v720_v21, %v2657_v38  ;;  %v694_v40 = vmul.f32 %v2476_v3, %v690_v16  ;;  %v765_v2 = vadd.f32 %v762_v4, %v2668_v19  ;;  %v807_v29 = vadd.f32 %v804_v37, %v800_v18 }
 0x247   : > { %v849_v6 = vadd.f32 %v846_v39, %v842_v25  ;;  %v1241_v49 = vadd.f32 %v1238_v61, %v1199_v56  ;;  %v655_v63 = vadd.f32 %v652_v31, %v610_v15  ;;  %v884_v3 = vadd.f32 %v2535_v53, %v879_v27  ;;  %v3074_v56 = vld [vmem:[#allocation19_spill] sm:$0xff] }
 0x248   : > { %vm726_vm8 = vcmp.gt.f32.partialorder %v723_v23, 0.0  ;;  %v729_v8 = vmul.f32 0.2, %v723_v23  ;;  %vm768_vm9 = vcmp.gt.f32.partialorder %v765_v2, 0.0  ;;  %v771_v26 = vmul.f32 0.2, %v765_v2 }
 0x249   : > { %vm810_vm10 = vcmp.gt.f32.partialorder %v807_v29, 0.0  ;;  %v813_v11 = vmul.f32 0.2, %v807_v29  ;;  %v2891_v0 = vsel %vm2854_vm4, %v1241_v49, -1e+30  ;;  %v697_v38 = vadd.f32 %v694_v40, %v655_v63  ;;  %v1131_v4 = vpop.permute.xlu0 %1130  ;;  %v1215_v37 = vpop.permute.xlu1 %1214 }
 0x24a   : > { %v732_v50 = vsel %vm726_vm8, %v723_v23, %v729_v8  ;;  %v1254_v19 = vsel %vm1253_vm2, %v2891_v0, -inf  ;;  %v774_v25 = vsel %vm768_vm9, %v765_v2, %v771_v26  ;;  %vm852_vm11 = vcmp.gt.f32.partialorder %v849_v6, 0.0  ;;  %v3075_v23 = vld [vmem:[#allocation36_spill] sm:$0xff] }
 0x24b   : > { %v736_v18 = vmul.f32 %v2479_v41, %v732_v50  ;;  %1255 = vmax.xlane.f32.xlu0 %v1254_v19  ;;  %v778_v47 = vmul.f32 %v2482_v54, %v774_v25  ;;  %v816_v32 = vsel %vm810_vm10, %v807_v29, %v813_v11  ;;  %v855_v55 = vmul.f32 0.2, %v849_v6  ;;  %v3078_v50 = vld [vmem:[#allocation32_spill] sm:$0xff] }
 0x24c   : > { %v888_v10 = vmul.f32 %v2467_v17, %v2371_v58  ;;  %v930_v15 = vmul.f32 %v2507_v43, %v2371_v58  ;;  %v1010_v53 = vadd.f32 %v2671_v59, %v1005_v30  ;;  %v1014_v1 = vmul.f32 %v2753_v42, %v2371_v58  ;;  %v3071_v42 = vld [vmem:[#allocation24_spill] sm:$0xff] }
 0x24d   : > { %v739_v12 = vadd.f32 %v736_v18, %v697_v38  ;;  %v1059_v41 = vadd.f32 %v2746_v34, %v2726_v28  ;;  %v1101_v54 = vadd.f32 %v2837_v9, %v2833_v62  ;;  %v858_v21 = vsel %vm852_vm11, %v849_v6, %v855_v55  ;;  %v3072_v34 = vld [vmem:[#allocation34_spill] sm:$0xff]  ;;  %v3077_v38 = vld [vmem:[#allocation31_spill] sm:$0xff] }
 0x24e   : > { %v891_v13 = vadd.f32 %v888_v10, %v884_v3  ;;  %v820_v17 = vmul.f32 %v2489_v22, %v816_v32  ;;  %v933_v16 = vadd.f32 %v930_v15, %v926_v57  ;;  %v1017_v7 = vadd.f32 %v1014_v1, %v1010_v53  ;;  %v3073_v9 = vld [vmem:[#allocation30_spill] sm:$0xff] }
 0x24f   : > { %v781_v35 = vadd.f32 %v778_v47, %v739_v12  ;;  %v1136_v59 = vadd.f32 %v2684_v20, %v1131_v4  ;;  %v1140_v30 = vmul.f32 %v3071_v42, %v2371_v58  ;;  %v862_v24 = vmul.f32 %v3072_v34, %v858_v21  ;;  %v3079_v55 = vld [vmem:[#allocation14_spill] sm:$0xff]  ;;  %v385_v21 = vld [vmem:[%s2735_s4 + $0x8] sm:$0x3] }
 0x250   : > { %vm894_vm12 = vcmp.gt.f32.partialorder %v891_v13, 0.0  ;;  %v897_v43 = vmul.f32 0.2, %v891_v13  ;;  %vm936_vm13 = vcmp.gt.f32.partialorder %v933_v16, 0.0  ;;  %v939_v62 = vmul.f32 0.2, %v933_v16 }
 0x251   : > { %v823_v28 = vadd.f32 %v820_v17, %v781_v35  ;;  %v1178_v39 = vadd.f32 %v3073_v9, %v1173_v48  ;;  %v1182_v22 = vmul.f32 %v3074_v56, %v2371_v58  ;;  %v1023_v61 = vmul.f32 0.2, %v1017_v7  ;;  %v3076_v48 = vld [vmem:[#allocation37_spill] sm:$0xff] }
 0x252   : > { %v900_v57 = vsel %vm894_vm12, %v891_v13, %v897_v43  ;;  %v942_v20 = vsel %vm936_vm13, %v933_v16, %v939_v62  ;;  %vm1020_vm14 = vcmp.gt.f32.partialorder %v1017_v7, 0.0  ;;  %v1065_v40 = vmul.f32 0.2, %v1059_v41 }
 0x253   : > { %v865_v31 = vadd.f32 %v862_v24, %v823_v28  ;;  %v904_v27 = vmul.f32 %v3075_v23, %v900_v57  ;;  %v1220_v2 = vadd.f32 %v2793_v45, %v1215_v37  ;;  %v1224_v29 = vmul.f32 %v2799_v5, %v2371_v58 }
 0x254   : > { %v1143_v6 = vadd.f32 %v1140_v30, %v1136_v59  ;;  %vm1062_vm15 = vcmp.gt.f32.partialorder %v1059_v41, 0.0  ;;  %v946_v63 = vmul.f32 %v3076_v48, %v942_v20  ;;  %v1107_v8 = vmul.f32 0.2, %v1101_v54 }
 0x255   : > { %v907_v49 = vadd.f32 %v904_v27, %v865_v31  ;;  %v1185_v26 = vadd.f32 %v1182_v22, %v1178_v39  ;;  %v1026_v11 = vsel %vm1020_vm14, %v1017_v7, %v1023_v61  ;;  %v988_v3 = vmul.f32 %v3078_v50, %v3077_v38 }
 0x256   : > { %vm1104_vm0 = vcmp.gt.f32.partialorder %v1101_v54, 0.0  ;;  %v1068_v18 = vsel %vm1062_vm15, %v1059_v41, %v1065_v40  ;;  %v1227_v25 = vadd.f32 %v1224_v29, %v1220_v2  ;;  %v1149_v45 = vmul.f32 0.2, %v1143_v6 }
 0x257   : > { %v949_v19 = vadd.f32 %v946_v63, %v907_v49  ;;  %v1030_v58 = vmul.f32 %v2788_v46, %v1026_v11  ;;  %vm1146_vm3 = vcmp.gt.f32.partialorder %v1143_v6, 0.0  ;;  %v1110_v5 = vsel %vm1104_vm0, %v1101_v54, %v1107_v8 }
 0x258   : > { %v1191_v32 = vmul.f32 0.2, %v1185_v26  ;;  %v1072_v10 = vmul.f32 %v3079_v55, %v1068_v18  ;;  %vm1188_vm5 = vcmp.gt.f32.partialorder %v1185_v26, 0.0  ;;  %v1233_v15 = vmul.f32 0.2, %v1227_v25 }
 0x259   : > { %v991_v47 = vadd.f32 %v988_v3, %v949_v19  ;;  %v1152_v53 = vsel %vm1146_vm3, %v1143_v6, %v1149_v45  ;;  %v1114_v1 = vmul.f32 %v2774_v14, %v1110_v5  ;;  %vm1230_vm6 = vcmp.gt.f32.partialorder %v1227_v25, 0.0 }
 0x25a   : > { %v1194_v41 = vsel %vm1188_vm5, %v1185_v26, %v1191_v32  ;;  %v1156_v35 = vmul.f32 %v2805_v33, %v1152_v53  ;;  %v1236_v17 = vsel %vm1230_vm6, %v1227_v25, %v1233_v15  ;;  %v1246_v46 = vunpack.c.l.bf16 %v385_v21 }
 0x25b   : > { %v1033_v12 = vadd.f32 %v1030_v58, %v991_v47  ;;  %v1198_v54 = vmul.f32 %v2796_v60, %v1194_v41  ;;  %v1240_v43 = vmul.f32 %v2810_v51, %v1236_v17  ;;  %vm1260_vm8 = vcmask 158720  }
 0x25c   : > { %vm2931_vm7 = vcmp.gt.f32.partialorder %v1246_v46, 0.0  ;;  %vm1363_vm6 = vcmask 1043456  }
 0x25d   : > { %v1075_v13 = vadd.f32 %v1072_v10, %v1033_v12 }
 0x25f   : > { %v1117_v4 = vadd.f32 %v1114_v1, %v1075_v13 }
 0x261   : > { %v1159_v16 = vadd.f32 %v1156_v35, %v1117_v4 }
 0x263   : > { %v1201_v7 = vadd.f32 %v1198_v54, %v1159_v16  ;;  %v1983_v54 = vmov 20.0  }
 0x265   : > { %v1243_v14 = vadd.f32 %v1240_v43, %v1201_v7 }
 0x267   : > { %v1252_v42 = vsel %vm2931_vm7, %v1243_v14, -1e+30 }
 0x268   : > { %v1261_v30 = vsel %vm1260_vm8, %v1252_v42, -inf }
 0x269   : > { %1262 = vmax.xlane.f32.xlu0 %v1261_v30 }
 0x2b5   : > { %v1259_v33 = vpop.xlane.xlu1 %1258 }
 0x2b6   : > { %v1265_v37 = vsub.f32 %v2851_v52, %v1259_v33 }
 0x2b8   : > { %v1269_v28 = vmul.f32 1.442695, %v1265_v37 }
 0x2ba   : > { %1843 = vpow2.f32 %v1269_v28 }
 0x2be   : > { %v1256_v60 = vpop.xlane.xlu0 %1255 }
 0x2bf   : > { %v1264_v51 = vsub.f32 %v2891_v0, %v1256_v60 }
 0x2c0   : > { %v1844_v34 = vpop.eup %1843 }
 0x2c1   : > { %v1274_v24 = vsel %vm2841_vm1, %v1844_v34, 0.0  ;;  %v1267_v62 = vmul.f32 1.442695, %v1264_v51 }
 0x2c2   : > { %v1279_v9 = vsel %vm1253_vm2, %v1274_v24, 0.0 }
 0x2c3   : > { %1280 = vadd.xlane.f32.xlu2 %v1279_v9  ;;  %1845 = vpow2.f32 %v1267_v62 }
 0x2c9   : > { %v1846_v39 = vpop.eup %1845 }
 0x2ca   : > { %v1273_v56 = vsel %vm2854_vm4, %v1846_v39, 0.0 }
 0x2cb   : > { %v1276_v52 = vsel %vm1253_vm2, %v1273_v56, 0.0 }
 0x2cc   : > { %1277 = vadd.xlane.f32.xlu1 %v1276_v52 }
 0x2dc   : > { %v1263_v22 = vpop.xlane.xlu0 %1262 }
 0x2dd   : > { %v1266_v57 = vsub.f32 %v1252_v42, %v1263_v22 }
 0x2df   : > { %v1271_v61 = vmul.f32 1.442695, %v1266_v57 }
 0x2e1   : > { %1847 = vpow2.f32 %v1271_v61 }
 0x2e7   : > { %v1848_v0 = vpop.eup %1847 }
 0x2e8   : > { %v1275_v44 = vsel %vm2931_vm7, %v1848_v0, 0.0 }
 0x2e9   : > { %v1282_v31 = vsel %vm1260_vm8, %v1275_v44, 0.0 }
 0x2ea   : > { %1283 = vadd.xlane.f32.xlu0 %v1282_v31 }
 0x336   : > { %v1281_v23 = vpop.xlane.xlu2 %1280 }
 0x337   : > { %1849 = vrcp.f32 %v1281_v23  ;;  %v1311_v49 = vand.u32 2147483648, %v1281_v23  ;;  %vm1305_vm4 = vweird.f32 %v1281_v23  ;;  %v1309_v48 = vand.u32 2147483647, %v1281_v23 }
 0x339   : > { %v1312_v11 = vor.u32 1.1754944e-38, %v1311_v49  ;;  %vm1310_vm10 = vcmp.eq.f32.partialorder %v1309_v48, 8.507059e+37 }
 0x33d   : > { %v1850_v27 = vpop.eup %1849 }
 0x33e   : > { %v1301_v20 = vmul.f32 %v1850_v27, %v1281_v23  ;;  %vm1306_vm1 = vweird.f32 %v1850_v27 }
 0x33f   : > { %v1278_v40 = vpop.xlane.xlu1 %1277  ;;  %vm1307_vm9 = vmor %vm1305_vm4, %vm1306_vm1 }
 0x340   : > { %v1302_v36 = vsub.f32 1.0, %v1301_v20  ;;  %1851 = vrcp.f32 %v1278_v40  ;;  %v1296_v38 = vand.u32 2147483648, %v1278_v40  ;;  %v1294_v3 = vand.u32 2147483647, %v1278_v40 }
 0x341   : > { %vm1290_vm12 = vweird.f32 %v1278_v40 }
 0x342   : > { %v1303_v2 = vmul.f32 %v1850_v27, %v1302_v36  ;;  %v1297_v25 = vor.u32 1.1754944e-38, %v1296_v38  ;;  %vm1295_vm14 = vcmp.eq.f32.partialorder %v1294_v3, 8.507059e+37 }
 0x344   : > { %v1304_v29 = vadd.f32 %v1850_v27, %v1303_v2 }
 0x346   : > { %v1852_v6 = vpop.eup %1851  ;;  %v1308_v8 = vsel %vm1307_vm9, %v1850_v27, %v1304_v29 }
 0x347   : > { %v1286_v63 = vmul.f32 %v1852_v6, %v1278_v40  ;;  %vm1291_vm11 = vweird.f32 %v1852_v6  ;;  %v1313_v19 = vsel %vm1310_vm10, %v1312_v11, %v1308_v8 }
 0x348   : > { %vm1292_vm13 = vmor %vm1290_vm12, %vm1291_vm11  ;;  %v1314_v47 = vmul.f32 %v1313_v19, %v1274_v24 }
 0x349   : > { %v1287_v26 = vsub.f32 1.0, %v1286_v63 }
 0x34b   : > { %v1288_v50 = vmul.f32 %v1852_v6, %v1287_v26 }
 0x34d   : > { %v1289_v18 = vadd.f32 %v1852_v6, %v1288_v50 }
 0x34f   : > { %v1293_v45 = vsel %vm1292_vm13, %v1852_v6, %v1289_v18 }
 0x350   : > { %v1298_v58 = vsel %vm1295_vm14, %v1297_v25, %v1293_v45 }
 0x351   : > { %v1299_v5 = vmul.f32 %v1298_v58, %v1273_v56 }
 0x353   : > { %v1330_v32 = vpack.c.bf16 %v1314_v47, %v1299_v5 }
 0x355   : > { %1676 = vmatmul.msk.bf16.vlgmr.msra.gmra.mxu2 %vm1253_vm2, %v1330_v32 }
 0x35d   : > { %v1284_v55 = vpop.xlane.xlu0 %1283 }
 0x35e   : > { %1853 = vrcp.f32 %v1284_v55  ;;  %v1326_v53 = vand.u32 2147483648, %v1284_v55  ;;  %v1324_v21 = vand.u32 2147483647, %v1284_v55  ;;  %vm1320_vm0 = vweird.f32 %v1284_v55 }
 0x35f   : > { %1855 = vrcp.f32 %v1983_v54 }
 0x360   : > { %v1327_v41 = vor.u32 1.1754944e-38, %v1326_v53  ;;  %vm1325_vm5 = vcmp.eq.f32.partialorder %v1324_v21, 8.507059e+37 }
 0x364   : > { %v1854_v10 = vpop.eup %1853 }
 0x365   : > { %v1316_v12 = vmul.f32 %v1854_v10, %v1284_v55  ;;  %vm1321_vm15 = vweird.f32 %v1854_v10  ;;  %v1856_v43 = vpop.eup %1855 }
 0x366   : > { %vm1322_vm3 = vmor %vm1320_vm0, %vm1321_vm15  ;;  %v1373_v59 = vmul.f32 20.0, %v1856_v43 }
 0x367   : > { %v1317_v15 = vsub.f32 1.0, %v1316_v12 }
 0x368   : > { %v1374_v33 = vsub.f32 1.0, %v1373_v59 }
 0x369   : > { %v1318_v1 = vmul.f32 %v1854_v10, %v1317_v15 }
 0x36a   : > { %v1375_v60 = vmul.f32 %v1856_v43, %v1374_v33 }
 0x36b   : > { %v1319_v13 = vadd.f32 %v1854_v10, %v1318_v1 }
 0x36c   : > { %v1376_v62 = vadd.f32 %v1856_v43, %v1375_v60 }
 0x36d   : > { %v1323_v4 = vsel %vm1322_vm3, %v1854_v10, %v1319_v13 }
 0x36e   : > { %v1328_v35 = vsel %vm1325_vm5, %v1327_v41, %v1323_v4 }
 0x36f   : > { %v1329_v17 = vmul.f32 %v1328_v35, %v1275_v44 }
 0x371   : > { %v1331_v46 = vpack.c.bf16 %v1329_v17, %v1329_v17 }
 0x373   : > { %1677 = vmatmul.msk.bf16.gmra.mxu2 %vm1253_vm2, %v1331_v46  ;;  %vm1377_vm2 = vweird.f32 %v1856_v43 }
 0x374   : > { %v1378_v56 = vsel %vm1377_vm2, %v1856_v43, %v1376_v62 }
 0x3d8   : > { %v1353_v16 = vpop.f32.mrf.mxu2 }
 0x3e0   : > { %v1355_v7 = vpop.f32.mrf.mxu2 }
 0x3e1   : > { %v1362_v14 = vadd.f32 %v1355_v7, %v1353_v16 }
 0x3f6   : > { %v1358_v42 = vpop.f32.mrf.mxu2 }
 0x3f7   : > { %v1364_v30 = vsel %vm1363_vm6, %v1358_v42, 0.0 }
 0x3f8   : > { %v1365_v37 = vadd.f32 %v1364_v30, %v1362_v14 }
 0x3fa   : > { %v1366_v28 = vrot.slane %v1365_v37, 4 }
 0x3fc   : > { %v1367_v34 = vadd.f32 %v1366_v28, %v1365_v37 }
 0x3fe   : > { %v1368_v51 = vrot.slane %v1367_v34, 2  ;;  %v1360_v24 = vpop.f32.mrf.mxu2 }
 0x400   : > { %v1369_v9 = vadd.f32 %v1368_v51, %v1367_v34 }
 0x402   : > { %v1370_v39 = vrot.slane %v1369_v9, 1 }
 0x404   : > { %v1371_v52 = vadd.f32 %v1370_v39, %v1369_v9 }
 0x406   : > { %v1379_v22 = vmul.f32 %v1378_v56, %v1371_v52 }
 0x408   : > { %v1380_v57 = vsub.f32 %v1353_v16, %v1379_v22  ;;  %v1381_v61 = vsub.f32 %v1355_v7, %v1379_v22  ;;  %v1382_v0 = vsub.f32 %v1358_v42, %v1379_v22 }
 0x40a   : > { %v1383_v44 = vmul.f32 %v1380_v57, %v1380_v57  ;;  %v1384_v31 = vmul.f32 %v1381_v61, %v1381_v61  ;;  %v1385_v23 = vmul.f32 %v1382_v0, %v1382_v0 }
 0x40c   : > { %v1386_v27 = vadd.f32 %v1384_v31, %v1383_v44  ;;  %v1387_v20 = vsel %vm1363_vm6, %v1385_v23, 0.0 }
 0x40e   : > { %v1388_v36 = vadd.f32 %v1387_v20, %v1386_v27 }
 0x410   : > { %v1389_v40 = vrot.slane %v1388_v36, 4 }
 0x412   : > { %v1390_v2 = vadd.f32 %v1389_v40, %v1388_v36 }
 0x414   : > { %v1391_v29 = vrot.slane %v1390_v2, 2 }
 0x416   : > { %v1392_v6 = vadd.f32 %v1391_v29, %v1390_v2 }
 0x418   : > { %v1393_v49 = vrot.slane %v1392_v6, 1 }
 0x41a   : > { %v1394_v48 = vadd.f32 %v1393_v49, %v1392_v6 }
 0x41c   : > { %v1395_v63 = vmul.f32 %v1394_v48, %v1378_v56 }
 0x41e   : > { %v1396_v8 = vadd.f32 1e-05, %v1395_v63 }
 0x420   : > { %1857 = vrsqrt.f32 %v1396_v8  ;;  %vm1403_vm8 = vweird.f32 %v1396_v8 }
 0x426   : > { %v1858_v26 = vpop.eup %1857 }
 0x427   : > { %v1398_v11 = vmul.f32 %v1858_v26, %v1396_v8  ;;  %vm1404_vm7 = vweird.f32 %v1858_v26 }
 0x428   : > { %vm1405_vm1 = vmor %vm1403_vm8, %vm1404_vm7 }
 0x429   : > { %v1399_v38 = vmul.f32 %v1858_v26, %v1398_v11 }
 0x42b   : > { %v1400_v50 = vmul.f32 0.5, %v1399_v38 }
 0x42d   : > { %v1401_v3 = vsub.f32 1.5, %v1400_v50 }
 0x42f   : > { %v1402_v19 = vmul.f32 %v1858_v26, %v1401_v3 }
 0x431   : > { %v1406_v18 = vsel %vm1405_vm1, %v1858_v26, %v1402_v19 }
 0x432   : > { %v1407_v25 = vmul.f32 %v1406_v18, %v1380_v57  ;;  %v1408_v45 = vmul.f32 %v1406_v18, %v1381_v61  ;;  %v1409_v47 = vmul.f32 %v1406_v18, %v1382_v0 }
 0x434   : > { %vm1410_vm4 = vcmp.gt.f32.partialorder %v1407_v25, 0.0  ;;  %vm1411_vm9 = vcmp.gt.f32.partialorder %v1408_v45, 0.0  ;;  %vm1412_vm10 = vcmp.gt.f32.partialorder %v1409_v47, 0.0  ;;  %v1413_v58 = vmul.f32 0.2, %v1407_v25 }
 0x435   : > { %v1414_v5 = vmul.f32 0.2, %v1408_v45  ;;  %v1415_v32 = vmul.f32 0.2, %v1409_v47  ;;  %1428 = sbr.rel (!%p2072_p10) target bundleno = 1090 (0x442), region = 64 }
 0x436   : > { %v1416_v55 = vsel %vm1410_vm4, %v1407_v25, %v1413_v58 }
 0x437   : > { %v1417_v10 = vsel %vm1411_vm9, %v1408_v45, %v1414_v5  ;;  %v1418_v12 = vsel %vm1412_vm10, %v1409_v47, %v1415_v32  ;;  %1419 = vst [vmem:[%s364_s13] sm:$0xff] %v1416_v55 }
 0x438   : > { %1420 = vst [vmem:[%s364_s13 + $0x8] sm:$0xff] %v1417_v10 }
 0x439   : > { %1421 = vst [vmem:[%s364_s13 + $0x10] sm:$0xf] %v1418_v12 }
 0x43e   : > { %v1463_v15 = vld [vmem:[%s364_s13] sm:$0xff] }
 0x43f   : > { %v1465_v53 = vld [vmem:[%s364_s13 + $0x8] sm:$0xff]  ;;  %1464 = vst [vmem:[%s1430_s17] sm:$0xff] %v1463_v15 }
 0x440   : > { %v1467_v1 = vld [vmem:[%s364_s13 + $0x10] sm:$0xff]  ;;  %1466 = vst [vmem:[%s1430_s17 + $0x10] sm:$0xff] %v1465_v53 }
 0x441   : > { %1468 = vst [vmem:[%s1430_s17 + $0x20] sm:$0xff] %v1467_v1 }
 0x442 PF: > { %s3082_s18 = sld [smem:[#allocation12_spill]]  ;;  %p19_p8 = scmp.ge.s32.totalorder %s2046_s29, 4  }
 0x443   : > { %s3083_s24 = smov %s1953_s25  ;;  %s3084_s25 = smov %s1957_s26 }
 0x444   : > { %s3086_s27 = smov %s2046_s29  ;;  %21 = sbr.rel (!%p19_p8) target bundleno = 11 (0xb), region = 144 }
 0x448   : > { %s3085_s26 = smov %s3082_s18 }
 0x449   :  { %1484 = vsyncpa [#allocation3], 1 }
 0x44a   :  { %1486 = vsyncpa [#allocation3 + $0x1], 1 }
 0x44b   :  { %1487 = vsyncpa [#allocation4], 1 }
 0x44c   :  { %1489 = vsyncpa [#allocation4 + $0x1], 1 }
 0x44d   :  { %1490 = vsyncpa [#allocation7], 1 }

// kernel: forward.7
= control target key start
LH: loop header
LB: loop body
LE: loop exit
PB: predicated region body
PF: predicated region fallthrough
CT: control target
= control target key end

     0   :  { %21 = vsyncpa [#allocation4], 0  ;;  %s2882_s0 = inlined_call_operand.vmem [shape: f32[20,256], index: 0, kind: input, shape index: {}]   ;;  %s2883_s1 = inlined_call_operand.vmem [shape: f32[20,1], index: 1, kind: input, shape index: {}]   ;;  %s2884_s2 = inlined_call_operand.vmem [shape: f32[20,4], index: 2, kind: input, shape index: {}]   ;;  %s2885_s3 = inlined_call_operand.vmem [shape: bf16[4,128], index: 3, kind: input, shape index: {}]   ;;  %s2886_s4 = inlined_call_operand.vmem [shape: bf16[4,4], index: 4, kind: input, shape index: {}]   ;;  %s2887_s5 = inlined_call_operand.hbm [shape: bf16[256,256], index: 5, kind: input, shape index: {}]   ;;  %s2888_s6 = inlined_call_operand.vmem [shape: f32[1,256], index: 6, kind: input, shape index: {}]   ;;  %s2889_s7 = inlined_call_operand.vmem [shape: bf16[128,256], index: 7, kind: input, shape index: {}]   ;;  %s2890_s8 = inlined_call_operand.vmem [shape: f32[1,256], index: 8, kind: input, shape index: {}]   ;;  %s2891_s9 = inlined_call_operand.vmem [shape: f32[2,16], index: 9, kind: input, shape index: {}]   ;;  %s2892_s10 = inlined_call_operand.vmem [shape: bf16[256,128], index: 10, kind: input, shape index: {}]   ;;  %s2893_s11 = inlined_call_operand.vmem [shape: f32[1,128], index: 11, kind: input, shape index: {}]   ;;  %s2894_s12 = inlined_call_operand.vmem [shape: bf16[128,2], index: 12, kind: input, shape index: {}]   ;;  %s2895_s13 = inlined_call_operand.vmem [shape: f32[1,2], index: 13, kind: input, shape index: {}]   ;;  %s2896_s14 = inlined_call_operand.vmem [shape: f32[4,2], index: 14, kind: output, shape index: {0}]   ;;  %s2897_s15 = inlined_call_operand.vmem [shape: f32[4,2], index: 15, kind: output, shape index: {1}]  }
   0x1   :  { %s37_s20 = sshll.u32 %s2887_s5, 4  ;;  %s38_s20 = int_to_ptr.hbm [resolvable:$true] %s37_s20 }
   0x2   :  { %22 = vsyncpa [#allocation5], 0  ;;  %s2164_s21 = smov [#allocation3]   ;;  %s57_s25 = sshll.u32 %s2891_s9, 4  ;;  %s58_s25 = int_to_ptr.vmem [resolvable:$true] %s57_s25 }
   0x3   :  { %s39_s22 = sshll.u32 %s2164_s21, 4  ;;  %s2165_s26 = smov 128   ;;  %s40_s22 = int_to_ptr.vmem [resolvable:$true] %s39_s22 }
   0x4   :  { %s2166_s27 = smov 8   ;;  %s2167_s28 = smov [#allocation6]  }
   0x5   :  { %45 = dma.hbm_to_vmem [thread:$0]  %s38_s20, 4096, %s40_s22, [#allocation4], %s2165_s26, %s2165_s26, %s2166_s27  }
   0x6   :  { %60 = dma.vmem_to_smem %s58_s25, 32, %s2167_s28, [#allocation5]  }
   0x7   :  { %2160 = dma.done.wait [#allocation4], 4096  }
   0x8   :  { %2161 = vsyncadd [#allocation4], 4294963200 }
   0x9   :  { %2162 = dma.done.wait [#allocation5], 32  }
   0xa   :  { %2163 = vsyncadd [#allocation5], 4294967264 }
   0xb   :  { %77 = sfence }
   0xc   :  { %v87_v0 = vld [vmem:[%s2883_s1 + $0x10] sm:$0xf]  ;;  %v2168_v2 = vmov 0   ;;  %v2169_v4 = vmov 2   ;;  %v85_v9 = vld [vmem:[%s2883_s1] sm:$0xff]  ;;  %v2170_v12 = vmov 1  }
   0xd   :  { %v111_v1 = vld [vmem:[%s2884_s2 + $0x10] sm:$0xf]  ;;  %2063 = vset.pattern.permute.xlu0 %v2168_v2  ;;  %2064 = vset.pattern.permute.xlu1 %v2168_v2  ;;  %v109_v11 = vld [vmem:[%s2884_s2] sm:$0xff]  ;;  %v2171_v14 = vmov 3   ;;  %v271_v16 = vld [vmem:[%s2884_s2 + $0x8] sm:$0xff]  ;;  %vm136_vm9 = vcmask 1043456  }
   0xe   :  { %vm114_vm0 = vcmp.gt.f32.partialorder %v111_v1, 0.0  ;;  %100 = vperm.xlu0 %2063, %v87_v0   ;;  %2066 = vset.pattern.permute.xlu2 %v2169_v4  ;;  %v220_v5 = vld [vmem:[%s2884_s2 + $0x10] sm:$0xf]  ;;  %vm112_vm4 = vcmp.gt.f32.partialorder %v109_v11, 0.0  ;;  %v86_v17 = vld [vmem:[%s2883_s1 + $0x8] sm:$0xff]  ;;  %vm274_vm5 = vcmp.gt.f32.partialorder %v271_v16, 0.0 }
   0xf   :  { %v117_v3 = vsel %vm114_vm0, 1, %v2168_v2  ;;  %v168_v6 = vld [vmem:[%s2884_s2 + $0x10] sm:$0xf]  ;;  %vm223_vm1 = vcmp.gt.f32.partialorder %v220_v5, 0.0  ;;  %v115_v15 = vsel %vm112_vm4, 1, %v2168_v2  ;;  %v277_v18 = vsel %vm274_vm5, 1, %v2168_v2 }
  0x10   :  { %125 = vperm.xlu1 %2064, %v117_v3   ;;  %v226_v7 = vsel %vm223_vm1, 1, %v2168_v2  ;;  %v272_v8 = vld [vmem:[%s2884_s2 + $0x10] sm:$0xf]  ;;  %vm171_vm2 = vcmp.gt.f32.partialorder %v168_v6, 0.0  ;;  %v83_v22 = vld [vmem:[%s2882_s0 + $0x20] sm:$0xf] }
  0x11   :  { %234 = vperm.xlu2 %2066, %v226_v7   ;;  %vm275_vm3 = vcmp.gt.f32.partialorder %v272_v8, 0.0  ;;  %v174_v10 = vsel %vm171_vm2, 1, %v2168_v2  ;;  %v1983_v24 = vld [vmem:[#allocation3 + $0x74] sm:$0xf]  ;;  %v1708_v25 = vld [vmem:[#allocation3 + $0x78] sm:$0xf0] }
  0x12   :  { %v278_v13 = vsel %vm275_vm3, 1, %v2168_v2  ;;  %v84_v26 = vld [vmem:[%s2882_s0 + $0x28] sm:$0xf]  ;;  %v1711_v27 = vor.u32 %v1983_v24, %v1708_v25  ;;  %v79_v31 = vld [vmem:[%s2882_s0] sm:$0xff]  ;;  %v1981_v32 = vld [vmem:[#allocation3 + $0x64] sm:$0xf] }
  0x13   :  { %v1700_v33 = vld [vmem:[#allocation3 + $0x68] sm:$0xf0]  ;;  %v80_v39 = vld [vmem:[%s2882_s0 + $0x8] sm:$0xff]  ;;  %v1979_v46 = vld [vmem:[#allocation3 + $0x54] sm:$0xf]  ;;  %vm158_vm2 = vcmask 1040384  }
  0x14   :  { %558 = vmatpush.bf16.msra.mxu2 %v1711_v27  ;;  %v1703_v35 = vor.u32 %v1981_v32, %v1700_v33  ;;  %v1692_v47 = vld [vmem:[#allocation3 + $0x58] sm:$0xf0]  ;;  %v1706_v55 = vld [vmem:[#allocation3 + $0x70] sm:$0xf]  ;;  %v1984_v59 = vld [vmem:[#allocation3 + $0x74] sm:$0xf0] }
  0x15   :  { %v1695_v50 = vor.u32 %v1979_v46, %v1692_v47  ;;  %v1707_v60 = vor.u32 %v1984_v59, %v1706_v55  ;;  %v1770_v61 = vld [vmem:[#allocation3 + $0xf0] sm:$0xf]  ;;  %v2000_v62 = vld [vmem:[#allocation3 + $0xf4] sm:$0xf0]  ;;  %v1999_v63 = vld [vmem:[#allocation3 + $0xf4] sm:$0xf] }
  0x16   :  { %90 = vperm.xlu0 %2063, %v85_v9   ;;  %v1771_v1 = vor.u32 %v2000_v62, %v1770_v61  ;;  %v1772_v3 = vld [vmem:[#allocation3 + $0xf8] sm:$0xf0]  ;;  %v1977_v5 = vld [vmem:[#allocation3 + $0x44] sm:$0xf]  ;;  %v1684_v9 = vld [vmem:[#allocation3 + $0x48] sm:$0xf0] }
  0x17   :  { %532 = vmatpush.bf16.msra.mxu0 %v1707_v60  ;;  %v1775_v8 = vor.u32 %v1999_v63, %v1772_v3  ;;  %v1762_v16 = vld [vmem:[#allocation3 + $0xe0] sm:$0xf]  ;;  %v1997_v24 = vld [vmem:[#allocation3 + $0xe4] sm:$0xf]  ;;  %v1764_v25 = vld [vmem:[#allocation3 + $0xe8] sm:$0xf0] }
  0x18   :  { %2065 = vset.pattern.permute.xlu1 %v2170_v12  ;;  %559 = vmatpush.bf16.msra.mxu2 %v1703_v35  ;;  %v1980_v32 = vld [vmem:[#allocation3 + $0x54] sm:$0xf0]  ;;  %v1754_v35 = vld [vmem:[#allocation3 + $0xd0] sm:$0xf]  ;;  %v1668_v46 = vld [vmem:[#allocation3 + $0x28] sm:$0xf0] }
  0x19   :  { %182 = vperm.xlu1 %2065, %v174_v10   ;;  %2067 = vset.pattern.permute.xlu2 %v2171_v14  ;;  %v1698_v10 = vld [vmem:[#allocation3 + $0x60] sm:$0xf]  ;;  %v1994_v63 = vld [vmem:[#allocation3 + $0xc4] sm:$0xf0]  ;;  %v1748_v3 = vld [vmem:[#allocation3 + $0xc8] sm:$0xf0] }
  0x1a   :  { %286 = vperm.xlu2 %2067, %v278_v13   ;;  %545 = vmatpush.bf16.msra.mxu1 %v1771_v1  ;;  %v1687_v13 = vor.u32 %v1977_v5, %v1684_v9  ;;  %v1682_v55 = vld [vmem:[#allocation3 + $0x40] sm:$0xf]  ;;  %v1993_v1 = vld [vmem:[#allocation3 + $0xc4] sm:$0xf]  ;;  %vm858_vm5 = vcmask 1041408   ;;  %s2628_s1 = sld [smem:[#allocation6 + $0x2]] }
  0x1b   :  { %571 = vmatpush.bf16.msra.mxu3 %v1775_v8  ;;  %v1746_v59 = vld [vmem:[#allocation3 + $0xc0] sm:$0xf]  ;;  %v1660_v8 = vld [vmem:[#allocation3 + $0x18] sm:$0xf0]  ;;  %s2631_s2 = sld [smem:[#allocation6 + $0x3]] }
  0x1c   :  { %560 = vmatpush.bf16.msra.mxu2 %v1695_v50  ;;  %v1747_v5 = vor.u32 %v1994_v63, %v1746_v59  ;;  %s2639_s29 = sld [smem:[#allocation6 + $0x4]] }
  0x1d   :  { %s2645_s30 = sld [smem:[#allocation6 + $0x5]] }
  0x1e   :  { %119 = vperm.xlu0 %2063, %v115_v15   ;;  %s2652_s16 = sld [smem:[#allocation6 + $0x6]] }
  0x1f   :  { %s2656_s9 = sld [smem:[#allocation6 + $0x7]] }
  0x20   :  { %561 = vmatpush.bf16.msra.mxu2 %v1687_v13  ;;  %s2662_s17 = sld [smem:[#allocation6 + $0x8]] }
  0x21   :  { %176 = vperm.xlu1 %2065, %v115_v15   ;;  %s1784_s18 = sld [smem:[#allocation6 + $0x9]] }
  0x22   :  { %2068 = vset.pattern.permute.xlu2 %v2169_v4  ;;  %s1785_s19 = sld [smem:[#allocation6 + $0xa]] }
  0x23   :  { %228 = vperm.xlu2 %2068, %v115_v15   ;;  %s1786_s20 = sld [smem:[#allocation6 + $0xb]] }
  0x24   :  { %s2681_s21 = sld [smem:[#allocation6 + $0xc]] }
  0x25   :  { %s2685_s22 = sld [smem:[#allocation6 + $0xd]] }
  0x26   :  { %2069 = vset.pattern.permute.xlu0 %v2171_v14  ;;  %s1790_s23 = sld [smem:[#allocation6 + $0xf]] }
  0x27   :  { %280 = vperm.xlu0 %2069, %v115_v15   ;;  %v1982_v15 = vld [vmem:[#allocation3 + $0x64] sm:$0xf0]  ;;  %s2713_s26 = sld [smem:[#allocation6 + $0x80]] }
  0x28   :  { %s2718_s27 = sld [smem:[#allocation6 + $0x82]] }
  0x29   :  { %2070 = vset.pattern.permute.xlu1 %v2168_v2  ;;  %s2720_s28 = sld [smem:[#allocation6 + $0x83]] }
  0x2a   :  { %95 = vperm.xlu1 %2070, %v86_v17   ;;  %s2725_s5 = sld [smem:[#allocation6 + $0x84]] }
  0x2b   :  { %2071 = vset.pattern.permute.xlu2 %v2168_v2 }
  0x2c   :  { %122 = vperm.xlu2 %2071, %v277_v18  }
  0x2f   :  { %283 = vperm.xlu0 %2069, %v277_v18  }
  0x32   :  { %2072 = vset.pattern.permute.xlu1 %v2170_v12 }
  0x33   :  { %179 = vperm.xlu1 %2072, %v277_v18  }
  0x34   :  { %2073 = vset.pattern.permute.xlu2 %v2169_v4 }
  0x35   :  { %231 = vperm.xlu2 %2073, %v277_v18  }
  0x3b   :  { %2074 = vset.pattern.permute.xlu1 %v2168_v2 }
  0x6b   :  { %v235_v19 = vpop.permute.xlu2 %234 }
  0x6c   :  { %vm238_vm8 = vcmp.eq.s32.totalorder %v235_v19, 1 }
  0x74   :  { %v287_v20 = vpop.permute.xlu2 %286 }
  0x75   :  { %vm290_vm6 = vcmp.eq.s32.totalorder %v287_v20, 1  ;;  %v1699_v20 = vor.u32 %v1982_v15, %v1698_v10  ;;  %v1674_v15 = vld [vmem:[#allocation3 + $0x30] sm:$0xf] }
  0x77   :  { %533 = vmatpush.bf16.msra.mxu0 %v1699_v20 }
  0x7d   :  { %v229_v30 = vpop.permute.xlu2 %228 }
  0x7e   :  { %vm236_vm10 = vcmp.eq.s32.totalorder %v229_v30, 1  ;;  %v1676_v30 = vld [vmem:[#allocation3 + $0x38] sm:$0xf0] }
  0x80   :  { %v101_v21 = vpop.permute.xlu0 %100 }
  0x81   :  { %v107_v28 = vmul.f32 %v101_v21, %v83_v22  ;;  %v108_v29 = vmul.f32 %v101_v21, %v84_v26  ;;  %v1998_v21 = vld [vmem:[#allocation3 + $0xe4] sm:$0xf0] }
  0x82   :  { %v126_v23 = vpop.permute.xlu1 %125 }
  0x83   :  { %vm129_vm7 = vcmp.eq.s32.totalorder %v126_v23, 1  ;;  %v295_v34 = vsel %vm290_vm6, %v107_v28, -3.4e+38  ;;  %v296_v36 = vsel %vm290_vm6, %v108_v29, -3.4e+38  ;;  %v1763_v23 = vor.u32 %v1998_v21, %v1762_v16 }
  0x84   :  { %v134_v37 = vsel %vm129_vm7, %v107_v28, -3.4e+38  ;;  %v135_v40 = vsel %vm129_vm7, %v108_v29, -3.4e+38  ;;  %v243_v42 = vsel %vm238_vm8, %v107_v28, -3.4e+38 }
  0x85   :  { %v244_v43 = vsel %vm238_vm8, %v108_v29, -3.4e+38  ;;  %v2331_v44 = vsel %vm136_vm9, %v295_v34, -inf  ;;  %v2334_v48 = vsel %vm136_vm9, %v296_v36, -inf  ;;  %v2339_v51 = vsel %vm136_vm9, %v134_v37, -inf  ;;  %546 = vmatpush.bf16.msra.mxu1 %v1763_v23 }
  0x86   :  { %v2342_v52 = vsel %vm136_vm9, %v135_v40, -inf  ;;  %v2345_v53 = vsel %vm136_vm9, %v243_v42, -inf  ;;  %v2348_v54 = vsel %vm136_vm9, %v244_v43, -inf  ;;  %v2355_v58 = vpop.permute.xlu2 %122  ;;  %v1996_v36 = vld [vmem:[#allocation3 + $0xd4] sm:$0xf0] }
  0x87   :  { %vm128_vm14 = vcmp.eq.s32.totalorder %v2355_v58, 1  ;;  %v1995_v37 = vld [vmem:[#allocation3 + $0xd4] sm:$0xf]  ;;  %v1755_v42 = vor.u32 %v1996_v36, %v1754_v35  ;;  %v1756_v43 = vld [vmem:[#allocation3 + $0xd8] sm:$0xf0] }
  0x88   :  { %v91_v38 = vpop.permute.xlu0 %90  ;;  %v1759_v47 = vor.u32 %v1995_v37, %v1756_v43  ;;  %v1738_v21 = vld [vmem:[#allocation3 + $0xb0] sm:$0xf]  ;;  %v1652_v35 = vld [vmem:[#allocation3 + $0x8] sm:$0xf0]  ;;  %v1666_v36 = vld [vmem:[#allocation3 + $0x20] sm:$0xf] }
  0x89   :  { %v2328_v41 = vmul.f32 %v91_v38, %v79_v31  ;;  %v2336_v49 = vmul.f32 %v91_v38, %v80_v39  ;;  %v1690_v31 = vld [vmem:[#allocation3 + $0x50] sm:$0xf]  ;;  %v81_v38 = vld [vmem:[%s2882_s0 + $0x10] sm:$0xff]  ;;  %v82_v39 = vld [vmem:[%s2882_s0 + $0x18] sm:$0xff]  ;;  %547 = vmatpush.bf16.msra.mxu1 %v1755_v42  ;;  %s2687_s0 = sld [smem:[#allocation6 + $0xe]] }
  0x8a   :  { %v1691_v34 = vor.u32 %v1980_v32, %v1690_v31  ;;  %v1974_v42 = vld [vmem:[#allocation3 + $0x24] sm:$0xf0]  ;;  %v1730_v43 = vld [vmem:[#allocation3 + $0xa0] sm:$0xf] }
  0x8b   :  { %v183_v45 = vpop.permute.xlu1 %182  ;;  %v2352_v56 = vsel %vm236_vm10, %v2328_v41, -3.4e+38  ;;  %v2359_v0 = vsel %vm236_vm10, %v2336_v49, -3.4e+38 }
  0x8c   :  { %vm186_vm11 = vcmp.eq.s32.totalorder %v183_v45, 1  ;;  %v1973_v45 = vld [vmem:[#allocation3 + $0x24] sm:$0xf]  ;;  %534 = vmatpush.bf16.msra.mxu0 %v1691_v34  ;;  %v246_v60 = vmax.f32 %v2352_v56, %v2345_v53  ;;  %v255_v9 = vmax.f32 %v2359_v0, %v2348_v54  ;;  %v1976_v0 = vld [vmem:[#allocation3 + $0x34] sm:$0xf0] }
  0x8d   :  { %v191_v57 = vsel %vm186_vm11, %v107_v28, -3.4e+38  ;;  %v192_v6 = vsel %vm186_vm11, %v108_v29, -3.4e+38  ;;  %v1767_v28 = vor.u32 %v1997_v24, %v1764_v25  ;;  %v1975_v29 = vld [vmem:[#allocation3 + $0x34] sm:$0xf]  ;;  %v1671_v50 = vor.u32 %v1973_v45, %v1668_v46  ;;  %548 = vmatpush.bf16.msra.mxu1 %v1747_v5 }
  0x8e   :  { %v2363_v11 = vsel %vm136_vm9, %v191_v57, -inf  ;;  %v2372_v22 = vsel %vm136_vm9, %v192_v6, -inf  ;;  %v1679_v33 = vor.u32 %v1975_v29, %v1676_v30  ;;  %v1978_v57 = vld [vmem:[#allocation3 + $0x44] sm:$0xf0]  ;;  %v1751_v6 = vor.u32 %v1993_v1, %v1748_v3  ;;  %v1991_v24 = vld [vmem:[#allocation3 + $0xb4] sm:$0xf] }
  0x8f   :  { %572 = vmatpush.bf16.msra.mxu3 %v1767_v28  ;;  %v232_v40 = vpop.permute.xlu2 %231  ;;  %v1683_v62 = vor.u32 %v1978_v57, %v1682_v55  ;;  %v1740_v25 = vld [vmem:[#allocation3 + $0xb8] sm:$0xf0]  ;;  %v1990_v45 = vld [vmem:[#allocation3 + $0xa4] sm:$0xf0]  ;;  %v1667_v55 = vor.u32 %v1974_v42, %v1666_v36  ;;  %v1989_v57 = vld [vmem:[#allocation3 + $0xa4] sm:$0xf] }
  0x90   :  { %v120_v7 = vpop.permute.xlu0 %119  ;;  %562 = vmatpush.bf16.msra.mxu2 %v1679_v33  ;;  %vm237_vm0 = vcmp.eq.s32.totalorder %v232_v40, 1  ;;  %v1743_v30 = vor.u32 %v1991_v24, %v1740_v25  ;;  %v2015_v5 = vld [vmem:[%s2889_s7 + $0x74] sm:$0xf] }
  0x91   :  { %vm127_vm12 = vcmp.eq.s32.totalorder %v120_v7, 1  ;;  %v1971_v7 = vld [vmem:[#allocation3 + $0x14] sm:$0xf]  ;;  %535 = vmatpush.bf16.msra.mxu0 %v1683_v62 }
  0x92   :  { %v2366_v17 = vsel %vm127_vm12, %v2328_v41, -3.4e+38  ;;  %v2369_v18 = vsel %vm127_vm12, %v2336_v49, -3.4e+38  ;;  %v1663_v54 = vor.u32 %v1971_v7, %v1660_v8 }
  0x93   :  { %v177_v19 = vpop.permute.xlu1 %176  ;;  %573 = vmatpush.bf16.msra.mxu3 %v1759_v47  ;;  %v138_v10 = vmax.f32 %v2366_v17, %v2339_v51  ;;  %v147_v16 = vmax.f32 %v2369_v18, %v2342_v52  ;;  %v1992_v51 = vld [vmem:[#allocation3 + $0xb4] sm:$0xf0]  ;;  %v161_v17 = vlaneseq  ;;  %v1969_v52 = vld [vmem:[#allocation3 + $0x4] sm:$0xf] }
  0x94   :  { %vm184_vm13 = vcmp.eq.s32.totalorder %v177_v19, 1  ;;  %563 = vmatpush.bf16.msra.mxu2 %v1671_v50  ;;  %v1739_v23 = vor.u32 %v1992_v51, %v1738_v21 }
  0x95   :  { %v2376_v26 = vsel %vm184_vm13, %v2328_v41, -3.4e+38  ;;  %v2379_v27 = vsel %vm184_vm13, %v2336_v49, -3.4e+38  ;;  %vm2431_vm3 = vcmp.lt.s32.totalorder %v161_v17, 256 }
  0x96   :  { %v203_v37 = vmax.f32 %v2379_v27, %v2372_v22  ;;  %549 = vmatpush.bf16.msra.mxu1 %v1739_v23  ;;  %v1650_v22 = vld [vmem:[#allocation3] sm:$0xf]  ;;  %v1970_v27 = vld [vmem:[#allocation3 + $0x4] sm:$0xf0] }
  0x97   :  { %574 = vmatpush.bf16.msra.mxu3 %v1751_v6  ;;  %v1852_v6 = vld [vmem:[%s2889_s7 + $0x78] sm:$0xf0] }
  0x98   :  { %564 = vmatpush.bf16.msra.mxu2 %v1663_v54  ;;  %v1855_v21 = vor.u32 %v2015_v5, %v1852_v6  ;;  %v1716_v5 = vld [vmem:[#allocation3 + $0x88] sm:$0xf0] }
  0x99   :  { %v281_v61 = vpop.permute.xlu0 %280 }
  0x9a   :  { %vm288_vm15 = vcmp.eq.s32.totalorder %v281_v61, 1  ;;  %v1732_v61 = vld [vmem:[#allocation3 + $0xa8] sm:$0xf0] }
  0x9b   :  { %v2394_v53 = vsel %vm288_vm15, %v2328_v41, -3.4e+38  ;;  %v2397_v56 = vsel %vm288_vm15, %v2336_v49, -3.4e+38  ;;  %v194_v41 = vmax.f32 %v2376_v26, %v2363_v11  ;;  %v1675_v49 = vor.u32 %v1976_v0, %v1674_v15  ;;  %575 = vmatpush.bf16.msra.mxu3 %v1743_v30  ;;  %v1722_v30 = vld [vmem:[#allocation3 + $0x90] sm:$0xf] }
  0x9c   :  { %v96_v13 = vpop.permute.xlu1 %95  ;;  %v298_v58 = vmax.f32 %v2394_v53, %v2331_v44  ;;  %v307_v59 = vmax.f32 %v2397_v56, %v2334_v48  ;;  %v1731_v44 = vor.u32 %v1990_v45, %v1730_v43 }
  0x9d   :  { %v2401_v19 = vmul.f32 %v96_v13, %v81_v38  ;;  %v2403_v20 = vmul.f32 %v96_v13, %v82_v39  ;;  %v1655_v39 = vor.u32 %v1969_v52, %v1652_v35  ;;  %536 = vmatpush.bf16.msra.mxu0 %v1675_v49  ;;  %v1988_v35 = vld [vmem:[#allocation3 + $0x94] sm:$0xf0]  ;;  %v1842_v13 = vld [vmem:[%s2889_s7 + $0x60] sm:$0xf] }
  0x9e   :  { %550 = vmatpush.bf16.msra.mxu1 %v1731_v44  ;;  %v1986_v44 = vld [vmem:[#allocation3 + $0x84] sm:$0xf0] }
  0x9f   :  { %v132_v18 = vsel %vm128_vm14, %v2401_v19, -3.4e+38  ;;  %v133_v28 = vsel %vm128_vm14, %v2403_v20, -3.4e+38  ;;  %v241_v29 = vsel %vm237_vm0, %v2401_v19, -3.4e+38  ;;  %565 = vmatpush.bf16.msra.mxu2 %v1655_v39 }
  0xa0   :  { %v139_v31 = vmax.f32 %v138_v10, %v132_v18  ;;  %v148_v32 = vmax.f32 %v147_v16, %v133_v28  ;;  %v242_v33 = vsel %vm237_vm0, %v2403_v20, -3.4e+38  ;;  %v247_v34 = vmax.f32 %v246_v60, %v241_v29  ;;  %v1658_v28 = vld [vmem:[#allocation3 + $0x10] sm:$0xf]  ;;  %v1972_v29 = vld [vmem:[#allocation3 + $0x14] sm:$0xf0] }
  0xa1   :  { %v256_v38 = vmax.f32 %v255_v9, %v242_v33  ;;  %v284_v40 = vpop.permute.xlu0 %283  ;;  %v1735_v10 = vor.u32 %v1989_v57, %v1732_v61  ;;  %537 = vmatpush.bf16.msra.mxu0 %v1667_v55  ;;  %v1724_v39 = vld [vmem:[#allocation3 + $0x98] sm:$0xf0]  ;;  %v1659_v57 = vor.u32 %v1972_v29, %v1658_v28 }
  0xa2   :  { %v140_v46 = vrot.slane %v139_v31, 4  ;;  %v149_v47 = vrot.slane %v148_v32, 4  ;;  %v248_v50 = vrot.slane %v247_v34, 4  ;;  %vm289_vm1 = vcmp.eq.s32.totalorder %v284_v40, 1 }
  0xa3   :  { %v257_v60 = vrot.slane %v256_v38, 4  ;;  %v293_v3 = vsel %vm289_vm1, %v2401_v19, -3.4e+38  ;;  %v294_v7 = vsel %vm289_vm1, %v2403_v20, -3.4e+38  ;;  %576 = vmatpush.bf16.msra.mxu3 %v1735_v10  ;;  %1031 = vmatpush.bf16.msrb.mxu2 %v1855_v21 }
  0xa4   :  { %v141_v62 = vmax.f32 %v139_v31, %v140_v46  ;;  %v150_v63 = vmax.f32 %v148_v32, %v149_v47  ;;  %v249_v1 = vmax.f32 %v247_v34, %v248_v50  ;;  %v299_v8 = vmax.f32 %v298_v58, %v293_v3  ;;  %v2013_v47 = vld [vmem:[%s2889_s7 + $0x64] sm:$0xf]  ;;  %v1844_v50 = vld [vmem:[%s2889_s7 + $0x68] sm:$0xf0]  ;;  %v1985_v3 = vld [vmem:[#allocation3 + $0x84] sm:$0xf] }
  0xa5   :  { %v258_v48 = vmax.f32 %v256_v38, %v257_v60  ;;  %v180_v9 = vpop.permute.xlu1 %179  ;;  %v308_v16 = vmax.f32 %v307_v59, %v294_v7  ;;  %v1723_v59 = vor.u32 %v1988_v35, %v1722_v30  ;;  %v1714_v60 = vld [vmem:[#allocation3 + $0x80] sm:$0xf]  ;;  %538 = vmatpush.bf16.msra.mxu0 %v1659_v57  ;;  %v1836_v10 = vld [vmem:[%s2889_s7 + $0x58] sm:$0xf0]  ;;  %v1826_v57 = vld [vmem:[%s2889_s7 + $0x40] sm:$0xf] }
  0xa6   :  { %v142_v53 = vrot.slane %v141_v62, 2  ;;  %v151_v56 = vrot.slane %v150_v63, 2  ;;  %v250_v15 = vrot.slane %v249_v1, 2  ;;  %v300_v0 = vrot.slane %v299_v8, 4 }
  0xa7   :  { %v259_v54 = vrot.slane %v258_v48, 2  ;;  %vm185_vm4 = vcmp.eq.s32.totalorder %v180_v9, 1  ;;  %v309_v24 = vrot.slane %v308_v16, 4  ;;  %551 = vmatpush.bf16.msra.mxu1 %v1723_v59  ;;  %v2011_v9 = vld [vmem:[%s2889_s7 + $0x54] sm:$0xf] }
  0xa8   :  { %v143_v51 = vmax.f32 %v141_v62, %v142_v53  ;;  %v152_v49 = vmax.f32 %v150_v63, %v151_v56  ;;  %v251_v23 = vmax.f32 %v249_v1, %v250_v15  ;;  %v301_v52 = vmax.f32 %v299_v8, %v300_v0  ;;  %v2010_v59 = vld [vmem:[%s2889_s7 + $0x44] sm:$0xf0] }
  0xa9   :  { %v260_v25 = vmax.f32 %v258_v48, %v259_v54  ;;  %v189_v17 = vsel %vm185_vm4, %v2401_v19, -3.4e+38  ;;  %v190_v18 = vsel %vm185_vm4, %v2403_v20, -3.4e+38  ;;  %v310_v34 = vmax.f32 %v308_v16, %v309_v24  ;;  %v1987_v20 = vld [vmem:[#allocation3 + $0x94] sm:$0xf] }
  0xaa   :  { %v144_v31 = vrot.slane %v143_v51, 1  ;;  %v153_v32 = vrot.slane %v152_v49, 1  ;;  %v252_v33 = vrot.slane %v251_v23, 1  ;;  %v302_v58 = vrot.slane %v301_v52, 2  ;;  %v2009_v24 = vld [vmem:[%s2889_s7 + $0x44] sm:$0xf] }
  0xab   :  { %v261_v36 = vrot.slane %v260_v25, 1  ;;  %v195_v38 = vmax.f32 %v194_v41, %v189_v17  ;;  %v204_v19 = vmax.f32 %v203_v37, %v190_v18  ;;  %v311_v46 = vrot.slane %v310_v34, 2 }
  0xac   :  { %v145_v42 = vmax.f32 %v143_v51, %v144_v31  ;;  %v154_v43 = vmax.f32 %v152_v49, %v153_v32  ;;  %v253_v45 = vmax.f32 %v251_v23, %v252_v33  ;;  %v303_v26 = vmax.f32 %v301_v52, %v302_v58  ;;  %v2007_v31 = vld [vmem:[%s2889_s7 + $0x34] sm:$0xf]  ;;  %v1820_v33 = vld [vmem:[%s2889_s7 + $0x38] sm:$0xf0] }
  0xad   :  { %v262_v11 = vmax.f32 %v260_v25, %v261_v36  ;;  %v196_v41 = vrot.slane %v195_v38, 4  ;;  %v205_v40 = vrot.slane %v204_v19, 4  ;;  %v312_v55 = vmax.f32 %v310_v34, %v311_v46  ;;  %v1828_v25 = vld [vmem:[%s2889_s7 + $0x48] sm:$0xf0] }
  0xae   :  { %v157_v37 = vrot.slane %v154_v43, 7  ;;  %v304_v62 = vrot.slane %v303_v26, 1  ;;  %v1727_v7 = vor.u32 %v1987_v20, %v1724_v39  ;;  %v1847_v8 = vor.u32 %v2013_v47, %v1844_v50  ;;  %v2003_v39 = vld [vmem:[%s2889_s7 + $0x14] sm:$0xf]  ;;  %v1850_v43 = vld [vmem:[%s2889_s7 + $0x70] sm:$0xf] }
  0xaf   :  { %v265_v61 = vrot.slane %v262_v11, 7  ;;  %v197_v63 = vmax.f32 %v195_v38, %v196_v41  ;;  %v206_v1 = vmax.f32 %v204_v19, %v205_v40  ;;  %v313_v48 = vrot.slane %v312_v55, 1  ;;  %v2005_v38 = vld [vmem:[%s2889_s7 + $0x24] sm:$0xf]  ;;  %v1812_v19 = vld [vmem:[%s2889_s7 + $0x28] sm:$0xf0] }
  0xb0   :  { %v159_v6 = vsel %vm158_vm2, %v145_v42, %v157_v37  ;;  %577 = vmatpush.bf16.msra.mxu3 %v1727_v7  ;;  %1032 = vmatpush.bf16.msrb.mxu2 %v1847_v8  ;;  %v1651_v54 = vor.u32 %v1970_v27, %v1650_v22  ;;  %v1715_v0 = vor.u32 %v1986_v44, %v1714_v60  ;;  %v1804_v42 = vld [vmem:[%s2889_s7 + $0x18] sm:$0xf0]  ;;  %v2014_v47 = vld [vmem:[%s2889_s7 + $0x64] sm:$0xf0]  ;;  %v2001_v11 = vld [vmem:[%s2889_s7 + $0x4] sm:$0xf] }
  0xb1   :  { %165 = vst.msk [vmem:[#allocation2] ss:$4 sm:$0x3] %vm2431_vm3, %v159_v6  ;;  %v266_v53 = vsel %vm158_vm2, %v253_v45, %v265_v61  ;;  %v198_v56 = vrot.slane %v197_v63, 2  ;;  %v207_v15 = vrot.slane %v206_v1, 2  ;;  %v314_v16 = vmax.f32 %v312_v55, %v313_v48 }
  0xb2   :  { %269 = vst.msk [vmem:[#allocation2 + $0x2] ss:$4 sm:$0x3] %vm2431_vm3, %v266_v53  ;;  %v1719_v49 = vor.u32 %v1985_v3, %v1716_v5  ;;  %v1839_v23 = vor.u32 %v2011_v9, %v1836_v10  ;;  %v305_v52 = vmax.f32 %v303_v26, %v304_v62  ;;  %539 = vmatpush.bf16.msra.mxu0 %v1651_v54  ;;  %v2016_v45 = vld [vmem:[%s2889_s7 + $0x74] sm:$0xf0]  ;;  %v2172_v54 = vmov 6  }
  0xb3   :  { %v199_v21 = vmax.f32 %v197_v63, %v198_v56  ;;  %v208_v51 = vmax.f32 %v206_v1, %v207_v15  ;;  %v317_v17 = vrot.slane %v314_v16, 7  ;;  %552 = vmatpush.bf16.msra.mxu1 %v1715_v0  ;;  %v1831_v30 = vor.u32 %v2009_v24, %v1828_v25  ;;  %v1796_v26 = vld [vmem:[%s2889_s7 + $0x8] sm:$0xf0]  ;;  %v1834_v22 = vld [vmem:[%s2889_s7 + $0x50] sm:$0xf]  ;;  %2080 = vset.pattern.permute.xlu0 %v2172_v54 }
  0xb4   :  { %578 = vmatpush.bf16.msra.mxu3 %v1719_v49  ;;  %1033 = vmatpush.bf16.msrb.mxu2 %v1839_v23  ;;  %v1823_v36 = vor.u32 %v2007_v31, %v1820_v33  ;;  %v1815_v20 = vor.u32 %v2005_v38, %v1812_v19  ;;  %v1851_v46 = vor.u32 %v2016_v45, %v1850_v43  ;;  %v2012_v27 = vld [vmem:[%s2889_s7 + $0x54] sm:$0xf0]  ;;  %v1818_v1 = vld [vmem:[%s2889_s7 + $0x30] sm:$0xf]  ;;  %v1810_v6 = vld [vmem:[%s2889_s7 + $0x20] sm:$0xf] }
  0xb5   :  { %v200_v18 = vrot.slane %v199_v21, 1  ;;  %v209_v28 = vrot.slane %v208_v51, 1  ;;  %v318_v29 = vsel %vm158_vm2, %v305_v52, %v317_v17  ;;  %v1807_v50 = vor.u32 %v2003_v39, %v1804_v42  ;;  %v2008_v3 = vld [vmem:[%s2889_s7 + $0x34] sm:$0xf0]  ;;  %v2006_v48 = vld [vmem:[%s2889_s7 + $0x24] sm:$0xf0] }
  0xb6   :  { %321 = vst.msk [vmem:[#allocation2 + $0x3] ss:$4 sm:$0x3] %vm2431_vm3, %v318_v29  ;;  %v1843_v41 = vor.u32 %v2014_v47, %v1842_v13  ;;  %v1799_v37 = vor.u32 %v2001_v11, %v1796_v26  ;;  %v1835_v55 = vor.u32 %v2012_v27, %v1834_v22  ;;  %v1827_v63 = vor.u32 %v2010_v59, %v1826_v57  ;;  %v1802_v8 = vld [vmem:[%s2889_s7 + $0x10] sm:$0xf] }
  0xb7   :  { %v210_v32 = vmax.f32 %v208_v51, %v209_v28  ;;  %v201_v34 = vmax.f32 %v199_v21, %v200_v18  ;;  %1018 = vmatpush.bf16.msrb.mxu1 %v1851_v46  ;;  %v1819_v5 = vor.u32 %v2008_v3, %v1818_v1  ;;  %v1811_v7 = vor.u32 %v2006_v48, %v1810_v6  ;;  %v2004_v9 = vld [vmem:[%s2889_s7 + $0x14] sm:$0xf0]  ;;  %v1794_v53 = vld [vmem:[%s2889_s7] sm:$0xf]  ;;  %v2002_v56 = vld [vmem:[%s2889_s7 + $0x4] sm:$0xf0] }
  0xb8   :  { %1034 = vmatpush.bf16.msrb.mxu2 %v1831_v30  ;;  %v1803_v10 = vor.u32 %v2004_v9, %v1802_v8  ;;  %v915_v15 = vld [vmem:[%s2885_s3] sm:$0x3]  ;;  %v1795_v16 = vor.u32 %v2002_v56, %v1794_v53  ;;  %v2175_v39 = vmov 5   ;;  %v2176_v43 = vmov 9   ;;  %s2622_s7 = sld [smem:[#allocation6 + $0x1]] }
  0xb9   :  { %v213_v35 = vrot.slane %v210_v32, 7  ;;  %v366_v0 = vld [vmem:[%s2888_s6] sm:$0x3]  ;;  %v2177_v45 = vmov 8   ;;  %v2178_v13 = vmov 10   ;;  %v2179_v46 = vmov 14  }
  0xba   :  { %v368_v21 = vperm.slane %v366_v0, 0  ;;  %v369_v25 = vperm.slane %v366_v0, 1  ;;  %v2180_v11 = vmov 12   ;;  %v2181_v22 = vmov 13   ;;  %s2729_s3 = sld [smem:[#allocation6 + $0x85]] }
  0xbb   :  { %v214_v58 = vsel %vm158_vm2, %v201_v34, %v213_v35  ;;  %1019 = vmatpush.bf16.msrb.mxu1 %v1843_v41  ;;  %v932_v35 = vld [vmem:[%s2890_s8] sm:$0x3]  ;;  %v2182_v27 = vmov 15   ;;  %s2625_s8 = sld [smem:[#allocation6]] }
  0xbc   :  { %217 = vst.msk [vmem:[#allocation2 + $0x1] ss:$4 sm:$0x3] %vm2431_vm3, %v214_v58  ;;  %1035 = vmatpush.bf16.msrb.mxu2 %v1823_v36  ;;  %v2173_v36 = vmov 11   ;;  %v2174_v58 = vmov 4   ;;  %v935_v38 = vperm.slane %v932_v35, 1 }
  0xbd   :  { %s1862_s6 = sld [smem:[#allocation6 + $0x86]] }
  0xbf   :  { %1020 = vmatpush.bf16.msrb.mxu1 %v1835_v55 }
  0xc0   :  { %1036 = vmatpush.bf16.msrb.mxu2 %v1815_v20 }
  0xc3   :  { %v325_v40 = vld [vmem:[#allocation2] sm:$0xff]  ;;  %1021 = vmatpush.bf16.msrb.mxu1 %v1827_v63 }
  0xc4   :  { %327 = vst [vmem:[#allocation1] ss:$2 sm:$0xff] %v325_v40  ;;  %1037 = vmatpush.bf16.msrb.mxu2 %v1807_v50  ;;  %v934_v50 = vperm.slane %v932_v35, 0 }
  0xc7   :  { %1022 = vmatpush.bf16.msrb.mxu1 %v1819_v5 }
  0xc8   :  { %1038 = vmatpush.bf16.msrb.mxu2 %v1799_v37  ;;  %v2183_v37 = vmov 7  }
  0xcb   :  { %v328_v60 = vld.sshfl [vmem:[#allocation1] sm:$0xff pattern:$0x75316420]  ;;  %v329_v44 = vld.sshfl [vmem:[#allocation1 + $0x8] sm:$0xff pattern:$0x75316420]  ;;  %1023 = vmatpush.bf16.msrb.mxu1 %v1811_v7 }
  0xcc   :  { %v332_v61 = vpack.c.bf16 %v328_v60, %v328_v60  ;;  %v333_v62 = vpack.c.bf16 %v329_v44, %v329_v44 }
  0xce   :  { %540 = vmatmul.bf16.vlgmr.msra.gmra.mxu0 %v332_v61  ;;  %553 = vmatmul.bf16.vlgmr.msra.gmra.mxu1 %v333_v62 }
  0xcf   :  { %566 = vmatmul.bf16.vlgmr.msra.gmra.mxu2 %v332_v61  ;;  %579 = vmatmul.bf16.vlgmr.msra.gmra.mxu3 %v333_v62 }
  0xd0   :  { %1024 = vmatpush.bf16.msrb.mxu1 %v1803_v10 }
  0xd4   :  { %1025 = vmatpush.bf16.msrb.mxu1 %v1795_v16 }
  0xde   :  { %1026 = vmatmul.bf16.vlgmr.msrb.gmra.mxu1 %v915_v15 }
  0xdf   :  { %1039 = vmatmul.bf16.vlgmr.msrb.gmra.mxu2 %v915_v15 }
 0x14b   :  { %v541_v51 = vpop.f32.mrf.mxu0  ;;  %v554_v49 = vpop.f32.mrf.mxu1 }
 0x14c   :  { %v542_v23 = vadd.f32 %v541_v51, %v368_v21  ;;  %v640_v51 = vstv %s2622_s7  ;;  %s2739_s7 = sld [smem:[#allocation6 + $0x87]] }
 0x14e   :  { %v555_v24 = vadd.f32 %v554_v49, %v542_v23 }
 0x150   :  { %584 = vxpose.xlu2.b32.start.end [1/1] (short) (narrow) %v555_v24, 16  ;;  %v853_v52 = vpack.c.bf16 %v555_v24, %v555_v24 }
 0x152   :  { %v567_v17 = vpop.f32.mrf.mxu2  ;;  %v580_v18 = vpop.f32.mrf.mxu3  ;;  %v860_v28 = vsel %vm858_vm5, %v853_v52, 0 }
 0x153   :  { %v568_v29 = vadd.f32 %v567_v17, %v369_v25  ;;  %v543_v30 = vpop.f32.mrf.mxu0  ;;  %v556_v31 = vpop.f32.mrf.mxu1  ;;  %869 = vmatpush.bf16.msrb.mxu0 %v860_v28  ;;  %v627_v25 = vstv %s2625_s8  ;;  %v653_v17 = vstv %s2628_s1  ;;  %s2742_s8 = sld [smem:[#allocation6 + $0x88]] }
 0x154   :  { %s2745_s1 = sld [smem:[#allocation6 + $0x8a]] }
 0x155   :  { %v2553_v32 = vadd.f32 %v580_v18, %v568_v29 }
 0x157   :  { %697 = vperm.xlu0 %2080, %v2553_v32   ;;  %619 = vperm.xlu1 %2074, %v2553_v32  }
 0x15a   :  { %v569_v33 = vpop.f32.mrf.mxu2  ;;  %v582_v34 = vpop.f32.mrf.mxu3 }
 0x15f   :  { %2085 = vset.pattern.permute.xlu0 %v2173_v36  ;;  %2078 = vset.pattern.permute.xlu1 %v2174_v58 }
 0x160   :  { %762 = vperm.xlu0 %2085, %v2553_v32   ;;  %671 = vperm.xlu1 %2078, %v2553_v32  }
 0x162   :  { %v1040_v19 = vpop.f32.mrf.mxu2 }
 0x163   :  { %v2563_v20 = vadd.f32 %v1040_v19, %v935_v38 }
 0x168   :  { %2086 = vset.pattern.permute.xlu0 %v2168_v2  ;;  %2079 = vset.pattern.permute.xlu1 %v2175_v39  ;;  %v1027_v2 = vpop.f32.mrf.mxu1 }
 0x169   :  { %1079 = vperm.xlu0 %2086, %v2563_v20   ;;  %684 = vperm.xlu1 %2079, %v2553_v32   ;;  %v1028_v26 = vadd.f32 %v1027_v2, %v934_v50 }
 0x16a   :  { %v1042_v42 = vpop.f32.mrf.mxu2 }
 0x16b   :  { %v1312_v41 = vpack.c.bf16 %v1028_v26, %v1028_v26 }
 0x16d   :  { %v1317_v40 = vsel %vm858_vm5, %v1312_v41, 0 }
 0x16e   :  { %1326 = vmatpush.bf16.msrb.mxu3 %v1317_v40 }
 0x170   :  { %v1029_v47 = vpop.f32.mrf.mxu1 }
 0x171   :  { %2089 = vset.pattern.permute.xlu0 %v2171_v14  ;;  %2083 = vset.pattern.permute.xlu1 %v2176_v43 }
 0x172   :  { %1118 = vperm.xlu0 %2089, %v2563_v20   ;;  %736 = vperm.xlu1 %2083, %v2553_v32  }
 0x17a   :  { %2094 = vset.pattern.permute.xlu0 %v2177_v45  ;;  %2084 = vset.pattern.permute.xlu1 %v2178_v13 }
 0x17b   :  { %1183 = vperm.xlu0 %2094, %v2563_v20   ;;  %749 = vperm.xlu1 %2084, %v2553_v32  }
 0x183   :  { %2098 = vset.pattern.permute.xlu0 %v2179_v46 }
 0x184   :  { %801 = vperm.xlu0 %2098, %v2553_v32  }
 0x18c   :  { %2099 = vset.pattern.permute.xlu0 %v2180_v11 }
 0x18d   :  { %775 = vperm.xlu0 %2099, %v2553_v32  }
 0x195   :  { %1235 = vperm.xlu0 %2099, %v2563_v20  }
 0x19d   :  { %2101 = vset.pattern.permute.xlu0 %v2181_v22 }
 0x19e   :  { %1248 = vperm.xlu0 %2101, %v2563_v20  }
 0x1a6   :  { %2103 = vset.pattern.permute.xlu0 %v2182_v27  ;;  %v692_v27 = vstv %s2645_s30  ;;  %s2758_s30 = sld [smem:[#allocation6 + $0x8c]] }
 0x1a7   :  { %814 = vperm.xlu0 %2103, %v2553_v32  }
 0x1af   :  { %1274 = vperm.xlu0 %2103, %v2563_v20  }
 0x1b0   :  { %1044 = vxpose.xlu1.b32.start.end [1/1] (short) (narrow) %v1028_v26, 16 }
 0x1b2   :  { %2075 = vset.pattern.permute.xlu2 %v2170_v12 }
 0x1c1   :  { %632 = vperm.xlu2 %2075, %v2553_v32  }
 0x1c9   :  { %2076 = vset.pattern.permute.xlu2 %v2169_v4  ;;  %v2596_v55 = vpop.permute.xlu0 %697  ;;  %v620_v63 = vpop.permute.xlu1 %619 }
 0x1ca   :  { %645 = vperm.xlu2 %2076, %v2553_v32  }
 0x1d2   :  { %2077 = vset.pattern.permute.xlu2 %v2171_v14  ;;  %v672_v8 = vpop.permute.xlu1 %671 }
 0x1d3   :  { %658 = vperm.xlu2 %2077, %v2553_v32  }
 0x1db   :  { %2081 = vset.pattern.permute.xlu2 %v2183_v37  ;;  %v685_v29 = vpop.permute.xlu1 %684 }
 0x1dc   :  { %710 = vperm.xlu2 %2081, %v2553_v32  }
 0x1e4   :  { %2082 = vset.pattern.permute.xlu2 %v2177_v45  ;;  %v679_v45 = vstv %s2639_s29  ;;  %v737_v41 = vpop.permute.xlu1 %736  ;;  %s2755_s29 = sld [smem:[#allocation6 + $0x8b]] }
 0x1e5   :  { %723 = vperm.xlu2 %2082, %v2553_v32  }
 0x1e9   :  { %v2593_v14 = vpop.trf.xlu2 }
 0x1ea   :  { %v635_v3 = vperm.slane %v2593_v14, 1  ;;  %v622_v5 = vperm.slane %v2593_v14, 0  ;;  %v648_v6 = vperm.slane %v2593_v14, 2  ;;  %v661_v7 = vperm.slane %v2593_v14, 3 }
 0x1eb   :  { %v674_v21 = vperm.slane %v2593_v14, 4  ;;  %v687_v24 = vperm.slane %v2593_v14, 5  ;;  %v700_v38 = vperm.slane %v2593_v14, 6  ;;  %v713_v42 = vperm.slane %v2593_v14, 7 }
 0x1ec   :  { %v623_v9 = vadd.f32 %v622_v5, %v620_v63 }
 0x1ed   :  { %2090 = vset.pattern.permute.xlu2 %v2174_v58  ;;  %v675_v28 = vadd.f32 %v674_v21, %v672_v8  ;;  %v688_v58 = vadd.f32 %v687_v24, %v685_v29 }
 0x1ee   :  { %1131 = vperm.xlu2 %2090, %v2563_v20   ;;  %vm624_vm7 = vcmp.gt.f32.partialorder %v623_v9, 0.0 }
 0x1ef   :  { %vm676_vm11 = vcmp.gt.f32.partialorder %v675_v28, 0.0  ;;  %v690_v2 = vmul.f32 0.2, %v688_v58  ;;  %vm689_vm12 = vcmp.gt.f32.partialorder %v688_v58, 0.0 }
 0x1f1   :  { %v2600_v57 = vpop.trf.xlu2 }
 0x1f2   :  { %v726_v47 = vperm.slane %v2600_v57, 0 }
 0x1f6   :  { %2091 = vset.pattern.permute.xlu2 %v2175_v39 }
 0x1f7   :  { %1144 = vperm.xlu2 %2091, %v2563_v20  }
 0x1ff   :  { %2095 = vset.pattern.permute.xlu2 %v2176_v43 }
 0x200   :  { %1196 = vperm.xlu2 %2095, %v2563_v20  }
 0x203   :  { %2087 = vset.pattern.permute.xlu1 %v2170_v12  ;;  %v2604_v12 = vpop.permute.xlu0 %762 }
 0x208   :  { %2096 = vset.pattern.permute.xlu2 %v2178_v13 }
 0x209   :  { %1209 = vperm.xlu2 %2096, %v2563_v20  }
 0x20b   :  { %v2607_v60 = vpop.permute.xlu0 %1079 }
 0x211   :  { %2097 = vset.pattern.permute.xlu2 %v2181_v22  ;;  %v691_v22 = vsel %vm689_vm12, %v688_v58, %v690_v2 }
 0x212   :  { %1092 = vperm.xlu1 %2087, %v2563_v20   ;;  %788 = vperm.xlu2 %2097, %v2553_v32   ;;  %v666_v32 = vstv %s2631_s2  ;;  %v693_v63 = vmul.f32 %v692_v27, %v691_v22  ;;  %v783_v22 = vstv %s2681_s21  ;;  %s2748_s2 = sld [smem:[#allocation6 + $0x89]] }
 0x213   :  { %v2611_v62 = vpop.permute.xlu0 %1118 }
 0x21a   :  { %2088 = vset.pattern.permute.xlu1 %v2169_v4 }
 0x21b   :  { %1105 = vperm.xlu1 %2088, %v2563_v20   ;;  %v633_v59 = vpop.permute.xlu2 %632  ;;  %v2617_v1 = vpop.permute.xlu0 %1183 }
 0x21c   :  { %v636_v48 = vadd.f32 %v635_v3, %v633_v59  ;;  %v705_v3 = vstv %s2652_s16  ;;  %s2765_s16 = sld [smem:[#allocation6 + $0x8d]] }
 0x21e   :  { %v638_v56 = vmul.f32 0.2, %v636_v48  ;;  %vm637_vm6 = vcmp.gt.f32.partialorder %v636_v48, 0.0 }
 0x220   :  { %v639_v49 = vsel %vm637_vm6, %v636_v48, %v638_v56  ;;  %v752_v48 = vperm.slane %v2600_v57, 2  ;;  %v731_v56 = vstv %s2662_s17  ;;  %s1871_s17 = sld [smem:[#allocation6 + $0x8f]] }
 0x221   :  { %v641_v30 = vmul.f32 %v640_v51, %v639_v49  ;;  %v765_v51 = vperm.slane %v2600_v57, 3 }
 0x223   :  { %2092 = vset.pattern.permute.xlu1 %v2172_v54  ;;  %v2633_v16 = vpop.permute.xlu0 %801  ;;  %v625_v54 = vmul.f32 0.2, %v623_v9 }
 0x224   :  { %1157 = vperm.xlu1 %2092, %v2563_v20   ;;  %v646_v44 = vpop.permute.xlu2 %645 }
 0x225   :  { %v649_v10 = vadd.f32 %v648_v6, %v646_v44  ;;  %v626_v52 = vsel %vm624_vm7, %v623_v9, %v625_v54  ;;  %v750_v54 = vpop.permute.xlu1 %749 }
 0x226   :  { %v628_v34 = vmul.f32 %v627_v25, %v626_v52 }
 0x227   :  { %v651_v0 = vmul.f32 0.2, %v649_v10  ;;  %vm650_vm8 = vcmp.gt.f32.partialorder %v649_v10, 0.0 }
 0x229   :  { %v652_v18 = vsel %vm650_vm8, %v649_v10, %v651_v0  ;;  %vm826_vm8 = vcmask 27648  }
 0x22a   :  { %v654_v35 = vmul.f32 %v653_v17, %v652_v18  ;;  %v744_v17 = vstv %s1784_s18  ;;  %v778_v18 = vperm.slane %v2600_v57, 4 }
 0x22b   :  { %v2648_v19 = vpop.permute.xlu0 %775 }
 0x22c   :  { %2093 = vset.pattern.permute.xlu1 %v2183_v37  ;;  %v779_v58 = vadd.f32 %v778_v18, %v2648_v19 }
 0x22d   :  { %1170 = vperm.xlu1 %2093, %v2563_v20   ;;  %v659_v61 = vpop.permute.xlu2 %658 }
 0x22e   :  { %v662_v15 = vadd.f32 %v661_v7, %v659_v61  ;;  %v739_v61 = vperm.slane %v2600_v57, 1  ;;  %v718_v7 = vstv %s2656_s9  ;;  %vm780_vm3 = vcmp.gt.f32.partialorder %v779_v58, 0.0  ;;  %s1870_s9 = sld [smem:[#allocation6 + $0x8e]] }
 0x230   :  { %v664_v23 = vmul.f32 0.2, %v662_v15  ;;  %vm663_vm10 = vcmp.gt.f32.partialorder %v662_v15, 0.0  ;;  %v740_v9 = vadd.f32 %v739_v61, %v737_v41 }
 0x232   :  { %v665_v33 = vsel %vm663_vm10, %v662_v15, %v664_v23  ;;  %v742_v49 = vmul.f32 0.2, %v740_v9  ;;  %v753_v23 = vadd.f32 %v752_v48, %v750_v54  ;;  %vm741_vm0 = vcmp.gt.f32.partialorder %v740_v9, 0.0 }
 0x233   :  { %v667_v39 = vmul.f32 %v666_v32, %v665_v33 }
 0x234   :  { %v755_v29 = vmul.f32 0.2, %v753_v23  ;;  %vm754_vm1 = vcmp.gt.f32.partialorder %v753_v23, 0.0 }
 0x235   :  { %2100 = vset.pattern.permute.xlu1 %v2173_v36  ;;  %v677_v36 = vmul.f32 0.2, %v675_v28 }
 0x236   :  { %1222 = vperm.xlu1 %2100, %v2563_v20   ;;  %v2615_v4 = vpop.permute.xlu2 %710 }
 0x237   :  { %v678_v13 = vsel %vm676_vm11, %v675_v28, %v677_v36  ;;  %v714_v11 = vadd.f32 %v713_v42, %v2615_v4  ;;  %v743_v28 = vsel %vm741_vm0, %v740_v9, %v742_v49  ;;  %v804_v36 = vperm.slane %v2600_v57, 6 }
 0x238   :  { %v680_v40 = vmul.f32 %v679_v45, %v678_v13  ;;  %v817_v42 = vperm.slane %v2600_v57, 7  ;;  %v781_v13 = vmul.f32 0.2, %v779_v58  ;;  %v822_v9 = vstv %s1790_s23 }
 0x239   :  { %v716_v44 = vmul.f32 0.2, %v714_v11  ;;  %vm715_vm14 = vcmp.gt.f32.partialorder %v714_v11, 0.0  ;;  %v805_v45 = vadd.f32 %v804_v36, %v2633_v16 }
 0x23a   :  { %v782_v27 = vsel %vm780_vm3, %v779_v58, %v781_v13 }
 0x23b   :  { %v717_v8 = vsel %vm715_vm14, %v714_v11, %v716_v44  ;;  %vm806_vm4 = vcmp.gt.f32.partialorder %v805_v45, 0.0  ;;  %v784_v61 = vmul.f32 %v783_v22, %v782_v27  ;;  %v1139_v27 = vstv %s2725_s5 }
 0x23c   :  { %v719_v21 = vmul.f32 %v718_v7, %v717_v8 }
 0x23e   :  { %2102 = vset.pattern.permute.xlu1 %v2179_v46  ;;  %v701_v46 = vadd.f32 %v700_v38, %v2596_v55  ;;  %v2664_v55 = vpop.permute.xlu0 %1235  ;;  %v756_v38 = vsel %vm754_vm1, %v753_v23, %v755_v29 }
 0x23f   :  { %1261 = vperm.xlu1 %2102, %v2563_v20   ;;  %v724_v53 = vpop.permute.xlu2 %723  ;;  %v642_v20 = vadd.f32 %v641_v30, %v628_v34  ;;  %v766_v30 = vadd.f32 %v765_v51, %v2604_v12  ;;  %v745_v34 = vmul.f32 %v744_v17, %v743_v28 }
 0x240   :  { %v703_v37 = vmul.f32 0.2, %v701_v46  ;;  %v727_v14 = vadd.f32 %v726_v47, %v724_v53  ;;  %vm702_vm13 = vcmp.gt.f32.partialorder %v701_v46, 0.0 }
 0x241   :  { %v655_v43 = vadd.f32 %v654_v35, %v642_v20  ;;  %v757_v35 = vstv %s1785_s19  ;;  %v768_v20 = vmul.f32 0.2, %v766_v30  ;;  %vm767_vm2 = vcmp.gt.f32.partialorder %v766_v30, 0.0 }
 0x242   :  { %v704_v4 = vsel %vm702_vm13, %v701_v46, %v703_v37  ;;  %v729_v5 = vmul.f32 0.2, %v727_v14  ;;  %vm728_vm15 = vcmp.gt.f32.partialorder %v727_v14, 0.0  ;;  %v770_v46 = vstv %s1786_s20 }
 0x243   :  { %v668_v50 = vadd.f32 %v667_v39, %v655_v43  ;;  %v706_v10 = vmul.f32 %v705_v3, %v704_v4  ;;  %v758_v43 = vmul.f32 %v757_v35, %v756_v38  ;;  %v769_v2 = vsel %vm767_vm2, %v766_v30, %v768_v20 }
 0x244   :  { %v730_v15 = vsel %vm728_vm15, %v727_v14, %v729_v5  ;;  %v771_v41 = vmul.f32 %v770_v46, %v769_v2  ;;  %v1113_v2 = vstv %s2718_s27 }
 0x245   :  { %v681_v59 = vadd.f32 %v680_v40, %v668_v50  ;;  %v732_v25 = vmul.f32 %v731_v56, %v730_v15  ;;  %v791_v50 = vperm.slane %v2600_v57, 5  ;;  %v807_v40 = vmul.f32 0.2, %v805_v45  ;;  %v322_v57 = vld [vmem:[%s2886_s4] sm:$0x3]  ;;  %s1857_s4 = sld [smem:[#allocation6 + $0x81]] }
 0x246   :  { %v2674_v24 = vpop.permute.xlu0 %1248  ;;  %v323_v8 = vunpack.c.l.bf16 %v322_v57 }
 0x247   :  { %v694_v6 = vadd.f32 %v693_v63, %v681_v59  ;;  %v796_v59 = vstv %s2685_s22  ;;  %v809_v63 = vstv %s2687_s0  ;;  %v808_v4 = vsel %vm806_vm4, %v805_v45, %v807_v40 }
 0x248   :  { %v2642_v31 = vpop.permute.xlu2 %1131  ;;  %vm2699_vm7 = vcmp.gt.f32.partialorder %v323_v8, 0.0 }
 0x249   :  { %v707_v0 = vadd.f32 %v706_v10, %v694_v6  ;;  %v810_v10 = vmul.f32 %v809_v63, %v808_v4 }
 0x24b   :  { %v720_v52 = vadd.f32 %v719_v21, %v707_v0  ;;  %v1100_v58 = vstv %s1857_s4 }
 0x24d   :  { %v733_v32 = vadd.f32 %v732_v25, %v720_v52 }
 0x24e   :  { %v815_v12 = vpop.permute.xlu0 %814 }
 0x24f   :  { %v746_v39 = vadd.f32 %v745_v34, %v733_v32  ;;  %v818_v47 = vadd.f32 %v817_v42, %v815_v12 }
 0x251   :  { %v2659_v26 = vpop.permute.xlu2 %1144  ;;  %v759_v19 = vadd.f32 %v758_v43, %v746_v39  ;;  %v820_v16 = vmul.f32 0.2, %v818_v47  ;;  %vm819_vm6 = vcmp.gt.f32.partialorder %v818_v47, 0.0  ;;  %v1087_v39 = vstv %s2713_s26 }
 0x253   :  { %v772_v14 = vadd.f32 %v771_v41, %v759_v19  ;;  %v821_v7 = vsel %vm819_vm6, %v818_v47, %v820_v16 }
 0x254   :  { %v2697_v5 = vpop.trf.xlu1  ;;  %v823_v54 = vmul.f32 %v822_v9, %v821_v7 }
 0x255   :  { %v785_v48 = vadd.f32 %v784_v61, %v772_v14  ;;  %v1082_v25 = vperm.slane %v2697_v5, 0  ;;  %v1095_v52 = vperm.slane %v2697_v5, 1  ;;  %v1121_v29 = vperm.slane %v2697_v5, 3 }
 0x256   :  { %v1134_v30 = vperm.slane %v2697_v5, 4  ;;  %v1147_v36 = vperm.slane %v2697_v5, 5  ;;  %v1108_v38 = vperm.slane %v2697_v5, 2  ;;  %v1160_v16 = vperm.slane %v2697_v5, 6 }
 0x257   :  { %v1083_v28 = vadd.f32 %v1082_v25, %v2607_v60  ;;  %v1122_v35 = vadd.f32 %v1121_v29, %v2611_v62 }
 0x258   :  { %v1135_v20 = vadd.f32 %v1134_v30, %v2642_v31  ;;  %v1148_v62 = vadd.f32 %v1147_v36, %v2659_v26  ;;  %v1178_v30 = vstv %s2739_s7 }
 0x259   :  { %v1085_v34 = vmul.f32 0.2, %v1083_v28  ;;  %vm1084_vm11 = vcmp.gt.f32.partialorder %v1083_v28, 0.0  ;;  %v1124_v43 = vmul.f32 0.2, %v1122_v35  ;;  %vm1123_vm12 = vcmp.gt.f32.partialorder %v1122_v35, 0.0 }
 0x25a   :  { %v2670_v53 = vpop.permute.xlu2 %1196  ;;  %v1137_v19 = vmul.f32 0.2, %v1135_v20  ;;  %vm1136_vm14 = vcmp.gt.f32.partialorder %v1135_v20, 0.0  ;;  %v1150_v41 = vmul.f32 0.2, %v1148_v62  ;;  %vm1149_vm15 = vcmp.gt.f32.partialorder %v1148_v62, 0.0 }
 0x25b   :  { %v1086_v12 = vsel %vm1084_vm11, %v1083_v28, %v1085_v34  ;;  %v1125_v31 = vsel %vm1123_vm12, %v1122_v35, %v1124_v43 }
 0x25c   :  { %v2709_v23 = vpop.trf.xlu1  ;;  %v1088_v47 = vmul.f32 %v1087_v39, %v1086_v12  ;;  %v1151_v61 = vsel %vm1149_vm15, %v1148_v62, %v1150_v41 }
 0x25d   :  { %v1199_v7 = vperm.slane %v2709_v23, 1  ;;  %v1212_v9 = vperm.slane %v2709_v23, 2  ;;  %v1251_v29 = vperm.slane %v2709_v23, 5  ;;  %v1225_v62 = vperm.slane %v2709_v23, 3 }
 0x263   :  { %v2678_v33 = vpop.permute.xlu2 %1209 }
 0x264   :  { %v1213_v25 = vadd.f32 %v1212_v9, %v2678_v33  ;;  %v1191_v33 = vstv %s2742_s8 }
 0x266   :  { %v1215_v34 = vmul.f32 0.2, %v1213_v25  ;;  %vm1214_vm4 = vcmp.gt.f32.partialorder %v1213_v25, 0.0 }
 0x268   :  { %v1216_v12 = vsel %vm1214_vm4, %v1213_v25, %v1215_v34 }
 0x26c   :  { %v789_v11 = vpop.permute.xlu2 %788 }
 0x26d   :  { %v792_v37 = vadd.f32 %v791_v50, %v789_v11  ;;  %v1126_v50 = vstv %s2720_s28 }
 0x26e   :  { %v1127_v26 = vmul.f32 %v1126_v50, %v1125_v31  ;;  %v1277_v31 = vperm.slane %v2709_v23, 7 }
 0x26f   :  { %vm793_vm5 = vcmp.gt.f32.partialorder %v792_v37, 0.0  ;;  %v794_v44 = vmul.f32 0.2, %v792_v37 }
 0x271   :  { %v795_v3 = vsel %vm793_vm5, %v792_v37, %v794_v44  ;;  %v1138_v37 = vsel %vm1136_vm14, %v1135_v20, %v1137_v19  ;;  %v1204_v20 = vstv %s2748_s2 }
 0x272   :  { %v797_v6 = vmul.f32 %v796_v59, %v795_v3  ;;  %v1152_v59 = vstv %s2729_s3  ;;  %v1140_v63 = vmul.f32 %v1139_v27, %v1138_v37  ;;  %v1186_v3 = vperm.slane %v2709_v23, 0 }
 0x274   :  { %v798_v56 = vadd.f32 %v797_v6, %v785_v48  ;;  %v1153_v48 = vmul.f32 %v1152_v59, %v1151_v61 }
 0x276   :  { %v811_v15 = vadd.f32 %v810_v10, %v798_v56  ;;  %v1187_v56 = vadd.f32 %v1186_v3, %v2617_v1  ;;  %v1238_v1 = vperm.slane %v2709_v23, 4 }
 0x278   :  { %v824_v21 = vadd.f32 %v823_v54, %v811_v15  ;;  %v1165_v15 = vstv %s1862_s6  ;;  %vm1188_vm1 = vcmp.gt.f32.partialorder %v1187_v56, 0.0 }
 0x27a   :  { %v2705_v51 = vsel %vm2699_vm7, %v824_v21, -1e+30  ;;  %v1173_v21 = vperm.slane %v2697_v5, 7 }
 0x27b   :  { %v827_v49 = vsel %vm826_vm8, %v2705_v51, -inf }
 0x27c   :  { %828 = vmax.xlane.f32.xlu0 %v827_v49  ;;  %v1200_v49 = vadd.f32 %v1199_v7, %v2670_v53 }
 0x27e   :  { %vm1201_vm3 = vcmp.gt.f32.partialorder %v1200_v49, 0.0 }
 0x284   :  { %v1093_v17 = vpop.permute.xlu1 %1092 }
 0x285   :  { %v1096_v18 = vadd.f32 %v1095_v52, %v1093_v17  ;;  %v1189_v17 = vmul.f32 0.2, %v1187_v56 }
 0x287   :  { %v1098_v32 = vmul.f32 0.2, %v1096_v18  ;;  %vm1097_vm10 = vcmp.gt.f32.partialorder %v1096_v18, 0.0  ;;  %v1190_v53 = vsel %vm1188_vm1, %v1187_v56, %v1189_v17 }
 0x288   :  { %v1192_v43 = vmul.f32 %v1191_v33, %v1190_v53 }
 0x289   :  { %v1099_v60 = vsel %vm1097_vm10, %v1096_v18, %v1098_v32  ;;  %v1202_v32 = vmul.f32 0.2, %v1200_v49 }
 0x28a   :  { %v1101_v13 = vmul.f32 %v1100_v58, %v1099_v60  ;;  %v1239_v60 = vadd.f32 %v1238_v1, %v2664_v55 }
 0x28b   :  { %v1203_v39 = vsel %vm1201_vm3, %v1200_v49, %v1202_v32 }
 0x28c   :  { %v1102_v40 = vadd.f32 %v1101_v13, %v1088_v47  ;;  %v1241_v47 = vmul.f32 0.2, %v1239_v60  ;;  %vm1240_vm5 = vcmp.gt.f32.partialorder %v1239_v60, 0.0 }
 0x28d   :  { %v1106_v42 = vpop.permute.xlu1 %1105 }
 0x28e   :  { %v1109_v45 = vadd.f32 %v1108_v38, %v1106_v42  ;;  %v1217_v38 = vstv %s2745_s1  ;;  %v1252_v42 = vadd.f32 %v1251_v29, %v2674_v24  ;;  %v1275_v24 = vpop.permute.xlu0 %1274  ;;  %v1242_v37 = vsel %vm1240_vm5, %v1239_v60, %v1241_v47 }
 0x28f   :  { %v1218_v55 = vmul.f32 %v1217_v38, %v1216_v12 }
 0x290   :  { %vm1110_vm13 = vcmp.gt.f32.partialorder %v1109_v45, 0.0  ;;  %v1111_v46 = vmul.f32 0.2, %v1109_v45  ;;  %v1254_v50 = vmul.f32 0.2, %v1252_v42  ;;  %vm1253_vm10 = vcmp.gt.f32.partialorder %v1252_v42, 0.0 }
 0x292   :  { %v1112_v11 = vsel %vm1110_vm13, %v1109_v45, %v1111_v46  ;;  %v1205_v46 = vmul.f32 %v1204_v20, %v1203_v39  ;;  %v1255_v59 = vsel %vm1253_vm10, %v1252_v42, %v1254_v50 }
 0x293   :  { %v1114_v22 = vmul.f32 %v1113_v2, %v1112_v11  ;;  %v1230_v11 = vstv %s2755_s29 }
 0x295   :  { %v1115_v14 = vadd.f32 %v1114_v22, %v1102_v40 }
 0x296   :  { %v1158_v44 = vpop.permute.xlu1 %1157 }
 0x297   :  { %v1128_v57 = vadd.f32 %v1127_v26, %v1115_v14  ;;  %v1161_v4 = vadd.f32 %v1160_v16, %v1158_v44  ;;  %v1243_v26 = vstv %s2758_s30  ;;  %v1278_v14 = vadd.f32 %v1277_v31, %v1275_v24 }
 0x298   :  { %v1256_v44 = vstv %s2765_s16 }
 0x299   :  { %v1141_v6 = vadd.f32 %v1140_v63, %v1128_v57  ;;  %v1163_v8 = vmul.f32 0.2, %v1161_v4  ;;  %vm1162_vm0 = vcmp.gt.f32.partialorder %v1161_v4, 0.0  ;;  %v1264_v57 = vperm.slane %v2709_v23, 6 }
 0x29a   :  { %v1244_v63 = vmul.f32 %v1243_v26, %v1242_v37  ;;  %v1280_v3 = vmul.f32 0.2, %v1278_v14  ;;  %v1257_v7 = vmul.f32 %v1256_v44, %v1255_v59  ;;  %vm1279_vm11 = vcmp.gt.f32.partialorder %v1278_v14, 0.0 }
 0x29b   :  { %v1154_v10 = vadd.f32 %v1153_v48, %v1141_v6  ;;  %v1164_v54 = vsel %vm1162_vm0, %v1161_v4, %v1163_v8  ;;  %v1269_v8 = vstv %s1870_s9  ;;  %v2184_v37 = vmov 4.0  }
 0x29c   :  { %v1166_v28 = vmul.f32 %v1165_v15, %v1164_v54  ;;  %v1281_v56 = vsel %vm1279_vm11, %v1278_v14, %v1280_v3  ;;  %v1282_v54 = vstv %s1871_s17 }
 0x29d   :  { %v1283_v25 = vmul.f32 %v1282_v54, %v1281_v56  ;;  %v2022_v56 = vld [vmem:[%s2892_s10 + $0x28] sm:$0xff] }
 0x29e   :  { %v1167_v36 = vadd.f32 %v1166_v28, %v1154_v10 }
 0x29f   :  { %v1171_v52 = vpop.permute.xlu1 %1170 }
 0x2a0   :  { %v1174_v18 = vadd.f32 %v1173_v21, %v1171_v52 }
 0x2a2   :  { %vm1175_vm2 = vcmp.gt.f32.partialorder %v1174_v18, 0.0  ;;  %v1176_v5 = vmul.f32 0.2, %v1174_v18 }
 0x2a4   :  { %v1177_v35 = vsel %vm1175_vm2, %v1174_v18, %v1176_v5 }
 0x2a5   :  { %v1179_v58 = vmul.f32 %v1178_v30, %v1177_v35 }
 0x2a7   :  { %v1180_v45 = vadd.f32 %v1179_v58, %v1167_v36 }
 0x2a8   :  { %v1223_v13 = vpop.permute.xlu1 %1222 }
 0x2a9   :  { %v1193_v2 = vadd.f32 %v1192_v43, %v1180_v45  ;;  %v1226_v19 = vadd.f32 %v1225_v62, %v1223_v13 }
 0x2ab   :  { %v1206_v41 = vadd.f32 %v1205_v46, %v1193_v2  ;;  %vm1227_vm6 = vcmp.gt.f32.partialorder %v1226_v19, 0.0  ;;  %v1228_v40 = vmul.f32 0.2, %v1226_v19 }
 0x2ad   :  { %v1219_v22 = vadd.f32 %v1218_v55, %v1206_v41  ;;  %v1229_v27 = vsel %vm1227_vm6, %v1226_v19, %v1228_v40 }
 0x2ae   :  { %v1231_v16 = vmul.f32 %v1230_v11, %v1229_v27 }
 0x2b0   :  { %v1232_v61 = vadd.f32 %v1231_v16, %v1219_v22 }
 0x2b1   :  { %v1262_v4 = vpop.permute.xlu1 %1261 }
 0x2b2   :  { %v1265_v6 = vadd.f32 %v1264_v57, %v1262_v4  ;;  %v1245_v48 = vadd.f32 %v1244_v63, %v1232_v61  ;;  %v2024_v63 = vld [vmem:[%s2892_s10 + $0x38] sm:$0xff] }
 0x2b3   :  { %1508 = vmatpush.bf16.msra.mxu3 %v2024_v63 }
 0x2b4   :  { %vm1266_vm12 = vcmp.gt.f32.partialorder %v1265_v6, 0.0  ;;  %v1267_v9 = vmul.f32 0.2, %v1265_v6  ;;  %v1258_v10 = vadd.f32 %v1257_v7, %v1245_v48  ;;  %v2023_v48 = vld [vmem:[%s2892_s10 + $0x30] sm:$0xff] }
 0x2b6   :  { %v1268_v15 = vsel %vm1266_vm12, %v1265_v6, %v1267_v9 }
 0x2b7   :  { %v1270_v21 = vmul.f32 %v1269_v8, %v1268_v15  ;;  %1509 = vmatpush.bf16.msra.mxu3 %v2023_v48 }
 0x2b9   :  { %v1271_v49 = vadd.f32 %v1270_v21, %v1258_v10  ;;  %v2021_v21 = vld [vmem:[%s2892_s10 + $0x20] sm:$0xff] }
 0x2bb   :  { %v1284_v52 = vadd.f32 %v1283_v25, %v1271_v49  ;;  %1510 = vmatpush.bf16.msra.mxu3 %v2022_v56 }
 0x2bd   :  { %v1285_v23 = vsel %vm2699_vm7, %v1284_v52, -1e+30  ;;  %v2020_v52 = vld [vmem:[%s2892_s10 + $0x18] sm:$0xff] }
 0x2be   :  { %v1286_v17 = vsel %vm826_vm8, %v1285_v23, -inf }
 0x2bf   :  { %1287 = vmax.xlane.f32.xlu0 %v1286_v17  ;;  %1511 = vmatpush.bf16.msra.mxu3 %v2021_v21 }
 0x2c3   :  { %1512 = vmatpush.bf16.msra.mxu3 %v2020_v52 }
 0x2ef   :  { %v829_v18 = vpop.xlane.xlu0 %828 }
 0x2f0   :  { %v830_v28 = vsub.f32 %v2705_v51, %v829_v18 }
 0x2f2   :  { %v831_v1 = vmul.f32 1.442695, %v830_v28  ;;  %v2019_v28 = vld [vmem:[%s2892_s10 + $0x10] sm:$0xff] }
 0x2f3   :  { %1513 = vmatpush.bf16.msra.mxu3 %v2019_v28  ;;  %v2036_v28 = vld [vmem:[%s2894_s12 + $0x18] sm:$0xff] }
 0x2f4   :  { %2106 = vpow2.f32 %v831_v1 }
 0x2fa   :  { %v2107_v29 = vpop.eup %2106 }
 0x2fb   :  { %v833_v30 = vsel %vm2699_vm7, %v2107_v29, 0.0  ;;  %v2018_v29 = vld [vmem:[%s2892_s10 + $0x8] sm:$0xff] }
 0x2fc   :  { %v834_v5 = vsel %vm826_vm8, %v833_v30, 0.0  ;;  %1514 = vmatpush.bf16.msra.mxu3 %v2018_v29 }
 0x2fd   :  { %835 = vadd.xlane.f32.xlu0 %v834_v5 }
 0x332   :  { %v1288_v32 = vpop.xlane.xlu0 %1287 }
 0x333   :  { %v1289_v34 = vsub.f32 %v1285_v23, %v1288_v32  ;;  %v2017_v32 = vld [vmem:[%s2892_s10] sm:$0xff] }
 0x334   :  { %1515 = vmatpush.bf16.msra.mxu3 %v2017_v32  ;;  %v2033_v32 = vld [vmem:[%s2894_s12] sm:$0xff] }
 0x335   :  { %v1290_v53 = vmul.f32 1.442695, %v1289_v34 }
 0x337   :  { %2108 = vpow2.f32 %v1290_v53 }
 0x33d   :  { %v2109_v33 = vpop.eup %2108 }
 0x33e   :  { %v1292_v35 = vsel %vm2699_vm7, %v2109_v33, 0.0  ;;  %vm854_vm7 = vcmask 31744  }
 0x33f   :  { %v1293_v36 = vsel %vm826_vm8, %v1292_v35, 0.0 }
 0x340   :  { %1294 = vadd.xlane.f32.xlu2 %v1293_v36 }
 0x370   :  { %v836_v51 = vpop.xlane.xlu0 %835 }
 0x371   :  { %2110 = vrcp.f32 %v836_v51  ;;  %v848_v20 = vand.u32 2147483648, %v836_v51  ;;  %v846_v42 = vand.u32 2147483647, %v836_v51  ;;  %vm842_vm14 = vweird.f32 %v836_v51 }
 0x373   :  { %v849_v43 = vor.u32 1.1754944e-38, %v848_v20  ;;  %vm847_vm0 = vcmp.eq.f32.partialorder %v846_v42, 8.507059e+37 }
 0x377   :  { %v2111_v58 = vpop.eup %2110 }
 0x378   :  { %v838_v60 = vmul.f32 %v2111_v58, %v836_v51  ;;  %vm843_vm13 = vweird.f32 %v2111_v58 }
 0x379   :  { %vm844_vm15 = vmor %vm842_vm14, %vm843_vm13 }
 0x37a   :  { %v839_v38 = vsub.f32 1.0, %v838_v60 }
 0x37c   :  { %v840_v39 = vmul.f32 %v2111_v58, %v839_v38 }
 0x37e   :  { %v841_v12 = vadd.f32 %v2111_v58, %v840_v39 }
 0x380   :  { %v845_v45 = vsel %vm844_vm15, %v2111_v58, %v841_v12 }
 0x381   :  { %v850_v0 = vsel %vm847_vm0, %v849_v43, %v845_v45  ;;  %vm1611_vm0 = vcmask 11264  }
 0x382   :  { %v851_v62 = vmul.f32 %v850_v0, %v833_v30 }
 0x384   :  { %v852_v13 = vpack.c.bf16 %v851_v62, %v851_v62 }
 0x386   :  { %1791 = vmatmul.msk.bf16.vlgmr.msrb.gmra.mxu0 %vm854_vm7, %v852_v13  ;;  %v2032_v13 = vld [vmem:[%s2892_s10 + $0x78] sm:$0xff] }
 0x387   :  { %1447 = vmatpush.bf16.msra.mxu0 %v2032_v13 }
 0x3b3   :  { %v1295_v2 = vpop.xlane.xlu2 %1294 }
 0x3b4   :  { %2112 = vrcp.f32 %v1295_v2  ;;  %v1307_v55 = vand.u32 2147483648, %v1295_v2  ;;  %v1305_v50 = vand.u32 2147483647, %v1295_v2  ;;  %vm1301_vm1 = vweird.f32 %v1295_v2 }
 0x3b5   :  { %2114 = vrcp.f32 %v2184_v37 }
 0x3b6   :  { %v1308_v11 = vor.u32 1.1754944e-38, %v1307_v55  ;;  %vm1306_vm3 = vcmp.eq.f32.partialorder %v1305_v50, 8.507059e+37  ;;  %v2030_v50 = vld [vmem:[%s2892_s10 + $0x68] sm:$0xff] }
 0x3ba   :  { %v2113_v46 = vpop.eup %2112 }
 0x3bb   :  { %v1297_v19 = vmul.f32 %v2113_v46, %v1295_v2  ;;  %vm1302_vm8 = vweird.f32 %v2113_v46  ;;  %v2115_v26 = vpop.eup %2114 }
 0x3bc   :  { %vm1303_vm2 = vmor %vm1301_vm1, %vm1302_vm8  ;;  %v883_v14 = vmul.f32 4.0, %v2115_v26  ;;  %vm887_vm4 = vweird.f32 %v2115_v26 }
 0x3bd   :  { %v1298_v47 = vsub.f32 1.0, %v1297_v19  ;;  %v2031_v19 = vld [vmem:[%s2892_s10 + $0x70] sm:$0xff] }
 0x3be   :  { %v884_v16 = vsub.f32 1.0, %v883_v14  ;;  %1448 = vmatpush.bf16.msra.mxu0 %v2031_v19  ;;  %v2027_v14 = vld [vmem:[%s2892_s10 + $0x50] sm:$0xff] }
 0x3bf   :  { %v1299_v31 = vmul.f32 %v2113_v46, %v1298_v47 }
 0x3c0   :  { %v885_v57 = vmul.f32 %v2115_v26, %v884_v16 }
 0x3c1   :  { %v1300_v24 = vadd.f32 %v2113_v46, %v1299_v31 }
 0x3c2   :  { %v886_v6 = vadd.f32 %v2115_v26, %v885_v57  ;;  %1449 = vmatpush.bf16.msra.mxu0 %v2030_v50  ;;  %v2025_v57 = vld [vmem:[%s2892_s10 + $0x40] sm:$0xff] }
 0x3c3   :  { %v1304_v41 = vsel %vm1303_vm2, %v2113_v46, %v1300_v24 }
 0x3c4   :  { %v1309_v40 = vsel %vm1306_vm3, %v1308_v11, %v1304_v41  ;;  %v2791_v10 = vsel %vm887_vm4, %v2115_v26, %v886_v6  ;;  %v2029_v41 = vld [vmem:[%s2892_s10 + $0x60] sm:$0xff] }
 0x3c5   :  { %v1310_v22 = vmul.f32 %v1309_v40, %v1292_v35 }
 0x3c6   :  { %1450 = vmatpush.bf16.msra.mxu0 %v2029_v41 }
 0x3c7   :  { %v1311_v27 = vpack.c.bf16 %v1310_v22, %v1310_v22 }
 0x3c9   :  { %1872 = vmatmul.msk.bf16.vlgmr.msrb.gmra.mxu3 %vm854_vm7, %v1311_v27  ;;  %v2028_v27 = vld [vmem:[%s2892_s10 + $0x58] sm:$0xff] }
 0x3ca   :  { %1451 = vmatpush.bf16.msra.mxu0 %v2028_v27 }
 0x3ce   :  { %1452 = vmatpush.bf16.msra.mxu0 %v2027_v14 }
 0x403   :  { %v871_v59 = vpop.f32.mrf.mxu0 }
 0x404   :  { %v875_v44 = vsel %vm136_vm9, %v871_v59, 0.0 }
 0x405   :  { %v876_v61 = vrot.slane %v875_v44, 4 }
 0x407   :  { %v877_v4 = vadd.f32 %v876_v61, %v875_v44  ;;  %v2026_v44 = vld [vmem:[%s2892_s10 + $0x48] sm:$0xff] }
 0x408   :  { %1453 = vmatpush.bf16.msra.mxu0 %v2026_v44 }
 0x409   :  { %v878_v3 = vrot.slane %v877_v4, 2 }
 0x40b   :  { %v879_v7 = vadd.f32 %v878_v3, %v877_v4  ;;  %v873_v8 = vpop.f32.mrf.mxu0 }
 0x40c   :  { %1454 = vmatpush.bf16.msra.mxu0 %v2025_v57 }
 0x40d   :  { %v880_v9 = vrot.slane %v879_v7, 1 }
 0x40f   :  { %v881_v15 = vadd.f32 %v880_v9, %v879_v7 }
 0x411   :  { %v889_v54 = vmul.f32 %v2791_v10, %v881_v15 }
 0x413   :  { %v890_v49 = vsub.f32 %v871_v59, %v889_v54 }
 0x415   :  { %v891_v25 = vmul.f32 %v890_v49, %v890_v49 }
 0x417   :  { %v892_v23 = vsel %vm136_vm9, %v891_v25, 0.0 }
 0x418   :  { %v893_v17 = vrot.slane %v892_v23, 4 }
 0x41a   :  { %v894_v18 = vadd.f32 %v893_v17, %v892_v23  ;;  %v2039_v23 = vld [vmem:[%s2894_s12 + $0x30] sm:$0xff]  ;;  %v2038_v17 = vld [vmem:[%s2894_s12 + $0x28] sm:$0xff] }
 0x41c   :  { %v895_v1 = vrot.slane %v894_v18, 2 }
 0x41e   :  { %v896_v30 = vadd.f32 %v895_v1, %v894_v18  ;;  %v2037_v18 = vld [vmem:[%s2894_s12 + $0x20] sm:$0xff]  ;;  %v2035_v1 = vld [vmem:[%s2894_s12 + $0x10] sm:$0xff] }
 0x420   :  { %v897_v5 = vrot.slane %v896_v30, 1 }
 0x422   :  { %v898_v34 = vadd.f32 %v897_v5, %v896_v30  ;;  %v2034_v5 = vld [vmem:[%s2894_s12 + $0x8] sm:$0xff] }
 0x424   :  { %v899_v53 = vmul.f32 %v898_v34, %v2791_v10  ;;  %v2104_v34 = vld [vmem:[%s2893_s11] ss:$0 sm:$0xff] }
 0x426   :  { %v900_v33 = vadd.f32 1e-05, %v899_v53 }
 0x428   :  { %2116 = vrsqrt.f32 %v900_v33  ;;  %vm907_vm6 = vweird.f32 %v900_v33 }
 0x42e   :  { %v2117_v35 = vpop.eup %2116 }
 0x42f   :  { %v902_v36 = vmul.f32 %v2117_v35, %v900_v33  ;;  %vm908_vm5 = vweird.f32 %v2117_v35 }
 0x430   :  { %vm909_vm10 = vmor %vm907_vm6, %vm908_vm5 }
 0x431   :  { %v903_v51 = vmul.f32 %v2117_v35, %v902_v36 }
 0x433   :  { %v904_v58 = vmul.f32 0.5, %v903_v51 }
 0x435   :  { %v905_v60 = vsub.f32 1.5, %v904_v58 }
 0x437   :  { %v906_v38 = vmul.f32 %v2117_v35, %v905_v60 }
 0x439   :  { %v910_v20 = vsel %vm909_vm10, %v2117_v35, %v906_v38  ;;  %v2105_v38 = vld [vmem:[%s2895_s13] ss:$0 sm:$0xff] }
 0x43a   :  { %v911_v39 = vmul.f32 %v910_v20, %v890_v49 }
 0x43c   :  { %vm912_vm11 = vcmp.gt.f32.partialorder %v911_v39, 0.0  ;;  %v913_v42 = vmul.f32 0.2, %v911_v39 }
 0x43e   :  { %v914_v12 = vsel %vm912_vm11, %v911_v39, %v913_v42 }
 0x43f   :  { %v1397_v43 = vpack.c.bf16 %v914_v12, %v914_v12 }
 0x441   :  { %1516 = vmatmul.bf16.vlgmr.msra.gmra.mxu3 %v1397_v43 }
 0x44c   :  { %v1328_v45 = vpop.f32.mrf.mxu3 }
 0x44d   :  { %v1332_v0 = vsel %vm136_vm9, %v1328_v45, 0.0 }
 0x44e   :  { %v1333_v62 = vrot.slane %v1332_v0, 4 }
 0x450   :  { %v1334_v2 = vadd.f32 %v1333_v62, %v1332_v0 }
 0x452   :  { %v1335_v46 = vrot.slane %v1334_v2, 2 }
 0x454   :  { %v1336_v47 = vadd.f32 %v1335_v46, %v1334_v2  ;;  %v1330_v55 = vpop.f32.mrf.mxu3 }
 0x456   :  { %v1337_v31 = vrot.slane %v1336_v47, 1 }
 0x458   :  { %v1338_v24 = vadd.f32 %v1337_v31, %v1336_v47 }
 0x45a   :  { %v1339_v11 = vmul.f32 %v1338_v24, %v2791_v10 }
 0x45c   :  { %v1340_v40 = vsub.f32 %v1328_v45, %v1339_v11 }
 0x45e   :  { %v1341_v22 = vmul.f32 %v1340_v40, %v1340_v40 }
 0x460   :  { %v1342_v37 = vsel %vm136_vm9, %v1341_v22, 0.0 }
 0x461   :  { %v1343_v26 = vrot.slane %v1342_v37, 4 }
 0x463   :  { %v1344_v16 = vadd.f32 %v1343_v26, %v1342_v37 }
 0x465   :  { %v1345_v59 = vrot.slane %v1344_v16, 2 }
 0x467   :  { %v1346_v61 = vadd.f32 %v1345_v59, %v1344_v16 }
 0x469   :  { %v1347_v63 = vrot.slane %v1346_v61, 1 }
 0x46b   :  { %v1348_v4 = vadd.f32 %v1347_v63, %v1346_v61 }
 0x46d   :  { %v1349_v3 = vmul.f32 %v1348_v4, %v2791_v10  ;;  %v2040_v10 = vld [vmem:[%s2894_s12 + $0x38] sm:$0xff] }
 0x46e   :  { %1598 = vmatpush.bf16.msra.mxu1 %v2040_v10 }
 0x46f   :  { %v1350_v6 = vadd.f32 1e-05, %v1349_v3 }
 0x471   :  { %2118 = vrsqrt.f32 %v1350_v6  ;;  %vm1357_vm12 = vweird.f32 %v1350_v6 }
 0x472   :  { %1599 = vmatpush.bf16.msra.mxu1 %v2039_v23 }
 0x476   :  { %1600 = vmatpush.bf16.msra.mxu1 %v2038_v17 }
 0x477   :  { %v2119_v48 = vpop.eup %2118 }
 0x478   :  { %v1352_v7 = vmul.f32 %v2119_v48, %v1350_v6  ;;  %vm1358_vm9 = vweird.f32 %v2119_v48 }
 0x479   :  { %vm1359_vm13 = vmor %vm1357_vm12, %vm1358_vm9 }
 0x47a   :  { %v1353_v8 = vmul.f32 %v2119_v48, %v1352_v7  ;;  %1601 = vmatpush.bf16.msra.mxu1 %v2037_v18 }
 0x47c   :  { %v1354_v9 = vmul.f32 0.5, %v1353_v8 }
 0x47e   :  { %v1355_v56 = vsub.f32 1.5, %v1354_v9  ;;  %1602 = vmatpush.bf16.msra.mxu1 %v2036_v28 }
 0x480   :  { %v1356_v15 = vmul.f32 %v2119_v48, %v1355_v56 }
 0x482   :  { %v1360_v54 = vsel %vm1359_vm13, %v2119_v48, %v1356_v15  ;;  %1603 = vmatpush.bf16.msra.mxu1 %v2035_v1 }
 0x483   :  { %v1361_v21 = vmul.f32 %v1360_v54, %v1340_v40 }
 0x485   :  { %vm1362_vm14 = vcmp.gt.f32.partialorder %v1361_v21, 0.0  ;;  %v1363_v49 = vmul.f32 0.2, %v1361_v21 }
 0x486   :  { %1604 = vmatpush.bf16.msra.mxu1 %v2034_v5 }
 0x487   :  { %v1364_v25 = vsel %vm1362_vm14, %v1361_v21, %v1363_v49 }
 0x488   :  { %v1398_v52 = vpack.c.bf16 %v1364_v25, %v1364_v25 }
 0x48a   :  { %1455 = vmatmul.bf16.vlgmr.msra.gmra.mxu0 %v1398_v52  ;;  %1605 = vmatpush.bf16.msra.mxu1 %v2033_v32 }
 0x4c4   :  { %v1517_v29 = vpop.f32.mrf.mxu3 }
 0x4cc   :  { %v1519_v30 = vpop.f32.mrf.mxu3 }
 0x507   :  { %v1456_v53 = vpop.f32.mrf.mxu0 }
 0x508   :  { %v1518_v33 = vadd.f32 %v1517_v29, %v1456_v53 }
 0x50a   :  { %v1525_v35 = vadd.f32 %v2104_v34, %v1518_v33 }
 0x50c   :  { %vm1526_vm15 = vcmp.gt.f32.partialorder %v1525_v35, 0.0  ;;  %v1527_v36 = vmul.f32 0.2, %v1525_v35 }
 0x50e   :  { %v1528_v51 = vsel %vm1526_vm15, %v1525_v35, %v1527_v36 }
 0x50f   :  { %v1529_v58 = vpack.c.bf16 %v1528_v51, %v1528_v51  ;;  %v1458_v60 = vpop.f32.mrf.mxu0 }
 0x511   :  { %1606 = vmatmul.bf16.vlgmr.msra.gmra.mxu1 %v1529_v58 }
 0x58e   :  { %v1607_v20 = vpop.f32.mrf.mxu1 }
 0x58f   :  { %v1608_v39 = vadd.f32 %v2105_v38, %v1607_v20 }
 0x591   :  { %v1613_v42 = vsel %vm1611_vm0, %v1608_v39, -inf  ;;  %1612 = vst.msk [vmem:[%s2896_s14] sm:$0xf] %vm1611_vm0, %v1608_v39 }
 0x592   :  { %1614 = vmax.xlane.f32.xlu0 %v1613_v42 }
 0x596   :  { %v1609_v12 = vpop.f32.mrf.mxu1 }
 0x605   :  { %v1615_v43 = vpop.xlane.xlu0 %1614 }
 0x606   :  { %v1616_v45 = vsub.f32 %v1608_v39, %v1615_v43 }
 0x608   :  { %v1617_v0 = vmul.f32 1.442695, %v1616_v45 }
 0x60a   :  { %2120 = vpow2.f32 %v1617_v0 }
 0x610   :  { %v2121_v62 = vpop.eup %2120 }
 0x611   :  { %v1619_v13 = vsel %vm1611_vm0, %v2121_v62, 0.0 }
 0x612   :  { %1620 = vadd.xlane.f32.xlu1 %v1619_v13 }
 0x685   :  { %v1621_v2 = vpop.xlane.xlu1 %1620 }
 0x686   :  { %2122 = vrcp.f32 %v1621_v2  ;;  %v1633_v55 = vand.u32 2147483648, %v1621_v2  ;;  %v1631_v50 = vand.u32 2147483647, %v1621_v2  ;;  %vm1627_vm8 = vweird.f32 %v1621_v2 }
 0x688   :  { %v1634_v11 = vor.u32 1.1754944e-38, %v1633_v55  ;;  %vm1632_vm2 = vcmp.eq.f32.partialorder %v1631_v50, 8.507059e+37 }
 0x68c   :  { %v2123_v46 = vpop.eup %2122 }
 0x68d   :  { %v1623_v19 = vmul.f32 %v2123_v46, %v1621_v2  ;;  %vm1628_vm7 = vweird.f32 %v2123_v46 }
 0x68e   :  { %vm1629_vm1 = vmor %vm1627_vm8, %vm1628_vm7 }
 0x68f   :  { %v1624_v47 = vsub.f32 1.0, %v1623_v19 }
 0x691   :  { %v1625_v31 = vmul.f32 %v2123_v46, %v1624_v47 }
 0x693   :  { %v1626_v24 = vadd.f32 %v2123_v46, %v1625_v31 }
 0x695   :  { %v1630_v41 = vsel %vm1629_vm1, %v2123_v46, %v1626_v24 }
 0x696   :  { %v1635_v40 = vsel %vm1632_vm2, %v1634_v11, %v1630_v41 }
 0x697   :  { %v1636_v22 = vmul.f32 %v2121_v62, %v1635_v40 }
 0x699   :  { %1637 = vst.msk [vmem:[%s2897_s15] sm:$0xf] %vm1611_vm0, %v1636_v22 }
 0x69a   :  { %1646 = vsyncpa [#allocation4], 1 }
 0x69b   :  { %1647 = vsyncpa [#allocation5], 1 }

</bundles_post_ra>
